<compile_context>
chip_gen: v7x
topology: tpu7x:2x2x1
jax: 0.10.0
libtpu: 0.0.40
codegen_flags: <defaults>
</compile_context>

<pallas_src>
import functools

import jax
import jax.numpy as jnp
import numpy as np
from jax.experimental import pallas as pl
from jax.experimental.pallas import tpu as pltpu

_EPS = 1e-5                      # nn.BatchNorm3d default eps
_LANE = 128                      # lane width -> channel padding target
_SUBLANE_BF16 = 16               # bf16 sublane tile -> row-stride padding target
_VMEM_LIMIT = 32 * 1024 * 1024   # safe on v5e/v6e/v7x; actual use is < 2 MiB


def _round_up(x, m):
    return ((x + m - 1) // m) * m


def _pick_row_tile(rows):
    """Divisor row tile preferring >=2 grid steps; always returns a divisor."""
    for t in (1024, 512, 256, 128, 64, 32, 16, 8):
        if rows % t == 0 and rows // t >= 2:
            return t
    for t in (1024, 512, 256, 128, 64, 32, 16, 8):
        if rows % t == 0:
            return t
    return rows


def _pick_dz(d, rows_per_plane, target_rows=512):
    """Planes per conv grid step: largest divisor of d with a <=target chunk
    and >=2 z-steps (keeps the grid parallel/pipelined)."""
    best = 1
    for dz in range(1, d + 1):
        if d % dz == 0 and dz * rows_per_plane <= target_rows and d // dz >= 2:
            best = dz
    return best


# ---------------------------------------------------------------------------
# Kernel 1: 3x3x3 conv as 9 aligned shifted matmuls + partial BN stats
# ---------------------------------------------------------------------------
def _conv9_stats_kernel(x_ref, w_ref, y_ref, stats_ref, *, dz, h, w, w_row, p_row):
    """One (batch, z-chunk) per grid step.

    x_ref    : (slab_rows, Cp) bf16 — packed padded slab of this batch
               (rows ordered zq, yq, xq; kw x Cin packed into lanes)
    w_ref    : (9, Cp, Cp)     bf16 — folded weight, tap (kd,kh) major
    y_ref    : (dz*h*w_row, Cp) bf16 — raw conv output rows (x-halo cols kept)
    stats_ref: (1, 8, Cp) f32 — row0 = partial sum, row1 = partial sum(y*y)
    """
    cp = w_ref.shape[-1]
    rows_per_plane = h * w_row
    z0 = pl.program_id(1) * dz

    # Interior-x mask (halo / stride-padding columns excluded from BN stats).
    col = jax.lax.broadcasted_iota(jnp.int32, (rows_per_plane, 1), 0) % w_row
    xmask = jnp.logical_and(col >= 1, col <= w)

    s_acc = jnp.zeros((1, cp), jnp.float32)
    q_acc = jnp.zeros((1, cp), jnp.float32)

    for pz in range(dz):                       # static loop over planes in chunk
        base = (z0 + pz) * p_row
        acc = jnp.zeros((rows_per_plane, cp), jnp.float32)   # lives in vregs
        for kd in range(3):
            for kh in range(3):
                start = pl.multiple_of(base + kd * p_row + kh * w_row, w_row)
                patch = x_ref[pl.ds(start, rows_per_plane), :]   # contiguous 2-D
                acc = acc + jnp.dot(patch, w_ref[kd * 3 + kh],
                                    preferred_element_type=jnp.float32)
        # single store per chunk
        y_ref[pl.ds(pz * rows_per_plane, rows_per_plane), :] = acc.astype(y_ref.dtype)
        ym = jnp.where(xmask, acc, 0.0)
        s_acc = s_acc + jnp.sum(ym, axis=0, keepdims=True)
        q_acc = q_acc + jnp.sum(ym * ym, axis=0, keepdims=True)

    # TODO(synk): sum/sumsq (E[y^2]-E[y]^2) can cancel for large means; a
    # Welford/centered accumulation would be safer for trained activations.
    stats_ref[...] = jnp.concatenate(
        [s_acc, q_acc, jnp.zeros((6, cp), jnp.float32)], axis=0)[None]


def _conv3d_9tap(x_packed, w9, *, n, d, h, w, w_row, dz):
    """x_packed: (n*(d+2)*(h+2)*w_row, Cp) bf16; w9: (9, Cp, Cp) bf16.
    Returns y_raw (n*d*h*w_row, Cp) bf16 and partial stats (n*zs, 8, Cp) f32."""
    cp = w9.shape[-1]
    p_row = (h + 2) * w_row
    slab_rows = (d + 2) * p_row
    zs = d // dz
    rows_per_step = dz * h * w_row

    kernel = functools.partial(_conv9_stats_kernel, dz=dz, h=h, w=w,
                               w_row=w_row, p_row=p_row)

    flops = 2 * n * d * h * w_row * 9 * cp * cp
    bytes_accessed = (x_packed.size * 2 + w9.size * 2
                      + n * d * h * w_row * cp * 2
                      + n * zs * 8 * cp * 4)

    grid_spec = pltpu.PrefetchScalarGridSpec(
        num_scalar_prefetch=0,
        grid=(n, zs),
        in_specs=[
            # Whole padded slab of one batch, resident across its z-steps.
            pl.BlockSpec((slab_rows, cp), lambda b, z: (b, 0)),
            # Constant weight block.  TODO(synk): pipeline_mode=pl.Buffered(1)
            # would save one weight buffer; kept default for portability.
            pl.BlockSpec((9, cp, cp), lambda b, z: (0, 0, 0)),
        ],
        out_specs=[
            pl.BlockSpec((rows_per_step, cp), lambda b, z: (b * zs + z, 0)),
            pl.BlockSpec((1, 8, cp), lambda b, z: (b * zs + z, 0, 0)),
        ],
    )

    return pl.pallas_call(
        kernel,
        out_shape=(
            jax.ShapeDtypeStruct((n * d * h * w_row, cp), jnp.bfloat16),
            jax.ShapeDtypeStruct((n * zs, 8, cp), jnp.float32),
        ),
        grid_spec=grid_spec,
        compiler_params=pltpu.CompilerParams(
            dimension_semantics=("parallel", "parallel"),
            vmem_limit_bytes=_VMEM_LIMIT,
        ),
        cost_estimate=pl.CostEstimate(flops=flops, transcendentals=0,
                                      bytes_accessed=bytes_accessed),
    )(x_packed, w9)


# ---------------------------------------------------------------------------
# Kernel 2: apply folded BN (scale, shift) [+ residual] + ReLU, row-tiled
# ---------------------------------------------------------------------------
def _scale_shift_relu_kernel(y_ref, sc_ref, sh_ref, o_ref):
    y = y_ref[...].astype(jnp.float32)
    o_ref[...] = jnp.maximum(y * sc_ref[...] + sh_ref[...], 0.0).astype(o_ref.dtype)


def _scale_shift_add_relu_kernel(y_ref, sc_ref, sh_ref, r_ref, o_ref):
    y = y_ref[...].astype(jnp.float32)
    o = y * sc_ref[...] + sh_ref[...] + r_ref[...].astype(jnp.float32)
    o_ref[...] = jnp.maximum(o, 0.0).astype(o_ref.dtype)


def _bn_apply(y_raw, scale, shift, residual=None, out_dtype=jnp.bfloat16):
    rows, cp = y_raw.shape
    tile = _pick_row_tile(rows)
    grid = (rows // tile,)

    row_spec = pl.BlockSpec((tile, cp), lambda i: (i, 0))
    vec_spec = pl.BlockSpec((1, cp), lambda i: (0, 0))

    in_specs = [row_spec, vec_spec, vec_spec]
    args = [y_raw, scale, shift]
    kernel = _scale_shift_relu_kernel
    if residual is not None:
        in_specs.append(row_spec)
        args.append(residual)
        kernel = _scale_shift_add_relu_kernel

    return pl.pallas_call(
        kernel,
        out_shape=jax.ShapeDtypeStruct((rows, cp), out_dtype),
        grid_spec=pltpu.PrefetchScalarGridSpec(
            num_scalar_prefetch=0, grid=grid,
            in_specs=in_specs, out_specs=row_spec),
        compiler_params=pltpu.CompilerParams(
            dimension_semantics=("parallel",),
            vmem_limit_bytes=_VMEM_LIMIT),
    )(*args)


# ---------------------------------------------------------------------------
# JAX glue: packing, weight folding, BN fold, full BasicBlock forward
# ---------------------------------------------------------------------------
def _pack_width_input(x_vol, cp, w_row):
    """(N, D, H, W, Cin) volume -> flat packed slab (N*(D+2)*(H+2)*w_row, cp) bf16.
    Each row holds [x(.,x-1,:), x(.,x,:), x(.,x+1,:)] in the leading 3*Cin lanes;
    spatial halos are zero; the x-row stride is padded to w_row (sublane tile)."""
    n, d, h, w, cin = x_vol.shape
    xp = jnp.pad(x_vol, ((0, 0), (1, 1), (1, 1), (2, 2), (0, 0)))
    packed = jnp.concatenate(
        [xp[:, :, :, 0:w + 2, :], xp[:, :, :, 1:w + 3, :], xp[:, :, :, 2:w + 4, :]],
        axis=-1)                                             # (N,D+2,H+2,W+2,3*Cin)
    packed = jnp.pad(packed, ((0, 0), (0, 0), (0, 0),
                              (0, w_row - (w + 2)), (0, cp - 3 * cin)))
    return packed.reshape(n * (d + 2) * (h + 2) * w_row, cp).astype(jnp.bfloat16)


def _fold_conv_weight9(w_oidhw, cp):
    """PyTorch Conv3d weight (O, I, 3, 3, 3) -> (9, Cp, Cp) bf16 where rows of
    each (kd,kh) tap are (kw-major, Cin-minor) to match the packed lanes."""
    o, i = int(w_oidhw.shape[0]), int(w_oidhw.shape[1])
    wt = jnp.transpose(w_oidhw, (2, 3, 4, 1, 0))             # (kd, kh, kw, I, O)
    wt = wt.reshape(3, 3, 3 * i, o)                          # merge (kw, I)
    wt = jnp.pad(wt, ((0, 0), (0, 0), (0, cp - 3 * i), (0, cp - o)))
    return wt.reshape(9, cp, cp).astype(jnp.bfloat16)


def _pad_vec(v, cp):
    c = int(v.shape[0])
    return jnp.pad(v, (0, cp - c)).reshape(1, cp).astype(jnp.float32)


def _fold_bn(s, sq, gamma_p, beta_p, count):
    """Fold training-mode BatchNorm3d (batch stats) into (scale, shift)."""
    mean = s / count
    var = jnp.maximum(sq / count - mean * mean, 0.0)   # biased variance, f32
    inv = jax.lax.rsqrt(var + _EPS)
    scale = gamma_p * inv
    shift = beta_p - mean * scale
    return scale, shift


def basic_block_forward(x_ncdhw, params):
    """BasicBlock forward (stride=1, downsample=None). Input/output NCDHW f32."""
    n, cin, d, h, w = x_ncdhw.shape
    cp = params["w1"].shape[-1]
    w_row = _round_up(w + 2, _SUBLANE_BF16)
    rows = n * d * h * w
    dz = _pick_dz(d, h * w_row)

    x_vol = jnp.transpose(x_ncdhw, (0, 2, 3, 4, 1))          # NDHWC f32

    # conv1 -> bn1 -> relu
    x1_packed = _pack_width_input(x_vol, cp, w_row)
    y1_raw, st1 = _conv3d_9tap(x1_packed, params["w1"], n=n, d=d, h=h, w=w,
                               w_row=w_row, dz=dz)
    s1 = jnp.sum(st1, axis=0)                                # (8, Cp) partial reduce
    sc1, sh1 = _fold_bn(s1[0:1], s1[1:2], params["g1"], params["b1"], rows)
    y1 = _bn_apply(y1_raw, sc1, sh1, out_dtype=jnp.bfloat16)

    # extract interior voxels / real channels, repack for conv2
    # TODO(synk): bn1+ReLU could be fused into the conv2 prologue (needs halo
    # re-zeroing after the affine); kept as a separate mem-bound pass here.
    y1_vol = y1.reshape(n, d, h, w_row, cp)[:, :, :, 1:w + 1, :cin]
    x2_packed = _pack_width_input(y1_vol, cp, w_row)

    # conv2 -> bn2 -> (+ residual) -> relu
    y2_raw, st2 = _conv3d_9tap(x2_packed, params["w2"], n=n, d=d, h=h, w=w,
                               w_row=w_row, dz=dz)
    s2 = jnp.sum(st2, axis=0)
    sc2, sh2 = _fold_bn(s2[0:1], s2[1:2], params["g2"], params["b2"], rows)

    y2_int = y2_raw.reshape(n, d, h, w_row, cp)[:, :, :, 1:w + 1, :]
    y2_int = y2_int.reshape(rows, cp)

    res = jnp.pad(x_vol, ((0, 0), (0, 0), (0, 0), (0, 0), (0, cp - cin)))
    res = res.reshape(rows, cp).astype(jnp.bfloat16)

    out = _bn_apply(y2_int, sc2, sh2, residual=res, out_dtype=jnp.bfloat16)
    out = out.reshape(n, d, h, w, cp)[..., :cin].astype(jnp.float32)
    return jnp.transpose(out, (0, 4, 1, 2, 3))               # back to NCDHW


# ---------------------------------------------------------------------------
# Pure-JAX f32 reference (mirrors the PyTorch forward) for a correctness check
# ---------------------------------------------------------------------------
def _reference_forward(x, w1_pt, w2_pt, g1, b1, g2, b2):
    def conv(x, w):
        return jax.lax.conv_general_dilated(
            x, w, window_strides=(1, 1, 1),
            padding=((1, 1), (1, 1), (1, 1)),
            dimension_numbers=("NCDHW", "OIDHW", "NCDHW"),
            precision=jax.lax.Precision.HIGHEST)

    def bn(y, g, b):
        mean = jnp.mean(y, axis=(0, 2, 3, 4), keepdims=True)
        var = jnp.mean(jnp.square(y - mean), axis=(0, 2, 3, 4), keepdims=True)
        return ((y - mean) * jax.lax.rsqrt(var + _EPS)
                * g.reshape(1, -1, 1, 1, 1) + b.reshape(1, -1, 1, 1, 1))

    out = jax.nn.relu(bn(conv(x, w1_pt), g1, b1))
    out = bn(conv(out, w2_pt), g2, b2) + x
    return jax.nn.relu(out)


if __name__ == "__main__":
    key = jax.random.PRNGKey(0)
    kx, kw1, kw2, kg1, kb1, kg2, kb2 = jax.random.split(key, 7)

    batch, planes, s = 2, 8, 8            # in_planes == planes == 8, D=H=W=8
    cp = max(_LANE, _round_up(planes, _LANE), _round_up(3 * planes, _LANE))

    x = jax.random.normal(kx, (batch, planes, s, s, s), jnp.float32)
    w1_pt = 0.1 * jax.random.normal(kw1, (planes, planes, 3, 3, 3), jnp.float32)
    w2_pt = 0.1 * jax.random.normal(kw2, (planes, planes, 3, 3, 3), jnp.float32)
    g1 = 1.0 + 0.1 * jax.random.normal(kg1, (planes,), jnp.float32)
    b1 = 0.1 * jax.random.normal(kb1, (planes,), jnp.float32)
    g2 = 1.0 + 0.1 * jax.random.normal(kg2, (planes,), jnp.float32)
    b2 = 0.1 * jax.random.normal(kb2, (planes,), jnp.float32)

    params = {
        "w1": _fold_conv_weight9(w1_pt, cp), "w2": _fold_conv_weight9(w2_pt, cp),
        "g1": _pad_vec(g1, cp), "b1": _pad_vec(b1, cp),
        "g2": _pad_vec(g2, cp), "b2": _pad_vec(b2, cp),
    }

    out = jax.jit(basic_block_forward)(x, params)
    out = jax.block_until_ready(out)

    ref = _reference_forward(x, w1_pt, w2_pt, g1, b1, g2, b2)
    np.testing.assert_allclose(np.asarray(out), np.asarray(ref),
                               rtol=5e-2, atol=5e-2)

    print("KERNEL_OK")
</pallas_src>

<mosaic_0001>
module attributes {stable_mosaic.version = 11 : i64} {
  func.func @_conv9_stats_kernel(%arg0: i32, %arg1: i32, %arg2: memref<1600x128xbf16, #tpu.memory_space<vmem>>, %arg3: memref<9x128x128xbf16, #tpu.memory_space<vmem>>, %arg4: memref<512x128xbf16, #tpu.memory_space<vmem>>, %arg5: memref<1x8x128xf32, #tpu.memory_space<vmem>>) attributes {dimension_semantics = [#tpu.dimension_semantics<parallel>, #tpu.dimension_semantics<parallel>], iteration_bounds = array<i64: 2, 2>, scalar_prefetch = 0 : i64, scratch_operands = 0 : i64, tpu.core_type = #tpu.core_type<tc>, window_params = [{transform_indices = @transform_0, window_bounds = array<i64: 1600, 128>}, {pipeline_mode = #tpu.pipeline_mode<synchronous>, transform_indices = @transform_1, window_bounds = array<i64: 9, 128, 128>}, {transform_indices = @transform_2, window_bounds = array<i64: 512, 128>}, {transform_indices = @transform_3, window_bounds = array<i64: 1, 8, 128>}]} {
    %c4_i32 = arith.constant 4 : i32
    %0 = arith.muli %arg1, %c4_i32 : i32
    %1 = tpu.iota {dimensions = array<i32: 0>} : vector<128x1xi32>
    %c16_i32 = arith.constant 16 : i32
    %c0_i32 = arith.constant 0 : i32
    %2 = arith.cmpi eq, %c16_i32, %c0_i32 : i32
    %c1_i32 = arith.constant 1 : i32
    %3 = arith.select %2, %c1_i32, %c16_i32 : i32
    %4 = vector.broadcast %3 : i32 to vector<128x1xi32>
    %5 = arith.remsi %1, %4 : vector<128x1xi32>
    %c0_i32_0 = arith.constant 0 : i32
    %6 = vector.broadcast %c0_i32_0 : i32 to vector<128x1xi32>
    %7 = arith.cmpi ne, %5, %6 : vector<128x1xi32>
    %c0_i32_1 = arith.constant 0 : i32
    %8 = vector.broadcast %c0_i32_1 : i32 to vector<128x1xi32>
    %9 = arith.cmpi slt, %5, %8 : vector<128x1xi32>
    %c0_i32_2 = arith.constant 0 : i32
    %10 = arith.cmpi slt, %3, %c0_i32_2 : i32
    %11 = vector.broadcast %10 : i1 to vector<128x1xi1>
    %12 = vector.broadcast %11 : vector<128x1xi1> to vector<128x1xi1>
    %13 = arith.xori %9, %12 : vector<128x1xi1>
    %14 = arith.andi %13, %7 : vector<128x1xi1>
    %15 = vector.broadcast %3 : i32 to vector<128x1xi32>
    %16 = arith.addi %5, %15 : vector<128x1xi32>
    %17 = arith.select %14, %16, %5 : vector<128x1xi1>, vector<128x1xi32>
    %c1_i32_3 = arith.constant 1 : i32
    %18 = vector.broadcast %c1_i32_3 : i32 to vector<128x1xi32>
    %19 = arith.cmpi sge, %17, %18 : vector<128x1xi32>
    %c8_i32 = arith.constant 8 : i32
    %20 = vector.broadcast %c8_i32 : i32 to vector<128x1xi32>
    %21 = arith.cmpi sle, %17, %20 : vector<128x1xi32>
    %22 = arith.andi %19, %21 : vector<128x1xi1>
    %cst = arith.constant 0.000000e+00 : f32
    %23 = vector.broadcast %cst : f32 to vector<1x128xf32>
    %cst_4 = arith.constant 0.000000e+00 : f32
    %24 = vector.broadcast %cst_4 : f32 to vector<1x128xf32>
    %c0_i32_5 = arith.constant 0 : i32
    %25 = arith.addi %0, %c0_i32_5 : i32
    %c160_i32 = arith.constant 160 : i32
    %26 = arith.muli %25, %c160_i32 : i32
    %cst_6 = arith.constant 0.000000e+00 : f32
    %27 = vector.broadcast %cst_6 : f32 to vector<128x128xf32>
    %c0_i32_7 = arith.constant 0 : i32
    %28 = arith.addi %26, %c0_i32_7 : i32
    %c0_i32_8 = arith.constant 0 : i32
    %29 = arith.addi %28, %c0_i32_8 : i32
    %30 = tpu.assume_multiple %29, 16 : i32
    %31 = arith.index_cast %30 : i32 to index
    %c0 = arith.constant 0 : index
    %32 = vector.load %arg2[%31, %c0] : memref<1600x128xbf16, #tpu.memory_space<vmem>>, vector<128x128xbf16>
    %c0_9 = arith.constant 0 : index
    %c0_10 = arith.constant 0 : index
    %c0_11 = arith.constant 0 : index
    %33 = vector.load %arg3[%c0_9, %c0_10, %c0_11] : memref<9x128x128xbf16, #tpu.memory_space<vmem>>, vector<1x128x128xbf16>
    %34 = vector.shape_cast %33 : vector<1x128x128xbf16> to vector<128x128xbf16>
    %cst_12 = arith.constant dense<0.000000e+00> : vector<128x128xf32>
    %35 = tpu.matmul %32, %34, %cst_12 {dimension_numbers = #tpu.dot_dimension_numbers<[1], [0], [0], [1], [0, 0, 1, 1], [], []>} : vector<128x128xbf16>, vector<128x128xbf16>, vector<128x128xf32> -> vector<128x128xf32>
    %36 = arith.addf %27, %35 : vector<128x128xf32>
    %c0_i32_13 = arith.constant 0 : i32
    %37 = arith.addi %26, %c0_i32_13 : i32
    %c16_i32_14 = arith.constant 16 : i32
    %38 = arith.addi %37, %c16_i32_14 : i32
    %39 = tpu.assume_multiple %38, 16 : i32
    %40 = arith.index_cast %39 : i32 to index
    %c0_15 = arith.constant 0 : index
    %41 = vector.load %arg2[%40, %c0_15] : memref<1600x128xbf16, #tpu.memory_space<vmem>>, vector<128x128xbf16>
    %c1 = arith.constant 1 : index
    %c0_16 = arith.constant 0 : index
    %c0_17 = arith.constant 0 : index
    %42 = vector.load %arg3[%c1, %c0_16, %c0_17] : memref<9x128x128xbf16, #tpu.memory_space<vmem>>, vector<1x128x128xbf16>
    %43 = vector.shape_cast %42 : vector<1x128x128xbf16> to vector<128x128xbf16>
    %cst_18 = arith.constant dense<0.000000e+00> : vector<128x128xf32>
    %44 = tpu.matmul %41, %43, %cst_18 {dimension_numbers = #tpu.dot_dimension_numbers<[1], [0], [0], [1], [0, 0, 1, 1], [], []>} : vector<128x128xbf16>, vector<128x128xbf16>, vector<128x128xf32> -> vector<128x128xf32>
    %45 = arith.addf %36, %44 : vector<128x128xf32>
    %c0_i32_19 = arith.constant 0 : i32
    %46 = arith.addi %26, %c0_i32_19 : i32
    %c32_i32 = arith.constant 32 : i32
    %47 = arith.addi %46, %c32_i32 : i32
    %48 = tpu.assume_multiple %47, 16 : i32
    %49 = arith.index_cast %48 : i32 to index
    %c0_20 = arith.constant 0 : index
    %50 = vector.load %arg2[%49, %c0_20] : memref<1600x128xbf16, #tpu.memory_space<vmem>>, vector<128x128xbf16>
    %c2 = arith.constant 2 : index
    %c0_21 = arith.constant 0 : index
    %c0_22 = arith.constant 0 : index
    %51 = vector.load %arg3[%c2, %c0_21, %c0_22] : memref<9x128x128xbf16, #tpu.memory_space<vmem>>, vector<1x128x128xbf16>
    %52 = vector.shape_cast %51 : vector<1x128x128xbf16> to vector<128x128xbf16>
    %cst_23 = arith.constant dense<0.000000e+00> : vector<128x128xf32>
    %53 = tpu.matmul %50, %52, %cst_23 {dimension_numbers = #tpu.dot_dimension_numbers<[1], [0], [0], [1], [0, 0, 1, 1], [], []>} : vector<128x128xbf16>, vector<128x128xbf16>, vector<128x128xf32> -> vector<128x128xf32>
    %54 = arith.addf %45, %53 : vector<128x128xf32>
    %c160_i32_24 = arith.constant 160 : i32
    %55 = arith.addi %26, %c160_i32_24 : i32
    %c0_i32_25 = arith.constant 0 : i32
    %56 = arith.addi %55, %c0_i32_25 : i32
    %57 = tpu.assume_multiple %56, 16 : i32
    %58 = arith.index_cast %57 : i32 to index
    %c0_26 = arith.constant 0 : index
    %59 = vector.load %arg2[%58, %c0_26] : memref<1600x128xbf16, #tpu.memory_space<vmem>>, vector<128x128xbf16>
    %c3 = arith.constant 3 : index
    %c0_27 = arith.constant 0 : index
    %c0_28 = arith.constant 0 : index
    %60 = vector.load %arg3[%c3, %c0_27, %c0_28] : memref<9x128x128xbf16, #tpu.memory_space<vmem>>, vector<1x128x128xbf16>
    %61 = vector.shape_cast %60 : vector<1x128x128xbf16> to vector<128x128xbf16>
    %cst_29 = arith.constant dense<0.000000e+00> : vector<128x128xf32>
    %62 = tpu.matmul %59, %61, %cst_29 {dimension_numbers = #tpu.dot_dimension_numbers<[1], [0], [0], [1], [0, 0, 1, 1], [], []>} : vector<128x128xbf16>, vector<128x128xbf16>, vector<128x128xf32> -> vector<128x128xf32>
    %63 = arith.addf %54, %62 : vector<128x128xf32>
    %c160_i32_30 = arith.constant 160 : i32
    %64 = arith.addi %26, %c160_i32_30 : i32
    %c16_i32_31 = arith.constant 16 : i32
    %65 = arith.addi %64, %c16_i32_31 : i32
    %66 = tpu.assume_multiple %65, 16 : i32
    %67 = arith.index_cast %66 : i32 to index
    %c0_32 = arith.constant 0 : index
    %68 = vector.load %arg2[%67, %c0_32] : memref<1600x128xbf16, #tpu.memory_space<vmem>>, vector<128x128xbf16>
    %c4 = arith.constant 4 : index
    %c0_33 = arith.constant 0 : index
    %c0_34 = arith.constant 0 : index
    %69 = vector.load %arg3[%c4, %c0_33, %c0_34] : memref<9x128x128xbf16, #tpu.memory_space<vmem>>, vector<1x128x128xbf16>
    %70 = vector.shape_cast %69 : vector<1x128x128xbf16> to vector<128x128xbf16>
    %cst_35 = arith.constant dense<0.000000e+00> : vector<128x128xf32>
    %71 = tpu.matmul %68, %70, %cst_35 {dimension_numbers = #tpu.dot_dimension_numbers<[1], [0], [0], [1], [0, 0, 1, 1], [], []>} : vector<128x128xbf16>, vector<128x128xbf16>, vector<128x128xf32> -> vector<128x128xf32>
    %72 = arith.addf %63, %71 : vector<128x128xf32>
    %c160_i32_36 = arith.constant 160 : i32
    %73 = arith.addi %26, %c160_i32_36 : i32
    %c32_i32_37 = arith.constant 32 : i32
    %74 = arith.addi %73, %c32_i32_37 : i32
    %75 = tpu.assume_multiple %74, 16 : i32
    %76 = arith.index_cast %75 : i32 to index
    %c0_38 = arith.constant 0 : index
    %77 = vector.load %arg2[%76, %c0_38] : memref<1600x128xbf16, #tpu.memory_space<vmem>>, vector<128x128xbf16>
    %c5 = arith.constant 5 : index
    %c0_39 = arith.constant 0 : index
    %c0_40 = arith.constant 0 : index
    %78 = vector.load %arg3[%c5, %c0_39, %c0_40] : memref<9x128x128xbf16, #tpu.memory_space<vmem>>, vector<1x128x128xbf16>
    %79 = vector.shape_cast %78 : vector<1x128x128xbf16> to vector<128x128xbf16>
    %cst_41 = arith.constant dense<0.000000e+00> : vector<128x128xf32>
    %80 = tpu.matmul %77, %79, %cst_41 {dimension_numbers = #tpu.dot_dimension_numbers<[1], [0], [0], [1], [0, 0, 1, 1], [], []>} : vector<128x128xbf16>, vector<128x128xbf16>, vector<128x128xf32> -> vector<128x128xf32>
    %81 = arith.addf %72, %80 : vector<128x128xf32>
    %c320_i32 = arith.constant 320 : i32
    %82 = arith.addi %26, %c320_i32 : i32
    %c0_i32_42 = arith.constant 0 : i32
    %83 = arith.addi %82, %c0_i32_42 : i32
    %84 = tpu.assume_multiple %83, 16 : i32
    %85 = arith.index_cast %84 : i32 to index
    %c0_43 = arith.constant 0 : index
    %86 = vector.load %arg2[%85, %c0_43] : memref<1600x128xbf16, #tpu.memory_space<vmem>>, vector<128x128xbf16>
    %c6 = arith.constant 6 : index
    %c0_44 = arith.constant 0 : index
    %c0_45 = arith.constant 0 : index
    %87 = vector.load %arg3[%c6, %c0_44, %c0_45] : memref<9x128x128xbf16, #tpu.memory_space<vmem>>, vector<1x128x128xbf16>
    %88 = vector.shape_cast %87 : vector<1x128x128xbf16> to vector<128x128xbf16>
    %cst_46 = arith.constant dense<0.000000e+00> : vector<128x128xf32>
    %89 = tpu.matmul %86, %88, %cst_46 {dimension_numbers = #tpu.dot_dimension_numbers<[1], [0], [0], [1], [0, 0, 1, 1], [], []>} : vector<128x128xbf16>, vector<128x128xbf16>, vector<128x128xf32> -> vector<128x128xf32>
    %90 = arith.addf %81, %89 : vector<128x128xf32>
    %c320_i32_47 = arith.constant 320 : i32
    %91 = arith.addi %26, %c320_i32_47 : i32
    %c16_i32_48 = arith.constant 16 : i32
    %92 = arith.addi %91, %c16_i32_48 : i32
    %93 = tpu.assume_multiple %92, 16 : i32
    %94 = arith.index_cast %93 : i32 to index
    %c0_49 = arith.constant 0 : index
    %95 = vector.load %arg2[%94, %c0_49] : memref<1600x128xbf16, #tpu.memory_space<vmem>>, vector<128x128xbf16>
    %c7 = arith.constant 7 : index
    %c0_50 = arith.constant 0 : index
    %c0_51 = arith.constant 0 : index
    %96 = vector.load %arg3[%c7, %c0_50, %c0_51] : memref<9x128x128xbf16, #tpu.memory_space<vmem>>, vector<1x128x128xbf16>
    %97 = vector.shape_cast %96 : vector<1x128x128xbf16> to vector<128x128xbf16>
    %cst_52 = arith.constant dense<0.000000e+00> : vector<128x128xf32>
    %98 = tpu.matmul %95, %97, %cst_52 {dimension_numbers = #tpu.dot_dimension_numbers<[1], [0], [0], [1], [0, 0, 1, 1], [], []>} : vector<128x128xbf16>, vector<128x128xbf16>, vector<128x128xf32> -> vector<128x128xf32>
    %99 = arith.addf %90, %98 : vector<128x128xf32>
    %c320_i32_53 = arith.constant 320 : i32
    %100 = arith.addi %26, %c320_i32_53 : i32
    %c32_i32_54 = arith.constant 32 : i32
    %101 = arith.addi %100, %c32_i32_54 : i32
    %102 = tpu.assume_multiple %101, 16 : i32
    %103 = arith.index_cast %102 : i32 to index
    %c0_55 = arith.constant 0 : index
    %104 = vector.load %arg2[%103, %c0_55] : memref<1600x128xbf16, #tpu.memory_space<vmem>>, vector<128x128xbf16>
    %c8 = arith.constant 8 : index
    %c0_56 = arith.constant 0 : index
    %c0_57 = arith.constant 0 : index
    %105 = vector.load %arg3[%c8, %c0_56, %c0_57] : memref<9x128x128xbf16, #tpu.memory_space<vmem>>, vector<1x128x128xbf16>
    %106 = vector.shape_cast %105 : vector<1x128x128xbf16> to vector<128x128xbf16>
    %cst_58 = arith.constant dense<0.000000e+00> : vector<128x128xf32>
    %107 = tpu.matmul %104, %106, %cst_58 {dimension_numbers = #tpu.dot_dimension_numbers<[1], [0], [0], [1], [0, 0, 1, 1], [], []>} : vector<128x128xbf16>, vector<128x128xbf16>, vector<128x128xf32> -> vector<128x128xf32>
    %108 = arith.addf %99, %107 : vector<128x128xf32>
    %109 = arith.truncf %108 : vector<128x128xf32> to vector<128x128xbf16>
    %c0_59 = arith.constant 0 : index
    %c0_60 = arith.constant 0 : index
    %110 = vector.load %arg4[%c0_59, %c0_60] : memref<512x128xbf16, #tpu.memory_space<vmem>>, vector<128x128xbf16>
    tpu.vector_store %arg4[%c0_59, %c0_60], %109 {strides = array<i32>} : memref<512x128xbf16, #tpu.memory_space<vmem>>, vector<128x128xbf16>,
    %cst_61 = arith.constant 0.000000e+00 : f32
    %111 = vector.shape_cast %22 : vector<128x1xi1> to vector<128x1xi1>
    %112 = vector.broadcast %111 : vector<128x1xi1> to vector<128x128xi1>
    %113 = vector.broadcast %cst_61 : f32 to vector<128x128xf32>
    %114 = arith.select %112, %108, %113 : vector<128x128xi1>, vector<128x128xf32>
    %cst_62 = arith.constant dense<0.000000e+00> : vector<128xf32>
    %115 = vector.multi_reduction <add>, %114, %cst_62 [0] : vector<128x128xf32> to vector<128xf32>
    %116 = vector.shape_cast %115 : vector<128xf32> to vector<1x128xf32>
    %117 = arith.addf %23, %116 : vector<1x128xf32>
    %118 = arith.mulf %114, %114 : vector<128x128xf32>
    %cst_63 = arith.constant dense<0.000000e+00> : vector<128xf32>
    %119 = vector.multi_reduction <add>, %118, %cst_63 [0] : vector<128x128xf32> to vector<128xf32>
    %120 = vector.shape_cast %119 : vector<128xf32> to vector<1x128xf32>
    %121 = arith.addf %24, %120 : vector<1x128xf32>
    %c1_i32_64 = arith.constant 1 : i32
    %122 = arith.addi %0, %c1_i32_64 : i32
    %c160_i32_65 = arith.constant 160 : i32
    %123 = arith.muli %122, %c160_i32_65 : i32
    %cst_66 = arith.constant 0.000000e+00 : f32
    %124 = vector.broadcast %cst_66 : f32 to vector<128x128xf32>
    %c0_i32_67 = arith.constant 0 : i32
    %125 = arith.addi %123, %c0_i32_67 : i32
    %c0_i32_68 = arith.constant 0 : i32
    %126 = arith.addi %125, %c0_i32_68 : i32
    %127 = tpu.assume_multiple %126, 16 : i32
    %128 = arith.index_cast %127 : i32 to index
    %c0_69 = arith.constant 0 : index
    %129 = vector.load %arg2[%128, %c0_69] : memref<1600x128xbf16, #tpu.memory_space<vmem>>, vector<128x128xbf16>
    %c0_70 = arith.constant 0 : index
    %c0_71 = arith.constant 0 : index
    %c0_72 = arith.constant 0 : index
    %130 = vector.load %arg3[%c0_70, %c0_71, %c0_72] : memref<9x128x128xbf16, #tpu.memory_space<vmem>>, vector<1x128x128xbf16>
    %131 = vector.shape_cast %130 : vector<1x128x128xbf16> to vector<128x128xbf16>
    %cst_73 = arith.constant dense<0.000000e+00> : vector<128x128xf32>
    %132 = tpu.matmul %129, %131, %cst_73 {dimension_numbers = #tpu.dot_dimension_numbers<[1], [0], [0], [1], [0, 0, 1, 1], [], []>} : vector<128x128xbf16>, vector<128x128xbf16>, vector<128x128xf32> -> vector<128x128xf32>
    %133 = arith.addf %124, %132 : vector<128x128xf32>
    %c0_i32_74 = arith.constant 0 : i32
    %134 = arith.addi %123, %c0_i32_74 : i32
    %c16_i32_75 = arith.constant 16 : i32
    %135 = arith.addi %134, %c16_i32_75 : i32
    %136 = tpu.assume_multiple %135, 16 : i32
    %137 = arith.index_cast %136 : i32 to index
    %c0_76 = arith.constant 0 : index
    %138 = vector.load %arg2[%137, %c0_76] : memref<1600x128xbf16, #tpu.memory_space<vmem>>, vector<128x128xbf16>
    %c1_77 = arith.constant 1 : index
    %c0_78 = arith.constant 0 : index
    %c0_79 = arith.constant 0 : index
    %139 = vector.load %arg3[%c1_77, %c0_78, %c0_79] : memref<9x128x128xbf16, #tpu.memory_space<vmem>>, vector<1x128x128xbf16>
    %140 = vector.shape_cast %139 : vector<1x128x128xbf16> to vector<128x128xbf16>
    %cst_80 = arith.constant dense<0.000000e+00> : vector<128x128xf32>
    %141 = tpu.matmul %138, %140, %cst_80 {dimension_numbers = #tpu.dot_dimension_numbers<[1], [0], [0], [1], [0, 0, 1, 1], [], []>} : vector<128x128xbf16>, vector<128x128xbf16>, vector<128x128xf32> -> vector<128x128xf32>
    %142 = arith.addf %133, %141 : vector<128x128xf32>
    %c0_i32_81 = arith.constant 0 : i32
    %143 = arith.addi %123, %c0_i32_81 : i32
    %c32_i32_82 = arith.constant 32 : i32
    %144 = arith.addi %143, %c32_i32_82 : i32
    %145 = tpu.assume_multiple %144, 16 : i32
    %146 = arith.index_cast %145 : i32 to index
    %c0_83 = arith.constant 0 : index
    %147 = vector.load %arg2[%146, %c0_83] : memref<1600x128xbf16, #tpu.memory_space<vmem>>, vector<128x128xbf16>
    %c2_84 = arith.constant 2 : index
    %c0_85 = arith.constant 0 : index
    %c0_86 = arith.constant 0 : index
    %148 = vector.load %arg3[%c2_84, %c0_85, %c0_86] : memref<9x128x128xbf16, #tpu.memory_space<vmem>>, vector<1x128x128xbf16>
    %149 = vector.shape_cast %148 : vector<1x128x128xbf16> to vector<128x128xbf16>
    %cst_87 = arith.constant dense<0.000000e+00> : vector<128x128xf32>
    %150 = tpu.matmul %147, %149, %cst_87 {dimension_numbers = #tpu.dot_dimension_numbers<[1], [0], [0], [1], [0, 0, 1, 1], [], []>} : vector<128x128xbf16>, vector<128x128xbf16>, vector<128x128xf32> -> vector<128x128xf32>
    %151 = arith.addf %142, %150 : vector<128x128xf32>
    %c160_i32_88 = arith.constant 160 : i32
    %152 = arith.addi %123, %c160_i32_88 : i32
    %c0_i32_89 = arith.constant 0 : i32
    %153 = arith.addi %152, %c0_i32_89 : i32
    %154 = tpu.assume_multiple %153, 16 : i32
    %155 = arith.index_cast %154 : i32 to index
    %c0_90 = arith.constant 0 : index
    %156 = vector.load %arg2[%155, %c0_90] : memref<1600x128xbf16, #tpu.memory_space<vmem>>, vector<128x128xbf16>
    %c3_91 = arith.constant 3 : index
    %c0_92 = arith.constant 0 : index
    %c0_93 = arith.constant 0 : index
    %157 = vector.load %arg3[%c3_91, %c0_92, %c0_93] : memref<9x128x128xbf16, #tpu.memory_space<vmem>>, vector<1x128x128xbf16>
    %158 = vector.shape_cast %157 : vector<1x128x128xbf16> to vector<128x128xbf16>
    %cst_94 = arith.constant dense<0.000000e+00> : vector<128x128xf32>
    %159 = tpu.matmul %156, %158, %cst_94 {dimension_numbers = #tpu.dot_dimension_numbers<[1], [0], [0], [1], [0, 0, 1, 1], [], []>} : vector<128x128xbf16>, vector<128x128xbf16>, vector<128x128xf32> -> vector<128x128xf32>
    %160 = arith.addf %151, %159 : vector<128x128xf32>
    %c160_i32_95 = arith.constant 160 : i32
    %161 = arith.addi %123, %c160_i32_95 : i32
    %c16_i32_96 = arith.constant 16 : i32
    %162 = arith.addi %161, %c16_i32_96 : i32
    %163 = tpu.assume_multiple %162, 16 : i32
    %164 = arith.index_cast %163 : i32 to index
    %c0_97 = arith.constant 0 : index
    %165 = vector.load %arg2[%164, %c0_97] : memref<1600x128xbf16, #tpu.memory_space<vmem>>, vector<128x128xbf16>
    %c4_98 = arith.constant 4 : index
    %c0_99 = arith.constant 0 : index
    %c0_100 = arith.constant 0 : index
    %166 = vector.load %arg3[%c4_98, %c0_99, %c0_100] : memref<9x128x128xbf16, #tpu.memory_space<vmem>>, vector<1x128x128xbf16>
    %167 = vector.shape_cast %166 : vector<1x128x128xbf16> to vector<128x128xbf16>
    %cst_101 = arith.constant dense<0.000000e+00> : vector<128x128xf32>
    %168 = tpu.matmul %165, %167, %cst_101 {dimension_numbers = #tpu.dot_dimension_numbers<[1], [0], [0], [1], [0, 0, 1, 1], [], []>} : vector<128x128xbf16>, vector<128x128xbf16>, vector<128x128xf32> -> vector<128x128xf32>
    %169 = arith.addf %160, %168 : vector<128x128xf32>
    %c160_i32_102 = arith.constant 160 : i32
    %170 = arith.addi %123, %c160_i32_102 : i32
    %c32_i32_103 = arith.constant 32 : i32
    %171 = arith.addi %170, %c32_i32_103 : i32
    %172 = tpu.assume_multiple %171, 16 : i32
    %173 = arith.index_cast %172 : i32 to index
    %c0_104 = arith.constant 0 : index
    %174 = vector.load %arg2[%173, %c0_104] : memref<1600x128xbf16, #tpu.memory_space<vmem>>, vector<128x128xbf16>
    %c5_105 = arith.constant 5 : index
    %c0_106 = arith.constant 0 : index
    %c0_107 = arith.constant 0 : index
    %175 = vector.load %arg3[%c5_105, %c0_106, %c0_107] : memref<9x128x128xbf16, #tpu.memory_space<vmem>>, vector<1x128x128xbf16>
    %176 = vector.shape_cast %175 : vector<1x128x128xbf16> to vector<128x128xbf16>
    %cst_108 = arith.constant dense<0.000000e+00> : vector<128x128xf32>
    %177 = tpu.matmul %174, %176, %cst_108 {dimension_numbers = #tpu.dot_dimension_numbers<[1], [0], [0], [1], [0, 0, 1, 1], [], []>} : vector<128x128xbf16>, vector<128x128xbf16>, vector<128x128xf32> -> vector<128x128xf32>
    %178 = arith.addf %169, %177 : vector<128x128xf32>
    %c320_i32_109 = arith.constant 320 : i32
    %179 = arith.addi %123, %c320_i32_109 : i32
    %c0_i32_110 = arith.constant 0 : i32
    %180 = arith.addi %179, %c0_i32_110 : i32
    %181 = tpu.assume_multiple %180, 16 : i32
    %182 = arith.index_cast %181 : i32 to index
    %c0_111 = arith.constant 0 : index
    %183 = vector.load %arg2[%182, %c0_111] : memref<1600x128xbf16, #tpu.memory_space<vmem>>, vector<128x128xbf16>
    %c6_112 = arith.constant 6 : index
    %c0_113 = arith.constant 0 : index
    %c0_114 = arith.constant 0 : index
    %184 = vector.load %arg3[%c6_112, %c0_113, %c0_114] : memref<9x128x128xbf16, #tpu.memory_space<vmem>>, vector<1x128x128xbf16>
    %185 = vector.shape_cast %184 : vector<1x128x128xbf16> to vector<128x128xbf16>
    %cst_115 = arith.constant dense<0.000000e+00> : vector<128x128xf32>
    %186 = tpu.matmul %183, %185, %cst_115 {dimension_numbers = #tpu.dot_dimension_numbers<[1], [0], [0], [1], [0, 0, 1, 1], [], []>} : vector<128x128xbf16>, vector<128x128xbf16>, vector<128x128xf32> -> vector<128x128xf32>
    %187 = arith.addf %178, %186 : vector<128x128xf32>
    %c320_i32_116 = arith.constant 320 : i32
    %188 = arith.addi %123, %c320_i32_116 : i32
    %c16_i32_117 = arith.constant 16 : i32
    %189 = arith.addi %188, %c16_i32_117 : i32
    %190 = tpu.assume_multiple %189, 16 : i32
    %191 = arith.index_cast %190 : i32 to index
    %c0_118 = arith.constant 0 : index
    %192 = vector.load %arg2[%191, %c0_118] : memref<1600x128xbf16, #tpu.memory_space<vmem>>, vector<128x128xbf16>
    %c7_119 = arith.constant 7 : index
    %c0_120 = arith.constant 0 : index
    %c0_121 = arith.constant 0 : index
    %193 = vector.load %arg3[%c7_119, %c0_120, %c0_121] : memref<9x128x128xbf16, #tpu.memory_space<vmem>>, vector<1x128x128xbf16>
    %194 = vector.shape_cast %193 : vector<1x128x128xbf16> to vector<128x128xbf16>
    %cst_122 = arith.constant dense<0.000000e+00> : vector<128x128xf32>
    %195 = tpu.matmul %192, %194, %cst_122 {dimension_numbers = #tpu.dot_dimension_numbers<[1], [0], [0], [1], [0, 0, 1, 1], [], []>} : vector<128x128xbf16>, vector<128x128xbf16>, vector<128x128xf32> -> vector<128x128xf32>
    %196 = arith.addf %187, %195 : vector<128x128xf32>
    %c320_i32_123 = arith.constant 320 : i32
    %197 = arith.addi %123, %c320_i32_123 : i32
    %c32_i32_124 = arith.constant 32 : i32
    %198 = arith.addi %197, %c32_i32_124 : i32
    %199 = tpu.assume_multiple %198, 16 : i32
    %200 = arith.index_cast %199 : i32 to index
    %c0_125 = arith.constant 0 : index
    %201 = vector.load %arg2[%200, %c0_125] : memref<1600x128xbf16, #tpu.memory_space<vmem>>, vector<128x128xbf16>
    %c8_126 = arith.constant 8 : index
    %c0_127 = arith.constant 0 : index
    %c0_128 = arith.constant 0 : index
    %202 = vector.load %arg3[%c8_126, %c0_127, %c0_128] : memref<9x128x128xbf16, #tpu.memory_space<vmem>>, vector<1x128x128xbf16>
    %203 = vector.shape_cast %202 : vector<1x128x128xbf16> to vector<128x128xbf16>
    %cst_129 = arith.constant dense<0.000000e+00> : vector<128x128xf32>
    %204 = tpu.matmul %201, %203, %cst_129 {dimension_numbers = #tpu.dot_dimension_numbers<[1], [0], [0], [1], [0, 0, 1, 1], [], []>} : vector<128x128xbf16>, vector<128x128xbf16>, vector<128x128xf32> -> vector<128x128xf32>
    %205 = arith.addf %196, %204 : vector<128x128xf32>
    %206 = arith.truncf %205 : vector<128x128xf32> to vector<128x128xbf16>
    %c128 = arith.constant 128 : index
    %c0_130 = arith.constant 0 : index
    %207 = vector.load %arg4[%c128, %c0_130] : memref<512x128xbf16, #tpu.memory_space<vmem>>, vector<128x128xbf16>
    tpu.vector_store %arg4[%c128, %c0_130], %206 {strides = array<i32>} : memref<512x128xbf16, #tpu.memory_space<vmem>>, vector<128x128xbf16>,
    %cst_131 = arith.constant 0.000000e+00 : f32
    %208 = vector.shape_cast %22 : vector<128x1xi1> to vector<128x1xi1>
    %209 = vector.broadcast %208 : vector<128x1xi1> to vector<128x128xi1>
    %210 = vector.broadcast %cst_131 : f32 to vector<128x128xf32>
    %211 = arith.select %209, %205, %210 : vector<128x128xi1>, vector<128x128xf32>
    %cst_132 = arith.constant dense<0.000000e+00> : vector<128xf32>
    %212 = vector.multi_reduction <add>, %211, %cst_132 [0] : vector<128x128xf32> to vector<128xf32>
    %213 = vector.shape_cast %212 : vector<128xf32> to vector<1x128xf32>
    %214 = arith.addf %117, %213 : vector<1x128xf32>
    %215 = arith.mulf %211, %211 : vector<128x128xf32>
    %cst_133 = arith.constant dense<0.000000e+00> : vector<128xf32>
    %216 = vector.multi_reduction <add>, %215, %cst_133 [0] : vector<128x128xf32> to vector<128xf32>
    %217 = vector.shape_cast %216 : vector<128xf32> to vector<1x128xf32>
    %218 = arith.addf %121, %217 : vector<1x128xf32>
    %c2_i32 = arith.constant 2 : i32
    %219 = arith.addi %0, %c2_i32 : i32
    %c160_i32_134 = arith.constant 160 : i32
    %220 = arith.muli %219, %c160_i32_134 : i32
    %cst_135 = arith.constant 0.000000e+00 : f32
    %221 = vector.broadcast %cst_135 : f32 to vector<128x128xf32>
    %c0_i32_136 = arith.constant 0 : i32
    %222 = arith.addi %220, %c0_i32_136 : i32
    %c0_i32_137 = arith.constant 0 : i32
    %223 = arith.addi %222, %c0_i32_137 : i32
    %224 = tpu.assume_multiple %223, 16 : i32
    %225 = arith.index_cast %224 : i32 to index
    %c0_138 = arith.constant 0 : index
    %226 = vector.load %arg2[%225, %c0_138] : memref<1600x128xbf16, #tpu.memory_space<vmem>>, vector<128x128xbf16>
    %c0_139 = arith.constant 0 : index
    %c0_140 = arith.constant 0 : index
    %c0_141 = arith.constant 0 : index
    %227 = vector.load %arg3[%c0_139, %c0_140, %c0_141] : memref<9x128x128xbf16, #tpu.memory_space<vmem>>, vector<1x128x128xbf16>
    %228 = vector.shape_cast %227 : vector<1x128x128xbf16> to vector<128x128xbf16>
    %cst_142 = arith.constant dense<0.000000e+00> : vector<128x128xf32>
    %229 = tpu.matmul %226, %228, %cst_142 {dimension_numbers = #tpu.dot_dimension_numbers<[1], [0], [0], [1], [0, 0, 1, 1], [], []>} : vector<128x128xbf16>, vector<128x128xbf16>, vector<128x128xf32> -> vector<128x128xf32>
    %230 = arith.addf %221, %229 : vector<128x128xf32>
    %c0_i32_143 = arith.constant 0 : i32
    %231 = arith.addi %220, %c0_i32_143 : i32
    %c16_i32_144 = arith.constant 16 : i32
    %232 = arith.addi %231, %c16_i32_144 : i32
    %233 = tpu.assume_multiple %232, 16 : i32
    %234 = arith.index_cast %233 : i32 to index
    %c0_145 = arith.constant 0 : index
    %235 = vector.load %arg2[%234, %c0_145] : memref<1600x128xbf16, #tpu.memory_space<vmem>>, vector<128x128xbf16>
    %c1_146 = arith.constant 1 : index
    %c0_147 = arith.constant 0 : index
    %c0_148 = arith.constant 0 : index
    %236 = vector.load %arg3[%c1_146, %c0_147, %c0_148] : memref<9x128x128xbf16, #tpu.memory_space<vmem>>, vector<1x128x128xbf16>
    %237 = vector.shape_cast %236 : vector<1x128x128xbf16> to vector<128x128xbf16>
    %cst_149 = arith.constant dense<0.000000e+00> : vector<128x128xf32>
    %238 = tpu.matmul %235, %237, %cst_149 {dimension_numbers = #tpu.dot_dimension_numbers<[1], [0], [0], [1], [0, 0, 1, 1], [], []>} : vector<128x128xbf16>, vector<128x128xbf16>, vector<128x128xf32> -> vector<128x128xf32>
    %239 = arith.addf %230, %238 : vector<128x128xf32>
    %c0_i32_150 = arith.constant 0 : i32
    %240 = arith.addi %220, %c0_i32_150 : i32
    %c32_i32_151 = arith.constant 32 : i32
    %241 = arith.addi %240, %c32_i32_151 : i32
    %242 = tpu.assume_multiple %241, 16 : i32
    %243 = arith.index_cast %242 : i32 to index
    %c0_152 = arith.constant 0 : index
    %244 = vector.load %arg2[%243, %c0_152] : memref<1600x128xbf16, #tpu.memory_space<vmem>>, vector<128x128xbf16>
    %c2_153 = arith.constant 2 : index
    %c0_154 = arith.constant 0 : index
    %c0_155 = arith.constant 0 : index
    %245 = vector.load %arg3[%c2_153, %c0_154, %c0_155] : memref<9x128x128xbf16, #tpu.memory_space<vmem>>, vector<1x128x128xbf16>
    %246 = vector.shape_cast %245 : vector<1x128x128xbf16> to vector<128x128xbf16>
    %cst_156 = arith.constant dense<0.000000e+00> : vector<128x128xf32>
    %247 = tpu.matmul %244, %246, %cst_156 {dimension_numbers = #tpu.dot_dimension_numbers<[1], [0], [0], [1], [0, 0, 1, 1], [], []>} : vector<128x128xbf16>, vector<128x128xbf16>, vector<128x128xf32> -> vector<128x128xf32>
    %248 = arith.addf %239, %247 : vector<128x128xf32>
    %c160_i32_157 = arith.constant 160 : i32
    %249 = arith.addi %220, %c160_i32_157 : i32
    %c0_i32_158 = arith.constant 0 : i32
    %250 = arith.addi %249, %c0_i32_158 : i32
    %251 = tpu.assume_multiple %250, 16 : i32
    %252 = arith.index_cast %251 : i32 to index
    %c0_159 = arith.constant 0 : index
    %253 = vector.load %arg2[%252, %c0_159] : memref<1600x128xbf16, #tpu.memory_space<vmem>>, vector<128x128xbf16>
    %c3_160 = arith.constant 3 : index
    %c0_161 = arith.constant 0 : index
    %c0_162 = arith.constant 0 : index
    %254 = vector.load %arg3[%c3_160, %c0_161, %c0_162] : memref<9x128x128xbf16, #tpu.memory_space<vmem>>, vector<1x128x128xbf16>
    %255 = vector.shape_cast %254 : vector<1x128x128xbf16> to vector<128x128xbf16>
    %cst_163 = arith.constant dense<0.000000e+00> : vector<128x128xf32>
    %256 = tpu.matmul %253, %255, %cst_163 {dimension_numbers = #tpu.dot_dimension_numbers<[1], [0], [0], [1], [0, 0, 1, 1], [], []>} : vector<128x128xbf16>, vector<128x128xbf16>, vector<128x128xf32> -> vector<128x128xf32>
    %257 = arith.addf %248, %256 : vector<128x128xf32>
    %c160_i32_164 = arith.constant 160 : i32
    %258 = arith.addi %220, %c160_i32_164 : i32
    %c16_i32_165 = arith.constant 16 : i32
    %259 = arith.addi %258, %c16_i32_165 : i32
    %260 = tpu.assume_multiple %259, 16 : i32
    %261 = arith.index_cast %260 : i32 to index
    %c0_166 = arith.constant 0 : index
    %262 = vector.load %arg2[%261, %c0_166] : memref<1600x128xbf16, #tpu.memory_space<vmem>>, vector<128x128xbf16>
    %c4_167 = arith.constant 4 : index
    %c0_168 = arith.constant 0 : index
    %c0_169 = arith.constant 0 : index
    %263 = vector.load %arg3[%c4_167, %c0_168, %c0_169] : memref<9x128x128xbf16, #tpu.memory_space<vmem>>, vector<1x128x128xbf16>
    %264 = vector.shape_cast %263 : vector<1x128x128xbf16> to vector<128x128xbf16>
    %cst_170 = arith.constant dense<0.000000e+00> : vector<128x128xf32>
    %265 = tpu.matmul %262, %264, %cst_170 {dimension_numbers = #tpu.dot_dimension_numbers<[1], [0], [0], [1], [0, 0, 1, 1], [], []>} : vector<128x128xbf16>, vector<128x128xbf16>, vector<128x128xf32> -> vector<128x128xf32>
    %266 = arith.addf %257, %265 : vector<128x128xf32>
    %c160_i32_171 = arith.constant 160 : i32
    %267 = arith.addi %220, %c160_i32_171 : i32
    %c32_i32_172 = arith.constant 32 : i32
    %268 = arith.addi %267, %c32_i32_172 : i32
    %269 = tpu.assume_multiple %268, 16 : i32
    %270 = arith.index_cast %269 : i32 to index
    %c0_173 = arith.constant 0 : index
    %271 = vector.load %arg2[%270, %c0_173] : memref<1600x128xbf16, #tpu.memory_space<vmem>>, vector<128x128xbf16>
    %c5_174 = arith.constant 5 : index
    %c0_175 = arith.constant 0 : index
    %c0_176 = arith.constant 0 : index
    %272 = vector.load %arg3[%c5_174, %c0_175, %c0_176] : memref<9x128x128xbf16, #tpu.memory_space<vmem>>, vector<1x128x128xbf16>
    %273 = vector.shape_cast %272 : vector<1x128x128xbf16> to vector<128x128xbf16>
    %cst_177 = arith.constant dense<0.000000e+00> : vector<128x128xf32>
    %274 = tpu.matmul %271, %273, %cst_177 {dimension_numbers = #tpu.dot_dimension_numbers<[1], [0], [0], [1], [0, 0, 1, 1], [], []>} : vector<128x128xbf16>, vector<128x128xbf16>, vector<128x128xf32> -> vector<128x128xf32>
    %275 = arith.addf %266, %274 : vector<128x128xf32>
    %c320_i32_178 = arith.constant 320 : i32
    %276 = arith.addi %220, %c320_i32_178 : i32
    %c0_i32_179 = arith.constant 0 : i32
    %277 = arith.addi %276, %c0_i32_179 : i32
    %278 = tpu.assume_multiple %277, 16 : i32
    %279 = arith.index_cast %278 : i32 to index
    %c0_180 = arith.constant 0 : index
    %280 = vector.load %arg2[%279, %c0_180] : memref<1600x128xbf16, #tpu.memory_space<vmem>>, vector<128x128xbf16>
    %c6_181 = arith.constant 6 : index
    %c0_182 = arith.constant 0 : index
    %c0_183 = arith.constant 0 : index
    %281 = vector.load %arg3[%c6_181, %c0_182, %c0_183] : memref<9x128x128xbf16, #tpu.memory_space<vmem>>, vector<1x128x128xbf16>
    %282 = vector.shape_cast %281 : vector<1x128x128xbf16> to vector<128x128xbf16>
    %cst_184 = arith.constant dense<0.000000e+00> : vector<128x128xf32>
    %283 = tpu.matmul %280, %282, %cst_184 {dimension_numbers = #tpu.dot_dimension_numbers<[1], [0], [0], [1], [0, 0, 1, 1], [], []>} : vector<128x128xbf16>, vector<128x128xbf16>, vector<128x128xf32> -> vector<128x128xf32>
    %284 = arith.addf %275, %283 : vector<128x128xf32>
    %c320_i32_185 = arith.constant 320 : i32
    %285 = arith.addi %220, %c320_i32_185 : i32
    %c16_i32_186 = arith.constant 16 : i32
    %286 = arith.addi %285, %c16_i32_186 : i32
    %287 = tpu.assume_multiple %286, 16 : i32
    %288 = arith.index_cast %287 : i32 to index
    %c0_187 = arith.constant 0 : index
    %289 = vector.load %arg2[%288, %c0_187] : memref<1600x128xbf16, #tpu.memory_space<vmem>>, vector<128x128xbf16>
    %c7_188 = arith.constant 7 : index
    %c0_189 = arith.constant 0 : index
    %c0_190 = arith.constant 0 : index
    %290 = vector.load %arg3[%c7_188, %c0_189, %c0_190] : memref<9x128x128xbf16, #tpu.memory_space<vmem>>, vector<1x128x128xbf16>
    %291 = vector.shape_cast %290 : vector<1x128x128xbf16> to vector<128x128xbf16>
    %cst_191 = arith.constant dense<0.000000e+00> : vector<128x128xf32>
    %292 = tpu.matmul %289, %291, %cst_191 {dimension_numbers = #tpu.dot_dimension_numbers<[1], [0], [0], [1], [0, 0, 1, 1], [], []>} : vector<128x128xbf16>, vector<128x128xbf16>, vector<128x128xf32> -> vector<128x128xf32>
    %293 = arith.addf %284, %292 : vector<128x128xf32>
    %c320_i32_192 = arith.constant 320 : i32
    %294 = arith.addi %220, %c320_i32_192 : i32
    %c32_i32_193 = arith.constant 32 : i32
    %295 = arith.addi %294, %c32_i32_193 : i32
    %296 = tpu.assume_multiple %295, 16 : i32
    %297 = arith.index_cast %296 : i32 to index
    %c0_194 = arith.constant 0 : index
    %298 = vector.load %arg2[%297, %c0_194] : memref<1600x128xbf16, #tpu.memory_space<vmem>>, vector<128x128xbf16>
    %c8_195 = arith.constant 8 : index
    %c0_196 = arith.constant 0 : index
    %c0_197 = arith.constant 0 : index
    %299 = vector.load %arg3[%c8_195, %c0_196, %c0_197] : memref<9x128x128xbf16, #tpu.memory_space<vmem>>, vector<1x128x128xbf16>
    %300 = vector.shape_cast %299 : vector<1x128x128xbf16> to vector<128x128xbf16>
    %cst_198 = arith.constant dense<0.000000e+00> : vector<128x128xf32>
    %301 = tpu.matmul %298, %300, %cst_198 {dimension_numbers = #tpu.dot_dimension_numbers<[1], [0], [0], [1], [0, 0, 1, 1], [], []>} : vector<128x128xbf16>, vector<128x128xbf16>, vector<128x128xf32> -> vector<128x128xf32>
    %302 = arith.addf %293, %301 : vector<128x128xf32>
    %303 = arith.truncf %302 : vector<128x128xf32> to vector<128x128xbf16>
    %c256 = arith.constant 256 : index
    %c0_199 = arith.constant 0 : index
    %304 = vector.load %arg4[%c256, %c0_199] : memref<512x128xbf16, #tpu.memory_space<vmem>>, vector<128x128xbf16>
    tpu.vector_store %arg4[%c256, %c0_199], %303 {strides = array<i32>} : memref<512x128xbf16, #tpu.memory_space<vmem>>, vector<128x128xbf16>,
    %cst_200 = arith.constant 0.000000e+00 : f32
    %305 = vector.shape_cast %22 : vector<128x1xi1> to vector<128x1xi1>
    %306 = vector.broadcast %305 : vector<128x1xi1> to vector<128x128xi1>
    %307 = vector.broadcast %cst_200 : f32 to vector<128x128xf32>
    %308 = arith.select %306, %302, %307 : vector<128x128xi1>, vector<128x128xf32>
    %cst_201 = arith.constant dense<0.000000e+00> : vector<128xf32>
    %309 = vector.multi_reduction <add>, %308, %cst_201 [0] : vector<128x128xf32> to vector<128xf32>
    %310 = vector.shape_cast %309 : vector<128xf32> to vector<1x128xf32>
    %311 = arith.addf %214, %310 : vector<1x128xf32>
    %312 = arith.mulf %308, %308 : vector<128x128xf32>
    %cst_202 = arith.constant dense<0.000000e+00> : vector<128xf32>
    %313 = vector.multi_reduction <add>, %312, %cst_202 [0] : vector<128x128xf32> to vector<128xf32>
    %314 = vector.shape_cast %313 : vector<128xf32> to vector<1x128xf32>
    %315 = arith.addf %218, %314 : vector<1x128xf32>
    %c3_i32 = arith.constant 3 : i32
    %316 = arith.addi %0, %c3_i32 : i32
    %c160_i32_203 = arith.constant 160 : i32
    %317 = arith.muli %316, %c160_i32_203 : i32
    %cst_204 = arith.constant 0.000000e+00 : f32
    %318 = vector.broadcast %cst_204 : f32 to vector<128x128xf32>
    %c0_i32_205 = arith.constant 0 : i32
    %319 = arith.addi %317, %c0_i32_205 : i32
    %c0_i32_206 = arith.constant 0 : i32
    %320 = arith.addi %319, %c0_i32_206 : i32
    %321 = tpu.assume_multiple %320, 16 : i32
    %322 = arith.index_cast %321 : i32 to index
    %c0_207 = arith.constant 0 : index
    %323 = vector.load %arg2[%322, %c0_207] : memref<1600x128xbf16, #tpu.memory_space<vmem>>, vector<128x128xbf16>
    %c0_208 = arith.constant 0 : index
    %c0_209 = arith.constant 0 : index
    %c0_210 = arith.constant 0 : index
    %324 = vector.load %arg3[%c0_208, %c0_209, %c0_210] : memref<9x128x128xbf16, #tpu.memory_space<vmem>>, vector<1x128x128xbf16>
    %325 = vector.shape_cast %324 : vector<1x128x128xbf16> to vector<128x128xbf16>
    %cst_211 = arith.constant dense<0.000000e+00> : vector<128x128xf32>
    %326 = tpu.matmul %323, %325, %cst_211 {dimension_numbers = #tpu.dot_dimension_numbers<[1], [0], [0], [1], [0, 0, 1, 1], [], []>} : vector<128x128xbf16>, vector<128x128xbf16>, vector<128x128xf32> -> vector<128x128xf32>
    %327 = arith.addf %318, %326 : vector<128x128xf32>
    %c0_i32_212 = arith.constant 0 : i32
    %328 = arith.addi %317, %c0_i32_212 : i32
    %c16_i32_213 = arith.constant 16 : i32
    %329 = arith.addi %328, %c16_i32_213 : i32
    %330 = tpu.assume_multiple %329, 16 : i32
    %331 = arith.index_cast %330 : i32 to index
    %c0_214 = arith.constant 0 : index
    %332 = vector.load %arg2[%331, %c0_214] : memref<1600x128xbf16, #tpu.memory_space<vmem>>, vector<128x128xbf16>
    %c1_215 = arith.constant 1 : index
    %c0_216 = arith.constant 0 : index
    %c0_217 = arith.constant 0 : index
    %333 = vector.load %arg3[%c1_215, %c0_216, %c0_217] : memref<9x128x128xbf16, #tpu.memory_space<vmem>>, vector<1x128x128xbf16>
    %334 = vector.shape_cast %333 : vector<1x128x128xbf16> to vector<128x128xbf16>
    %cst_218 = arith.constant dense<0.000000e+00> : vector<128x128xf32>
    %335 = tpu.matmul %332, %334, %cst_218 {dimension_numbers = #tpu.dot_dimension_numbers<[1], [0], [0], [1], [0, 0, 1, 1], [], []>} : vector<128x128xbf16>, vector<128x128xbf16>, vector<128x128xf32> -> vector<128x128xf32>
    %336 = arith.addf %327, %335 : vector<128x128xf32>
    %c0_i32_219 = arith.constant 0 : i32
    %337 = arith.addi %317, %c0_i32_219 : i32
    %c32_i32_220 = arith.constant 32 : i32
    %338 = arith.addi %337, %c32_i32_220 : i32
    %339 = tpu.assume_multiple %338, 16 : i32
    %340 = arith.index_cast %339 : i32 to index
    %c0_221 = arith.constant 0 : index
    %341 = vector.load %arg2[%340, %c0_221] : memref<1600x128xbf16, #tpu.memory_space<vmem>>, vector<128x128xbf16>
    %c2_222 = arith.constant 2 : index
    %c0_223 = arith.constant 0 : index
    %c0_224 = arith.constant 0 : index
    %342 = vector.load %arg3[%c2_222, %c0_223, %c0_224] : memref<9x128x128xbf16, #tpu.memory_space<vmem>>, vector<1x128x128xbf16>
    %343 = vector.shape_cast %342 : vector<1x128x128xbf16> to vector<128x128xbf16>
    %cst_225 = arith.constant dense<0.000000e+00> : vector<128x128xf32>
    %344 = tpu.matmul %341, %343, %cst_225 {dimension_numbers = #tpu.dot_dimension_numbers<[1], [0], [0], [1], [0, 0, 1, 1], [], []>} : vector<128x128xbf16>, vector<128x128xbf16>, vector<128x128xf32> -> vector<128x128xf32>
    %345 = arith.addf %336, %344 : vector<128x128xf32>
    %c160_i32_226 = arith.constant 160 : i32
    %346 = arith.addi %317, %c160_i32_226 : i32
    %c0_i32_227 = arith.constant 0 : i32
    %347 = arith.addi %346, %c0_i32_227 : i32
    %348 = tpu.assume_multiple %347, 16 : i32
    %349 = arith.index_cast %348 : i32 to index
    %c0_228 = arith.constant 0 : index
    %350 = vector.load %arg2[%349, %c0_228] : memref<1600x128xbf16, #tpu.memory_space<vmem>>, vector<128x128xbf16>
    %c3_229 = arith.constant 3 : index
    %c0_230 = arith.constant 0 : index
    %c0_231 = arith.constant 0 : index
    %351 = vector.load %arg3[%c3_229, %c0_230, %c0_231] : memref<9x128x128xbf16, #tpu.memory_space<vmem>>, vector<1x128x128xbf16>
    %352 = vector.shape_cast %351 : vector<1x128x128xbf16> to vector<128x128xbf16>
    %cst_232 = arith.constant dense<0.000000e+00> : vector<128x128xf32>
    %353 = tpu.matmul %350, %352, %cst_232 {dimension_numbers = #tpu.dot_dimension_numbers<[1], [0], [0], [1], [0, 0, 1, 1], [], []>} : vector<128x128xbf16>, vector<128x128xbf16>, vector<128x128xf32> -> vector<128x128xf32>
    %354 = arith.addf %345, %353 : vector<128x128xf32>
    %c160_i32_233 = arith.constant 160 : i32
    %355 = arith.addi %317, %c160_i32_233 : i32
    %c16_i32_234 = arith.constant 16 : i32
    %356 = arith.addi %355, %c16_i32_234 : i32
    %357 = tpu.assume_multiple %356, 16 : i32
    %358 = arith.index_cast %357 : i32 to index
    %c0_235 = arith.constant 0 : index
    %359 = vector.load %arg2[%358, %c0_235] : memref<1600x128xbf16, #tpu.memory_space<vmem>>, vector<128x128xbf16>
    %c4_236 = arith.constant 4 : index
    %c0_237 = arith.constant 0 : index
    %c0_238 = arith.constant 0 : index
    %360 = vector.load %arg3[%c4_236, %c0_237, %c0_238] : memref<9x128x128xbf16, #tpu.memory_space<vmem>>, vector<1x128x128xbf16>
    %361 = vector.shape_cast %360 : vector<1x128x128xbf16> to vector<128x128xbf16>
    %cst_239 = arith.constant dense<0.000000e+00> : vector<128x128xf32>
    %362 = tpu.matmul %359, %361, %cst_239 {dimension_numbers = #tpu.dot_dimension_numbers<[1], [0], [0], [1], [0, 0, 1, 1], [], []>} : vector<128x128xbf16>, vector<128x128xbf16>, vector<128x128xf32> -> vector<128x128xf32>
    %363 = arith.addf %354, %362 : vector<128x128xf32>
    %c160_i32_240 = arith.constant 160 : i32
    %364 = arith.addi %317, %c160_i32_240 : i32
    %c32_i32_241 = arith.constant 32 : i32
    %365 = arith.addi %364, %c32_i32_241 : i32
    %366 = tpu.assume_multiple %365, 16 : i32
    %367 = arith.index_cast %366 : i32 to index
    %c0_242 = arith.constant 0 : index
    %368 = vector.load %arg2[%367, %c0_242] : memref<1600x128xbf16, #tpu.memory_space<vmem>>, vector<128x128xbf16>
    %c5_243 = arith.constant 5 : index
    %c0_244 = arith.constant 0 : index
    %c0_245 = arith.constant 0 : index
    %369 = vector.load %arg3[%c5_243, %c0_244, %c0_245] : memref<9x128x128xbf16, #tpu.memory_space<vmem>>, vector<1x128x128xbf16>
    %370 = vector.shape_cast %369 : vector<1x128x128xbf16> to vector<128x128xbf16>
    %cst_246 = arith.constant dense<0.000000e+00> : vector<128x128xf32>
    %371 = tpu.matmul %368, %370, %cst_246 {dimension_numbers = #tpu.dot_dimension_numbers<[1], [0], [0], [1], [0, 0, 1, 1], [], []>} : vector<128x128xbf16>, vector<128x128xbf16>, vector<128x128xf32> -> vector<128x128xf32>
    %372 = arith.addf %363, %371 : vector<128x128xf32>
    %c320_i32_247 = arith.constant 320 : i32
    %373 = arith.addi %317, %c320_i32_247 : i32
    %c0_i32_248 = arith.constant 0 : i32
    %374 = arith.addi %373, %c0_i32_248 : i32
    %375 = tpu.assume_multiple %374, 16 : i32
    %376 = arith.index_cast %375 : i32 to index
    %c0_249 = arith.constant 0 : index
    %377 = vector.load %arg2[%376, %c0_249] : memref<1600x128xbf16, #tpu.memory_space<vmem>>, vector<128x128xbf16>
    %c6_250 = arith.constant 6 : index
    %c0_251 = arith.constant 0 : index
    %c0_252 = arith.constant 0 : index
    %378 = vector.load %arg3[%c6_250, %c0_251, %c0_252] : memref<9x128x128xbf16, #tpu.memory_space<vmem>>, vector<1x128x128xbf16>
    %379 = vector.shape_cast %378 : vector<1x128x128xbf16> to vector<128x128xbf16>
    %cst_253 = arith.constant dense<0.000000e+00> : vector<128x128xf32>
    %380 = tpu.matmul %377, %379, %cst_253 {dimension_numbers = #tpu.dot_dimension_numbers<[1], [0], [0], [1], [0, 0, 1, 1], [], []>} : vector<128x128xbf16>, vector<128x128xbf16>, vector<128x128xf32> -> vector<128x128xf32>
    %381 = arith.addf %372, %380 : vector<128x128xf32>
    %c320_i32_254 = arith.constant 320 : i32
    %382 = arith.addi %317, %c320_i32_254 : i32
    %c16_i32_255 = arith.constant 16 : i32
    %383 = arith.addi %382, %c16_i32_255 : i32
    %384 = tpu.assume_multiple %383, 16 : i32
    %385 = arith.index_cast %384 : i32 to index
    %c0_256 = arith.constant 0 : index
    %386 = vector.load %arg2[%385, %c0_256] : memref<1600x128xbf16, #tpu.memory_space<vmem>>, vector<128x128xbf16>
    %c7_257 = arith.constant 7 : index
    %c0_258 = arith.constant 0 : index
    %c0_259 = arith.constant 0 : index
    %387 = vector.load %arg3[%c7_257, %c0_258, %c0_259] : memref<9x128x128xbf16, #tpu.memory_space<vmem>>, vector<1x128x128xbf16>
    %388 = vector.shape_cast %387 : vector<1x128x128xbf16> to vector<128x128xbf16>
    %cst_260 = arith.constant dense<0.000000e+00> : vector<128x128xf32>
    %389 = tpu.matmul %386, %388, %cst_260 {dimension_numbers = #tpu.dot_dimension_numbers<[1], [0], [0], [1], [0, 0, 1, 1], [], []>} : vector<128x128xbf16>, vector<128x128xbf16>, vector<128x128xf32> -> vector<128x128xf32>
    %390 = arith.addf %381, %389 : vector<128x128xf32>
    %c320_i32_261 = arith.constant 320 : i32
    %391 = arith.addi %317, %c320_i32_261 : i32
    %c32_i32_262 = arith.constant 32 : i32
    %392 = arith.addi %391, %c32_i32_262 : i32
    %393 = tpu.assume_multiple %392, 16 : i32
    %394 = arith.index_cast %393 : i32 to index
    %c0_263 = arith.constant 0 : index
    %395 = vector.load %arg2[%394, %c0_263] : memref<1600x128xbf16, #tpu.memory_space<vmem>>, vector<128x128xbf16>
    %c8_264 = arith.constant 8 : index
    %c0_265 = arith.constant 0 : index
    %c0_266 = arith.constant 0 : index
    %396 = vector.load %arg3[%c8_264, %c0_265, %c0_266] : memref<9x128x128xbf16, #tpu.memory_space<vmem>>, vector<1x128x128xbf16>
    %397 = vector.shape_cast %396 : vector<1x128x128xbf16> to vector<128x128xbf16>
    %cst_267 = arith.constant dense<0.000000e+00> : vector<128x128xf32>
    %398 = tpu.matmul %395, %397, %cst_267 {dimension_numbers = #tpu.dot_dimension_numbers<[1], [0], [0], [1], [0, 0, 1, 1], [], []>} : vector<128x128xbf16>, vector<128x128xbf16>, vector<128x128xf32> -> vector<128x128xf32>
    %399 = arith.addf %390, %398 : vector<128x128xf32>
    %400 = arith.truncf %399 : vector<128x128xf32> to vector<128x128xbf16>
    %c384 = arith.constant 384 : index
    %c0_268 = arith.constant 0 : index
    %401 = vector.load %arg4[%c384, %c0_268] : memref<512x128xbf16, #tpu.memory_space<vmem>>, vector<128x128xbf16>
    tpu.vector_store %arg4[%c384, %c0_268], %400 {strides = array<i32>} : memref<512x128xbf16, #tpu.memory_space<vmem>>, vector<128x128xbf16>,
    %cst_269 = arith.constant 0.000000e+00 : f32
    %402 = vector.shape_cast %22 : vector<128x1xi1> to vector<128x1xi1>
    %403 = vector.broadcast %402 : vector<128x1xi1> to vector<128x128xi1>
    %404 = vector.broadcast %cst_269 : f32 to vector<128x128xf32>
    %405 = arith.select %403, %399, %404 : vector<128x128xi1>, vector<128x128xf32>
    %cst_270 = arith.constant dense<0.000000e+00> : vector<128xf32>
    %406 = vector.multi_reduction <add>, %405, %cst_270 [0] : vector<128x128xf32> to vector<128xf32>
    %407 = vector.shape_cast %406 : vector<128xf32> to vector<1x128xf32>
    %408 = arith.addf %311, %407 : vector<1x128xf32>
    %409 = arith.mulf %405, %405 : vector<128x128xf32>
    %cst_271 = arith.constant dense<0.000000e+00> : vector<128xf32>
    %410 = vector.multi_reduction <add>, %409, %cst_271 [0] : vector<128x128xf32> to vector<128xf32>
    %411 = vector.shape_cast %410 : vector<128xf32> to vector<1x128xf32>
    %412 = arith.addf %315, %411 : vector<1x128xf32>
    %cst_272 = arith.constant 0.000000e+00 : f32
    %413 = vector.broadcast %cst_272 : f32 to vector<6x128xf32>
    %414 = tpu.concatenate %408, %412, %413 in 0 : vector<1x128xf32>, vector<1x128xf32>, vector<6x128xf32> -> vector<8x128xf32>
    %415 = vector.shape_cast %414 : vector<8x128xf32> to vector<1x8x128xf32>
    %c0_273 = arith.constant 0 : index
    %c0_274 = arith.constant 0 : index
    %c0_275 = arith.constant 0 : index
    %416 = vector.load %arg5[%c0_273, %c0_274, %c0_275] : memref<1x8x128xf32, #tpu.memory_space<vmem>>, vector<1x8x128xf32>
    tpu.vector_store %arg5[%c0_273, %c0_274, %c0_275], %415 {strides = array<i32>} : memref<1x8x128xf32, #tpu.memory_space<vmem>>, vector<1x8x128xf32>,
    return
  }
  func.func @transform_0(%arg0: i32, %arg1: i32) -> (i32, i32) {
    %c0_i32 = arith.constant 0 : i32
    %c0_i32_0 = arith.constant 0 : i32
    return %arg0, %c0_i32 : i32, i32
  }
  func.func @transform_1(%arg0: i32, %arg1: i32) -> (i32, i32, i32) {
    %c0_i32 = arith.constant 0 : i32
    %c0_i32_0 = arith.constant 0 : i32
    %c0_i32_1 = arith.constant 0 : i32
    %c0_i32_2 = arith.constant 0 : i32
    return %c0_i32, %c0_i32_0, %c0_i32_1 : i32, i32, i32
  }
  func.func @transform_2(%arg0: i32, %arg1: i32) -> (i32, i32) {
    %c2_i32 = arith.constant 2 : i32
    %0 = arith.muli %arg0, %c2_i32 : i32
    %1 = arith.addi %0, %arg1 : i32
    %c0_i32 = arith.constant 0 : i32
    %c0_i32_0 = arith.constant 0 : i32
    return %1, %c0_i32 : i32, i32
  }
  func.func @transform_3(%arg0: i32, %arg1: i32) -> (i32, i32, i32) {
    %c2_i32 = arith.constant 2 : i32
    %0 = arith.muli %arg0, %c2_i32 : i32
    %1 = arith.addi %0, %arg1 : i32
    %c0_i32 = arith.constant 0 : i32
    %c0_i32_0 = arith.constant 0 : i32
    %c0_i32_1 = arith.constant 0 : i32
    return %1, %c0_i32, %c0_i32_0 : i32, i32, i32
  }
}

module attributes {stable_mosaic.version = 11 : i64} {
  func.func @_scale_shift_relu_kernel(%arg0: i32, %arg1: memref<1024x128xbf16, #tpu.memory_space<vmem>>, %arg2: memref<1x128xf32, #tpu.memory_space<vmem>>, %arg3: memref<1x128xf32, #tpu.memory_space<vmem>>, %arg4: memref<1024x128xbf16, #tpu.memory_space<vmem>>) attributes {dimension_semantics = [#tpu.dimension_semantics<parallel>], iteration_bounds = array<i64: 2>, scalar_prefetch = 0 : i64, scratch_operands = 0 : i64, tpu.core_type = #tpu.core_type<tc>, window_params = [{transform_indices = @transform_0, window_bounds = array<i64: 1024, 128>}, {pipeline_mode = #tpu.pipeline_mode<synchronous>, transform_indices = @transform_1, window_bounds = array<i64: 1, 128>}, {pipeline_mode = #tpu.pipeline_mode<synchronous>, transform_indices = @transform_2, window_bounds = array<i64: 1, 128>}, {transform_indices = @transform_3, window_bounds = array<i64: 1024, 128>}]} {
    %c0 = arith.constant 0 : index
    %c0_0 = arith.constant 0 : index
    %0 = vector.load %arg1[%c0, %c0_0] : memref<1024x128xbf16, #tpu.memory_space<vmem>>, vector<1024x128xbf16>
    %1 = arith.extf %0 : vector<1024x128xbf16> to vector<1024x128xf32>
    %c0_1 = arith.constant 0 : index
    %c0_2 = arith.constant 0 : index
    %2 = vector.load %arg2[%c0_1, %c0_2] : memref<1x128xf32, #tpu.memory_space<vmem>>, vector<1x128xf32>
    %3 = vector.broadcast %2 : vector<1x128xf32> to vector<1024x128xf32>
    %4 = arith.mulf %1, %3 : vector<1024x128xf32>
    %c0_3 = arith.constant 0 : index
    %c0_4 = arith.constant 0 : index
    %5 = vector.load %arg3[%c0_3, %c0_4] : memref<1x128xf32, #tpu.memory_space<vmem>>, vector<1x128xf32>
    %6 = vector.broadcast %5 : vector<1x128xf32> to vector<1024x128xf32>
    %7 = arith.addf %4, %6 : vector<1024x128xf32>
    %cst = arith.constant 0.000000e+00 : f32
    %8 = vector.broadcast %cst : f32 to vector<1024x128xf32>
    %9 = arith.maximumf %7, %8 : vector<1024x128xf32>
    %10 = arith.truncf %9 : vector<1024x128xf32> to vector<1024x128xbf16>
    %c0_5 = arith.constant 0 : index
    %c0_6 = arith.constant 0 : index
    %11 = vector.load %arg4[%c0_5, %c0_6] : memref<1024x128xbf16, #tpu.memory_space<vmem>>, vector<1024x128xbf16>
    tpu.vector_store %arg4[%c0_5, %c0_6], %10 {strides = array<i32>} : memref<1024x128xbf16, #tpu.memory_space<vmem>>, vector<1024x128xbf16>,
    return
  }
  func.func @transform_0(%arg0: i32) -> (i32, i32) {
    %c0_i32 = arith.constant 0 : i32
    %c0_i32_0 = arith.constant 0 : i32
    return %arg0, %c0_i32 : i32, i32
  }
  func.func @transform_1(%arg0: i32) -> (i32, i32) {
    %c0_i32 = arith.constant 0 : i32
    %c0_i32_0 = arith.constant 0 : i32
    %c0_i32_1 = arith.constant 0 : i32
    return %c0_i32, %c0_i32_0 : i32, i32
  }
  func.func @transform_2(%arg0: i32) -> (i32, i32) {
    %c0_i32 = arith.constant 0 : i32
    %c0_i32_0 = arith.constant 0 : i32
    %c0_i32_1 = arith.constant 0 : i32
    return %c0_i32, %c0_i32_0 : i32, i32
  }
  func.func @transform_3(%arg0: i32) -> (i32, i32) {
    %c0_i32 = arith.constant 0 : i32
    %c0_i32_0 = arith.constant 0 : i32
    return %arg0, %c0_i32 : i32, i32
  }
}

module attributes {stable_mosaic.version = 11 : i64} {
  func.func @_scale_shift_add_relu_kernel(%arg0: i32, %arg1: memref<512x128xbf16, #tpu.memory_space<vmem>>, %arg2: memref<1x128xf32, #tpu.memory_space<vmem>>, %arg3: memref<1x128xf32, #tpu.memory_space<vmem>>, %arg4: memref<512x128xbf16, #tpu.memory_space<vmem>>, %arg5: memref<512x128xbf16, #tpu.memory_space<vmem>>) attributes {dimension_semantics = [#tpu.dimension_semantics<parallel>], iteration_bounds = array<i64: 2>, scalar_prefetch = 0 : i64, scratch_operands = 0 : i64, tpu.core_type = #tpu.core_type<tc>, window_params = [{transform_indices = @transform_0, window_bounds = array<i64: 512, 128>}, {pipeline_mode = #tpu.pipeline_mode<synchronous>, transform_indices = @transform_1, window_bounds = array<i64: 1, 128>}, {pipeline_mode = #tpu.pipeline_mode<synchronous>, transform_indices = @transform_2, window_bounds = array<i64: 1, 128>}, {transform_indices = @transform_3, window_bounds = array<i64: 512, 128>}, {transform_indices = @transform_4, window_bounds = array<i64: 512, 128>}]} {
    %c0 = arith.constant 0 : index
    %c0_0 = arith.constant 0 : index
    %0 = vector.load %arg1[%c0, %c0_0] : memref<512x128xbf16, #tpu.memory_space<vmem>>, vector<512x128xbf16>
    %1 = arith.extf %0 : vector<512x128xbf16> to vector<512x128xf32>
    %c0_1 = arith.constant 0 : index
    %c0_2 = arith.constant 0 : index
    %2 = vector.load %arg2[%c0_1, %c0_2] : memref<1x128xf32, #tpu.memory_space<vmem>>, vector<1x128xf32>
    %3 = vector.broadcast %2 : vector<1x128xf32> to vector<512x128xf32>
    %4 = arith.mulf %1, %3 : vector<512x128xf32>
    %c0_3 = arith.constant 0 : index
    %c0_4 = arith.constant 0 : index
    %5 = vector.load %arg3[%c0_3, %c0_4] : memref<1x128xf32, #tpu.memory_space<vmem>>, vector<1x128xf32>
    %6 = vector.broadcast %5 : vector<1x128xf32> to vector<512x128xf32>
    %7 = arith.addf %4, %6 : vector<512x128xf32>
    %c0_5 = arith.constant 0 : index
    %c0_6 = arith.constant 0 : index
    %8 = vector.load %arg4[%c0_5, %c0_6] : memref<512x128xbf16, #tpu.memory_space<vmem>>, vector<512x128xbf16>
    %9 = arith.extf %8 : vector<512x128xbf16> to vector<512x128xf32>
    %10 = arith.addf %7, %9 : vector<512x128xf32>
    %cst = arith.constant 0.000000e+00 : f32
    %11 = vector.broadcast %cst : f32 to vector<512x128xf32>
    %12 = arith.maximumf %10, %11 : vector<512x128xf32>
    %13 = arith.truncf %12 : vector<512x128xf32> to vector<512x128xbf16>
    %c0_7 = arith.constant 0 : index
    %c0_8 = arith.constant 0 : index
    %14 = vector.load %arg5[%c0_7, %c0_8] : memref<512x128xbf16, #tpu.memory_space<vmem>>, vector<512x128xbf16>
    tpu.vector_store %arg5[%c0_7, %c0_8], %13 {strides = array<i32>} : memref<512x128xbf16, #tpu.memory_space<vmem>>, vector<512x128xbf16>,
    return
  }
  func.func @transform_0(%arg0: i32) -> (i32, i32) {
    %c0_i32 = arith.constant 0 : i32
    %c0_i32_0 = arith.constant 0 : i32
    return %arg0, %c0_i32 : i32, i32
  }
  func.func @transform_1(%arg0: i32) -> (i32, i32) {
    %c0_i32 = arith.constant 0 : i32
    %c0_i32_0 = arith.constant 0 : i32
    %c0_i32_1 = arith.constant 0 : i32
    return %c0_i32, %c0_i32_0 : i32, i32
  }
  func.func @transform_2(%arg0: i32) -> (i32, i32) {
    %c0_i32 = arith.constant 0 : i32
    %c0_i32_0 = arith.constant 0 : i32
    %c0_i32_1 = arith.constant 0 : i32
    return %c0_i32, %c0_i32_0 : i32, i32
  }
  func.func @transform_3(%arg0: i32) -> (i32, i32) {
    %c0_i32 = arith.constant 0 : i32
    %c0_i32_0 = arith.constant 0 : i32
    return %arg0, %c0_i32 : i32, i32
  }
  func.func @transform_4(%arg0: i32) -> (i32, i32) {
    %c0_i32 = arith.constant 0 : i32
    %c0_i32_0 = arith.constant 0 : i32
    return %arg0, %c0_i32 : i32, i32
  }
}

</mosaic_0001>

<bundles_post_ra>
// kernel: basic_block_forward.5
= control target key start
LH: loop header
LB: loop body
LE: loop exit
PB: predicated region body
PF: predicated region fallthrough
CT: control target
= control target key end

     0   :  { %s2533_s12 = smov 0   ;;  %s2965_s0 = inlined_call_operand.vmem [shape: bf16[2048,128], index: 0, kind: input, shape index: {}]   ;;  %s2966_s1 = inlined_call_operand.vmem [shape: f32[1,128], index: 1, kind: input, shape index: {}]   ;;  %s2967_s2 = inlined_call_operand.vmem [shape: f32[1,128], index: 2, kind: input, shape index: {}]   ;;  %s2968_s3 = inlined_call_operand.vmem [shape: bf16[2048,128], index: 3, kind: output, shape index: {}]  }
   0x1 LB: > { %s1524_s13 = sadd.s32 4294967295, %s2511_s12   ;;  %p1528_p0 = scmp.ge.s32.totalorder %s2511_s12, 1  ;;  %s2511_s12 = sphi %s2533_s12, %s13_s12  }
   0x2   : > { %p138_p1 = scmp.lt.s32.totalorder %s2511_s12, 3 }
   0x4   : > { %p139_p2 = pnand %p1528_p0, %p138_p1 }
   0x5   : > { %s1529_s14 = sshll.u32 (!%p139_p2), %s1524_s13, 7  ;;  %v2554_v0 = vld [vmem:[%s2966_s1] ss:$0 sm:$0xff] (!%p139_p2) }
   0x6   : > { %142 = sbr.rel (%p139_p2) target bundleno = 167 (0xa7), region = 32  ;;  %p163_p3 = scmp.lt.s32.totalorder (!%p139_p2), %s1529_s14, 255  ;;  %v2563_v9 = vld [vmem:[%s2967_s2] ss:$0 sm:$0xff] (!%p139_p2) }
   0xd   : > { %s2970_s14 = smov (!%p163_p3, %s1529_s14), 255 }
   0xe   : > { %s1530_s15 = sshll.u32 %s2970_s14, 2 }
   0xf   : > { %s2549_s18 = scalar_lea.vmem %s2965_s0, %s1530_s15  ;;  %s2588_s25 = scalar_lea.vmem %s2968_s3, %s1530_s15 }
  0x10   : > { %v1794_v1 = vld [vmem:[%s2549_s18] sm:$0xff]   ;;  %v2369_v2 = vld [vmem:[%s2549_s18 + $0x8] sm:$0xff]   ;;  %v2370_v3 = vld [vmem:[%s2549_s18 + $0x10] sm:$0xff]  }
  0x11   : > { %v1795_v4 = vunpack.c.l.bf16 %v1794_v1  ;;  %v1796_v5 = vunpack.c.h.bf16 %v1794_v1  ;;  %v1799_v6 = vunpack.c.l.bf16 %v2369_v2  ;;  %v1800_v7 = vunpack.c.h.bf16 %v2369_v2  ;;  %v2371_v8 = vld [vmem:[%s2549_s18 + $0x18] sm:$0xff]   ;;  %v2372_v30 = vld [vmem:[%s2549_s18 + $0x20] sm:$0xff]   ;;  %v2373_v35 = vld [vmem:[%s2549_s18 + $0x28] sm:$0xff]  }
  0x12   : > { %v1803_v10 = vunpack.c.l.bf16 %v2370_v3  ;;  %v1804_v11 = vunpack.c.h.bf16 %v2370_v3  ;;  %v1807_v12 = vunpack.c.l.bf16 %v2371_v8  ;;  %v1808_v13 = vunpack.c.h.bf16 %v2371_v8  ;;  %v2374_v40 = vld [vmem:[%s2549_s18 + $0x30] sm:$0xff]   ;;  %v2375_v45 = vld [vmem:[%s2549_s18 + $0x38] sm:$0xff]   ;;  %v2376_v3 = vld [vmem:[%s2549_s18 + $0x40] sm:$0xff]  }
  0x13   : > { %v437_v14 = vmul.f32 %v1795_v4, %v2554_v0  ;;  %v438_v15 = vmul.f32 %v1796_v5, %v2554_v0  ;;  %v439_v16 = vmul.f32 %v1799_v6, %v2554_v0  ;;  %v440_v17 = vmul.f32 %v1800_v7, %v2554_v0 }
  0x14   : > { %v441_v18 = vmul.f32 %v1803_v10, %v2554_v0  ;;  %v442_v19 = vmul.f32 %v1804_v11, %v2554_v0  ;;  %v443_v20 = vmul.f32 %v1807_v12, %v2554_v0  ;;  %v444_v21 = vmul.f32 %v1808_v13, %v2554_v0  ;;  %v2377_v13 = vld [vmem:[%s2549_s18 + $0x48] sm:$0xff]  }
  0x15   : > { %v572_v22 = vadd.f32 %v2563_v9, %v437_v14  ;;  %v573_v23 = vadd.f32 %v2563_v9, %v438_v15  ;;  %v574_v24 = vadd.f32 %v2563_v9, %v439_v16  ;;  %v575_v25 = vadd.f32 %v2563_v9, %v440_v17 }
  0x16   : > { %v576_v26 = vadd.f32 %v2563_v9, %v441_v18  ;;  %v577_v27 = vadd.f32 %v2563_v9, %v442_v19  ;;  %v578_v28 = vadd.f32 %v2563_v9, %v443_v20  ;;  %v579_v29 = vadd.f32 %v2563_v9, %v444_v21  ;;  %v2378_v18 = vld [vmem:[%s2549_s18 + $0x50] sm:$0xff]  }
  0x17   : > { %v700_v31 = vmax.f32 %v572_v22, 0.0  ;;  %v701_v32 = vmax.f32 %v573_v23, 0.0  ;;  %v702_v33 = vmax.f32 %v574_v24, 0.0  ;;  %v703_v34 = vmax.f32 %v575_v25, 0.0  ;;  %v2379_v23 = vld [vmem:[%s2549_s18 + $0x58] sm:$0xff]  }
  0x18   : > { %v704_v36 = vmax.f32 %v576_v26, 0.0  ;;  %v705_v37 = vmax.f32 %v577_v27, 0.0  ;;  %v706_v38 = vmax.f32 %v578_v28, 0.0  ;;  %v707_v39 = vmax.f32 %v579_v29, 0.0 }
  0x19   : > { %v2052_v41 = vpack.c.bf16 %v701_v32, %v700_v31  ;;  %v2057_v42 = vpack.c.bf16 %v703_v34, %v702_v33  ;;  %v1811_v43 = vunpack.c.l.bf16 %v2372_v30  ;;  %v1812_v44 = vunpack.c.h.bf16 %v2372_v30 }
  0x1a   : > { %v2062_v46 = vpack.c.bf16 %v705_v37, %v704_v36  ;;  %v2067_v47 = vpack.c.bf16 %v707_v39, %v706_v38  ;;  %v1815_v48 = vunpack.c.l.bf16 %v2373_v35  ;;  %v1816_v49 = vunpack.c.h.bf16 %v2373_v35 }
  0x1b   : > { %2053 = vst [vmem:[%s2588_s25] sm:$0xff] %v2052_v41   ;;  %2432 = vst [vmem:[%s2588_s25 + $0x8] sm:$0xff] %v2057_v42   ;;  %v445_v50 = vmul.f32 %v1811_v43, %v2554_v0  ;;  %v446_v51 = vmul.f32 %v1812_v44, %v2554_v0  ;;  %v1819_v52 = vunpack.c.l.bf16 %v2374_v40  ;;  %v1820_v53 = vunpack.c.h.bf16 %v2374_v40  ;;  %v2380_v40 = vld [vmem:[%s2549_s18 + $0x60] sm:$0xff]  }
  0x1c   : > { %2433 = vst [vmem:[%s2588_s25 + $0x10] sm:$0xff] %v2062_v46   ;;  %2434 = vst [vmem:[%s2588_s25 + $0x18] sm:$0xff] %v2067_v47   ;;  %v447_v54 = vmul.f32 %v1815_v48, %v2554_v0  ;;  %v448_v55 = vmul.f32 %v1816_v49, %v2554_v0  ;;  %v1823_v56 = vunpack.c.l.bf16 %v2375_v45  ;;  %v1824_v57 = vunpack.c.h.bf16 %v2375_v45 }
  0x1d   : > { %v580_v58 = vadd.f32 %v2563_v9, %v445_v50  ;;  %v581_v59 = vadd.f32 %v2563_v9, %v446_v51  ;;  %v449_v60 = vmul.f32 %v1819_v52, %v2554_v0  ;;  %v450_v61 = vmul.f32 %v1820_v53, %v2554_v0  ;;  %v2381_v53 = vld [vmem:[%s2549_s18 + $0x68] sm:$0xff]  }
  0x1e   : > { %v582_v62 = vadd.f32 %v2563_v9, %v447_v54  ;;  %v583_v63 = vadd.f32 %v2563_v9, %v448_v55  ;;  %v451_v1 = vmul.f32 %v1823_v56, %v2554_v0  ;;  %v452_v2 = vmul.f32 %v1824_v57, %v2554_v0 }
  0x1f   : > { %v708_v4 = vmax.f32 %v580_v58, 0.0  ;;  %v709_v5 = vmax.f32 %v581_v59, 0.0  ;;  %v584_v6 = vadd.f32 %v2563_v9, %v449_v60  ;;  %v585_v7 = vadd.f32 %v2563_v9, %v450_v61  ;;  %v2382_v58 = vld [vmem:[%s2549_s18 + $0x70] sm:$0xff]  }
  0x20   : > { %v710_v8 = vmax.f32 %v582_v62, 0.0  ;;  %v711_v10 = vmax.f32 %v583_v63, 0.0  ;;  %v586_v11 = vadd.f32 %v2563_v9, %v451_v1  ;;  %v587_v12 = vadd.f32 %v2563_v9, %v452_v2  ;;  %v2383_v63 = vld [vmem:[%s2549_s18 + $0x78] sm:$0xff]  }
  0x21   : > { %v2072_v14 = vpack.c.bf16 %v709_v5, %v708_v4  ;;  %v712_v15 = vmax.f32 %v584_v6, 0.0  ;;  %v713_v16 = vmax.f32 %v585_v7, 0.0  ;;  %v1827_v17 = vunpack.c.l.bf16 %v2376_v3 }
  0x22   : > { %v2077_v19 = vpack.c.bf16 %v711_v10, %v710_v8  ;;  %v714_v20 = vmax.f32 %v586_v11, 0.0  ;;  %v715_v21 = vmax.f32 %v587_v12, 0.0  ;;  %v1828_v22 = vunpack.c.h.bf16 %v2376_v3 }
  0x23   : > { %2435 = vst [vmem:[%s2588_s25 + $0x20] sm:$0xff] %v2072_v14   ;;  %v2082_v24 = vpack.c.bf16 %v713_v16, %v712_v15  ;;  %v453_v25 = vmul.f32 %v1827_v17, %v2554_v0  ;;  %v1831_v26 = vunpack.c.l.bf16 %v2377_v13  ;;  %v1832_v27 = vunpack.c.h.bf16 %v2377_v13  ;;  %v2384_v14 = vld [vmem:[%s2549_s18 + $0x80] sm:$0xff]  }
  0x24   : > { %2436 = vst [vmem:[%s2588_s25 + $0x28] sm:$0xff] %v2077_v19   ;;  %v2087_v28 = vpack.c.bf16 %v715_v21, %v714_v20  ;;  %v454_v29 = vmul.f32 %v1828_v22, %v2554_v0  ;;  %v1835_v30 = vunpack.c.l.bf16 %v2378_v18  ;;  %v1836_v31 = vunpack.c.h.bf16 %v2378_v18 }
  0x25   : > { %2437 = vst [vmem:[%s2588_s25 + $0x30] sm:$0xff] %v2082_v24   ;;  %v588_v32 = vadd.f32 %v2563_v9, %v453_v25  ;;  %v455_v33 = vmul.f32 %v1831_v26, %v2554_v0  ;;  %v456_v34 = vmul.f32 %v1832_v27, %v2554_v0  ;;  %v1839_v35 = vunpack.c.l.bf16 %v2379_v23 }
  0x26   : > { %2438 = vst [vmem:[%s2588_s25 + $0x38] sm:$0xff] %v2087_v28   ;;  %v589_v36 = vadd.f32 %v2563_v9, %v454_v29  ;;  %v457_v37 = vmul.f32 %v1835_v30, %v2554_v0  ;;  %v458_v38 = vmul.f32 %v1836_v31, %v2554_v0  ;;  %v1840_v39 = vunpack.c.h.bf16 %v2379_v23  ;;  %v2385_v31 = vld [vmem:[%s2549_s18 + $0x88] sm:$0xff]  }
  0x27   : > { %v716_v41 = vmax.f32 %v588_v32, 0.0  ;;  %v590_v42 = vadd.f32 %v2563_v9, %v455_v33  ;;  %v591_v43 = vadd.f32 %v2563_v9, %v456_v34  ;;  %v459_v44 = vmul.f32 %v1839_v35, %v2554_v0 }
  0x28   : > { %v717_v45 = vmax.f32 %v589_v36, 0.0  ;;  %v592_v46 = vadd.f32 %v2563_v9, %v457_v37  ;;  %v593_v47 = vadd.f32 %v2563_v9, %v458_v38  ;;  %v460_v48 = vmul.f32 %v1840_v39, %v2554_v0  ;;  %v2386_v36 = vld [vmem:[%s2549_s18 + $0x90] sm:$0xff]  }
  0x29   : > { %v718_v49 = vmax.f32 %v590_v42, 0.0  ;;  %v719_v50 = vmax.f32 %v591_v43, 0.0  ;;  %v594_v51 = vadd.f32 %v2563_v9, %v459_v44  ;;  %v1843_v52 = vunpack.c.l.bf16 %v2380_v40 }
  0x2a   : > { %v2092_v54 = vpack.c.bf16 %v717_v45, %v716_v41  ;;  %v720_v55 = vmax.f32 %v592_v46, 0.0  ;;  %v721_v56 = vmax.f32 %v593_v47, 0.0  ;;  %v595_v57 = vadd.f32 %v2563_v9, %v460_v48  ;;  %v2387_v41 = vld [vmem:[%s2549_s18 + $0x98] sm:$0xff]  }
  0x2b   : > { %v2097_v59 = vpack.c.bf16 %v719_v50, %v718_v49  ;;  %v722_v60 = vmax.f32 %v594_v51, 0.0  ;;  %v1844_v61 = vunpack.c.h.bf16 %v2380_v40  ;;  %v461_v62 = vmul.f32 %v1843_v52, %v2554_v0 }
  0x2c   : > { %2439 = vst [vmem:[%s2588_s25 + $0x40] sm:$0xff] %v2092_v54   ;;  %v2102_v1 = vpack.c.bf16 %v721_v56, %v720_v55  ;;  %v723_v2 = vmax.f32 %v595_v57, 0.0  ;;  %v1847_v3 = vunpack.c.l.bf16 %v2381_v53  ;;  %v1848_v4 = vunpack.c.h.bf16 %v2381_v53  ;;  %v2388_v54 = vld [vmem:[%s2549_s18 + $0xa0] sm:$0xff]  }
  0x2d   : > { %2440 = vst [vmem:[%s2588_s25 + $0x48] sm:$0xff] %v2097_v59   ;;  %v462_v5 = vmul.f32 %v1844_v61, %v2554_v0  ;;  %v596_v6 = vadd.f32 %v2563_v9, %v461_v62  ;;  %v1851_v7 = vunpack.c.l.bf16 %v2382_v58  ;;  %v1852_v8 = vunpack.c.h.bf16 %v2382_v58 }
  0x2e   : > { %2441 = vst [vmem:[%s2588_s25 + $0x50] sm:$0xff] %v2102_v1   ;;  %v2107_v10 = vpack.c.bf16 %v723_v2, %v722_v60  ;;  %v463_v11 = vmul.f32 %v1847_v3, %v2554_v0  ;;  %v464_v12 = vmul.f32 %v1848_v4, %v2554_v0  ;;  %v1855_v13 = vunpack.c.l.bf16 %v2383_v63  ;;  %v2389_v4 = vld [vmem:[%s2549_s18 + $0xa8] sm:$0xff]  }
  0x2f   : > { %v597_v15 = vadd.f32 %v2563_v9, %v462_v5  ;;  %v724_v16 = vmax.f32 %v596_v6, 0.0  ;;  %v465_v17 = vmul.f32 %v1851_v7, %v2554_v0  ;;  %v466_v18 = vmul.f32 %v1852_v8, %v2554_v0 }
  0x30   : > { %2442 = vst [vmem:[%s2588_s25 + $0x58] sm:$0xff] %v2107_v10   ;;  %v598_v19 = vadd.f32 %v2563_v9, %v463_v11  ;;  %v599_v20 = vadd.f32 %v2563_v9, %v464_v12  ;;  %v1856_v21 = vunpack.c.h.bf16 %v2383_v63  ;;  %v467_v22 = vmul.f32 %v1855_v13, %v2554_v0 }
  0x31   : > { %v725_v23 = vmax.f32 %v597_v15, 0.0  ;;  %v600_v24 = vadd.f32 %v2563_v9, %v465_v17  ;;  %v601_v25 = vadd.f32 %v2563_v9, %v466_v18  ;;  %v1859_v26 = vunpack.c.l.bf16 %v2384_v14 }
  0x32   : > { %v726_v27 = vmax.f32 %v598_v19, 0.0  ;;  %v727_v28 = vmax.f32 %v599_v20, 0.0  ;;  %v468_v29 = vmul.f32 %v1856_v21, %v2554_v0  ;;  %v602_v30 = vadd.f32 %v2563_v9, %v467_v22  ;;  %v2391_v19 = vld [vmem:[%s2549_s18 + $0xb8] sm:$0xff]  }
  0x33   : > { %v2112_v32 = vpack.c.bf16 %v725_v23, %v724_v16  ;;  %v728_v33 = vmax.f32 %v600_v24, 0.0  ;;  %v729_v34 = vmax.f32 %v601_v25, 0.0  ;;  %v1860_v35 = vunpack.c.h.bf16 %v2384_v14  ;;  %v2390_v14 = vld [vmem:[%s2549_s18 + $0xb0] sm:$0xff]  }
  0x34   : > { %v2117_v37 = vpack.c.bf16 %v727_v28, %v726_v27  ;;  %v603_v38 = vadd.f32 %v2563_v9, %v468_v29  ;;  %v730_v39 = vmax.f32 %v602_v30, 0.0  ;;  %v469_v40 = vmul.f32 %v1859_v26, %v2554_v0 }
  0x35   : > { %2443 = vst [vmem:[%s2588_s25 + $0x60] sm:$0xff] %v2112_v32   ;;  %v2122_v42 = vpack.c.bf16 %v729_v34, %v728_v33  ;;  %v470_v43 = vmul.f32 %v1860_v35, %v2554_v0  ;;  %v1863_v44 = vunpack.c.l.bf16 %v2385_v31  ;;  %v1864_v45 = vunpack.c.h.bf16 %v2385_v31  ;;  %v2392_v32 = vld [vmem:[%s2549_s18 + $0xc0] sm:$0xff]  }
  0x36   : > { %2444 = vst [vmem:[%s2588_s25 + $0x68] sm:$0xff] %v2117_v37   ;;  %v731_v46 = vmax.f32 %v603_v38, 0.0  ;;  %v604_v47 = vadd.f32 %v2563_v9, %v469_v40  ;;  %v1867_v48 = vunpack.c.l.bf16 %v2386_v36  ;;  %v1868_v49 = vunpack.c.h.bf16 %v2386_v36 }
  0x37   : > { %2445 = vst [vmem:[%s2588_s25 + $0x70] sm:$0xff] %v2122_v42   ;;  %v605_v50 = vadd.f32 %v2563_v9, %v470_v43  ;;  %v471_v51 = vmul.f32 %v1863_v44, %v2554_v0  ;;  %v472_v52 = vmul.f32 %v1864_v45, %v2554_v0  ;;  %v1871_v53 = vunpack.c.l.bf16 %v2387_v41  ;;  %v2393_v45 = vld [vmem:[%s2549_s18 + $0xc8] sm:$0xff]  }
  0x38   : > { %v2127_v55 = vpack.c.bf16 %v731_v46, %v730_v39  ;;  %v732_v56 = vmax.f32 %v604_v47, 0.0  ;;  %v473_v57 = vmul.f32 %v1867_v48, %v2554_v0  ;;  %v474_v58 = vmul.f32 %v1868_v49, %v2554_v0 }
  0x39   : > { %v733_v59 = vmax.f32 %v605_v50, 0.0  ;;  %v606_v60 = vadd.f32 %v2563_v9, %v471_v51  ;;  %v607_v61 = vadd.f32 %v2563_v9, %v472_v52  ;;  %v1872_v62 = vunpack.c.h.bf16 %v2387_v41 }
  0x3a   : > { %2446 = vst [vmem:[%s2588_s25 + $0x78] sm:$0xff] %v2127_v55   ;;  %v608_v63 = vadd.f32 %v2563_v9, %v473_v57  ;;  %v609_v1 = vadd.f32 %v2563_v9, %v474_v58  ;;  %v475_v2 = vmul.f32 %v1871_v53, %v2554_v0  ;;  %v1875_v3 = vunpack.c.l.bf16 %v2388_v54 }
  0x3b   : > { %v2132_v5 = vpack.c.bf16 %v733_v59, %v732_v56  ;;  %v734_v6 = vmax.f32 %v606_v60, 0.0  ;;  %v735_v7 = vmax.f32 %v607_v61, 0.0  ;;  %v476_v8 = vmul.f32 %v1872_v62, %v2554_v0 }
  0x3c   : > { %v736_v10 = vmax.f32 %v608_v63, 0.0  ;;  %v737_v11 = vmax.f32 %v609_v1, 0.0  ;;  %v610_v12 = vadd.f32 %v2563_v9, %v475_v2  ;;  %v1876_v13 = vunpack.c.h.bf16 %v2388_v54  ;;  %v2394_v54 = vld [vmem:[%s2549_s18 + $0xd0] sm:$0xff]   ;;  %v2395_v63 = vld [vmem:[%s2549_s18 + $0xd8] sm:$0xff]  }
  0x3d   : > { %2447 = vst [vmem:[%s2588_s25 + $0x80] sm:$0xff] %v2132_v5   ;;  %v2137_v15 = vpack.c.bf16 %v735_v7, %v734_v6  ;;  %v611_v16 = vadd.f32 %v2563_v9, %v476_v8  ;;  %v477_v17 = vmul.f32 %v1875_v3, %v2554_v0  ;;  %v1879_v18 = vunpack.c.l.bf16 %v2389_v4 }
  0x3e   : > { %v2142_v20 = vpack.c.bf16 %v737_v11, %v736_v10  ;;  %v738_v21 = vmax.f32 %v610_v12, 0.0  ;;  %v478_v22 = vmul.f32 %v1876_v13, %v2554_v0  ;;  %v1880_v23 = vunpack.c.h.bf16 %v2389_v4  ;;  %v2396_v10 = vld [vmem:[%s2549_s18 + $0xe0] sm:$0xff]  }
  0x3f   : > { %2448 = vst [vmem:[%s2588_s25 + $0x88] sm:$0xff] %v2137_v15   ;;  %v739_v24 = vmax.f32 %v611_v16, 0.0  ;;  %v612_v25 = vadd.f32 %v2563_v9, %v477_v17  ;;  %v479_v26 = vmul.f32 %v1879_v18, %v2554_v0  ;;  %v1883_v27 = vunpack.c.l.bf16 %v2390_v14 }
  0x40   : > { %2449 = vst [vmem:[%s2588_s25 + $0x90] sm:$0xff] %v2142_v20   ;;  %v613_v28 = vadd.f32 %v2563_v9, %v478_v22  ;;  %v480_v29 = vmul.f32 %v1880_v23, %v2554_v0  ;;  %v1884_v30 = vunpack.c.h.bf16 %v2390_v14  ;;  %v1887_v31 = vunpack.c.l.bf16 %v2391_v19  ;;  %v2397_v23 = vld [vmem:[%s2549_s18 + $0xe8] sm:$0xff]  }
  0x41   : > { %v2147_v33 = vpack.c.bf16 %v739_v24, %v738_v21  ;;  %v740_v34 = vmax.f32 %v612_v25, 0.0  ;;  %v614_v35 = vadd.f32 %v2563_v9, %v479_v26  ;;  %v481_v36 = vmul.f32 %v1883_v27, %v2554_v0 }
  0x42   : > { %v741_v37 = vmax.f32 %v613_v28, 0.0  ;;  %v615_v38 = vadd.f32 %v2563_v9, %v480_v29  ;;  %v482_v39 = vmul.f32 %v1884_v30, %v2554_v0  ;;  %v1888_v40 = vunpack.c.h.bf16 %v2391_v19 }
  0x43   : > { %2450 = vst [vmem:[%s2588_s25 + $0x98] sm:$0xff] %v2147_v33   ;;  %v742_v41 = vmax.f32 %v614_v35, 0.0  ;;  %v616_v42 = vadd.f32 %v2563_v9, %v481_v36  ;;  %v483_v43 = vmul.f32 %v1887_v31, %v2554_v0  ;;  %v1891_v44 = vunpack.c.l.bf16 %v2392_v32 }
  0x44   : > { %v2152_v46 = vpack.c.bf16 %v741_v37, %v740_v34  ;;  %v743_v47 = vmax.f32 %v615_v38, 0.0  ;;  %v617_v48 = vadd.f32 %v2563_v9, %v482_v39  ;;  %v484_v49 = vmul.f32 %v1888_v40, %v2554_v0 }
  0x45   : > { %v744_v50 = vmax.f32 %v616_v42, 0.0  ;;  %v618_v51 = vadd.f32 %v2563_v9, %v483_v43  ;;  %v1892_v52 = vunpack.c.h.bf16 %v2392_v32  ;;  %v485_v53 = vmul.f32 %v1891_v44, %v2554_v0  ;;  %v2398_v32 = vld [vmem:[%s2549_s18 + $0xf0] sm:$0xff]  }
  0x46   : > { %2451 = vst [vmem:[%s2588_s25 + $0xa0] sm:$0xff] %v2152_v46   ;;  %v2157_v55 = vpack.c.bf16 %v743_v47, %v742_v41  ;;  %v745_v56 = vmax.f32 %v617_v48, 0.0  ;;  %v619_v57 = vadd.f32 %v2563_v9, %v484_v49  ;;  %v1895_v58 = vunpack.c.l.bf16 %v2393_v45  ;;  %v2399_v41 = vld [vmem:[%s2549_s18 + $0xf8] sm:$0xff]  }
  0x47   : > { %v746_v59 = vmax.f32 %v618_v51, 0.0  ;;  %v486_v60 = vmul.f32 %v1892_v52, %v2554_v0  ;;  %v620_v61 = vadd.f32 %v2563_v9, %v485_v53  ;;  %v1896_v62 = vunpack.c.h.bf16 %v2393_v45 }
  0x48   : > { %2452 = vst [vmem:[%s2588_s25 + $0xa8] sm:$0xff] %v2157_v55   ;;  %v2162_v1 = vpack.c.bf16 %v745_v56, %v744_v50  ;;  %v747_v2 = vmax.f32 %v619_v57, 0.0  ;;  %v487_v3 = vmul.f32 %v1895_v58, %v2554_v0  ;;  %v1899_v4 = vunpack.c.l.bf16 %v2394_v54  ;;  %v2400_v50 = vld [vmem:[%s2549_s18 + $0x100] sm:$0xff]  }
  0x49   : > { %v621_v5 = vadd.f32 %v2563_v9, %v486_v60  ;;  %v748_v6 = vmax.f32 %v620_v61, 0.0  ;;  %v488_v7 = vmul.f32 %v1896_v62, %v2554_v0  ;;  %v1900_v8 = vunpack.c.h.bf16 %v2394_v54 }
  0x4a   : > { %2453 = vst [vmem:[%s2588_s25 + $0xb0] sm:$0xff] %v2162_v1   ;;  %v2167_v11 = vpack.c.bf16 %v747_v2, %v746_v59  ;;  %v622_v12 = vadd.f32 %v2563_v9, %v487_v3  ;;  %v489_v13 = vmul.f32 %v1899_v4, %v2554_v0  ;;  %v1903_v14 = vunpack.c.l.bf16 %v2395_v63 }
  0x4b   : > { %v749_v15 = vmax.f32 %v621_v5, 0.0  ;;  %v623_v16 = vadd.f32 %v2563_v9, %v488_v7  ;;  %v490_v17 = vmul.f32 %v1900_v8, %v2554_v0  ;;  %v1904_v18 = vunpack.c.h.bf16 %v2395_v63  ;;  %v2401_v63 = vld [vmem:[%s2549_s18 + $0x108] sm:$0xff]  }
  0x4c   : > { %2454 = vst [vmem:[%s2588_s25 + $0xb8] sm:$0xff] %v2167_v11   ;;  %v750_v19 = vmax.f32 %v622_v12, 0.0  ;;  %v624_v20 = vadd.f32 %v2563_v9, %v489_v13  ;;  %v491_v21 = vmul.f32 %v1903_v14, %v2554_v0  ;;  %v1907_v22 = vunpack.c.l.bf16 %v2396_v10 }
  0x4d   : > { %v2172_v24 = vpack.c.bf16 %v749_v15, %v748_v6  ;;  %v751_v25 = vmax.f32 %v623_v16, 0.0  ;;  %v625_v26 = vadd.f32 %v2563_v9, %v490_v17  ;;  %v492_v27 = vmul.f32 %v1904_v18, %v2554_v0 }
  0x4e   : > { %v752_v28 = vmax.f32 %v624_v20, 0.0  ;;  %v626_v29 = vadd.f32 %v2563_v9, %v491_v21  ;;  %v1908_v30 = vunpack.c.h.bf16 %v2396_v10  ;;  %v493_v31 = vmul.f32 %v1907_v22, %v2554_v0  ;;  %v2402_v10 = vld [vmem:[%s2549_s18 + $0x110] sm:$0xff]  }
  0x4f   : > { %2455 = vst [vmem:[%s2588_s25 + $0xc0] sm:$0xff] %v2172_v24   ;;  %v2177_v33 = vpack.c.bf16 %v751_v25, %v750_v19  ;;  %v753_v34 = vmax.f32 %v625_v26, 0.0  ;;  %v627_v35 = vadd.f32 %v2563_v9, %v492_v27  ;;  %v1911_v36 = vunpack.c.l.bf16 %v2397_v23  ;;  %v2403_v19 = vld [vmem:[%s2549_s18 + $0x118] sm:$0xff]  }
  0x50   : > { %v754_v37 = vmax.f32 %v626_v29, 0.0  ;;  %v494_v38 = vmul.f32 %v1908_v30, %v2554_v0  ;;  %v628_v39 = vadd.f32 %v2563_v9, %v493_v31  ;;  %v1912_v40 = vunpack.c.h.bf16 %v2397_v23 }
  0x51   : > { %2456 = vst [vmem:[%s2588_s25 + $0xc8] sm:$0xff] %v2177_v33   ;;  %v2182_v42 = vpack.c.bf16 %v753_v34, %v752_v28  ;;  %v755_v43 = vmax.f32 %v627_v35, 0.0  ;;  %v495_v44 = vmul.f32 %v1911_v36, %v2554_v0  ;;  %v1915_v45 = vunpack.c.l.bf16 %v2398_v32  ;;  %v2404_v28 = vld [vmem:[%s2549_s18 + $0x120] sm:$0xff]  }
  0x52   : > { %v629_v46 = vadd.f32 %v2563_v9, %v494_v38  ;;  %v756_v47 = vmax.f32 %v628_v39, 0.0  ;;  %v496_v48 = vmul.f32 %v1912_v40, %v2554_v0  ;;  %v1916_v49 = vunpack.c.h.bf16 %v2398_v32 }
  0x53   : > { %2457 = vst [vmem:[%s2588_s25 + $0xd0] sm:$0xff] %v2182_v42   ;;  %v2187_v51 = vpack.c.bf16 %v755_v43, %v754_v37  ;;  %v630_v52 = vadd.f32 %v2563_v9, %v495_v44  ;;  %v497_v53 = vmul.f32 %v1915_v45, %v2554_v0  ;;  %v1919_v54 = vunpack.c.l.bf16 %v2399_v41 }
  0x54   : > { %v757_v55 = vmax.f32 %v629_v46, 0.0  ;;  %v631_v56 = vadd.f32 %v2563_v9, %v496_v48  ;;  %v498_v57 = vmul.f32 %v1916_v49, %v2554_v0  ;;  %v1920_v58 = vunpack.c.h.bf16 %v2399_v41  ;;  %v2405_v41 = vld [vmem:[%s2549_s18 + $0x128] sm:$0xff]  }
  0x55   : > { %2458 = vst [vmem:[%s2588_s25 + $0xd8] sm:$0xff] %v2187_v51   ;;  %v758_v59 = vmax.f32 %v630_v52, 0.0  ;;  %v632_v60 = vadd.f32 %v2563_v9, %v497_v53  ;;  %v499_v61 = vmul.f32 %v1919_v54, %v2554_v0  ;;  %v1923_v62 = vunpack.c.l.bf16 %v2400_v50 }
  0x56   : > { %v2192_v1 = vpack.c.bf16 %v757_v55, %v756_v47  ;;  %v759_v2 = vmax.f32 %v631_v56, 0.0  ;;  %v633_v3 = vadd.f32 %v2563_v9, %v498_v57  ;;  %v500_v4 = vmul.f32 %v1920_v58, %v2554_v0 }
  0x57   : > { %v760_v5 = vmax.f32 %v632_v60, 0.0  ;;  %v634_v6 = vadd.f32 %v2563_v9, %v499_v61  ;;  %v1924_v7 = vunpack.c.h.bf16 %v2400_v50  ;;  %v501_v8 = vmul.f32 %v1923_v62, %v2554_v0  ;;  %v2406_v50 = vld [vmem:[%s2549_s18 + $0x130] sm:$0xff]  }
  0x58   : > { %2459 = vst [vmem:[%s2588_s25 + $0xe0] sm:$0xff] %v2192_v1   ;;  %v2197_v11 = vpack.c.bf16 %v759_v2, %v758_v59  ;;  %v761_v12 = vmax.f32 %v633_v3, 0.0  ;;  %v635_v13 = vadd.f32 %v2563_v9, %v500_v4  ;;  %v1927_v14 = vunpack.c.l.bf16 %v2401_v63  ;;  %v2407_v59 = vld [vmem:[%s2549_s18 + $0x138] sm:$0xff]  }
  0x59   : > { %v762_v15 = vmax.f32 %v634_v6, 0.0  ;;  %v502_v16 = vmul.f32 %v1924_v7, %v2554_v0  ;;  %v636_v17 = vadd.f32 %v2563_v9, %v501_v8  ;;  %v1928_v18 = vunpack.c.h.bf16 %v2401_v63 }
  0x5a   : > { %2460 = vst [vmem:[%s2588_s25 + $0xe8] sm:$0xff] %v2197_v11   ;;  %v2202_v20 = vpack.c.bf16 %v761_v12, %v760_v5  ;;  %v763_v21 = vmax.f32 %v635_v13, 0.0  ;;  %v503_v22 = vmul.f32 %v1927_v14, %v2554_v0  ;;  %v1931_v23 = vunpack.c.l.bf16 %v2402_v10  ;;  %v2408_v5 = vld [vmem:[%s2549_s18 + $0x140] sm:$0xff]  }
  0x5b   : > { %v637_v24 = vadd.f32 %v2563_v9, %v502_v16  ;;  %v764_v25 = vmax.f32 %v636_v17, 0.0  ;;  %v504_v26 = vmul.f32 %v1928_v18, %v2554_v0  ;;  %v1932_v27 = vunpack.c.h.bf16 %v2402_v10 }
  0x5c   : > { %2461 = vst [vmem:[%s2588_s25 + $0xf0] sm:$0xff] %v2202_v20   ;;  %v2207_v29 = vpack.c.bf16 %v763_v21, %v762_v15  ;;  %v638_v30 = vadd.f32 %v2563_v9, %v503_v22  ;;  %v505_v31 = vmul.f32 %v1931_v23, %v2554_v0  ;;  %v1935_v32 = vunpack.c.l.bf16 %v2403_v19 }
  0x5d   : > { %v765_v33 = vmax.f32 %v637_v24, 0.0  ;;  %v639_v34 = vadd.f32 %v2563_v9, %v504_v26  ;;  %v506_v35 = vmul.f32 %v1932_v27, %v2554_v0  ;;  %v1936_v36 = vunpack.c.h.bf16 %v2403_v19  ;;  %v2409_v19 = vld [vmem:[%s2549_s18 + $0x148] sm:$0xff]  }
  0x5e   : > { %2462 = vst [vmem:[%s2588_s25 + $0xf8] sm:$0xff] %v2207_v29   ;;  %v766_v37 = vmax.f32 %v638_v30, 0.0  ;;  %v640_v38 = vadd.f32 %v2563_v9, %v505_v31  ;;  %v507_v39 = vmul.f32 %v1935_v32, %v2554_v0  ;;  %v1939_v40 = vunpack.c.l.bf16 %v2404_v28 }
  0x5f   : > { %v2212_v42 = vpack.c.bf16 %v765_v33, %v764_v25  ;;  %v767_v43 = vmax.f32 %v639_v34, 0.0  ;;  %v641_v44 = vadd.f32 %v2563_v9, %v506_v35  ;;  %v508_v45 = vmul.f32 %v1936_v36, %v2554_v0 }
  0x60   : > { %v768_v46 = vmax.f32 %v640_v38, 0.0  ;;  %v642_v47 = vadd.f32 %v2563_v9, %v507_v39  ;;  %v1940_v48 = vunpack.c.h.bf16 %v2404_v28  ;;  %v509_v49 = vmul.f32 %v1939_v40, %v2554_v0  ;;  %v2410_v28 = vld [vmem:[%s2549_s18 + $0x150] sm:$0xff]  }
  0x61   : > { %2463 = vst [vmem:[%s2588_s25 + $0x100] sm:$0xff] %v2212_v42   ;;  %v2217_v51 = vpack.c.bf16 %v767_v43, %v766_v37  ;;  %v769_v52 = vmax.f32 %v641_v44, 0.0  ;;  %v643_v53 = vadd.f32 %v2563_v9, %v508_v45  ;;  %v1943_v54 = vunpack.c.l.bf16 %v2405_v41  ;;  %v2411_v37 = vld [vmem:[%s2549_s18 + $0x158] sm:$0xff]  }
  0x62   : > { %v770_v55 = vmax.f32 %v642_v47, 0.0  ;;  %v510_v56 = vmul.f32 %v1940_v48, %v2554_v0  ;;  %v644_v57 = vadd.f32 %v2563_v9, %v509_v49  ;;  %v1944_v58 = vunpack.c.h.bf16 %v2405_v41 }
  0x63   : > { %2464 = vst [vmem:[%s2588_s25 + $0x108] sm:$0xff] %v2217_v51   ;;  %v2222_v60 = vpack.c.bf16 %v769_v52, %v768_v46  ;;  %v771_v61 = vmax.f32 %v643_v53, 0.0  ;;  %v511_v62 = vmul.f32 %v1943_v54, %v2554_v0  ;;  %v1947_v63 = vunpack.c.l.bf16 %v2406_v50  ;;  %v2412_v46 = vld [vmem:[%s2549_s18 + $0x160] sm:$0xff]  }
  0x64   : > { %v645_v1 = vadd.f32 %v2563_v9, %v510_v56  ;;  %v772_v2 = vmax.f32 %v644_v57, 0.0  ;;  %v512_v3 = vmul.f32 %v1944_v58, %v2554_v0  ;;  %v1948_v4 = vunpack.c.h.bf16 %v2406_v50 }
  0x65   : > { %2465 = vst [vmem:[%s2588_s25 + $0x110] sm:$0xff] %v2222_v60   ;;  %v2227_v6 = vpack.c.bf16 %v771_v61, %v770_v55  ;;  %v646_v7 = vadd.f32 %v2563_v9, %v511_v62  ;;  %v513_v8 = vmul.f32 %v1947_v63, %v2554_v0  ;;  %v1951_v10 = vunpack.c.l.bf16 %v2407_v59 }
  0x66   : > { %v773_v11 = vmax.f32 %v645_v1, 0.0  ;;  %v647_v12 = vadd.f32 %v2563_v9, %v512_v3  ;;  %v514_v13 = vmul.f32 %v1948_v4, %v2554_v0  ;;  %v1952_v14 = vunpack.c.h.bf16 %v2407_v59  ;;  %v2413_v59 = vld [vmem:[%s2549_s18 + $0x168] sm:$0xff]  }
  0x67   : > { %2466 = vst [vmem:[%s2588_s25 + $0x118] sm:$0xff] %v2227_v6   ;;  %v774_v15 = vmax.f32 %v646_v7, 0.0  ;;  %v648_v16 = vadd.f32 %v2563_v9, %v513_v8  ;;  %v515_v17 = vmul.f32 %v1951_v10, %v2554_v0  ;;  %v1955_v18 = vunpack.c.l.bf16 %v2408_v5 }
  0x68   : > { %v2232_v20 = vpack.c.bf16 %v773_v11, %v772_v2  ;;  %v775_v21 = vmax.f32 %v647_v12, 0.0  ;;  %v649_v22 = vadd.f32 %v2563_v9, %v514_v13  ;;  %v516_v23 = vmul.f32 %v1952_v14, %v2554_v0 }
  0x69   : > { %v776_v24 = vmax.f32 %v648_v16, 0.0  ;;  %v650_v25 = vadd.f32 %v2563_v9, %v515_v17  ;;  %v1956_v26 = vunpack.c.h.bf16 %v2408_v5  ;;  %v517_v27 = vmul.f32 %v1955_v18, %v2554_v0  ;;  %v2414_v5 = vld [vmem:[%s2549_s18 + $0x170] sm:$0xff]  }
  0x6a   : > { %2467 = vst [vmem:[%s2588_s25 + $0x120] sm:$0xff] %v2232_v20   ;;  %v2237_v29 = vpack.c.bf16 %v775_v21, %v774_v15  ;;  %v777_v30 = vmax.f32 %v649_v22, 0.0  ;;  %v651_v31 = vadd.f32 %v2563_v9, %v516_v23  ;;  %v1959_v32 = vunpack.c.l.bf16 %v2409_v19  ;;  %v2415_v15 = vld [vmem:[%s2549_s18 + $0x178] sm:$0xff]  }
  0x6b   : > { %v778_v33 = vmax.f32 %v650_v25, 0.0  ;;  %v518_v34 = vmul.f32 %v1956_v26, %v2554_v0  ;;  %v652_v35 = vadd.f32 %v2563_v9, %v517_v27  ;;  %v1960_v36 = vunpack.c.h.bf16 %v2409_v19 }
  0x6c   : > { %2468 = vst [vmem:[%s2588_s25 + $0x128] sm:$0xff] %v2237_v29   ;;  %v2242_v38 = vpack.c.bf16 %v777_v30, %v776_v24  ;;  %v779_v39 = vmax.f32 %v651_v31, 0.0  ;;  %v519_v40 = vmul.f32 %v1959_v32, %v2554_v0  ;;  %v1963_v41 = vunpack.c.l.bf16 %v2410_v28  ;;  %v2416_v24 = vld [vmem:[%s2549_s18 + $0x180] sm:$0xff]  }
  0x6d   : > { %v653_v42 = vadd.f32 %v2563_v9, %v518_v34  ;;  %v780_v43 = vmax.f32 %v652_v35, 0.0  ;;  %v520_v44 = vmul.f32 %v1960_v36, %v2554_v0  ;;  %v1964_v45 = vunpack.c.h.bf16 %v2410_v28  ;;  %v2851_v35 = vld [vmem:[%s2966_s1] ss:$0 sm:$0xff] }
  0x6e   : > { %2469 = vst [vmem:[%s2588_s25 + $0x130] sm:$0xff] %v2242_v38   ;;  %v2247_v47 = vpack.c.bf16 %v779_v39, %v778_v33  ;;  %v654_v48 = vadd.f32 %v2563_v9, %v519_v40  ;;  %v521_v49 = vmul.f32 %v1963_v41, %v2554_v0  ;;  %v1967_v50 = vunpack.c.l.bf16 %v2411_v37  ;;  %v2417_v38 = vld [vmem:[%s2549_s18 + $0x188] sm:$0xff]  }
  0x6f   : > { %v781_v51 = vmax.f32 %v653_v42, 0.0  ;;  %v655_v52 = vadd.f32 %v2563_v9, %v520_v44  ;;  %v522_v53 = vmul.f32 %v1964_v45, %v2554_v0  ;;  %v1968_v54 = vunpack.c.h.bf16 %v2411_v37 }
  0x70   : > { %2470 = vst [vmem:[%s2588_s25 + $0x138] sm:$0xff] %v2247_v47   ;;  %v782_v55 = vmax.f32 %v654_v48, 0.0  ;;  %v656_v56 = vadd.f32 %v2563_v9, %v521_v49  ;;  %v523_v57 = vmul.f32 %v1967_v50, %v2554_v0  ;;  %v1971_v58 = vunpack.c.l.bf16 %v2412_v46  ;;  %v2418_v47 = vld [vmem:[%s2549_s18 + $0x190] sm:$0xff]  }
  0x71   : > { %v2252_v60 = vpack.c.bf16 %v781_v51, %v780_v43  ;;  %v783_v61 = vmax.f32 %v655_v52, 0.0  ;;  %v657_v62 = vadd.f32 %v2563_v9, %v522_v53  ;;  %v524_v63 = vmul.f32 %v1968_v54, %v2554_v0  ;;  %v2860_v43 = vld [vmem:[%s2967_s2] ss:$0 sm:$0xff] }
  0x72   : > { %v784_v1 = vmax.f32 %v656_v56, 0.0  ;;  %v658_v2 = vadd.f32 %v2563_v9, %v523_v57  ;;  %v1972_v3 = vunpack.c.h.bf16 %v2412_v46  ;;  %v525_v4 = vmul.f32 %v1971_v58, %v2554_v0 }
  0x73   : > { %2471 = vst [vmem:[%s2588_s25 + $0x140] sm:$0xff] %v2252_v60   ;;  %v2257_v6 = vpack.c.bf16 %v783_v61, %v782_v55  ;;  %v785_v7 = vmax.f32 %v657_v62, 0.0  ;;  %v659_v8 = vadd.f32 %v2563_v9, %v524_v63  ;;  %v1975_v10 = vunpack.c.l.bf16 %v2413_v59  ;;  %v2419_v55 = vld [vmem:[%s2549_s18 + $0x198] sm:$0xff]  }
  0x74   : > { %v786_v11 = vmax.f32 %v658_v2, 0.0  ;;  %v526_v12 = vmul.f32 %v1972_v3, %v2554_v0  ;;  %v660_v13 = vadd.f32 %v2563_v9, %v525_v4  ;;  %v1976_v14 = vunpack.c.h.bf16 %v2413_v59 }
  0x75   : > { %2472 = vst [vmem:[%s2588_s25 + $0x148] sm:$0xff] %v2257_v6   ;;  %v2262_v16 = vpack.c.bf16 %v785_v7, %v784_v1  ;;  %v787_v17 = vmax.f32 %v659_v8, 0.0  ;;  %v527_v18 = vmul.f32 %v1975_v10, %v2554_v0  ;;  %v1979_v19 = vunpack.c.l.bf16 %v2414_v5  ;;  %v2420_v1 = vld [vmem:[%s2549_s18 + $0x1a0] sm:$0xff]  }
  0x76   : > { %v661_v20 = vadd.f32 %v2563_v9, %v526_v12  ;;  %v788_v21 = vmax.f32 %v660_v13, 0.0  ;;  %v528_v22 = vmul.f32 %v1976_v14, %v2554_v0  ;;  %v1980_v23 = vunpack.c.h.bf16 %v2414_v5 }
  0x77   : > { %2473 = vst [vmem:[%s2588_s25 + $0x150] sm:$0xff] %v2262_v16   ;;  %v2267_v25 = vpack.c.bf16 %v787_v17, %v786_v11  ;;  %v662_v26 = vadd.f32 %v2563_v9, %v527_v18  ;;  %v529_v27 = vmul.f32 %v1979_v19, %v2554_v0  ;;  %v1983_v28 = vunpack.c.l.bf16 %v2415_v15 }
  0x78   : > { %v789_v29 = vmax.f32 %v661_v20, 0.0  ;;  %v663_v30 = vadd.f32 %v2563_v9, %v528_v22  ;;  %v530_v31 = vmul.f32 %v1980_v23, %v2554_v0  ;;  %v1984_v32 = vunpack.c.h.bf16 %v2415_v15  ;;  %v2421_v15 = vld [vmem:[%s2549_s18 + $0x1a8] sm:$0xff]  }
  0x79   : > { %2474 = vst [vmem:[%s2588_s25 + $0x158] sm:$0xff] %v2267_v25   ;;  %v790_v33 = vmax.f32 %v662_v26, 0.0  ;;  %v664_v34 = vadd.f32 %v2563_v9, %v529_v27  ;;  %v531_v36 = vmul.f32 %v2851_v35, %v1983_v28  ;;  %v1987_v37 = vunpack.c.l.bf16 %v2416_v24 }
  0x7a   : > { %v2272_v39 = vpack.c.bf16 %v789_v29, %v788_v21  ;;  %v791_v40 = vmax.f32 %v663_v30, 0.0  ;;  %v665_v0 = vadd.f32 %v2563_v9, %v530_v31  ;;  %v532_v41 = vmul.f32 %v2851_v35, %v1984_v32 }
  0x7b   : > { %v792_v42 = vmax.f32 %v664_v34, 0.0  ;;  %v666_v44 = vadd.f32 %v2860_v43, %v531_v36  ;;  %v1988_v45 = vunpack.c.h.bf16 %v2416_v24  ;;  %v533_v46 = vmul.f32 %v2851_v35, %v1987_v37  ;;  %v2422_v24 = vld [vmem:[%s2549_s18 + $0x1b0] sm:$0xff]  }
  0x7c   : > { %2475 = vst [vmem:[%s2588_s25 + $0x160] sm:$0xff] %v2272_v39   ;;  %v2277_v48 = vpack.c.bf16 %v791_v40, %v790_v33  ;;  %v793_v49 = vmax.f32 %v665_v0, 0.0  ;;  %v667_v9 = vadd.f32 %v2860_v43, %v532_v41  ;;  %v1991_v50 = vunpack.c.l.bf16 %v2417_v38  ;;  %v2423_v33 = vld [vmem:[%s2549_s18 + $0x1b8] sm:$0xff]  }
  0x7d   : > { %v794_v51 = vmax.f32 %v666_v44, 0.0  ;;  %v534_v52 = vmul.f32 %v2851_v35, %v1988_v45  ;;  %v668_v53 = vadd.f32 %v2860_v43, %v533_v46  ;;  %v1992_v54 = vunpack.c.h.bf16 %v2417_v38 }
  0x7e   : > { %2476 = vst [vmem:[%s2588_s25 + $0x168] sm:$0xff] %v2277_v48   ;;  %v2282_v56 = vpack.c.bf16 %v793_v49, %v792_v42  ;;  %v795_v57 = vmax.f32 %v667_v9, 0.0  ;;  %v535_v58 = vmul.f32 %v2851_v35, %v1991_v50  ;;  %v1995_v59 = vunpack.c.l.bf16 %v2418_v47  ;;  %v2424_v42 = vld [vmem:[%s2549_s18 + $0x1c0] sm:$0xff]  }
  0x7f   : > { %v669_v60 = vadd.f32 %v2860_v43, %v534_v52  ;;  %v796_v61 = vmax.f32 %v668_v53, 0.0  ;;  %v536_v62 = vmul.f32 %v2851_v35, %v1992_v54  ;;  %v1996_v63 = vunpack.c.h.bf16 %v2418_v47 }
  0x80   : > { %2477 = vst [vmem:[%s2588_s25 + $0x170] sm:$0xff] %v2282_v56   ;;  %v2287_v2 = vpack.c.bf16 %v795_v57, %v794_v51  ;;  %v670_v3 = vadd.f32 %v2860_v43, %v535_v58  ;;  %v537_v4 = vmul.f32 %v2851_v35, %v1995_v59  ;;  %v1999_v5 = vunpack.c.l.bf16 %v2419_v55 }
  0x81   : > { %v797_v6 = vmax.f32 %v669_v60, 0.0  ;;  %v671_v7 = vadd.f32 %v2860_v43, %v536_v62  ;;  %v538_v8 = vmul.f32 %v2851_v35, %v1996_v63  ;;  %v2000_v10 = vunpack.c.h.bf16 %v2419_v55  ;;  %v2425_v55 = vld [vmem:[%s2549_s18 + $0x1c8] sm:$0xff]  }
  0x82   : > { %2478 = vst [vmem:[%s2588_s25 + $0x178] sm:$0xff] %v2287_v2   ;;  %v798_v11 = vmax.f32 %v670_v3, 0.0  ;;  %v672_v12 = vadd.f32 %v2860_v43, %v537_v4  ;;  %v539_v13 = vmul.f32 %v2851_v35, %v1999_v5  ;;  %v2003_v14 = vunpack.c.l.bf16 %v2420_v1 }
  0x83   : > { %v2292_v16 = vpack.c.bf16 %v797_v6, %v796_v61  ;;  %v799_v17 = vmax.f32 %v671_v7, 0.0  ;;  %v673_v18 = vadd.f32 %v2860_v43, %v538_v8  ;;  %v540_v19 = vmul.f32 %v2851_v35, %v2000_v10 }
  0x84   : > { %v800_v20 = vmax.f32 %v672_v12, 0.0  ;;  %v674_v21 = vadd.f32 %v2860_v43, %v539_v13  ;;  %v2004_v22 = vunpack.c.h.bf16 %v2420_v1  ;;  %v541_v23 = vmul.f32 %v2851_v35, %v2003_v14  ;;  %v2426_v1 = vld [vmem:[%s2549_s18 + $0x1d0] sm:$0xff]  }
  0x85   : > { %2479 = vst [vmem:[%s2588_s25 + $0x180] sm:$0xff] %v2292_v16   ;;  %v2297_v25 = vpack.c.bf16 %v799_v17, %v798_v11  ;;  %v801_v26 = vmax.f32 %v673_v18, 0.0  ;;  %v675_v27 = vadd.f32 %v2860_v43, %v540_v19  ;;  %v2007_v28 = vunpack.c.l.bf16 %v2421_v15  ;;  %v2427_v11 = vld [vmem:[%s2549_s18 + $0x1d8] sm:$0xff]  }
  0x86   : > { %v802_v29 = vmax.f32 %v674_v21, 0.0  ;;  %v542_v30 = vmul.f32 %v2851_v35, %v2004_v22  ;;  %v676_v31 = vadd.f32 %v2860_v43, %v541_v23  ;;  %v2008_v32 = vunpack.c.h.bf16 %v2421_v15 }
  0x87   : > { %2480 = vst [vmem:[%s2588_s25 + $0x188] sm:$0xff] %v2297_v25   ;;  %v2302_v34 = vpack.c.bf16 %v801_v26, %v800_v20  ;;  %v803_v36 = vmax.f32 %v675_v27, 0.0  ;;  %v543_v37 = vmul.f32 %v2851_v35, %v2007_v28  ;;  %v2011_v38 = vunpack.c.l.bf16 %v2422_v24  ;;  %v2428_v20 = vld [vmem:[%s2549_s18 + $0x1e0] sm:$0xff]  }
  0x88   : > { %v677_v39 = vadd.f32 %v2860_v43, %v542_v30  ;;  %v804_v40 = vmax.f32 %v676_v31, 0.0  ;;  %v544_v0 = vmul.f32 %v2851_v35, %v2008_v32  ;;  %v2012_v41 = vunpack.c.h.bf16 %v2422_v24 }
  0x89   : > { %2481 = vst [vmem:[%s2588_s25 + $0x190] sm:$0xff] %v2302_v34   ;;  %v2307_v44 = vpack.c.bf16 %v803_v36, %v802_v29  ;;  %v678_v45 = vadd.f32 %v2860_v43, %v543_v37  ;;  %v545_v46 = vmul.f32 %v2851_v35, %v2011_v38  ;;  %v2015_v47 = vunpack.c.l.bf16 %v2423_v33 }
  0x8a   : > { %v805_v48 = vmax.f32 %v677_v39, 0.0  ;;  %v679_v49 = vadd.f32 %v2860_v43, %v544_v0  ;;  %v546_v9 = vmul.f32 %v2851_v35, %v2012_v41  ;;  %v2016_v50 = vunpack.c.h.bf16 %v2423_v33  ;;  %v2429_v33 = vld [vmem:[%s2549_s18 + $0x1e8] sm:$0xff]  }
  0x8b   : > { %2482 = vst [vmem:[%s2588_s25 + $0x198] sm:$0xff] %v2307_v44   ;;  %v806_v51 = vmax.f32 %v678_v45, 0.0  ;;  %v680_v52 = vadd.f32 %v2860_v43, %v545_v46  ;;  %v547_v53 = vmul.f32 %v2851_v35, %v2015_v47  ;;  %v2019_v54 = vunpack.c.l.bf16 %v2424_v42 }
  0x8c   : > { %v2312_v56 = vpack.c.bf16 %v805_v48, %v804_v40  ;;  %v807_v57 = vmax.f32 %v679_v49, 0.0  ;;  %v681_v58 = vadd.f32 %v2860_v43, %v546_v9  ;;  %v548_v59 = vmul.f32 %v2851_v35, %v2016_v50 }
  0x8d   : > { %v808_v60 = vmax.f32 %v680_v52, 0.0  ;;  %v682_v61 = vadd.f32 %v2860_v43, %v547_v53  ;;  %v2020_v62 = vunpack.c.h.bf16 %v2424_v42  ;;  %v549_v63 = vmul.f32 %v2851_v35, %v2019_v54  ;;  %v2430_v42 = vld [vmem:[%s2549_s18 + $0x1f0] sm:$0xff]  }
  0x8e   : > { %2483 = vst [vmem:[%s2588_s25 + $0x1a0] sm:$0xff] %v2312_v56   ;;  %v2317_v2 = vpack.c.bf16 %v807_v57, %v806_v51  ;;  %v809_v3 = vmax.f32 %v681_v58, 0.0  ;;  %v683_v4 = vadd.f32 %v2860_v43, %v548_v59  ;;  %v2023_v5 = vunpack.c.l.bf16 %v2425_v55  ;;  %v2431_v51 = vld [vmem:[%s2549_s18 + $0x1f8] sm:$0xff]  }
  0x8f   : > { %v810_v6 = vmax.f32 %v682_v61, 0.0  ;;  %v550_v7 = vmul.f32 %v2851_v35, %v2020_v62  ;;  %v684_v8 = vadd.f32 %v2860_v43, %v549_v63  ;;  %v2024_v10 = vunpack.c.h.bf16 %v2425_v55 }
  0x90   : > { %2484 = vst [vmem:[%s2588_s25 + $0x1a8] sm:$0xff] %v2317_v2   ;;  %v2322_v12 = vpack.c.bf16 %v809_v3, %v808_v60  ;;  %v811_v13 = vmax.f32 %v683_v4, 0.0  ;;  %v551_v14 = vmul.f32 %v2851_v35, %v2023_v5  ;;  %v2027_v15 = vunpack.c.l.bf16 %v2426_v1 }
  0x91   : > { %v685_v16 = vadd.f32 %v2860_v43, %v550_v7  ;;  %v812_v17 = vmax.f32 %v684_v8, 0.0  ;;  %v552_v18 = vmul.f32 %v2851_v35, %v2024_v10  ;;  %v2028_v19 = vunpack.c.h.bf16 %v2426_v1 }
  0x92   : > { %2485 = vst [vmem:[%s2588_s25 + $0x1b0] sm:$0xff] %v2322_v12   ;;  %v2327_v21 = vpack.c.bf16 %v811_v13, %v810_v6  ;;  %v686_v22 = vadd.f32 %v2860_v43, %v551_v14  ;;  %v553_v23 = vmul.f32 %v2851_v35, %v2027_v15  ;;  %v2031_v24 = vunpack.c.l.bf16 %v2427_v11 }
  0x93   : > { %v813_v25 = vmax.f32 %v685_v16, 0.0  ;;  %v687_v26 = vadd.f32 %v2860_v43, %v552_v18  ;;  %v554_v27 = vmul.f32 %v2851_v35, %v2028_v19  ;;  %v2032_v28 = vunpack.c.h.bf16 %v2427_v11 }
  0x94   : > { %2486 = vst [vmem:[%s2588_s25 + $0x1b8] sm:$0xff] %v2327_v21   ;;  %v814_v29 = vmax.f32 %v686_v22, 0.0  ;;  %v688_v30 = vadd.f32 %v2860_v43, %v553_v23  ;;  %v555_v31 = vmul.f32 %v2851_v35, %v2031_v24  ;;  %v2035_v32 = vunpack.c.l.bf16 %v2428_v20 }
  0x95   : > { %v2332_v34 = vpack.c.bf16 %v813_v25, %v812_v17  ;;  %v815_v36 = vmax.f32 %v687_v26, 0.0  ;;  %v689_v37 = vadd.f32 %v2860_v43, %v554_v27  ;;  %v556_v38 = vmul.f32 %v2851_v35, %v2032_v28 }
  0x96   : > { %v816_v39 = vmax.f32 %v688_v30, 0.0  ;;  %v690_v40 = vadd.f32 %v2860_v43, %v555_v31  ;;  %v2036_v0 = vunpack.c.h.bf16 %v2428_v20  ;;  %v557_v41 = vmul.f32 %v2851_v35, %v2035_v32 }
  0x97   : > { %2487 = vst [vmem:[%s2588_s25 + $0x1c0] sm:$0xff] %v2332_v34   ;;  %v2337_v44 = vpack.c.bf16 %v815_v36, %v814_v29  ;;  %v817_v45 = vmax.f32 %v689_v37, 0.0  ;;  %v691_v46 = vadd.f32 %v2860_v43, %v556_v38  ;;  %v2039_v47 = vunpack.c.l.bf16 %v2429_v33 }
  0x98   : > { %v818_v48 = vmax.f32 %v690_v40, 0.0  ;;  %v558_v49 = vmul.f32 %v2851_v35, %v2036_v0  ;;  %v692_v9 = vadd.f32 %v2860_v43, %v557_v41  ;;  %v2040_v50 = vunpack.c.h.bf16 %v2429_v33 }
  0x99   : > { %2488 = vst [vmem:[%s2588_s25 + $0x1c8] sm:$0xff] %v2337_v44   ;;  %v2342_v52 = vpack.c.bf16 %v817_v45, %v816_v39  ;;  %v819_v53 = vmax.f32 %v691_v46, 0.0  ;;  %v559_v54 = vmul.f32 %v2851_v35, %v2039_v47  ;;  %v2043_v55 = vunpack.c.l.bf16 %v2430_v42 }
  0x9a   : > { %v693_v56 = vadd.f32 %v2860_v43, %v558_v49  ;;  %v820_v57 = vmax.f32 %v692_v9, 0.0  ;;  %v560_v58 = vmul.f32 %v2851_v35, %v2040_v50  ;;  %v2044_v59 = vunpack.c.h.bf16 %v2430_v42 }
  0x9b   : > { %2489 = vst [vmem:[%s2588_s25 + $0x1d0] sm:$0xff] %v2342_v52   ;;  %v2347_v60 = vpack.c.bf16 %v819_v53, %v818_v48  ;;  %v694_v61 = vadd.f32 %v2860_v43, %v559_v54  ;;  %v561_v62 = vmul.f32 %v2851_v35, %v2043_v55  ;;  %v2047_v63 = vunpack.c.l.bf16 %v2431_v51 }
  0x9c   : > { %v821_v1 = vmax.f32 %v693_v56, 0.0  ;;  %v695_v2 = vadd.f32 %v2860_v43, %v560_v58  ;;  %v562_v3 = vmul.f32 %v2851_v35, %v2044_v59  ;;  %v2048_v4 = vunpack.c.h.bf16 %v2431_v51 }
  0x9d   : > { %2490 = vst [vmem:[%s2588_s25 + $0x1d8] sm:$0xff] %v2347_v60   ;;  %v822_v5 = vmax.f32 %v694_v61, 0.0  ;;  %v696_v6 = vadd.f32 %v2860_v43, %v561_v62  ;;  %v563_v7 = vmul.f32 %v2851_v35, %v2047_v63 }
  0x9e   : > { %v2352_v8 = vpack.c.bf16 %v821_v1, %v820_v57  ;;  %v823_v10 = vmax.f32 %v695_v2, 0.0  ;;  %v697_v11 = vadd.f32 %v2860_v43, %v562_v3  ;;  %v564_v12 = vmul.f32 %v2851_v35, %v2048_v4 }
  0x9f   : > { %v824_v13 = vmax.f32 %v696_v6, 0.0  ;;  %v698_v14 = vadd.f32 %v2860_v43, %v563_v7 }
  0xa0   : > { %2491 = vst [vmem:[%s2588_s25 + $0x1e0] sm:$0xff] %v2352_v8   ;;  %v2357_v15 = vpack.c.bf16 %v823_v10, %v822_v5  ;;  %v825_v16 = vmax.f32 %v697_v11, 0.0  ;;  %v699_v17 = vadd.f32 %v2860_v43, %v564_v12 }
  0xa1   : > { %v826_v18 = vmax.f32 %v698_v14, 0.0 }
  0xa2   : > { %2492 = vst [vmem:[%s2588_s25 + $0x1e8] sm:$0xff] %v2357_v15   ;;  %v2362_v19 = vpack.c.bf16 %v825_v16, %v824_v13  ;;  %v827_v20 = vmax.f32 %v699_v17, 0.0 }
  0xa4   : > { %2493 = vst [vmem:[%s2588_s25 + $0x1f0] sm:$0xff] %v2362_v19   ;;  %v2367_v21 = vpack.c.bf16 %v827_v20, %v826_v18 }
  0xa6   : > { %2494 = vst [vmem:[%s2588_s25 + $0x1f8] sm:$0xff] %v2367_v21  }
  0xa7 PF: > { %s13_s12 = sadd.s32 1, %s2511_s12  }
  0xa8   : > { %p10_p4 = scmp.ge.s32.totalorder %s13_s12, 4  }
  0xaa   :  { %12 = sbr.rel (!%p10_p4) target bundleno = 1 (0x1), region = 62 }

// kernel: basic_block_forward.4
= control target key start
LH: loop header
LB: loop body
LE: loop exit
PB: predicated region body
PF: predicated region fallthrough
CT: control target
= control target key end

     0   :  { %s14436_s12 = smov 0   ;;  %s14438_s13 = smov 0   ;;  %s16240_s0 = inlined_call_operand.vmem [shape: bf16[3200,128], index: 0, kind: input, shape index: {}]   ;;  %s16241_s1 = inlined_call_operand.vmem [shape: bf16[9,128,128], index: 1, kind: input, shape index: {}]   ;;  %s16242_s2 = inlined_call_operand.vmem [shape: bf16[2048,128], index: 2, kind: output, shape index: {0}]   ;;  %s16243_s3 = inlined_call_operand.vmem [shape: f32[4,8,128], index: 3, kind: output, shape index: {1}]  }
   0x1   :  { %s14440_s14 = smov 0   ;;  %s14442_s15 = smov 0  }
   0x2   :  { %s14444_s16 = smov 0  }
   0x3 LB: > { %s23_s17 = sadd.s32 1, %s14406_s14  ;;  %s26_s18 = sadd.s32 1, %s14410_s15  ;;  %s14414_s16 = sphi %s14444_s16, %s14_s16   ;;  %s14410_s15 = sphi %s14442_s15, %s16280_s15   ;;  %s14406_s14 = sphi %s14440_s14, %s16279_s14   ;;  %s14402_s13 = sphi %s14438_s13, %s16278_s13   ;;  %s14398_s12 = sphi %s14436_s12, %s16277_s12  }
   0x4   : > { %p24_p0 = scmp.ge.s32.totalorder %s23_s17, 2  ;;  %p10067_p1 = scmp.ge.s32.totalorder %s14414_s16, 1 }
   0x5   : > { %p161_p2 = scmp.lt.s32.totalorder %s14414_s16, 5 }
   0x6   : > { %s16282_s17 = smov (%p24_p0, %s23_s17), 0  ;;  %s16284_s18 = smov (!%p24_p0, %s26_s18), %s14410_s15 }
   0x7   : > { %p162_p3 = pnand %p10067_p1, %p161_p2  ;;  %p28_p4 = scmp.ge.s32.totalorder %s16284_s18, 2 }
   0x8   : > { %v13800_v0 = vld [vmem:[%s16241_s1 + $0x40] sm:$0xff] (!%p162_p3)   ;;  %s193_s21 = smul.u32 (!%p162_p3), 200, %s14402_s13  ;;  %v13802_v2 = vld [vmem:[%s16241_s1 + $0x48] sm:$0xff] (!%p162_p3)   ;;  %v13804_v4 = vld [vmem:[%s16241_s1 + $0x50] sm:$0xff] (!%p162_p3)   ;;  %s14497_s11 = sshll.u32 (!%p162_p3), %s14398_s12, 2 }
   0x9   : > { %s16286_s18 = smov (%p28_p4, %s16284_s18), 0  ;;  %165 = sbr.rel (%p162_p3) target bundleno = 857 (0x359), region = 28 }
   0xa   : > { %v13801_v1 = vld [vmem:[%s16241_s1 + $0x40] sm:$0xff] (!%p162_p3)   ;;  %s14478_s24 = smul.u32 (!%p162_p3), 640, %s14398_s12  ;;  %12096 = vmatprep.subr.bf16.mxu0 (!%p162_p3), %v13800_v0  ;;  %p194_p5 = scmp.lt.s32.totalorder (!%p162_p3), %s193_s21, 399  ;;  %v13803_v3 = vld [vmem:[%s16241_s1 + $0x48] sm:$0xff] (!%p162_p3)   ;;  %v13805_v5 = vld [vmem:[%s16241_s1 + $0x50] sm:$0xff] (!%p162_p3)  }
   0xb   : > { %12384 = vmatprep.subr.bf16.mxu1 (!%p162_p3), %v13801_v1  ;;  %12097 = vmatpush3.bf16.msra.mxu0 (!%p162_p3), %v13800_v0  ;;  %v13806_v6 = vld [vmem:[%s16241_s1 + $0x58] sm:$0xff] (!%p162_p3)   ;;  %s2854_s25 = sadd.s32 (!%p162_p3), 1, %s14497_s11  ;;  %v13808_v8 = vld [vmem:[%s16241_s1 + $0x60] sm:$0xff] (!%p162_p3)   ;;  %v13810_v10 = vld [vmem:[%s16241_s1 + $0x68] sm:$0xff] (!%p162_p3)  }
   0xc   : > { %s513_s29 = sadd.s32 (!%p162_p3), 16, %s14478_s24  ;;  %12385 = vmatpush3.bf16.msra.mxu1 (!%p162_p3), %v13801_v1  ;;  %12098 = vmatprep.subr.bf16.mxu0 (!%p162_p3), %v13802_v2  ;;  %v13807_v7 = vld [vmem:[%s16241_s1 + $0x58] sm:$0xff] (!%p162_p3)   ;;  %s14508_s27 = smul.u32 (!%p162_p3), 160, %s2854_s25  ;;  %v13809_v9 = vld [vmem:[%s16241_s1 + $0x60] sm:$0xff] (!%p162_p3)   ;;  %v13811_v11 = vld [vmem:[%s16241_s1 + $0x68] sm:$0xff] (!%p162_p3)  }
   0xd   : > { %12386 = vmatprep.subr.bf16.mxu1 (!%p162_p3), %v13803_v3  ;;  %s514_s8 = sshra.s32 (!%p162_p3), %s513_s29, 3  ;;  %v13812_v14 = vld [vmem:[%s16241_s1 + $0x70] sm:$0xff] (!%p162_p3)   ;;  %v13814_v16 = vld [vmem:[%s16241_s1 + $0x78] sm:$0xff] (!%p162_p3)   ;;  %v13819_v19 = vld [vmem:[%s16241_s1] sm:$0xff] (!%p162_p3)   ;;  %s477_s9 = sshra.s32 (!%p162_p3), %s14478_s24, 3 }
   0xe   : > { %s10076_s26 = sshll.u32 (!%p162_p3), %s514_s8, 2  ;;  %s2892_s30 = sadd.s32 (!%p162_p3), 16, %s14508_s27  ;;  %v13813_v15 = vld [vmem:[%s16241_s1 + $0x70] sm:$0xff] (!%p162_p3)   ;;  %v13815_v17 = vld [vmem:[%s16241_s1 + $0x78] sm:$0xff] (!%p162_p3)   ;;  %v13821_v20 = vld [vmem:[%s16241_s1] sm:$0xff] (!%p162_p3)  }
   0xf   : > { %12099 = vmatpush3.bf16.msra.mxu0 (!%p162_p3), %v13802_v2  ;;  %v13822_v22 = vld [vmem:[%s16241_s1 + $0x8] sm:$0xff] (!%p162_p3)   ;;  %v13827_v27 = vld [vmem:[%s16241_s1 + $0x10] sm:$0xff] (!%p162_p3)   ;;  %v13830_v30 = vld [vmem:[%s16241_s1 + $0x18] sm:$0xff] (!%p162_p3)   ;;  %s10075_s23 = sshll.u32 (!%p162_p3), %s477_s9, 2 }
  0x10   : > { %s16288_s21 = smov (!%p194_p5, %s193_s21), 399  ;;  %12387 = vmatpush3.bf16.msra.mxu1 %v13803_v3  ;;  %12100 = vmatprep.subr.bf16.mxu0 %v13804_v4  ;;  %v13823_v23 = vld [vmem:[%s16241_s1 + $0x8] sm:$0xff]   ;;  %v13829_v28 = vld [vmem:[%s16241_s1 + $0x10] sm:$0xff]   ;;  %v13831_v31 = vld [vmem:[%s16241_s1 + $0x18] sm:$0xff]  }
  0x11   : > { %s10068_s7 = sshll.u32 %s16288_s21, 2  ;;  %12388 = vmatprep.subr.bf16.mxu1 %v13805_v5  ;;  %v13835_v35 = vld [vmem:[%s16241_s1 + $0x20] sm:$0xff]   ;;  %v13838_v38 = vld [vmem:[%s16241_s1 + $0x28] sm:$0xff]   ;;  %v13843_v43 = vld [vmem:[%s16241_s1 + $0x30] sm:$0xff]  }
  0x12   : > { %s14505_s21 = scalar_lea.vmem %s16240_s0, %s10068_s7  ;;  %s2893_s7 = sshra.s32 %s2892_s30, 3  ;;  %v13837_v36 = vld [vmem:[%s16241_s1 + $0x20] sm:$0xff]   ;;  %v13839_v39 = vld [vmem:[%s16241_s1 + $0x28] sm:$0xff]   ;;  %v13845_v44 = vld [vmem:[%s16241_s1 + $0x30] sm:$0xff]  }
  0x13   : > { %12101 = vmatpush3.bf16.msra.mxu0 %v13804_v4  ;;  %s14518_s6 = scalar_lea.vmem %s14505_s21, %s10076_s26  ;;  %s10373_s10 = sshll.u32 %s2893_s7, 2  ;;  %v13846_v46 = vld [vmem:[%s16241_s1 + $0x38] sm:$0xff]   ;;  %v13851_v51 = vld [vmem:[%s16241_s1 + $0x80] sm:$0xff]   ;;  %v13854_v54 = vld [vmem:[%s16241_s1 + $0x88] sm:$0xff]  }
  0x14   : > { %12389 = vmatpush3.bf16.msra.mxu1 %v13805_v5  ;;  %12102 = vmatprep.subr.bf16.mxu0 %v13806_v6  ;;  %s14527_s22 = scalar_lea.vmem %s14505_s21, %s10373_s10  ;;  %v13816_v12 = vld [vmem:[%s14518_s6] sm:$0xff]   ;;  %v13818_v18 = vld [vmem:[%s14518_s6 + $0x8] sm:$0xff]   ;;  %v13824_v24 = vld [vmem:[%s14518_s6 + $0x10] sm:$0xff]   ;;  %s2856_s10 = sshra.s32 %s14508_s27, 3 }
  0x15   : > { %12390 = vmatprep.subr.bf16.mxu1 %v13807_v7  ;;  %v13817_v13 = vld [vmem:[%s14527_s22] sm:$0xff]   ;;  %12112 = vmatprep.mubr.bf16.mxu0 %v13816_v12  ;;  %v13820_v21 = vld [vmem:[%s14527_s22 + $0x8] sm:$0xff]   ;;  %v13825_v25 = vld [vmem:[%s14527_s22 + $0x10] sm:$0xff]   ;;  %s10372_s28 = sshll.u32 %s2856_s10, 2  ;;  %s14589_s4 = scalar_lea.vmem %s14505_s21, %s10075_s23 }
  0x16   : > { %12400 = vmatprep.mubr.bf16.mxu1 %v13817_v13  ;;  %v13826_v26 = vld [vmem:[%s14518_s6 + $0x18] sm:$0xff]   ;;  %v13832_v32 = vld [vmem:[%s14518_s6 + $0x20] sm:$0xff]   ;;  %v13834_v34 = vld [vmem:[%s14518_s6 + $0x28] sm:$0xff]   ;;  %s14595_s8 = scalar_lea.vmem %s14505_s21, %s10372_s28  ;;  %s3315_s28 = sadd.s32 32, %s14508_s27 }
  0x17   : > { %12103 = vmatpush3.bf16.msra.mxu0 %v13806_v6  ;;  %v13828_v29 = vld [vmem:[%s14527_s22 + $0x18] sm:$0xff]   ;;  %v13833_v33 = vld [vmem:[%s14527_s22 + $0x20] sm:$0xff]   ;;  %v13836_v37 = vld [vmem:[%s14527_s22 + $0x28] sm:$0xff]   ;;  %s3316_s7 = sshra.s32 %s3315_s28, 3 }
  0x18   : > { %12391 = vmatpush3.bf16.msra.mxu1 %v13807_v7  ;;  %12104 = vmatprep.subr.bf16.mxu0 %v13808_v8  ;;  %v13840_v40 = vld [vmem:[%s14518_s6 + $0x30] sm:$0xff]   ;;  %v13842_v42 = vld [vmem:[%s14518_s6 + $0x38] sm:$0xff]   ;;  %v13848_v48 = vld [vmem:[%s14589_s4] sm:$0xff]   ;;  %s937_s6 = sadd.s32 32, %s14478_s24  ;;  %s10422_s25 = sshll.u32 %s3316_s7, 2 }
  0x19   : > { %12392 = vmatprep.subr.bf16.mxu1 %v13809_v9  ;;  %v13841_v41 = vld [vmem:[%s14527_s22 + $0x30] sm:$0xff]   ;;  %v13844_v45 = vld [vmem:[%s14527_s22 + $0x38] sm:$0xff]   ;;  %v13849_v49 = vld [vmem:[%s14595_s8] sm:$0xff]   ;;  %s938_s5 = sshra.s32 %s937_s6, 3  ;;  %s14667_s30 = scalar_lea.vmem %s14505_s21, %s10422_s25 }
  0x1a   : > { %v13847_v47 = vld [vmem:[%s16241_s1 + $0x38] sm:$0xff]   ;;  %v13850_v50 = vld [vmem:[%s14589_s4 + $0x8] sm:$0xff]   ;;  %v13853_v52 = vld [vmem:[%s16241_s1 + $0x80] sm:$0xff]   ;;  %s10125_s19 = sshll.u32 %s938_s5, 2  ;;  %s3561_s25 = sadd.s32 160, %s14508_s27 }
  0x1b   : > { %12105 = vmatpush3.bf16.msra.mxu0 %v13808_v8  ;;  %v13852_v53 = vld [vmem:[%s14595_s8 + $0x8] sm:$0xff]   ;;  %v13856_v56 = vld [vmem:[%s14589_s4 + $0x10] sm:$0xff]   ;;  %v13858_v58 = vld [vmem:[%s14589_s4 + $0x18] sm:$0xff]   ;;  %s14661_s22 = scalar_lea.vmem %s14505_s21, %s10125_s19  ;;  %s3562_s29 = sshra.s32 %s3561_s25, 3 }
  0x1c   : > { %12393 = vmatpush3.bf16.msra.mxu1 %v13809_v9  ;;  %12106 = vmatprep.subr.bf16.mxu0 %v13810_v10  ;;  %v13855_v55 = vld [vmem:[%s16241_s1 + $0x88] sm:$0xff]   ;;  %v13857_v57 = vld [vmem:[%s14595_s8 + $0x10] sm:$0xff]   ;;  %v13860_v61 = vld [vmem:[%s14595_s8 + $0x18] sm:$0xff]   ;;  %s10455_s20 = sshll.u32 %s3562_s29, 2 }
  0x1d   : > { %12394 = vmatprep.subr.bf16.mxu1 %v13811_v11  ;;  %v13859_v59 = vld [vmem:[%s16241_s1 + $0x90] sm:$0xff]   ;;  %v13862_v62 = vld [vmem:[%s16241_s1 + $0x98] sm:$0xff]   ;;  %v13864_v0 = vld [vmem:[%s14589_s4 + $0x20] sm:$0xff]   ;;  %s14739_s26 = scalar_lea.vmem %s14505_s21, %s10455_s20  ;;  %s3807_s20 = sadd.s32 176, %s14508_s27 }
  0x1e   : > { %v13861_v60 = vld [vmem:[%s16241_s1 + $0x90] sm:$0xff]   ;;  %v13863_v63 = vld [vmem:[%s16241_s1 + $0x98] sm:$0xff]   ;;  %v13865_v1 = vld [vmem:[%s14595_s8 + $0x20] sm:$0xff]   ;;  %s3808_s6 = sshra.s32 %s3807_s20, 3 }
  0x1f   : > { %12107 = vmatpush3.bf16.msra.mxu0 %v13810_v10  ;;  %v13866_v2 = vld [vmem:[%s14589_s4 + $0x28] sm:$0xff]   ;;  %v13867_v3 = vld [vmem:[%s16241_s1 + $0xa0] sm:$0xff]   ;;  %v13872_v8 = vld [vmem:[%s14589_s4 + $0x30] sm:$0xff]   ;;  %s10488_s10 = sshll.u32 %s3808_s6, 2 }
  0x20   : > { %12395 = vmatpush3.bf16.msra.mxu1 %v13811_v11  ;;  %12108 = vmatprep.subr.bf16.mxu0 %v13812_v14  ;;  %v13869_v4 = vld [vmem:[%s16241_s1 + $0xa0] sm:$0xff]   ;;  %v13868_v5 = vld [vmem:[%s14595_s8 + $0x28] sm:$0xff]   ;;  %v13873_v9 = vld [vmem:[%s14595_s8 + $0x30] sm:$0xff]   ;;  %s14811_s23 = scalar_lea.vmem %s14505_s21, %s10488_s10  ;;  %s4053_s10 = sadd.s32 192, %s14508_s27 }
  0x21   : > { %12396 = vmatprep.subr.bf16.mxu1 %v13813_v15  ;;  %v13870_v6 = vld [vmem:[%s16241_s1 + $0xa8] sm:$0xff]   ;;  %v13874_v10 = vld [vmem:[%s14589_s4 + $0x38] sm:$0xff]   ;;  %v13875_v11 = vld [vmem:[%s16241_s1 + $0xb0] sm:$0xff]   ;;  %s1184_s4 = sadd.s32 160, %s14478_s24 }
  0x22   : > { %v13871_v7 = vld [vmem:[%s16241_s1 + $0xa8] sm:$0xff]   ;;  %v13877_v12 = vld [vmem:[%s16241_s1 + $0xb0] sm:$0xff]   ;;  %v13876_v13 = vld [vmem:[%s14595_s8 + $0x38] sm:$0xff]   ;;  %s1185_s28 = sshra.s32 %s1184_s4, 3  ;;  %s4054_s4 = sshra.s32 %s4053_s10, 3 }
  0x23   : > { %12109 = vmatpush3.bf16.msra.mxu0 %v13812_v14  ;;  %v13878_v14 = vld [vmem:[%s16241_s1 + $0xb8] sm:$0xff]   ;;  %s10158_s9 = sshll.u32 %s1185_s28, 2  ;;  %s10521_s7 = sshll.u32 %s4054_s4, 2 }
  0x24   : > { %12397 = vmatpush3.bf16.msra.mxu1 %v13813_v15  ;;  %12110 = vmatprep.subr.bf16.mxu0 %v13814_v16  ;;  %v13879_v15 = vld [vmem:[%s16241_s1 + $0xb8] sm:$0xff]   ;;  %s14733_s8 = scalar_lea.vmem %s14505_s21, %s10158_s9  ;;  %s14883_s19 = scalar_lea.vmem %s14505_s21, %s10521_s7 }
  0x25   : > { %12398 = vmatprep.subr.bf16.mxu1 %v13815_v17  ;;  %s4299_s7 = sadd.s32 320, %s14508_s27 }
  0x27   : > { %12111 = vmatpush3.bf16.msra.mxu0 %v13814_v16  ;;  %v13880_v16 = vld [vmem:[%s14661_s22] sm:$0xff]  }
  0x28   : > { %12399 = vmatpush3.bf16.msra.mxu1 %v13815_v17  ;;  %12128 = vmatprep.subr.bf16.mxu0 %v13819_v19  ;;  %v13881_v17 = vld [vmem:[%s14667_s30] sm:$0xff]  }
  0x29   : > { %12416 = vmatprep.subr.bf16.mxu1 %v13821_v20 }
  0x2a   : > { %12113 = vmatmul.mubr.bf16.vlgmr.msra.gmra.mrb[0].mxu0 %v13818_v18  ;;  %v13882_v18 = vld [vmem:[%s14661_s22 + $0x8] sm:$0xff]  }
  0x2b   : > { %12401 = vmatmul.mubr.bf16.vlgmr.msra.gmra.mrb[0].mxu1 %v13820_v21  ;;  %12129 = vmatpush3.bf16.msra.mxu0 %v13819_v19  ;;  %v13883_v19 = vld [vmem:[%s16241_s1 + $0xc0] sm:$0xff]   ;;  %v13884_v21 = vld [vmem:[%s14667_s30 + $0x8] sm:$0xff]  }
  0x2c   : > { %12417 = vmatpush3.bf16.msra.mxu1 %v13821_v20  ;;  %12130 = vmatprep.subr.bf16.mxu0 %v13822_v22  ;;  %v13885_v20 = vld [vmem:[%s16241_s1 + $0xc0] sm:$0xff]  }
  0x2d   : > { %12418 = vmatprep.subr.bf16.mxu1 %v13823_v23  ;;  %12116 = vmatprep.mubr.bf16.mxu0 %v13824_v24  ;;  %v13888_v24 = vld [vmem:[%s14661_s22 + $0x10] sm:$0xff]  }
  0x2e   : > { %12404 = vmatprep.mubr.bf16.mxu1 %v13825_v25  ;;  %v13889_v25 = vld [vmem:[%s14667_s30 + $0x10] sm:$0xff]  }
  0x2f   : > { %12131 = vmatpush3.bf16.msra.mxu0 %v13822_v22  ;;  %v13886_v22 = vld [vmem:[%s16241_s1 + $0xc8] sm:$0xff]  }
  0x30   : > { %12419 = vmatpush3.bf16.msra.mxu1 %v13823_v23  ;;  %12132 = vmatprep.subr.bf16.mxu0 %v13827_v27  ;;  %v13887_v23 = vld [vmem:[%s16241_s1 + $0xc8] sm:$0xff]  }
  0x31   : > { %12420 = vmatprep.subr.bf16.mxu1 %v13829_v28 }
  0x32   : > { %12117 = vmatmul.mubr.bf16.gmra.mrb[4].mxu0 %v13826_v26  ;;  %v13890_v26 = vld [vmem:[%s14661_s22 + $0x18] sm:$0xff]  }
  0x33   : > { %12405 = vmatmul.mubr.bf16.gmra.mrb[4].mxu1 %v13828_v29  ;;  %12133 = vmatpush3.bf16.msra.mxu0 %v13827_v27  ;;  %v13891_v27 = vld [vmem:[%s16241_s1 + $0xd0] sm:$0xff]   ;;  %v13892_v29 = vld [vmem:[%s14667_s30 + $0x18] sm:$0xff]  }
  0x34   : > { %12421 = vmatpush3.bf16.msra.mxu1 %v13829_v28  ;;  %12134 = vmatprep.subr.bf16.mxu0 %v13830_v30  ;;  %v13893_v28 = vld [vmem:[%s16241_s1 + $0xd0] sm:$0xff]  }
  0x35   : > { %12422 = vmatprep.subr.bf16.mxu1 %v13831_v31  ;;  %12120 = vmatprep.mubr.bf16.mxu0 %v13832_v32  ;;  %v13896_v32 = vld [vmem:[%s14661_s22 + $0x20] sm:$0xff]  }
  0x36   : > { %12408 = vmatprep.mubr.bf16.mxu1 %v13833_v33  ;;  %v13897_v33 = vld [vmem:[%s14667_s30 + $0x20] sm:$0xff]  }
  0x37   : > { %12135 = vmatpush3.bf16.msra.mxu0 %v13830_v30  ;;  %v13894_v30 = vld [vmem:[%s16241_s1 + $0xd8] sm:$0xff]  }
  0x38   : > { %12423 = vmatpush3.bf16.msra.mxu1 %v13831_v31  ;;  %12136 = vmatprep.subr.bf16.mxu0 %v13835_v35  ;;  %v13895_v31 = vld [vmem:[%s16241_s1 + $0xd8] sm:$0xff]  }
  0x39   : > { %12424 = vmatprep.subr.bf16.mxu1 %v13837_v36 }
  0x3a   : > { %12121 = vmatmul.mubr.bf16.gmra.mrb[8].mxu0 %v13834_v34  ;;  %v13898_v34 = vld [vmem:[%s14661_s22 + $0x28] sm:$0xff]  }
  0x3b   : > { %12409 = vmatmul.mubr.bf16.gmra.mrb[8].mxu1 %v13836_v37  ;;  %12137 = vmatpush3.bf16.msra.mxu0 %v13835_v35  ;;  %v13899_v35 = vld [vmem:[%s16241_s1 + $0xe0] sm:$0xff]   ;;  %v13900_v37 = vld [vmem:[%s14667_s30 + $0x28] sm:$0xff]  }
  0x3c   : > { %12425 = vmatpush3.bf16.msra.mxu1 %v13837_v36  ;;  %12138 = vmatprep.subr.bf16.mxu0 %v13838_v38  ;;  %v13901_v36 = vld [vmem:[%s16241_s1 + $0xe0] sm:$0xff]  }
  0x3d   : > { %12426 = vmatprep.subr.bf16.mxu1 %v13839_v39  ;;  %12124 = vmatprep.mubr.bf16.mxu0 %v13840_v40  ;;  %v13904_v40 = vld [vmem:[%s14661_s22 + $0x30] sm:$0xff]  }
  0x3e   : > { %12412 = vmatprep.mubr.bf16.mxu1 %v13841_v41  ;;  %v13905_v41 = vld [vmem:[%s14667_s30 + $0x30] sm:$0xff]  }
  0x3f   : > { %12139 = vmatpush3.bf16.msra.mxu0 %v13838_v38  ;;  %v13902_v38 = vld [vmem:[%s16241_s1 + $0xe8] sm:$0xff]  }
  0x40   : > { %12427 = vmatpush3.bf16.msra.mxu1 %v13839_v39  ;;  %12140 = vmatprep.subr.bf16.mxu0 %v13843_v43  ;;  %v13903_v39 = vld [vmem:[%s16241_s1 + $0xe8] sm:$0xff]  }
  0x41   : > { %12428 = vmatprep.subr.bf16.mxu1 %v13845_v44 }
  0x42   : > { %12125 = vmatmul.mubr.bf16.gmra.mrb[12].mxu0 %v13842_v42  ;;  %v13906_v42 = vld [vmem:[%s14661_s22 + $0x38] sm:$0xff]   ;;  %s1431_s22 = sadd.s32 176, %s14478_s24 }
  0x43   : > { %12413 = vmatmul.mubr.bf16.gmra.mrb[12].mxu1 %v13844_v45  ;;  %12141 = vmatpush3.bf16.msra.mxu0 %v13843_v43  ;;  %v13907_v43 = vld [vmem:[%s16241_s1 + $0xf0] sm:$0xff]   ;;  %v13908_v45 = vld [vmem:[%s14667_s30 + $0x38] sm:$0xff]   ;;  %s1432_s25 = sshra.s32 %s1431_s22, 3  ;;  %s4300_s22 = sshra.s32 %s4299_s7, 3 }
  0x44   : > { %12429 = vmatpush3.bf16.msra.mxu1 %v13845_v44  ;;  %12142 = vmatprep.subr.bf16.mxu0 %v13846_v46  ;;  %v13909_v44 = vld [vmem:[%s16241_s1 + $0xf0] sm:$0xff]   ;;  %s10191_s5 = sshll.u32 %s1432_s25, 2  ;;  %s10554_s29 = sshll.u32 %s4300_s22, 2 }
  0x45   : > { %12430 = vmatprep.subr.bf16.mxu1 %v13847_v47  ;;  %12144 = vmatprep.mubr.bf16.mxu0 %v13848_v48  ;;  %v13912_v48 = vld [vmem:[%s14733_s8] sm:$0xff]   ;;  %s14805_s30 = scalar_lea.vmem %s14505_s21, %s10191_s5  ;;  %s14955_s9 = scalar_lea.vmem %s14505_s21, %s10554_s29 }
  0x46   : > { %12432 = vmatprep.mubr.bf16.mxu1 %v13849_v49  ;;  %v13913_v49 = vld [vmem:[%s14739_s26] sm:$0xff]   ;;  %s4545_s29 = sadd.s32 336, %s14508_s27 }
  0x47   : > { %12143 = vmatpush3.bf16.msra.mxu0 %v13846_v46  ;;  %v13910_v46 = vld [vmem:[%s16241_s1 + $0xf8] sm:$0xff]  }
  0x48   : > { %12431 = vmatpush3.bf16.msra.mxu1 %v13847_v47  ;;  %12160 = vmatprep.subr.bf16.mxu0 %v13851_v51  ;;  %v13911_v47 = vld [vmem:[%s16241_s1 + $0xf8] sm:$0xff]  }
  0x49   : > { %12448 = vmatprep.subr.bf16.mxu1 %v13853_v52 }
  0x4a   : > { %12145 = vmatmul.mubr.bf16.vlgmr.msra.gmra.mrb[0].mxu0 %v13850_v50  ;;  %v13914_v50 = vld [vmem:[%s14733_s8 + $0x8] sm:$0xff]  }
  0x4b   : > { %12433 = vmatmul.mubr.bf16.vlgmr.msra.gmra.mrb[0].mxu1 %v13852_v53  ;;  %12161 = vmatpush3.bf16.msra.mxu0 %v13851_v51  ;;  %v13915_v51 = vld [vmem:[%s16241_s1 + $0x100] sm:$0xff]   ;;  %v13916_v53 = vld [vmem:[%s14739_s26 + $0x8] sm:$0xff]  }
  0x4c   : > { %12449 = vmatpush3.bf16.msra.mxu1 %v13853_v52  ;;  %12162 = vmatprep.subr.bf16.mxu0 %v13854_v54  ;;  %v13917_v52 = vld [vmem:[%s16241_s1 + $0x100] sm:$0xff]  }
  0x4d   : > { %12450 = vmatprep.subr.bf16.mxu1 %v13855_v55  ;;  %12148 = vmatprep.mubr.bf16.mxu0 %v13856_v56  ;;  %v13920_v56 = vld [vmem:[%s14733_s8 + $0x10] sm:$0xff]  }
  0x4e   : > { %12436 = vmatprep.mubr.bf16.mxu1 %v13857_v57  ;;  %v13921_v57 = vld [vmem:[%s14739_s26 + $0x10] sm:$0xff]  }
  0x4f   : > { %12163 = vmatpush3.bf16.msra.mxu0 %v13854_v54  ;;  %v13918_v54 = vld [vmem:[%s16241_s1 + $0x108] sm:$0xff]  }
  0x50   : > { %12451 = vmatpush3.bf16.msra.mxu1 %v13855_v55  ;;  %12164 = vmatprep.subr.bf16.mxu0 %v13859_v59  ;;  %v13919_v55 = vld [vmem:[%s16241_s1 + $0x108] sm:$0xff]  }
  0x51   : > { %12452 = vmatprep.subr.bf16.mxu1 %v13861_v60 }
  0x52   : > { %12149 = vmatmul.mubr.bf16.gmra.mrb[4].mxu0 %v13858_v58  ;;  %v13922_v58 = vld [vmem:[%s14733_s8 + $0x18] sm:$0xff]  }
  0x53   : > { %12437 = vmatmul.mubr.bf16.gmra.mrb[4].mxu1 %v13860_v61  ;;  %12165 = vmatpush3.bf16.msra.mxu0 %v13859_v59  ;;  %v13923_v59 = vld [vmem:[%s16241_s1 + $0x110] sm:$0xff]   ;;  %v13924_v61 = vld [vmem:[%s14739_s26 + $0x18] sm:$0xff]  }
  0x54   : > { %12453 = vmatpush3.bf16.msra.mxu1 %v13861_v60  ;;  %12166 = vmatprep.subr.bf16.mxu0 %v13862_v62  ;;  %v13925_v60 = vld [vmem:[%s16241_s1 + $0x110] sm:$0xff]  }
  0x55   : > { %12454 = vmatprep.subr.bf16.mxu1 %v13863_v63  ;;  %12152 = vmatprep.mubr.bf16.mxu0 %v13864_v0  ;;  %v13928_v0 = vld [vmem:[%s14733_s8 + $0x20] sm:$0xff]  }
  0x56   : > { %12440 = vmatprep.mubr.bf16.mxu1 %v13865_v1  ;;  %v13929_v1 = vld [vmem:[%s14739_s26 + $0x20] sm:$0xff]  }
  0x57   : > { %12167 = vmatpush3.bf16.msra.mxu0 %v13862_v62  ;;  %v13926_v62 = vld [vmem:[%s16241_s1 + $0x118] sm:$0xff]  }
  0x58   : > { %12455 = vmatpush3.bf16.msra.mxu1 %v13863_v63  ;;  %12168 = vmatprep.subr.bf16.mxu0 %v13867_v3  ;;  %v13927_v63 = vld [vmem:[%s16241_s1 + $0x118] sm:$0xff]  }
  0x59   : > { %12456 = vmatprep.subr.bf16.mxu1 %v13869_v4 }
  0x5a   : > { %12153 = vmatmul.mubr.bf16.gmra.mrb[8].mxu0 %v13866_v2  ;;  %v13930_v2 = vld [vmem:[%s14733_s8 + $0x28] sm:$0xff]  }
  0x5b   : > { %12441 = vmatmul.mubr.bf16.gmra.mrb[8].mxu1 %v13868_v5  ;;  %12169 = vmatpush3.bf16.msra.mxu0 %v13867_v3  ;;  %v13931_v3 = vld [vmem:[%s16241_s1 + $0x120] sm:$0xff]   ;;  %v13932_v5 = vld [vmem:[%s14739_s26 + $0x28] sm:$0xff]  }
  0x5c   : > { %12457 = vmatpush3.bf16.msra.mxu1 %v13869_v4  ;;  %12170 = vmatprep.subr.bf16.mxu0 %v13870_v6  ;;  %v13933_v4 = vld [vmem:[%s16241_s1 + $0x120] sm:$0xff]  }
  0x5d   : > { %12458 = vmatprep.subr.bf16.mxu1 %v13871_v7  ;;  %12156 = vmatprep.mubr.bf16.mxu0 %v13872_v8  ;;  %v13936_v8 = vld [vmem:[%s14733_s8 + $0x30] sm:$0xff]  }
  0x5e   : > { %12444 = vmatprep.mubr.bf16.mxu1 %v13873_v9  ;;  %v13937_v9 = vld [vmem:[%s14739_s26 + $0x30] sm:$0xff]  }
  0x5f   : > { %12171 = vmatpush3.bf16.msra.mxu0 %v13870_v6  ;;  %v13934_v6 = vld [vmem:[%s16241_s1 + $0x128] sm:$0xff]  }
  0x60   : > { %12459 = vmatpush3.bf16.msra.mxu1 %v13871_v7  ;;  %12172 = vmatprep.subr.bf16.mxu0 %v13875_v11  ;;  %v13935_v7 = vld [vmem:[%s16241_s1 + $0x128] sm:$0xff]  }
  0x61   : > { %12460 = vmatprep.subr.bf16.mxu1 %v13877_v12 }
  0x62   : > { %12157 = vmatmul.mubr.bf16.gmra.mrb[12].mxu0 %v13874_v10  ;;  %v13938_v10 = vld [vmem:[%s14733_s8 + $0x38] sm:$0xff]   ;;  %s1678_s8 = sadd.s32 192, %s14478_s24 }
  0x63   : > { %12445 = vmatmul.mubr.bf16.gmra.mrb[12].mxu1 %v13876_v13  ;;  %12173 = vmatpush3.bf16.msra.mxu0 %v13875_v11  ;;  %v13939_v11 = vld [vmem:[%s16241_s1 + $0x130] sm:$0xff]   ;;  %v13940_v13 = vld [vmem:[%s14739_s26 + $0x38] sm:$0xff]   ;;  %s1679_s20 = sshra.s32 %s1678_s8, 3  ;;  %s4546_s8 = sshra.s32 %s4545_s29, 3 }
  0x64   : > { %12461 = vmatpush3.bf16.msra.mxu1 %v13877_v12  ;;  %12174 = vmatprep.subr.bf16.mxu0 %v13878_v14  ;;  %v13941_v12 = vld [vmem:[%s16241_s1 + $0x130] sm:$0xff]   ;;  %s10224_s28 = sshll.u32 %s1679_s20, 2  ;;  %s10587_s6 = sshll.u32 %s4546_s8, 2 }
  0x65   : > { %12462 = vmatprep.subr.bf16.mxu1 %v13879_v15  ;;  %12176 = vmatprep.mubr.bf16.mxu0 %v13880_v16  ;;  %v13944_v16 = vld [vmem:[%s14805_s30] sm:$0xff]   ;;  %s14877_s26 = scalar_lea.vmem %s14505_s21, %s10224_s28  ;;  %s15027_s5 = scalar_lea.vmem %s14505_s21, %s10587_s6 }
  0x66   : > { %12464 = vmatprep.mubr.bf16.mxu1 %v13881_v17  ;;  %v13945_v17 = vld [vmem:[%s14811_s23] sm:$0xff]   ;;  %s4791_s6 = sadd.s32 352, %s14508_s27  ;;  %s7532_s28 = sadd.s32 3, %s14497_s11 }
  0x67   : > { %12175 = vmatpush3.bf16.msra.mxu0 %v13878_v14  ;;  %v13942_v14 = vld [vmem:[%s16241_s1 + $0x138] sm:$0xff]  }
  0x68   : > { %12463 = vmatpush3.bf16.msra.mxu1 %v13879_v15  ;;  %12192 = vmatprep.subr.bf16.mxu0 %v13883_v19  ;;  %v13943_v15 = vld [vmem:[%s16241_s1 + $0x138] sm:$0xff]  }
  0x69   : > { %12480 = vmatprep.subr.bf16.mxu1 %v13885_v20 }
  0x6a   : > { %12177 = vmatmul.mubr.bf16.vlgmr.msra.gmra.mrb[0].mxu0 %v13882_v18  ;;  %v13946_v18 = vld [vmem:[%s14805_s30 + $0x8] sm:$0xff]  }
  0x6b   : > { %12465 = vmatmul.mubr.bf16.vlgmr.msra.gmra.mrb[0].mxu1 %v13884_v21  ;;  %12193 = vmatpush3.bf16.msra.mxu0 %v13883_v19  ;;  %v13947_v19 = vld [vmem:[%s16241_s1 + $0x140] sm:$0xff]   ;;  %v13948_v21 = vld [vmem:[%s14811_s23 + $0x8] sm:$0xff]  }
  0x6c   : > { %12481 = vmatpush3.bf16.msra.mxu1 %v13885_v20  ;;  %12194 = vmatprep.subr.bf16.mxu0 %v13886_v22  ;;  %v13949_v20 = vld [vmem:[%s16241_s1 + $0x140] sm:$0xff]  }
  0x6d   : > { %12482 = vmatprep.subr.bf16.mxu1 %v13887_v23  ;;  %12180 = vmatprep.mubr.bf16.mxu0 %v13888_v24  ;;  %v13952_v24 = vld [vmem:[%s14805_s30 + $0x10] sm:$0xff]  }
  0x6e   : > { %12468 = vmatprep.mubr.bf16.mxu1 %v13889_v25  ;;  %v13953_v25 = vld [vmem:[%s14811_s23 + $0x10] sm:$0xff]  }
  0x6f   : > { %12195 = vmatpush3.bf16.msra.mxu0 %v13886_v22  ;;  %v13950_v22 = vld [vmem:[%s16241_s1 + $0x148] sm:$0xff]  }
  0x70   : > { %12483 = vmatpush3.bf16.msra.mxu1 %v13887_v23  ;;  %12196 = vmatprep.subr.bf16.mxu0 %v13891_v27  ;;  %v13951_v23 = vld [vmem:[%s16241_s1 + $0x148] sm:$0xff]  }
  0x71   : > { %12484 = vmatprep.subr.bf16.mxu1 %v13893_v28 }
  0x72   : > { %12181 = vmatmul.mubr.bf16.gmra.mrb[4].mxu0 %v13890_v26  ;;  %v13954_v26 = vld [vmem:[%s14805_s30 + $0x18] sm:$0xff]  }
  0x73   : > { %12469 = vmatmul.mubr.bf16.gmra.mrb[4].mxu1 %v13892_v29  ;;  %12197 = vmatpush3.bf16.msra.mxu0 %v13891_v27  ;;  %v13955_v27 = vld [vmem:[%s16241_s1 + $0x150] sm:$0xff]   ;;  %v13956_v29 = vld [vmem:[%s14811_s23 + $0x18] sm:$0xff]  }
  0x74   : > { %12485 = vmatpush3.bf16.msra.mxu1 %v13893_v28  ;;  %12198 = vmatprep.subr.bf16.mxu0 %v13894_v30  ;;  %v13957_v28 = vld [vmem:[%s16241_s1 + $0x150] sm:$0xff]  }
  0x75   : > { %12486 = vmatprep.subr.bf16.mxu1 %v13895_v31  ;;  %12184 = vmatprep.mubr.bf16.mxu0 %v13896_v32  ;;  %v13960_v32 = vld [vmem:[%s14805_s30 + $0x20] sm:$0xff]  }
  0x76   : > { %12472 = vmatprep.mubr.bf16.mxu1 %v13897_v33  ;;  %v13961_v33 = vld [vmem:[%s14811_s23 + $0x20] sm:$0xff]  }
  0x77   : > { %12199 = vmatpush3.bf16.msra.mxu0 %v13894_v30  ;;  %v13958_v30 = vld [vmem:[%s16241_s1 + $0x158] sm:$0xff]  }
  0x78   : > { %12487 = vmatpush3.bf16.msra.mxu1 %v13895_v31  ;;  %12200 = vmatprep.subr.bf16.mxu0 %v13899_v35  ;;  %v13959_v31 = vld [vmem:[%s16241_s1 + $0x158] sm:$0xff]  }
  0x79   : > { %12488 = vmatprep.subr.bf16.mxu1 %v13901_v36 }
  0x7a   : > { %12185 = vmatmul.mubr.bf16.gmra.mrb[8].mxu0 %v13898_v34  ;;  %v13962_v34 = vld [vmem:[%s14805_s30 + $0x28] sm:$0xff]  }
  0x7b   : > { %12473 = vmatmul.mubr.bf16.gmra.mrb[8].mxu1 %v13900_v37  ;;  %12201 = vmatpush3.bf16.msra.mxu0 %v13899_v35  ;;  %v13963_v35 = vld [vmem:[%s16241_s1 + $0x160] sm:$0xff]   ;;  %v13964_v37 = vld [vmem:[%s14811_s23 + $0x28] sm:$0xff]  }
  0x7c   : > { %12489 = vmatpush3.bf16.msra.mxu1 %v13901_v36  ;;  %12202 = vmatprep.subr.bf16.mxu0 %v13902_v38  ;;  %v13965_v36 = vld [vmem:[%s16241_s1 + $0x160] sm:$0xff]  }
  0x7d   : > { %12490 = vmatprep.subr.bf16.mxu1 %v13903_v39  ;;  %12188 = vmatprep.mubr.bf16.mxu0 %v13904_v40  ;;  %v13968_v40 = vld [vmem:[%s14805_s30 + $0x30] sm:$0xff]  }
  0x7e   : > { %12476 = vmatprep.mubr.bf16.mxu1 %v13905_v41  ;;  %v13969_v41 = vld [vmem:[%s14811_s23 + $0x30] sm:$0xff]  }
  0x7f   : > { %12203 = vmatpush3.bf16.msra.mxu0 %v13902_v38  ;;  %v13966_v38 = vld [vmem:[%s16241_s1 + $0x168] sm:$0xff]  }
  0x80   : > { %12491 = vmatpush3.bf16.msra.mxu1 %v13903_v39  ;;  %12204 = vmatprep.subr.bf16.mxu0 %v13907_v43  ;;  %v13967_v39 = vld [vmem:[%s16241_s1 + $0x168] sm:$0xff]  }
  0x81   : > { %12492 = vmatprep.subr.bf16.mxu1 %v13909_v44 }
  0x82   : > { %12189 = vmatmul.mubr.bf16.gmra.mrb[12].mxu0 %v13906_v42  ;;  %v13970_v42 = vld [vmem:[%s14805_s30 + $0x38] sm:$0xff]   ;;  %s1925_s30 = sadd.s32 320, %s14478_s24 }
  0x83   : > { %12477 = vmatmul.mubr.bf16.gmra.mrb[12].mxu1 %v13908_v45  ;;  %12205 = vmatpush3.bf16.msra.mxu0 %v13907_v43  ;;  %v13971_v43 = vld [vmem:[%s16241_s1 + $0x170] sm:$0xff]   ;;  %v13972_v45 = vld [vmem:[%s14811_s23 + $0x38] sm:$0xff]   ;;  %s1926_s10 = sshra.s32 %s1925_s30, 3 }
  0x84   : > { %12493 = vmatpush3.bf16.msra.mxu1 %v13909_v44  ;;  %12206 = vmatprep.subr.bf16.mxu0 %v13910_v46  ;;  %v13973_v44 = vld [vmem:[%s16241_s1 + $0x170] sm:$0xff]   ;;  %s10257_s25 = sshll.u32 %s1926_s10, 2 }
  0x85   : > { %12494 = vmatprep.subr.bf16.mxu1 %v13911_v47  ;;  %12208 = vmatprep.mubr.bf16.mxu0 %v13912_v48  ;;  %v13976_v48 = vld [vmem:[%s14877_s26] sm:$0xff]   ;;  %s14949_s23 = scalar_lea.vmem %s14505_s21, %s10257_s25  ;;  %s5193_s25 = sadd.s32 2, %s14497_s11 }
  0x86   : > { %12496 = vmatprep.mubr.bf16.mxu1 %v13913_v49  ;;  %v13977_v49 = vld [vmem:[%s14883_s19] sm:$0xff]  }
  0x87   : > { %12207 = vmatpush3.bf16.msra.mxu0 %v13910_v46  ;;  %v13974_v46 = vld [vmem:[%s16241_s1 + $0x178] sm:$0xff]  }
  0x88   : > { %12495 = vmatpush3.bf16.msra.mxu1 %v13911_v47  ;;  %12224 = vmatprep.subr.bf16.mxu0 %v13915_v51  ;;  %v13975_v47 = vld [vmem:[%s16241_s1 + $0x178] sm:$0xff]  }
  0x89   : > { %12512 = vmatprep.subr.bf16.mxu1 %v13917_v52 }
  0x8a   : > { %12209 = vmatmul.mubr.bf16.vlgmr.msra.gmra.mrb[0].mxu0 %v13914_v50  ;;  %v13978_v50 = vld [vmem:[%s14877_s26 + $0x8] sm:$0xff]  }
  0x8b   : > { %12497 = vmatmul.mubr.bf16.vlgmr.msra.gmra.mrb[0].mxu1 %v13916_v53  ;;  %12225 = vmatpush3.bf16.msra.mxu0 %v13915_v51  ;;  %v13979_v51 = vld [vmem:[%s16241_s1 + $0x180] sm:$0xff]   ;;  %v13980_v53 = vld [vmem:[%s14883_s19 + $0x8] sm:$0xff]  }
  0x8c   : > { %12513 = vmatpush3.bf16.msra.mxu1 %v13917_v52  ;;  %12226 = vmatprep.subr.bf16.mxu0 %v13918_v54  ;;  %v13981_v52 = vld [vmem:[%s16241_s1 + $0x180] sm:$0xff]  }
  0x8d   : > { %12514 = vmatprep.subr.bf16.mxu1 %v13919_v55  ;;  %12212 = vmatprep.mubr.bf16.mxu0 %v13920_v56  ;;  %v13984_v56 = vld [vmem:[%s14877_s26 + $0x10] sm:$0xff]  }
  0x8e   : > { %12500 = vmatprep.mubr.bf16.mxu1 %v13921_v57  ;;  %v13985_v57 = vld [vmem:[%s14883_s19 + $0x10] sm:$0xff]  }
  0x8f   : > { %12227 = vmatpush3.bf16.msra.mxu0 %v13918_v54  ;;  %v13982_v54 = vld [vmem:[%s16241_s1 + $0x188] sm:$0xff]  }
  0x90   : > { %12515 = vmatpush3.bf16.msra.mxu1 %v13919_v55  ;;  %12228 = vmatprep.subr.bf16.mxu0 %v13923_v59  ;;  %v13983_v55 = vld [vmem:[%s16241_s1 + $0x188] sm:$0xff]  }
  0x91   : > { %12516 = vmatprep.subr.bf16.mxu1 %v13925_v60 }
  0x92   : > { %12213 = vmatmul.mubr.bf16.gmra.mrb[4].mxu0 %v13922_v58  ;;  %v13986_v58 = vld [vmem:[%s14877_s26 + $0x18] sm:$0xff]  }
  0x93   : > { %12501 = vmatmul.mubr.bf16.gmra.mrb[4].mxu1 %v13924_v61  ;;  %12229 = vmatpush3.bf16.msra.mxu0 %v13923_v59  ;;  %v13987_v59 = vld [vmem:[%s16241_s1 + $0x190] sm:$0xff]   ;;  %v13988_v61 = vld [vmem:[%s14883_s19 + $0x18] sm:$0xff]  }
  0x94   : > { %12517 = vmatpush3.bf16.msra.mxu1 %v13925_v60  ;;  %12230 = vmatprep.subr.bf16.mxu0 %v13926_v62  ;;  %v13989_v60 = vld [vmem:[%s16241_s1 + $0x190] sm:$0xff]  }
  0x95   : > { %12518 = vmatprep.subr.bf16.mxu1 %v13927_v63  ;;  %12216 = vmatprep.mubr.bf16.mxu0 %v13928_v0  ;;  %v13992_v0 = vld [vmem:[%s14877_s26 + $0x20] sm:$0xff]  }
  0x96   : > { %12504 = vmatprep.mubr.bf16.mxu1 %v13929_v1  ;;  %v13993_v1 = vld [vmem:[%s14883_s19 + $0x20] sm:$0xff]  }
  0x97   : > { %12231 = vmatpush3.bf16.msra.mxu0 %v13926_v62  ;;  %v13990_v62 = vld [vmem:[%s16241_s1 + $0x198] sm:$0xff]  }
  0x98   : > { %12519 = vmatpush3.bf16.msra.mxu1 %v13927_v63  ;;  %12232 = vmatprep.subr.bf16.mxu0 %v13931_v3  ;;  %v13991_v63 = vld [vmem:[%s16241_s1 + $0x198] sm:$0xff]  }
  0x99   : > { %12520 = vmatprep.subr.bf16.mxu1 %v13933_v4 }
  0x9a   : > { %12217 = vmatmul.mubr.bf16.gmra.mrb[8].mxu0 %v13930_v2  ;;  %v13994_v2 = vld [vmem:[%s14877_s26 + $0x28] sm:$0xff]  }
  0x9b   : > { %12505 = vmatmul.mubr.bf16.gmra.mrb[8].mxu1 %v13932_v5  ;;  %12233 = vmatpush3.bf16.msra.mxu0 %v13931_v3  ;;  %v13995_v3 = vld [vmem:[%s16241_s1 + $0x1a0] sm:$0xff]   ;;  %v13996_v5 = vld [vmem:[%s14883_s19 + $0x28] sm:$0xff]  }
  0x9c   : > { %12521 = vmatpush3.bf16.msra.mxu1 %v13933_v4  ;;  %12234 = vmatprep.subr.bf16.mxu0 %v13934_v6  ;;  %v13997_v4 = vld [vmem:[%s16241_s1 + $0x1a0] sm:$0xff]  }
  0x9d   : > { %12522 = vmatprep.subr.bf16.mxu1 %v13935_v7  ;;  %12220 = vmatprep.mubr.bf16.mxu0 %v13936_v8  ;;  %v14000_v8 = vld [vmem:[%s14877_s26 + $0x30] sm:$0xff]  }
  0x9e   : > { %12508 = vmatprep.mubr.bf16.mxu1 %v13937_v9  ;;  %v14001_v9 = vld [vmem:[%s14883_s19 + $0x30] sm:$0xff]  }
  0x9f   : > { %12235 = vmatpush3.bf16.msra.mxu0 %v13934_v6  ;;  %v13998_v6 = vld [vmem:[%s16241_s1 + $0x1a8] sm:$0xff]  }
  0xa0   : > { %12523 = vmatpush3.bf16.msra.mxu1 %v13935_v7  ;;  %12236 = vmatprep.subr.bf16.mxu0 %v13939_v11  ;;  %v13999_v7 = vld [vmem:[%s16241_s1 + $0x1a8] sm:$0xff]  }
  0xa1   : > { %12524 = vmatprep.subr.bf16.mxu1 %v13941_v12 }
  0xa2   : > { %12221 = vmatmul.mubr.bf16.gmra.mrb[12].mxu0 %v13938_v10  ;;  %v14002_v10 = vld [vmem:[%s14877_s26 + $0x38] sm:$0xff]   ;;  %s2172_s26 = sadd.s32 336, %s14478_s24 }
  0xa3   : > { %12509 = vmatmul.mubr.bf16.gmra.mrb[12].mxu1 %v13940_v13  ;;  %12237 = vmatpush3.bf16.msra.mxu0 %v13939_v11  ;;  %v14003_v11 = vld [vmem:[%s16241_s1 + $0x1b0] sm:$0xff]   ;;  %v14004_v13 = vld [vmem:[%s14883_s19 + $0x38] sm:$0xff]   ;;  %s2173_s7 = sshra.s32 %s2172_s26, 3 }
  0xa4   : > { %12525 = vmatpush3.bf16.msra.mxu1 %v13941_v12  ;;  %12238 = vmatprep.subr.bf16.mxu0 %v13942_v14  ;;  %v14005_v12 = vld [vmem:[%s16241_s1 + $0x1b0] sm:$0xff]   ;;  %s10290_s20 = sshll.u32 %s2173_s7, 2 }
  0xa5   : > { %12526 = vmatprep.subr.bf16.mxu1 %v13943_v15  ;;  %12240 = vmatprep.mubr.bf16.mxu0 %v13944_v16  ;;  %v14008_v16 = vld [vmem:[%s14949_s23] sm:$0xff]   ;;  %s15021_s19 = scalar_lea.vmem %s14505_s21, %s10290_s20 }
  0xa6   : > { %12528 = vmatprep.mubr.bf16.mxu1 %v13945_v17  ;;  %v14009_v17 = vld [vmem:[%s14955_s9] sm:$0xff]  }
  0xa7   : > { %12239 = vmatpush3.bf16.msra.mxu0 %v13942_v14  ;;  %v14006_v14 = vld [vmem:[%s16241_s1 + $0x1b8] sm:$0xff]  }
  0xa8   : > { %12527 = vmatpush3.bf16.msra.mxu1 %v13943_v15  ;;  %12256 = vmatprep.subr.bf16.mxu0 %v13947_v19  ;;  %v14007_v15 = vld [vmem:[%s16241_s1 + $0x1b8] sm:$0xff]  }
  0xa9   : > { %12544 = vmatprep.subr.bf16.mxu1 %v13949_v20 }
  0xaa   : > { %12241 = vmatmul.mubr.bf16.vlgmr.msra.gmra.mrb[0].mxu0 %v13946_v18  ;;  %v14010_v18 = vld [vmem:[%s14949_s23 + $0x8] sm:$0xff]  }
  0xab   : > { %12529 = vmatmul.mubr.bf16.vlgmr.msra.gmra.mrb[0].mxu1 %v13948_v21  ;;  %12257 = vmatpush3.bf16.msra.mxu0 %v13947_v19  ;;  %v14011_v19 = vld [vmem:[%s16241_s1 + $0x1c0] sm:$0xff]   ;;  %v14012_v21 = vld [vmem:[%s14955_s9 + $0x8] sm:$0xff]  }
  0xac   : > { %12545 = vmatpush3.bf16.msra.mxu1 %v13949_v20  ;;  %12258 = vmatprep.subr.bf16.mxu0 %v13950_v22  ;;  %v14013_v20 = vld [vmem:[%s16241_s1 + $0x1c0] sm:$0xff]  }
  0xad   : > { %12546 = vmatprep.subr.bf16.mxu1 %v13951_v23  ;;  %12244 = vmatprep.mubr.bf16.mxu0 %v13952_v24  ;;  %v14016_v24 = vld [vmem:[%s14949_s23 + $0x10] sm:$0xff]  }
  0xae   : > { %12532 = vmatprep.mubr.bf16.mxu1 %v13953_v25  ;;  %v14017_v25 = vld [vmem:[%s14955_s9 + $0x10] sm:$0xff]  }
  0xaf   : > { %12259 = vmatpush3.bf16.msra.mxu0 %v13950_v22  ;;  %v14014_v22 = vld [vmem:[%s16241_s1 + $0x1c8] sm:$0xff]  }
  0xb0   : > { %12547 = vmatpush3.bf16.msra.mxu1 %v13951_v23  ;;  %12260 = vmatprep.subr.bf16.mxu0 %v13955_v27  ;;  %v14015_v23 = vld [vmem:[%s16241_s1 + $0x1c8] sm:$0xff]  }
  0xb1   : > { %12548 = vmatprep.subr.bf16.mxu1 %v13957_v28 }
  0xb2   : > { %12245 = vmatmul.mubr.bf16.gmra.mrb[4].mxu0 %v13954_v26  ;;  %v14018_v26 = vld [vmem:[%s14949_s23 + $0x18] sm:$0xff]  }
  0xb3   : > { %12533 = vmatmul.mubr.bf16.gmra.mrb[4].mxu1 %v13956_v29  ;;  %12261 = vmatpush3.bf16.msra.mxu0 %v13955_v27  ;;  %v14019_v27 = vld [vmem:[%s16241_s1 + $0x1d0] sm:$0xff]   ;;  %v14020_v29 = vld [vmem:[%s14955_s9 + $0x18] sm:$0xff]  }
  0xb4   : > { %12549 = vmatpush3.bf16.msra.mxu1 %v13957_v28  ;;  %12262 = vmatprep.subr.bf16.mxu0 %v13958_v30  ;;  %v14021_v28 = vld [vmem:[%s16241_s1 + $0x1d0] sm:$0xff]  }
  0xb5   : > { %12550 = vmatprep.subr.bf16.mxu1 %v13959_v31  ;;  %12248 = vmatprep.mubr.bf16.mxu0 %v13960_v32  ;;  %v14024_v32 = vld [vmem:[%s14949_s23 + $0x20] sm:$0xff]  }
  0xb6   : > { %12536 = vmatprep.mubr.bf16.mxu1 %v13961_v33  ;;  %v14025_v33 = vld [vmem:[%s14955_s9 + $0x20] sm:$0xff]  }
  0xb7   : > { %12263 = vmatpush3.bf16.msra.mxu0 %v13958_v30  ;;  %v14022_v30 = vld [vmem:[%s16241_s1 + $0x1d8] sm:$0xff]  }
  0xb8   : > { %12551 = vmatpush3.bf16.msra.mxu1 %v13959_v31  ;;  %12264 = vmatprep.subr.bf16.mxu0 %v13963_v35  ;;  %v14023_v31 = vld [vmem:[%s16241_s1 + $0x1d8] sm:$0xff]  }
  0xb9   : > { %12552 = vmatprep.subr.bf16.mxu1 %v13965_v36 }
  0xba   : > { %12249 = vmatmul.mubr.bf16.gmra.mrb[8].mxu0 %v13962_v34  ;;  %v14026_v34 = vld [vmem:[%s14949_s23 + $0x28] sm:$0xff]  }
  0xbb   : > { %12537 = vmatmul.mubr.bf16.gmra.mrb[8].mxu1 %v13964_v37  ;;  %12265 = vmatpush3.bf16.msra.mxu0 %v13963_v35  ;;  %v14027_v35 = vld [vmem:[%s16241_s1 + $0x1e0] sm:$0xff]   ;;  %v14028_v37 = vld [vmem:[%s14955_s9 + $0x28] sm:$0xff]  }
  0xbc   : > { %12553 = vmatpush3.bf16.msra.mxu1 %v13965_v36  ;;  %12266 = vmatprep.subr.bf16.mxu0 %v13966_v38  ;;  %v14029_v36 = vld [vmem:[%s16241_s1 + $0x1e0] sm:$0xff]  }
  0xbd   : > { %12554 = vmatprep.subr.bf16.mxu1 %v13967_v39  ;;  %12252 = vmatprep.mubr.bf16.mxu0 %v13968_v40  ;;  %v14032_v40 = vld [vmem:[%s14949_s23 + $0x30] sm:$0xff]  }
  0xbe   : > { %12540 = vmatprep.mubr.bf16.mxu1 %v13969_v41  ;;  %v14033_v41 = vld [vmem:[%s14955_s9 + $0x30] sm:$0xff]  }
  0xbf   : > { %12267 = vmatpush3.bf16.msra.mxu0 %v13966_v38  ;;  %v14030_v38 = vld [vmem:[%s16241_s1 + $0x1e8] sm:$0xff]  }
  0xc0   : > { %12555 = vmatpush3.bf16.msra.mxu1 %v13967_v39  ;;  %12268 = vmatprep.subr.bf16.mxu0 %v13971_v43  ;;  %v14031_v39 = vld [vmem:[%s16241_s1 + $0x1e8] sm:$0xff]  }
  0xc1   : > { %12556 = vmatprep.subr.bf16.mxu1 %v13973_v44 }
  0xc2   : > { %12253 = vmatmul.mubr.bf16.gmra.mrb[12].mxu0 %v13970_v42  ;;  %v14034_v42 = vld [vmem:[%s14949_s23 + $0x38] sm:$0xff]   ;;  %s2419_s23 = sadd.s32 352, %s14478_s24  ;;  %s4792_s24 = sshra.s32 %s4791_s6, 3 }
  0xc3   : > { %12541 = vmatmul.mubr.bf16.gmra.mrb[12].mxu1 %v13972_v45  ;;  %12269 = vmatpush3.bf16.msra.mxu0 %v13971_v43  ;;  %v14035_v43 = vld [vmem:[%s16241_s1 + $0x1f0] sm:$0xff]   ;;  %v14036_v45 = vld [vmem:[%s14955_s9 + $0x38] sm:$0xff]   ;;  %s2420_s29 = sshra.s32 %s2419_s23, 3  ;;  %s10620_s22 = sshll.u32 %s4792_s24, 2 }
  0xc4   : > { %12557 = vmatpush3.bf16.msra.mxu1 %v13973_v44  ;;  %12270 = vmatprep.subr.bf16.mxu0 %v13974_v46  ;;  %v14037_v44 = vld [vmem:[%s16241_s1 + $0x1f0] sm:$0xff]   ;;  %s10323_s7 = sshll.u32 %s2420_s29, 2  ;;  %s15099_s6 = scalar_lea.vmem %s14505_s21, %s10620_s22 }
  0xc5   : > { %12558 = vmatprep.subr.bf16.mxu1 %v13975_v47  ;;  %12272 = vmatprep.mubr.bf16.mxu0 %v13976_v48  ;;  %v14040_v48 = vld [vmem:[%s15021_s19] sm:$0xff]   ;;  %s15093_s23 = scalar_lea.vmem %s14505_s21, %s10323_s7  ;;  %s15137_s29 = smul.u32 160, %s5193_s25 }
  0xc6   : > { %12560 = vmatprep.mubr.bf16.mxu1 %v13977_v49  ;;  %v14041_v49 = vld [vmem:[%s15027_s5] sm:$0xff]   ;;  %s15139_s24 = smul.u32 160, %s7532_s28 }
  0xc7   : > { %12271 = vmatpush3.bf16.msra.mxu0 %v13974_v46  ;;  %v14038_v46 = vld [vmem:[%s16241_s1 + $0x1f8] sm:$0xff]   ;;  %s5231_s7 = sadd.s32 16, %s15137_s29  ;;  %s5195_s30 = sshra.s32 %s15137_s29, 3 }
  0xc8   : > { %12559 = vmatpush3.bf16.msra.mxu1 %v13975_v47  ;;  %12288 = vmatprep.subr.bf16.mxu0 %v13979_v51  ;;  %v14039_v47 = vld [vmem:[%s16241_s1 + $0x1f8] sm:$0xff]   ;;  %s7570_s10 = sadd.s32 16, %s15139_s24  ;;  %s5232_s4 = sshra.s32 %s5231_s7, 3 }
  0xc9   : > { %12576 = vmatprep.subr.bf16.mxu1 %v13981_v52  ;;  %s7571_s25 = sshra.s32 %s7570_s10, 3  ;;  %s10670_s28 = sshll.u32 %s5232_s4, 2 }
  0xca   : > { %12273 = vmatmul.mubr.bf16.vlgmr.msra.gmra.mrb[0].mxu0 %v13978_v50  ;;  %v14042_v50 = vld [vmem:[%s15021_s19 + $0x8] sm:$0xff]   ;;  %s10967_s11 = sshll.u32 %s7571_s25, 2  ;;  %s10669_s8 = sshll.u32 %s5195_s30, 2 }
  0xcb   : > { %12561 = vmatmul.mubr.bf16.vlgmr.msra.gmra.mrb[0].mxu1 %v13980_v53  ;;  %12289 = vmatpush3.bf16.msra.mxu0 %v13979_v51  ;;  %v14043_v51 = vld [vmem:[%s16241_s1 + $0x200] sm:$0xff]   ;;  %v14044_v53 = vld [vmem:[%s15027_s5 + $0x8] sm:$0xff]   ;;  %s15177_s22 = scalar_lea.vmem %s14505_s21, %s10967_s11  ;;  %s7534_s11 = sshra.s32 %s15139_s24, 3 }
  0xcc   : > { %12577 = vmatpush3.bf16.msra.mxu1 %v13981_v52  ;;  %12290 = vmatprep.subr.bf16.mxu0 %v13982_v54  ;;  %v14045_v52 = vld [vmem:[%s16241_s1 + $0x200] sm:$0xff]   ;;  %s10966_s4 = sshll.u32 %s7534_s11, 2  ;;  %s15243_s26 = scalar_lea.vmem %s14505_s21, %s10669_s8 }
  0xcd   : > { %12578 = vmatprep.subr.bf16.mxu1 %v13983_v55  ;;  %12276 = vmatprep.mubr.bf16.mxu0 %v13984_v56  ;;  %v14048_v56 = vld [vmem:[%s15021_s19 + $0x10] sm:$0xff]   ;;  %s15249_s27 = scalar_lea.vmem %s14505_s21, %s10966_s4  ;;  %s5654_s8 = sadd.s32 32, %s15137_s29 }
  0xce   : > { %12564 = vmatprep.mubr.bf16.mxu1 %v13985_v57  ;;  %v14049_v57 = vld [vmem:[%s15027_s5 + $0x10] sm:$0xff]   ;;  %s5655_s25 = sshra.s32 %s5654_s8, 3 }
  0xcf   : > { %12291 = vmatpush3.bf16.msra.mxu0 %v13982_v54  ;;  %v14046_v54 = vld [vmem:[%s16241_s1 + $0x208] sm:$0xff]  }
  0xd0   : > { %12579 = vmatpush3.bf16.msra.mxu1 %v13983_v55  ;;  %12292 = vmatprep.subr.bf16.mxu0 %v13987_v59  ;;  %v14047_v55 = vld [vmem:[%s16241_s1 + $0x208] sm:$0xff]  }
  0xd1   : > { %12580 = vmatprep.subr.bf16.mxu1 %v13989_v60 }
  0xd2   : > { %12277 = vmatmul.mubr.bf16.gmra.mrb[4].mxu0 %v13986_v58  ;;  %v14050_v58 = vld [vmem:[%s15021_s19 + $0x18] sm:$0xff]  }
  0xd3   : > { %12565 = vmatmul.mubr.bf16.gmra.mrb[4].mxu1 %v13988_v61  ;;  %12293 = vmatpush3.bf16.msra.mxu0 %v13987_v59  ;;  %v14051_v59 = vld [vmem:[%s16241_s1 + $0x210] sm:$0xff]   ;;  %v14052_v61 = vld [vmem:[%s15027_s5 + $0x18] sm:$0xff]  }
  0xd4   : > { %12581 = vmatpush3.bf16.msra.mxu1 %v13989_v60  ;;  %12294 = vmatprep.subr.bf16.mxu0 %v13990_v62  ;;  %v14053_v60 = vld [vmem:[%s16241_s1 + $0x210] sm:$0xff]  }
  0xd5   : > { %12582 = vmatprep.subr.bf16.mxu1 %v13991_v63  ;;  %12280 = vmatprep.mubr.bf16.mxu0 %v13992_v0  ;;  %v14056_v0 = vld [vmem:[%s15021_s19 + $0x20] sm:$0xff]  }
  0xd6   : > { %12568 = vmatprep.mubr.bf16.mxu1 %v13993_v1  ;;  %v14057_v1 = vld [vmem:[%s15027_s5 + $0x20] sm:$0xff]  }
  0xd7   : > { %12295 = vmatpush3.bf16.msra.mxu0 %v13990_v62  ;;  %v14054_v62 = vld [vmem:[%s16241_s1 + $0x218] sm:$0xff]  }
  0xd8   : > { %12583 = vmatpush3.bf16.msra.mxu1 %v13991_v63  ;;  %12296 = vmatprep.subr.bf16.mxu0 %v13995_v3  ;;  %v14055_v63 = vld [vmem:[%s16241_s1 + $0x218] sm:$0xff]  }
  0xd9   : > { %12584 = vmatprep.subr.bf16.mxu1 %v13997_v4 }
  0xda   : > { %12281 = vmatmul.mubr.bf16.gmra.mrb[8].mxu0 %v13994_v2  ;;  %v14058_v2 = vld [vmem:[%s15021_s19 + $0x28] sm:$0xff]  }
  0xdb   : > { %12569 = vmatmul.mubr.bf16.gmra.mrb[8].mxu1 %v13996_v5  ;;  %12297 = vmatpush3.bf16.msra.mxu0 %v13995_v3  ;;  %v14059_v3 = vld [vmem:[%s16241_s1 + $0x220] sm:$0xff]   ;;  %v14060_v5 = vld [vmem:[%s15027_s5 + $0x28] sm:$0xff]  }
  0xdc   : > { %12585 = vmatpush3.bf16.msra.mxu1 %v13997_v4  ;;  %12298 = vmatprep.subr.bf16.mxu0 %v13998_v6  ;;  %v14061_v4 = vld [vmem:[%s16241_s1 + $0x220] sm:$0xff]  }
  0xdd   : > { %12586 = vmatprep.subr.bf16.mxu1 %v13999_v7  ;;  %12284 = vmatprep.mubr.bf16.mxu0 %v14000_v8  ;;  %v14064_v8 = vld [vmem:[%s15021_s19 + $0x30] sm:$0xff]  }
  0xde   : > { %12572 = vmatprep.mubr.bf16.mxu1 %v14001_v9  ;;  %v14065_v9 = vld [vmem:[%s15027_s5 + $0x30] sm:$0xff]  }
  0xdf   : > { %12299 = vmatpush3.bf16.msra.mxu0 %v13998_v6  ;;  %v14062_v6 = vld [vmem:[%s16241_s1 + $0x228] sm:$0xff]  }
  0xe0   : > { %12587 = vmatpush3.bf16.msra.mxu1 %v13999_v7  ;;  %12300 = vmatprep.subr.bf16.mxu0 %v14003_v11  ;;  %v14063_v7 = vld [vmem:[%s16241_s1 + $0x228] sm:$0xff]  }
  0xe1   : > { %12588 = vmatprep.subr.bf16.mxu1 %v14005_v12 }
  0xe2   : > { %12285 = vmatmul.mubr.bf16.gmra.mrb[12].mxu0 %v14002_v10  ;;  %v14066_v10 = vld [vmem:[%s15021_s19 + $0x38] sm:$0xff]  }
  0xe3   : > { %12573 = vmatmul.mubr.bf16.gmra.mrb[12].mxu1 %v14004_v13  ;;  %12301 = vmatpush3.bf16.msra.mxu0 %v14003_v11  ;;  %v14067_v11 = vld [vmem:[%s16241_s1 + $0x230] sm:$0xff]   ;;  %v14068_v13 = vld [vmem:[%s15027_s5 + $0x38] sm:$0xff]   ;;  %s15171_s5 = scalar_lea.vmem %s14505_s21, %s10670_s28 }
  0xe4   : > { %12589 = vmatpush3.bf16.msra.mxu1 %v14005_v12  ;;  %12302 = vmatprep.subr.bf16.mxu0 %v14006_v14  ;;  %v14069_v12 = vld [vmem:[%s16241_s1 + $0x230] sm:$0xff]  }
  0xe5   : > { %12590 = vmatprep.subr.bf16.mxu1 %v14007_v15  ;;  %12304 = vmatprep.mubr.bf16.mxu0 %v14008_v16  ;;  %v14072_v16 = vld [vmem:[%s15093_s23] sm:$0xff]  }
  0xe6   : > { %12592 = vmatprep.mubr.bf16.mxu1 %v14009_v17  ;;  %v14073_v17 = vld [vmem:[%s15099_s6] sm:$0xff]  }
  0xe7   : > { %12303 = vmatpush3.bf16.msra.mxu0 %v14006_v14  ;;  %v14070_v14 = vld [vmem:[%s16241_s1 + $0x238] sm:$0xff]  }
  0xe8   : > { %12591 = vmatpush3.bf16.msra.mxu1 %v14007_v15  ;;  %12320 = vmatprep.subr.bf16.mxu0 %v14011_v19  ;;  %v14071_v15 = vld [vmem:[%s16241_s1 + $0x238] sm:$0xff]  }
  0xe9   : > { %12608 = vmatprep.subr.bf16.mxu1 %v14013_v20 }
  0xea   : > { %12305 = vmatmul.mubr.bf16.vlgmr.msra.gmra.mrb[0].mxu0 %v14010_v18  ;;  %v14074_v18 = vld [vmem:[%s15093_s23 + $0x8] sm:$0xff]  }
  0xeb   : > { %12593 = vmatmul.mubr.bf16.vlgmr.msra.gmra.mrb[0].mxu1 %v14012_v21  ;;  %12321 = vmatpush3.bf16.msra.mxu0 %v14011_v19  ;;  %v14076_v19 = vld [vmem:[%s16241_s1 + $0x40] sm:$0xff]   ;;  %v14075_v21 = vld [vmem:[%s15099_s6 + $0x8] sm:$0xff]  }
  0xec   : > { %12609 = vmatpush3.bf16.msra.mxu1 %v14013_v20  ;;  %12322 = vmatprep.subr.bf16.mxu0 %v14014_v22  ;;  %v14077_v20 = vld [vmem:[%s16241_s1 + $0x40] sm:$0xff]  }
  0xed   : > { %12610 = vmatprep.subr.bf16.mxu1 %v14015_v23  ;;  %12308 = vmatprep.mubr.bf16.mxu0 %v14016_v24  ;;  %v14080_v24 = vld [vmem:[%s15093_s23 + $0x10] sm:$0xff]  }
  0xee   : > { %12596 = vmatprep.mubr.bf16.mxu1 %v14017_v25  ;;  %v14081_v25 = vld [vmem:[%s15099_s6 + $0x10] sm:$0xff]  }
  0xef   : > { %12323 = vmatpush3.bf16.msra.mxu0 %v14014_v22  ;;  %v14078_v22 = vld [vmem:[%s16241_s1 + $0x48] sm:$0xff]  }
  0xf0   : > { %12611 = vmatpush3.bf16.msra.mxu1 %v14015_v23  ;;  %12324 = vmatprep.subr.bf16.mxu0 %v14019_v27  ;;  %v14079_v23 = vld [vmem:[%s16241_s1 + $0x48] sm:$0xff]  }
  0xf1   : > { %12612 = vmatprep.subr.bf16.mxu1 %v14021_v28 }
  0xf2   : > { %12309 = vmatmul.mubr.bf16.gmra.mrb[4].mxu0 %v14018_v26  ;;  %v14082_v26 = vld [vmem:[%s15093_s23 + $0x18] sm:$0xff]  }
  0xf3   : > { %12597 = vmatmul.mubr.bf16.gmra.mrb[4].mxu1 %v14020_v29  ;;  %12325 = vmatpush3.bf16.msra.mxu0 %v14019_v27  ;;  %v14084_v27 = vld [vmem:[%s16241_s1 + $0x50] sm:$0xff]   ;;  %v14083_v29 = vld [vmem:[%s15099_s6 + $0x18] sm:$0xff]  }
  0xf4   : > { %12613 = vmatpush3.bf16.msra.mxu1 %v14021_v28  ;;  %12326 = vmatprep.subr.bf16.mxu0 %v14022_v30  ;;  %v14085_v28 = vld [vmem:[%s16241_s1 + $0x50] sm:$0xff]  }
  0xf5   : > { %12614 = vmatprep.subr.bf16.mxu1 %v14023_v31  ;;  %12312 = vmatprep.mubr.bf16.mxu0 %v14024_v32  ;;  %v14088_v32 = vld [vmem:[%s15093_s23 + $0x20] sm:$0xff]  }
  0xf6   : > { %12600 = vmatprep.mubr.bf16.mxu1 %v14025_v33  ;;  %v14089_v33 = vld [vmem:[%s15099_s6 + $0x20] sm:$0xff]  }
  0xf7   : > { %12327 = vmatpush3.bf16.msra.mxu0 %v14022_v30  ;;  %v14086_v30 = vld [vmem:[%s16241_s1 + $0x58] sm:$0xff]  }
  0xf8   : > { %12615 = vmatpush3.bf16.msra.mxu1 %v14023_v31  ;;  %12328 = vmatprep.subr.bf16.mxu0 %v14027_v35  ;;  %v14087_v31 = vld [vmem:[%s16241_s1 + $0x58] sm:$0xff]  }
  0xf9   : > { %12616 = vmatprep.subr.bf16.mxu1 %v14029_v36 }
  0xfa   : > { %12313 = vmatmul.mubr.bf16.gmra.mrb[8].mxu0 %v14026_v34  ;;  %v14090_v34 = vld [vmem:[%s15093_s23 + $0x28] sm:$0xff]  }
  0xfb   : > { %12601 = vmatmul.mubr.bf16.gmra.mrb[8].mxu1 %v14028_v37  ;;  %12329 = vmatpush3.bf16.msra.mxu0 %v14027_v35  ;;  %v14092_v35 = vld [vmem:[%s16241_s1 + $0x60] sm:$0xff]   ;;  %v14091_v37 = vld [vmem:[%s15099_s6 + $0x28] sm:$0xff]  }
  0xfc   : > { %12617 = vmatpush3.bf16.msra.mxu1 %v14029_v36  ;;  %12330 = vmatprep.subr.bf16.mxu0 %v14030_v38  ;;  %v14093_v36 = vld [vmem:[%s16241_s1 + $0x60] sm:$0xff]  }
  0xfd   : > { %12618 = vmatprep.subr.bf16.mxu1 %v14031_v39  ;;  %12316 = vmatprep.mubr.bf16.mxu0 %v14032_v40  ;;  %v14096_v40 = vld [vmem:[%s15093_s23 + $0x30] sm:$0xff]  }
  0xfe   : > { %12604 = vmatprep.mubr.bf16.mxu1 %v14033_v41  ;;  %v14097_v41 = vld [vmem:[%s15099_s6 + $0x30] sm:$0xff]  }
  0xff   : > { %12331 = vmatpush3.bf16.msra.mxu0 %v14030_v38  ;;  %v14094_v38 = vld [vmem:[%s16241_s1 + $0x68] sm:$0xff]  }
 0x100   : > { %12619 = vmatpush3.bf16.msra.mxu1 %v14031_v39  ;;  %12332 = vmatprep.subr.bf16.mxu0 %v14035_v43  ;;  %v14095_v39 = vld [vmem:[%s16241_s1 + $0x68] sm:$0xff]  }
 0x101   : > { %12620 = vmatprep.subr.bf16.mxu1 %v14037_v44 }
 0x102   : > { %12317 = vmatmul.mubr.bf16.gmra.mrb[12].mxu0 %v14034_v42  ;;  %v14098_v42 = vld [vmem:[%s15093_s23 + $0x38] sm:$0xff]  }
 0x103   : > { %12605 = vmatmul.mubr.bf16.gmra.mrb[12].mxu1 %v14036_v45  ;;  %12333 = vmatpush3.bf16.msra.mxu0 %v14035_v43  ;;  %v14100_v43 = vld [vmem:[%s16241_s1 + $0x70] sm:$0xff]   ;;  %v14099_v45 = vld [vmem:[%s15099_s6 + $0x38] sm:$0xff]   ;;  %s10719_s6 = sshll.u32 %s5655_s25, 2 }
 0x104   : > { %12621 = vmatpush3.bf16.msra.mxu1 %v14037_v44  ;;  %12334 = vmatprep.subr.bf16.mxu0 %v14038_v46  ;;  %v14101_v44 = vld [vmem:[%s16241_s1 + $0x70] sm:$0xff]  }
 0x105   : > { %12622 = vmatprep.subr.bf16.mxu1 %v14039_v47  ;;  %12336 = vmatprep.mubr.bf16.mxu0 %v14040_v48  ;;  %v14104_v48 = vld [vmem:[%s15171_s5] sm:$0xff]  }
 0x106   : > { %12624 = vmatprep.mubr.bf16.mxu1 %v14041_v49  ;;  %v14105_v49 = vld [vmem:[%s15177_s22] sm:$0xff]  }
 0x107   : > { %12335 = vmatpush3.bf16.msra.mxu0 %v14038_v46  ;;  %v14102_v46 = vld [vmem:[%s16241_s1 + $0x78] sm:$0xff]  }
 0x108   : > { %12623 = vmatpush3.bf16.msra.mxu1 %v14039_v47  ;;  %12352 = vmatprep.subr.bf16.mxu0 %v14043_v51  ;;  %v14103_v47 = vld [vmem:[%s16241_s1 + $0x78] sm:$0xff]  }
 0x109   : > { %12640 = vmatprep.subr.bf16.mxu1 %v14045_v52 }
 0x10a   : > { %12337 = vmatmul.mubr.bf16.vlgmr.msra.gmra.mrb[0].mxu0 %v14042_v50  ;;  %v14106_v50 = vld [vmem:[%s15171_s5 + $0x8] sm:$0xff]  }
 0x10b   : > { %12625 = vmatmul.mubr.bf16.vlgmr.msra.gmra.mrb[0].mxu1 %v14044_v53  ;;  %12353 = vmatpush3.bf16.msra.mxu0 %v14043_v51  ;;  %v14107_v51 = vld [vmem:[%s16241_s1] sm:$0xff]   ;;  %v14108_v53 = vld [vmem:[%s15177_s22 + $0x8] sm:$0xff]  }
 0x10c   : > { %12641 = vmatpush3.bf16.msra.mxu1 %v14045_v52  ;;  %12354 = vmatprep.subr.bf16.mxu0 %v14046_v54  ;;  %v14109_v52 = vld [vmem:[%s16241_s1] sm:$0xff]  }
 0x10d   : > { %12642 = vmatprep.subr.bf16.mxu1 %v14047_v55  ;;  %12340 = vmatprep.mubr.bf16.mxu0 %v14048_v56  ;;  %v14112_v56 = vld [vmem:[%s15171_s5 + $0x10] sm:$0xff]  }
 0x10e   : > { %12628 = vmatprep.mubr.bf16.mxu1 %v14049_v57  ;;  %v14113_v57 = vld [vmem:[%s15177_s22 + $0x10] sm:$0xff]  }
 0x10f   : > { %12355 = vmatpush3.bf16.msra.mxu0 %v14046_v54  ;;  %v14110_v54 = vld [vmem:[%s16241_s1 + $0x8] sm:$0xff]  }
 0x110   : > { %12643 = vmatpush3.bf16.msra.mxu1 %v14047_v55  ;;  %12356 = vmatprep.subr.bf16.mxu0 %v14051_v59  ;;  %v14111_v55 = vld [vmem:[%s16241_s1 + $0x8] sm:$0xff]  }
 0x111   : > { %12644 = vmatprep.subr.bf16.mxu1 %v14053_v60 }
 0x112   : > { %12341 = vmatmul.mubr.bf16.gmra.mrb[4].mxu0 %v14050_v58  ;;  %v14114_v58 = vld [vmem:[%s15171_s5 + $0x18] sm:$0xff]  }
 0x113   : > { %12629 = vmatmul.mubr.bf16.gmra.mrb[4].mxu1 %v14052_v61  ;;  %12357 = vmatpush3.bf16.msra.mxu0 %v14051_v59  ;;  %v14115_v59 = vld [vmem:[%s16241_s1 + $0x10] sm:$0xff]   ;;  %v14116_v61 = vld [vmem:[%s15177_s22 + $0x18] sm:$0xff]  }
 0x114   : > { %12645 = vmatpush3.bf16.msra.mxu1 %v14053_v60  ;;  %12358 = vmatprep.subr.bf16.mxu0 %v14054_v62  ;;  %v14117_v60 = vld [vmem:[%s16241_s1 + $0x10] sm:$0xff]  }
 0x115   : > { %12646 = vmatprep.subr.bf16.mxu1 %v14055_v63  ;;  %12344 = vmatprep.mubr.bf16.mxu0 %v14056_v0  ;;  %v14120_v0 = vld [vmem:[%s15171_s5 + $0x20] sm:$0xff]  }
 0x116   : > { %12632 = vmatprep.mubr.bf16.mxu1 %v14057_v1  ;;  %v14121_v1 = vld [vmem:[%s15177_s22 + $0x20] sm:$0xff]  }
 0x117   : > { %12359 = vmatpush3.bf16.msra.mxu0 %v14054_v62  ;;  %v14118_v62 = vld [vmem:[%s16241_s1 + $0x18] sm:$0xff]  }
 0x118   : > { %12647 = vmatpush3.bf16.msra.mxu1 %v14055_v63  ;;  %12360 = vmatprep.subr.bf16.mxu0 %v14059_v3  ;;  %v14119_v63 = vld [vmem:[%s16241_s1 + $0x18] sm:$0xff]  }
 0x119   : > { %12648 = vmatprep.subr.bf16.mxu1 %v14061_v4 }
 0x11a   : > { %12345 = vmatmul.mubr.bf16.gmra.mrb[8].mxu0 %v14058_v2  ;;  %v14122_v2 = vld [vmem:[%s15171_s5 + $0x28] sm:$0xff]  }
 0x11b   : > { %12633 = vmatmul.mubr.bf16.gmra.mrb[8].mxu1 %v14060_v5  ;;  %12361 = vmatpush3.bf16.msra.mxu0 %v14059_v3  ;;  %v14123_v3 = vld [vmem:[%s16241_s1 + $0x20] sm:$0xff]   ;;  %v14124_v5 = vld [vmem:[%s15177_s22 + $0x28] sm:$0xff]  }
 0x11c   : > { %12649 = vmatpush3.bf16.msra.mxu1 %v14061_v4  ;;  %12362 = vmatprep.subr.bf16.mxu0 %v14062_v6  ;;  %v14125_v4 = vld [vmem:[%s16241_s1 + $0x20] sm:$0xff]  }
 0x11d   : > { %12650 = vmatprep.subr.bf16.mxu1 %v14063_v7  ;;  %12348 = vmatprep.mubr.bf16.mxu0 %v14064_v8  ;;  %v14128_v8 = vld [vmem:[%s15171_s5 + $0x30] sm:$0xff]  }
 0x11e   : > { %12636 = vmatprep.mubr.bf16.mxu1 %v14065_v9  ;;  %v14129_v9 = vld [vmem:[%s15177_s22 + $0x30] sm:$0xff]  }
 0x11f   : > { %12363 = vmatpush3.bf16.msra.mxu0 %v14062_v6  ;;  %v14126_v6 = vld [vmem:[%s16241_s1 + $0x28] sm:$0xff]  }
 0x120   : > { %12651 = vmatpush3.bf16.msra.mxu1 %v14063_v7  ;;  %12364 = vmatprep.subr.bf16.mxu0 %v14067_v11  ;;  %v14127_v7 = vld [vmem:[%s16241_s1 + $0x28] sm:$0xff]  }
 0x121   : > { %12652 = vmatprep.subr.bf16.mxu1 %v14069_v12 }
 0x122   : > { %12349 = vmatmul.mubr.bf16.gmra.mrb[12].mxu0 %v14066_v10  ;;  %v14130_v10 = vld [vmem:[%s15171_s5 + $0x38] sm:$0xff]   ;;  %s15315_s5 = scalar_lea.vmem %s14505_s21, %s10719_s6  ;;  %s5900_s6 = sadd.s32 160, %s15137_s29 }
 0x123   : > { %12637 = vmatmul.mubr.bf16.gmra.mrb[12].mxu1 %v14068_v13  ;;  %12365 = vmatpush3.bf16.msra.mxu0 %v14067_v11  ;;  %v14131_v11 = vld [vmem:[%s16241_s1 + $0x30] sm:$0xff]   ;;  %v14132_v13 = vld [vmem:[%s15177_s22 + $0x38] sm:$0xff]   ;;  %s7993_s22 = sadd.s32 32, %s15139_s24  ;;  %s5901_s7 = sshra.s32 %s5900_s6, 3 }
 0x124   : > { %12653 = vmatpush3.bf16.msra.mxu1 %v14069_v12  ;;  %12366 = vmatprep.subr.bf16.mxu0 %v14070_v14  ;;  %v14133_v12 = vld [vmem:[%s16241_s1 + $0x30] sm:$0xff]   ;;  %s7994_s9 = sshra.s32 %s7993_s22, 3  ;;  %s10752_s4 = sshll.u32 %s5901_s7, 2 }
 0x125   : > { %12654 = vmatprep.subr.bf16.mxu1 %v14071_v15  ;;  %12368 = vmatprep.mubr.bf16.mxu0 %v14072_v16  ;;  %v14136_v16 = vld [vmem:[%s15243_s26] sm:$0xff]   ;;  %s11016_s19 = sshll.u32 %s7994_s9, 2  ;;  %s6884_s7 = sadd.s32 336, %s15137_s29 }
 0x126   : > { %12656 = vmatprep.mubr.bf16.mxu1 %v14073_v17  ;;  %v14137_v17 = vld [vmem:[%s15249_s27] sm:$0xff]   ;;  %s15321_s20 = scalar_lea.vmem %s14505_s21, %s11016_s19 }
 0x127   : > { %12367 = vmatpush3.bf16.msra.mxu0 %v14070_v14  ;;  %v14134_v14 = vld [vmem:[%s16241_s1 + $0x38] sm:$0xff]  }
 0x128   : > { %12655 = vmatpush3.bf16.msra.mxu1 %v14071_v15  ;;  %12672 = vmatprep.subr.bf16.mxu0 %v14076_v19  ;;  %v14135_v15 = vld [vmem:[%s16241_s1 + $0x38] sm:$0xff]  }
 0x129   : > { %12960 = vmatprep.subr.bf16.mxu1 %v14077_v20 }
 0x12a   : > { %12369 = vmatmul.mubr.bf16.vlgmr.msra.gmra.mrb[0].mxu0 %v14074_v18  ;;  %v14138_v18 = vld [vmem:[%s15243_s26 + $0x8] sm:$0xff]  }
 0x12b   : > { %12657 = vmatmul.mubr.bf16.vlgmr.msra.gmra.mrb[0].mxu1 %v14075_v21  ;;  %12673 = vmatpush3.bf16.msra.mxu0 %v14076_v19  ;;  %v14139_v19 = vld [vmem:[%s16241_s1 + $0x80] sm:$0xff]   ;;  %v14140_v21 = vld [vmem:[%s15249_s27 + $0x8] sm:$0xff]  }
 0x12c   : > { %12961 = vmatpush3.bf16.msra.mxu1 %v14077_v20  ;;  %12674 = vmatprep.subr.bf16.mxu0 %v14078_v22  ;;  %v14141_v20 = vld [vmem:[%s16241_s1 + $0x80] sm:$0xff]  }
 0x12d   : > { %12962 = vmatprep.subr.bf16.mxu1 %v14079_v23  ;;  %12372 = vmatprep.mubr.bf16.mxu0 %v14080_v24  ;;  %v14144_v24 = vld [vmem:[%s15243_s26 + $0x10] sm:$0xff]  }
 0x12e   : > { %12660 = vmatprep.mubr.bf16.mxu1 %v14081_v25  ;;  %v14145_v25 = vld [vmem:[%s15249_s27 + $0x10] sm:$0xff]  }
 0x12f   : > { %12675 = vmatpush3.bf16.msra.mxu0 %v14078_v22  ;;  %v14142_v22 = vld [vmem:[%s16241_s1 + $0x88] sm:$0xff]  }
 0x130   : > { %12963 = vmatpush3.bf16.msra.mxu1 %v14079_v23  ;;  %12676 = vmatprep.subr.bf16.mxu0 %v14084_v27  ;;  %v14143_v23 = vld [vmem:[%s16241_s1 + $0x88] sm:$0xff]  }
 0x131   : > { %12964 = vmatprep.subr.bf16.mxu1 %v14085_v28 }
 0x132   : > { %12373 = vmatmul.mubr.bf16.gmra.mrb[4].mxu0 %v14082_v26  ;;  %v14146_v26 = vld [vmem:[%s15243_s26 + $0x18] sm:$0xff]  }
 0x133   : > { %12661 = vmatmul.mubr.bf16.gmra.mrb[4].mxu1 %v14083_v29  ;;  %12677 = vmatpush3.bf16.msra.mxu0 %v14084_v27  ;;  %v14147_v27 = vld [vmem:[%s16241_s1 + $0x90] sm:$0xff]   ;;  %v14148_v29 = vld [vmem:[%s15249_s27 + $0x18] sm:$0xff]  }
 0x134   : > { %12965 = vmatpush3.bf16.msra.mxu1 %v14085_v28  ;;  %12678 = vmatprep.subr.bf16.mxu0 %v14086_v30  ;;  %v14149_v28 = vld [vmem:[%s16241_s1 + $0x90] sm:$0xff]  }
 0x135   : > { %12966 = vmatprep.subr.bf16.mxu1 %v14087_v31  ;;  %12376 = vmatprep.mubr.bf16.mxu0 %v14088_v32  ;;  %v14152_v32 = vld [vmem:[%s15243_s26 + $0x20] sm:$0xff]  }
 0x136   : > { %12664 = vmatprep.mubr.bf16.mxu1 %v14089_v33  ;;  %v14153_v33 = vld [vmem:[%s15249_s27 + $0x20] sm:$0xff]  }
 0x137   : > { %12679 = vmatpush3.bf16.msra.mxu0 %v14086_v30  ;;  %v14150_v30 = vld [vmem:[%s16241_s1 + $0x98] sm:$0xff]  }
 0x138   : > { %12967 = vmatpush3.bf16.msra.mxu1 %v14087_v31  ;;  %12680 = vmatprep.subr.bf16.mxu0 %v14092_v35  ;;  %v14151_v31 = vld [vmem:[%s16241_s1 + $0x98] sm:$0xff]  }
 0x139   : > { %12968 = vmatprep.subr.bf16.mxu1 %v14093_v36 }
 0x13a   : > { %12377 = vmatmul.mubr.bf16.gmra.mrb[8].mxu0 %v14090_v34  ;;  %v14154_v34 = vld [vmem:[%s15243_s26 + $0x28] sm:$0xff]  }
 0x13b   : > { %12665 = vmatmul.mubr.bf16.gmra.mrb[8].mxu1 %v14091_v37  ;;  %12681 = vmatpush3.bf16.msra.mxu0 %v14092_v35  ;;  %v14155_v35 = vld [vmem:[%s16241_s1 + $0xa0] sm:$0xff]   ;;  %v14156_v37 = vld [vmem:[%s15249_s27 + $0x28] sm:$0xff]  }
 0x13c   : > { %12969 = vmatpush3.bf16.msra.mxu1 %v14093_v36  ;;  %12682 = vmatprep.subr.bf16.mxu0 %v14094_v38  ;;  %v14157_v36 = vld [vmem:[%s16241_s1 + $0xa0] sm:$0xff]  }
 0x13d   : > { %12970 = vmatprep.subr.bf16.mxu1 %v14095_v39  ;;  %12380 = vmatprep.mubr.bf16.mxu0 %v14096_v40  ;;  %v14160_v40 = vld [vmem:[%s15243_s26 + $0x30] sm:$0xff]  }
 0x13e   : > { %12668 = vmatprep.mubr.bf16.mxu1 %v14097_v41  ;;  %v14161_v41 = vld [vmem:[%s15249_s27 + $0x30] sm:$0xff]  }
 0x13f   : > { %12683 = vmatpush3.bf16.msra.mxu0 %v14094_v38  ;;  %v14158_v38 = vld [vmem:[%s16241_s1 + $0xa8] sm:$0xff]  }
 0x140   : > { %12971 = vmatpush3.bf16.msra.mxu1 %v14095_v39  ;;  %12684 = vmatprep.subr.bf16.mxu0 %v14100_v43  ;;  %v14159_v39 = vld [vmem:[%s16241_s1 + $0xa8] sm:$0xff]  }
 0x141   : > { %12972 = vmatprep.subr.bf16.mxu1 %v14101_v44 }
 0x142   : > { %12381 = vmatmul.mubr.bf16.gmra.mrb[12].mxu0 %v14098_v42  ;;  %v14162_v42 = vld [vmem:[%s15243_s26 + $0x38] sm:$0xff]   ;;  %s15387_s26 = scalar_lea.vmem %s14505_s21, %s10752_s4  ;;  %s6146_s4 = sadd.s32 176, %s15137_s29 }
 0x143   : > { %12669 = vmatmul.mubr.bf16.gmra.mrb[12].mxu1 %v14099_v45  ;;  %12685 = vmatpush3.bf16.msra.mxu0 %v14100_v43  ;;  %v14163_v43 = vld [vmem:[%s16241_s1 + $0xb0] sm:$0xff]   ;;  %v14164_v45 = vld [vmem:[%s15249_s27 + $0x38] sm:$0xff]   ;;  %s8239_s27 = sadd.s32 160, %s15139_s24  ;;  %s6147_s23 = sshra.s32 %s6146_s4, 3 }
 0x144   : > { %12973 = vmatpush3.bf16.msra.mxu1 %v14101_v44  ;;  %12686 = vmatprep.subr.bf16.mxu0 %v14102_v46  ;;  %v14165_v44 = vld [vmem:[%s16241_s1 + $0xb0] sm:$0xff]   ;;  %s8240_s8 = sshra.s32 %s8239_s27, 3  ;;  %s10785_s19 = sshll.u32 %s6147_s23, 2 }
 0x145   : > { %12974 = vmatprep.subr.bf16.mxu1 %v14103_v47  ;;  %12688 = vmatprep.mubr.bf16.mxu0 %v14104_v48  ;;  %v14168_v48 = vld [vmem:[%s15315_s5] sm:$0xff]   ;;  %s11049_s28 = sshll.u32 %s8240_s8, 2  ;;  %s10069_s23 = sshll.u32 %s14402_s13, 1 }
 0x146   : > { %12976 = vmatprep.mubr.bf16.mxu1 %v14105_v49  ;;  %v14169_v49 = vld [vmem:[%s15321_s20] sm:$0xff]   ;;  %s15393_s11 = scalar_lea.vmem %s14505_s21, %s11049_s28  ;;  %s15512_s13 = sadd.s32 %s14398_s12, %s10069_s23 }
 0x147   : > { %12687 = vmatpush3.bf16.msra.mxu0 %v14102_v46  ;;  %v14166_v46 = vld [vmem:[%s16241_s1 + $0xb8] sm:$0xff]   ;;  %s10070_s12 = sshll.u32 %s15512_s13, 6  ;;  %p211_p7 = scmp.lt.s32.totalorder %s15512_s13, 3 }
 0x148   : > { %12975 = vmatpush3.bf16.msra.mxu1 %v14103_v47  ;;  %12704 = vmatprep.subr.bf16.mxu0 %v14107_v51  ;;  %v14167_v47 = vld [vmem:[%s16241_s1 + $0xb8] sm:$0xff]   ;;  %p15531_p6 = scmp.lt.s32.totalorder %s10070_s12, 255 }
 0x149   : > { %12992 = vmatprep.subr.bf16.mxu1 %v14109_v52  ;;  %s16292_s13 = smov (!%p211_p7, %s15512_s13), 3 }
 0x14a   : > { %12689 = vmatmul.mubr.bf16.vlgmr.msra.gmra.mrb[16].mxu0 %v14106_v50  ;;  %v14170_v50 = vld [vmem:[%s15315_s5 + $0x8] sm:$0xff]   ;;  %s16290_s12 = smov (!%p15531_p6, %s10070_s12), 255 }
 0x14b   : > { %12977 = vmatmul.mubr.bf16.vlgmr.msra.gmra.mrb[16].mxu1 %v14108_v53  ;;  %12705 = vmatpush3.bf16.msra.mxu0 %v14107_v51  ;;  %v14171_v51 = vld [vmem:[%s16241_s1 + $0xc0] sm:$0xff]   ;;  %v14172_v53 = vld [vmem:[%s15321_s20 + $0x8] sm:$0xff]   ;;  %s10071_s4 = sshll.u32 %s16290_s12, 2  ;;  %s9469_s12 = sadd.s32 352, %s15139_s24 }
 0x14c   : > { %12993 = vmatpush3.bf16.msra.mxu1 %v14109_v52  ;;  %12706 = vmatprep.subr.bf16.mxu0 %v14110_v54  ;;  %v14173_v52 = vld [vmem:[%s16241_s1 + $0xc0] sm:$0xff]   ;;  %s15763_s28 = scalar_lea.vmem %s16242_s2, %s10071_s4 }
 0x14d   : > { %12994 = vmatprep.subr.bf16.mxu1 %v14111_v55  ;;  %12692 = vmatprep.mubr.bf16.mxu0 %v14112_v56  ;;  %v14176_v56 = vld [vmem:[%s15315_s5 + $0x10] sm:$0xff]  }
 0x14e   : > { %12980 = vmatprep.mubr.bf16.mxu1 %v14113_v57  ;;  %v14177_v57 = vld [vmem:[%s15321_s20 + $0x10] sm:$0xff]  }
 0x14f   : > { %12707 = vmatpush3.bf16.msra.mxu0 %v14110_v54  ;;  %v14174_v54 = vld [vmem:[%s16241_s1 + $0xc8] sm:$0xff]  }
 0x150   : > { %12995 = vmatpush3.bf16.msra.mxu1 %v14111_v55  ;;  %12708 = vmatprep.subr.bf16.mxu0 %v14115_v59  ;;  %v14175_v55 = vld [vmem:[%s16241_s1 + $0xc8] sm:$0xff]  }
 0x151   : > { %12996 = vmatprep.subr.bf16.mxu1 %v14117_v60 }
 0x152   : > { %12693 = vmatmul.mubr.bf16.gmra.mrb[20].mxu0 %v14114_v58  ;;  %v14178_v58 = vld [vmem:[%s15315_s5 + $0x18] sm:$0xff]  }
 0x153   : > { %12981 = vmatmul.mubr.bf16.gmra.mrb[20].mxu1 %v14116_v61  ;;  %12709 = vmatpush3.bf16.msra.mxu0 %v14115_v59  ;;  %v14179_v59 = vld [vmem:[%s16241_s1 + $0xd0] sm:$0xff]   ;;  %v14180_v61 = vld [vmem:[%s15321_s20 + $0x18] sm:$0xff]  }
 0x154   : > { %12997 = vmatpush3.bf16.msra.mxu1 %v14117_v60  ;;  %12710 = vmatprep.subr.bf16.mxu0 %v14118_v62  ;;  %v14181_v60 = vld [vmem:[%s16241_s1 + $0xd0] sm:$0xff]  }
 0x155   : > { %12998 = vmatprep.subr.bf16.mxu1 %v14119_v63  ;;  %12696 = vmatprep.mubr.bf16.mxu0 %v14120_v0  ;;  %v14184_v0 = vld [vmem:[%s15315_s5 + $0x20] sm:$0xff]  }
 0x156   : > { %12984 = vmatprep.mubr.bf16.mxu1 %v14121_v1  ;;  %v14185_v1 = vld [vmem:[%s15321_s20 + $0x20] sm:$0xff]  }
 0x157   : > { %12711 = vmatpush3.bf16.msra.mxu0 %v14118_v62  ;;  %v14182_v62 = vld [vmem:[%s16241_s1 + $0xd8] sm:$0xff]  }
 0x158   : > { %12999 = vmatpush3.bf16.msra.mxu1 %v14119_v63  ;;  %12712 = vmatprep.subr.bf16.mxu0 %v14123_v3  ;;  %v14183_v63 = vld [vmem:[%s16241_s1 + $0xd8] sm:$0xff]  }
 0x159   : > { %13000 = vmatprep.subr.bf16.mxu1 %v14125_v4 }
 0x15a   : > { %12697 = vmatmul.mubr.bf16.gmra.mrb[24].mxu0 %v14122_v2  ;;  %v14186_v2 = vld [vmem:[%s15315_s5 + $0x28] sm:$0xff]  }
 0x15b   : > { %12985 = vmatmul.mubr.bf16.gmra.mrb[24].mxu1 %v14124_v5  ;;  %12713 = vmatpush3.bf16.msra.mxu0 %v14123_v3  ;;  %v14187_v3 = vld [vmem:[%s16241_s1 + $0xe0] sm:$0xff]   ;;  %v14188_v5 = vld [vmem:[%s15321_s20 + $0x28] sm:$0xff]  }
 0x15c   : > { %13001 = vmatpush3.bf16.msra.mxu1 %v14125_v4  ;;  %12714 = vmatprep.subr.bf16.mxu0 %v14126_v6  ;;  %v14189_v4 = vld [vmem:[%s16241_s1 + $0xe0] sm:$0xff]  }
 0x15d   : > { %13002 = vmatprep.subr.bf16.mxu1 %v14127_v7  ;;  %12700 = vmatprep.mubr.bf16.mxu0 %v14128_v8  ;;  %v14192_v8 = vld [vmem:[%s15315_s5 + $0x30] sm:$0xff]  }
 0x15e   : > { %12988 = vmatprep.mubr.bf16.mxu1 %v14129_v9  ;;  %v14193_v9 = vld [vmem:[%s15321_s20 + $0x30] sm:$0xff]  }
 0x15f   : > { %12715 = vmatpush3.bf16.msra.mxu0 %v14126_v6  ;;  %v14190_v6 = vld [vmem:[%s16241_s1 + $0xe8] sm:$0xff]  }
 0x160   : > { %13003 = vmatpush3.bf16.msra.mxu1 %v14127_v7  ;;  %12716 = vmatprep.subr.bf16.mxu0 %v14131_v11  ;;  %v14191_v7 = vld [vmem:[%s16241_s1 + $0xe8] sm:$0xff]  }
 0x161   : > { %13004 = vmatprep.subr.bf16.mxu1 %v14133_v12 }
 0x162   : > { %12701 = vmatmul.mubr.bf16.gmra.mrb[28].mxu0 %v14130_v10  ;;  %v14194_v10 = vld [vmem:[%s15315_s5 + $0x38] sm:$0xff]   ;;  %s15459_s5 = scalar_lea.vmem %s14505_s21, %s10785_s19  ;;  %s8731_s19 = sadd.s32 192, %s15139_s24 }
 0x163   : > { %12989 = vmatmul.mubr.bf16.gmra.mrb[28].mxu1 %v14132_v13  ;;  %12717 = vmatpush3.bf16.msra.mxu0 %v14131_v11  ;;  %v14195_v11 = vld [vmem:[%s16241_s1 + $0xf0] sm:$0xff]   ;;  %v14196_v13 = vld [vmem:[%s15321_s20 + $0x38] sm:$0xff]   ;;  %s8485_s20 = sadd.s32 176, %s15139_s24  ;;  %s15520_s22 = sshra.s32 %s8731_s19, 3 }
 0x164   : > { %13005 = vmatpush3.bf16.msra.mxu1 %v14133_v12  ;;  %12718 = vmatprep.subr.bf16.mxu0 %v14134_v14  ;;  %v14197_v12 = vld [vmem:[%s16241_s1 + $0xf0] sm:$0xff]   ;;  %s8486_s6 = sshra.s32 %s8485_s20, 3  ;;  %s11115_s30 = sshll.u32 %s15520_s22, 2 }
 0x165   : > { %13006 = vmatprep.subr.bf16.mxu1 %v14135_v15  ;;  %12720 = vmatprep.mubr.bf16.mxu0 %v14136_v16  ;;  %v14200_v16 = vld [vmem:[%s15387_s26] sm:$0xff]   ;;  %s11082_s10 = sshll.u32 %s8486_s6, 2  ;;  %s6392_s6 = sadd.s32 192, %s15137_s29 }
 0x166   : > { %13008 = vmatprep.mubr.bf16.mxu1 %v14137_v17  ;;  %v14201_v17 = vld [vmem:[%s15393_s11] sm:$0xff]   ;;  %s15465_s9 = scalar_lea.vmem %s14505_s21, %s11082_s10  ;;  %s15564_s22 = scalar_lea.vmem %s14505_s21, %s11115_s30 }
 0x167   : > { %12719 = vmatpush3.bf16.msra.mxu0 %v14134_v14  ;;  %v14198_v14 = vld [vmem:[%s16241_s1 + $0xf8] sm:$0xff]  }
 0x168   : > { %13007 = vmatpush3.bf16.msra.mxu1 %v14135_v15  ;;  %12736 = vmatprep.subr.bf16.mxu0 %v14139_v19  ;;  %v14199_v15 = vld [vmem:[%s16241_s1 + $0xf8] sm:$0xff]  }
 0x169   : > { %13024 = vmatprep.subr.bf16.mxu1 %v14141_v20 }
 0x16a   : > { %12721 = vmatmul.mubr.bf16.vlgmr.msra.gmra.mrb[16].mxu0 %v14138_v18  ;;  %v14202_v18 = vld [vmem:[%s15387_s26 + $0x8] sm:$0xff]  }
 0x16b   : > { %13009 = vmatmul.mubr.bf16.vlgmr.msra.gmra.mrb[16].mxu1 %v14140_v21  ;;  %12737 = vmatpush3.bf16.msra.mxu0 %v14139_v19  ;;  %v14203_v19 = vld [vmem:[%s16241_s1 + $0x100] sm:$0xff]   ;;  %v14204_v21 = vld [vmem:[%s15393_s11 + $0x8] sm:$0xff]  }
 0x16c   : > { %13025 = vmatpush3.bf16.msra.mxu1 %v14141_v20  ;;  %12738 = vmatprep.subr.bf16.mxu0 %v14142_v22  ;;  %v14205_v20 = vld [vmem:[%s16241_s1 + $0x100] sm:$0xff]  }
 0x16d   : > { %13026 = vmatprep.subr.bf16.mxu1 %v14143_v23  ;;  %12724 = vmatprep.mubr.bf16.mxu0 %v14144_v24  ;;  %v14208_v24 = vld [vmem:[%s15387_s26 + $0x10] sm:$0xff]  }
 0x16e   : > { %13012 = vmatprep.mubr.bf16.mxu1 %v14145_v25  ;;  %v14209_v25 = vld [vmem:[%s15393_s11 + $0x10] sm:$0xff]  }
 0x16f   : > { %12739 = vmatpush3.bf16.msra.mxu0 %v14142_v22  ;;  %v14206_v22 = vld [vmem:[%s16241_s1 + $0x108] sm:$0xff]  }
 0x170   : > { %13027 = vmatpush3.bf16.msra.mxu1 %v14143_v23  ;;  %12740 = vmatprep.subr.bf16.mxu0 %v14147_v27  ;;  %v14207_v23 = vld [vmem:[%s16241_s1 + $0x108] sm:$0xff]  }
 0x171   : > { %13028 = vmatprep.subr.bf16.mxu1 %v14149_v28 }
 0x172   : > { %12725 = vmatmul.mubr.bf16.gmra.mrb[20].mxu0 %v14146_v26  ;;  %v14210_v26 = vld [vmem:[%s15387_s26 + $0x18] sm:$0xff]  }
 0x173   : > { %13013 = vmatmul.mubr.bf16.gmra.mrb[20].mxu1 %v14148_v29  ;;  %12741 = vmatpush3.bf16.msra.mxu0 %v14147_v27  ;;  %v14211_v27 = vld [vmem:[%s16241_s1 + $0x110] sm:$0xff]   ;;  %v14212_v29 = vld [vmem:[%s15393_s11 + $0x18] sm:$0xff]  }
 0x174   : > { %13029 = vmatpush3.bf16.msra.mxu1 %v14149_v28  ;;  %12742 = vmatprep.subr.bf16.mxu0 %v14150_v30  ;;  %v14213_v28 = vld [vmem:[%s16241_s1 + $0x110] sm:$0xff]  }
 0x175   : > { %13030 = vmatprep.subr.bf16.mxu1 %v14151_v31  ;;  %12728 = vmatprep.mubr.bf16.mxu0 %v14152_v32  ;;  %v14216_v32 = vld [vmem:[%s15387_s26 + $0x20] sm:$0xff]  }
 0x176   : > { %13016 = vmatprep.mubr.bf16.mxu1 %v14153_v33  ;;  %v14217_v33 = vld [vmem:[%s15393_s11 + $0x20] sm:$0xff]  }
 0x177   : > { %12743 = vmatpush3.bf16.msra.mxu0 %v14150_v30  ;;  %v14214_v30 = vld [vmem:[%s16241_s1 + $0x118] sm:$0xff]  }
 0x178   : > { %13031 = vmatpush3.bf16.msra.mxu1 %v14151_v31  ;;  %12744 = vmatprep.subr.bf16.mxu0 %v14155_v35  ;;  %v14215_v31 = vld [vmem:[%s16241_s1 + $0x118] sm:$0xff]  }
 0x179   : > { %13032 = vmatprep.subr.bf16.mxu1 %v14157_v36 }
 0x17a   : > { %12729 = vmatmul.mubr.bf16.gmra.mrb[24].mxu0 %v14154_v34  ;;  %v14218_v34 = vld [vmem:[%s15387_s26 + $0x28] sm:$0xff]  }
 0x17b   : > { %13017 = vmatmul.mubr.bf16.gmra.mrb[24].mxu1 %v14156_v37  ;;  %12745 = vmatpush3.bf16.msra.mxu0 %v14155_v35  ;;  %v14219_v35 = vld [vmem:[%s16241_s1 + $0x120] sm:$0xff]   ;;  %v14220_v37 = vld [vmem:[%s15393_s11 + $0x28] sm:$0xff]  }
 0x17c   : > { %13033 = vmatpush3.bf16.msra.mxu1 %v14157_v36  ;;  %12746 = vmatprep.subr.bf16.mxu0 %v14158_v38  ;;  %v14221_v36 = vld [vmem:[%s16241_s1 + $0x120] sm:$0xff]  }
 0x17d   : > { %13034 = vmatprep.subr.bf16.mxu1 %v14159_v39  ;;  %12732 = vmatprep.mubr.bf16.mxu0 %v14160_v40  ;;  %v14224_v40 = vld [vmem:[%s15387_s26 + $0x30] sm:$0xff]  }
 0x17e   : > { %13020 = vmatprep.mubr.bf16.mxu1 %v14161_v41  ;;  %v14225_v41 = vld [vmem:[%s15393_s11 + $0x30] sm:$0xff]  }
 0x17f   : > { %12747 = vmatpush3.bf16.msra.mxu0 %v14158_v38  ;;  %v14222_v38 = vld [vmem:[%s16241_s1 + $0x128] sm:$0xff]  }
 0x180   : > { %13035 = vmatpush3.bf16.msra.mxu1 %v14159_v39  ;;  %12748 = vmatprep.subr.bf16.mxu0 %v14163_v43  ;;  %v14223_v39 = vld [vmem:[%s16241_s1 + $0x128] sm:$0xff]  }
 0x181   : > { %13036 = vmatprep.subr.bf16.mxu1 %v14165_v44 }
 0x182   : > { %12733 = vmatmul.mubr.bf16.gmra.mrb[28].mxu0 %v14162_v42  ;;  %v14226_v42 = vld [vmem:[%s15387_s26 + $0x38] sm:$0xff]  }
 0x183   : > { %13021 = vmatmul.mubr.bf16.gmra.mrb[28].mxu1 %v14164_v45  ;;  %12749 = vmatpush3.bf16.msra.mxu0 %v14163_v43  ;;  %v14227_v43 = vld [vmem:[%s16241_s1 + $0x130] sm:$0xff]   ;;  %v14228_v45 = vld [vmem:[%s15393_s11 + $0x38] sm:$0xff]   ;;  %s15515_s11 = sshra.s32 %s6392_s6, 3  ;;  %s15727_s6 = sshra.s32 %s6884_s7, 3 }
 0x184   : > { %13037 = vmatpush3.bf16.msra.mxu1 %v14165_v44  ;;  %12750 = vmatprep.subr.bf16.mxu0 %v14166_v46  ;;  %v14229_v44 = vld [vmem:[%s16241_s1 + $0x130] sm:$0xff]   ;;  %s10818_s20 = sshll.u32 %s15515_s11, 2  ;;  %s8977_s11 = sadd.s32 320, %s15139_s24 }
 0x185   : > { %13038 = vmatprep.subr.bf16.mxu1 %v14167_v47  ;;  %12752 = vmatprep.mubr.bf16.mxu0 %v14168_v48  ;;  %v14232_v48 = vld [vmem:[%s15459_s5] sm:$0xff]   ;;  %s15548_s26 = scalar_lea.vmem %s14505_s21, %s10818_s20  ;;  %s15622_s23 = sshra.s32 %s8977_s11, 3 }
 0x186   : > { %13040 = vmatprep.mubr.bf16.mxu1 %v14169_v49  ;;  %v14233_v49 = vld [vmem:[%s15465_s9] sm:$0xff]   ;;  %s11148_s27 = sshll.u32 %s15622_s23, 2  ;;  %s7130_s20 = sadd.s32 352, %s15137_s29 }
 0x187   : > { %12751 = vmatpush3.bf16.msra.mxu0 %v14166_v46  ;;  %v14230_v46 = vld [vmem:[%s16241_s1 + $0x138] sm:$0xff]  }
 0x188   : > { %13039 = vmatpush3.bf16.msra.mxu1 %v14167_v47  ;;  %12768 = vmatprep.subr.bf16.mxu0 %v14171_v51  ;;  %v14231_v47 = vld [vmem:[%s16241_s1 + $0x138] sm:$0xff]  }
 0x189   : > { %13056 = vmatprep.subr.bf16.mxu1 %v14173_v52 }
 0x18a   : > { %12753 = vmatmul.mubr.bf16.vlgmr.msra.gmra.mrb[16].mxu0 %v14170_v50  ;;  %v14234_v50 = vld [vmem:[%s15459_s5 + $0x8] sm:$0xff]  }
 0x18b   : > { %13041 = vmatmul.mubr.bf16.vlgmr.msra.gmra.mrb[16].mxu1 %v14172_v53  ;;  %12769 = vmatpush3.bf16.msra.mxu0 %v14171_v51  ;;  %v14235_v51 = vld [vmem:[%s16241_s1 + $0x140] sm:$0xff]   ;;  %v14236_v53 = vld [vmem:[%s15465_s9 + $0x8] sm:$0xff]  }
 0x18c   : > { %13057 = vmatpush3.bf16.msra.mxu1 %v14173_v52  ;;  %12770 = vmatprep.subr.bf16.mxu0 %v14174_v54  ;;  %v14237_v52 = vld [vmem:[%s16241_s1 + $0x140] sm:$0xff]  }
 0x18d   : > { %13058 = vmatprep.subr.bf16.mxu1 %v14175_v55  ;;  %12756 = vmatprep.mubr.bf16.mxu0 %v14176_v56  ;;  %v14240_v56 = vld [vmem:[%s15459_s5 + $0x10] sm:$0xff]  }
 0x18e   : > { %13044 = vmatprep.mubr.bf16.mxu1 %v14177_v57  ;;  %v14241_v57 = vld [vmem:[%s15465_s9 + $0x10] sm:$0xff]  }
 0x18f   : > { %12771 = vmatpush3.bf16.msra.mxu0 %v14174_v54  ;;  %v14238_v54 = vld [vmem:[%s16241_s1 + $0x148] sm:$0xff]  }
 0x190   : > { %13059 = vmatpush3.bf16.msra.mxu1 %v14175_v55  ;;  %12772 = vmatprep.subr.bf16.mxu0 %v14179_v59  ;;  %v14239_v55 = vld [vmem:[%s16241_s1 + $0x148] sm:$0xff]  }
 0x191   : > { %13060 = vmatprep.subr.bf16.mxu1 %v14181_v60 }
 0x192   : > { %12757 = vmatmul.mubr.bf16.gmra.mrb[20].mxu0 %v14178_v58  ;;  %v14242_v58 = vld [vmem:[%s15459_s5 + $0x18] sm:$0xff]  }
 0x193   : > { %13045 = vmatmul.mubr.bf16.gmra.mrb[20].mxu1 %v14180_v61  ;;  %12773 = vmatpush3.bf16.msra.mxu0 %v14179_v59  ;;  %v14243_v59 = vld [vmem:[%s16241_s1 + $0x150] sm:$0xff]   ;;  %v219_v61 = vlaneseq }
 0x194   : > { %13061 = vmatpush3.bf16.msra.mxu1 %v14181_v60  ;;  %12774 = vmatprep.subr.bf16.mxu0 %v14182_v62  ;;  %v14245_v60 = vld [vmem:[%s16241_s1 + $0x150] sm:$0xff]  }
 0x195   : > { %13062 = vmatprep.subr.bf16.mxu1 %v14183_v63  ;;  %12760 = vmatprep.mubr.bf16.mxu0 %v14184_v0  ;;  %v14247_v0 = vld [vmem:[%s16241_s1 + $0x158] sm:$0xff]  }
 0x196   : > { %13048 = vmatprep.mubr.bf16.mxu1 %v14185_v1  ;;  %v14248_v1 = vld [vmem:[%s15459_s5 + $0x20] sm:$0xff]  }
 0x197   : > { %12775 = vmatpush3.bf16.msra.mxu0 %v14182_v62  ;;  %v14244_v62 = vld [vmem:[%s15465_s9 + $0x18] sm:$0xff]  }
 0x198   : > { %13063 = vmatpush3.bf16.msra.mxu1 %v14183_v63  ;;  %12776 = vmatprep.subr.bf16.mxu0 %v14187_v3  ;;  %v14246_v63 = vld [vmem:[%s16241_s1 + $0x158] sm:$0xff]  }
 0x199   : > { %13064 = vmatprep.subr.bf16.mxu1 %v14189_v4 }
 0x19a   : > { %12761 = vmatmul.mubr.bf16.gmra.mrb[24].mxu0 %v14186_v2  ;;  %v15527_v2 = vshrl.u32 %v219_v61, 7 }
 0x19b   : > { %13049 = vmatmul.mubr.bf16.gmra.mrb[24].mxu1 %v14188_v5  ;;  %12777 = vmatpush3.bf16.msra.mxu0 %v14187_v3  ;;  %v14249_v3 = vld [vmem:[%s15465_s9 + $0x20] sm:$0xff]  }
 0x19c   : > { %13065 = vmatpush3.bf16.msra.mxu1 %v14189_v4  ;;  %12778 = vmatprep.subr.bf16.mxu0 %v14190_v6  ;;  %v14250_v4 = vld [vmem:[%s15459_s5 + $0x28] sm:$0xff]   ;;  %v14251_v5 = vld [vmem:[%s16241_s1 + $0x160] sm:$0xff]  }
 0x19d   : > { %13066 = vmatprep.subr.bf16.mxu1 %v14191_v7  ;;  %12764 = vmatprep.mubr.bf16.mxu0 %v14192_v8  ;;  %v14252_v8 = vld [vmem:[%s15465_s9 + $0x28] sm:$0xff]  }
 0x19e   : > { %13052 = vmatprep.mubr.bf16.mxu1 %v14193_v9  ;;  %v15551_v9 = vadd.s32 24, %v15527_v2 }
 0x19f   : > { %12779 = vmatpush3.bf16.msra.mxu0 %v14190_v6  ;;  %v14253_v6 = vld [vmem:[%s16241_s1 + $0x160] sm:$0xff]  }
 0x1a0   : > { %13067 = vmatpush3.bf16.msra.mxu1 %v14191_v7  ;;  %12780 = vmatprep.subr.bf16.mxu0 %v14195_v11  ;;  %v15544_v7 = vadd.s32 16, %v15527_v2 }
 0x1a1   : > { %13068 = vmatprep.subr.bf16.mxu1 %v14197_v12 }
 0x1a2   : > { %12765 = vmatmul.mubr.bf16.gmra.mrb[28].mxu0 %v14194_v10  ;;  %v14254_v10 = vld [vmem:[%s16241_s1 + $0x168] sm:$0xff]  }
 0x1a3   : > { %13053 = vmatmul.mubr.bf16.gmra.mrb[28].mxu1 %v14196_v13  ;;  %12781 = vmatpush3.bf16.msra.mxu0 %v14195_v11  ;;  %v14255_v11 = vld [vmem:[%s16241_s1 + $0x168] sm:$0xff]   ;;  %v254_v13 = vand.u32 15, %v15544_v7 }
 0x1a4   : > { %13069 = vmatpush3.bf16.msra.mxu1 %v14197_v12  ;;  %12782 = vmatprep.subr.bf16.mxu0 %v14198_v14  ;;  %v14256_v12 = vld [vmem:[%s15459_s5 + $0x30] sm:$0xff]  }
 0x1a5   : > { %13070 = vmatprep.subr.bf16.mxu1 %v14199_v15  ;;  %12784 = vmatprep.mubr.bf16.mxu0 %v14200_v16  ;;  %v261_v16 = vand.u32 15, %v15551_v9  ;;  %vm15689_vm1 = vcmp.ge.s32.totalorder %v254_v13, 1  ;;  %v14287_v9 = vld [vmem:[%s16241_s1 + $0x1a8] sm:$0xff]   ;;  %v14289_v13 = vld [vmem:[%s15564_s22 + $0x30] sm:$0xff]  }
 0x1a6   : > { %13072 = vmatprep.mubr.bf16.mxu1 %v14201_v17  ;;  %v14258_v17 = vld [vmem:[%s15459_s5 + $0x38] sm:$0xff]   ;;  %s15725_s5 = scalar_lea.vmem %s14505_s21, %s11148_s27 }
 0x1a7   : > { %12783 = vmatpush3.bf16.msra.mxu0 %v14198_v14  ;;  %v14257_v14 = vld [vmem:[%s15465_s9 + $0x30] sm:$0xff]   ;;  %vm15701_vm2 = vcmp.le.s32.totalorder %v261_v16, 8 }
 0x1a8   : > { %13071 = vmatpush3.bf16.msra.mxu1 %v14199_v15  ;;  %12800 = vmatprep.subr.bf16.mxu0 %v14203_v19  ;;  %v240_v15 = vand.u32 15, %v15527_v2  ;;  %v14291_v16 = vld [vmem:[%s16241_s1 + $0x1b0] sm:$0xff]  }
 0x1a9   : > { %13088 = vmatprep.subr.bf16.mxu1 %v14205_v20 }
 0x1aa   : > { %12785 = vmatmul.mubr.bf16.vlgmr.msra.gmra.mrb[16].mxu0 %v14202_v18  ;;  %v14259_v18 = vld [vmem:[%s16241_s1 + $0x170] sm:$0xff]   ;;  %vm15677_vm0 = vcmp.ge.s32.totalorder %v240_v15, 1  ;;  %v14290_v15 = vld [vmem:[%s15548_s26 + $0x38] sm:$0xff]  }
 0x1ab   : > { %13073 = vmatmul.mubr.bf16.vlgmr.msra.gmra.mrb[16].mxu1 %v14204_v21  ;;  %12801 = vmatpush3.bf16.msra.mxu0 %v14203_v19  ;;  %v15577_v19 = vadd.s32 8, %v15527_v2  ;;  %v15583_v21 = vadd.s32 48, %v15527_v2 }
 0x1ac   : > { %13089 = vmatpush3.bf16.msra.mxu1 %v14205_v20  ;;  %12802 = vmatprep.subr.bf16.mxu0 %v14206_v22  ;;  %v14261_v20 = vld [vmem:[%s16241_s1 + $0x170] sm:$0xff]  }
 0x1ad   : > { %13090 = vmatprep.subr.bf16.mxu1 %v14207_v23  ;;  %12788 = vmatprep.mubr.bf16.mxu0 %v14208_v24  ;;  %v14262_v24 = vld [vmem:[%s16241_s1 + $0x178] sm:$0xff]  }
 0x1ae   : > { %13076 = vmatprep.mubr.bf16.mxu1 %v14209_v25  ;;  %v15593_v25 = vadd.s32 56, %v15527_v2 }
 0x1af   : > { %12803 = vmatpush3.bf16.msra.mxu0 %v14206_v22  ;;  %v14260_v22 = vld [vmem:[%s15465_s9 + $0x38] sm:$0xff]   ;;  %s6638_s9 = sadd.s32 320, %s15137_s29  ;;  %s7131_s29 = sshra.s32 %s7130_s20, 3 }
 0x1b0   : > { %13091 = vmatpush3.bf16.msra.mxu1 %v14207_v23  ;;  %12804 = vmatprep.subr.bf16.mxu0 %v14211_v27  ;;  %v15587_v23 = vadd.s32 32, %v15527_v2  ;;  %s15617_s25 = sshra.s32 %s6638_s9, 3 }
 0x1b1   : > { %13092 = vmatprep.subr.bf16.mxu1 %v14213_v28  ;;  %s10851_s30 = sshll.u32 %s15617_s25, 2  ;;  %s9223_s25 = sadd.s32 336, %s15139_s24 }
 0x1b2   : > { %12789 = vmatmul.mubr.bf16.gmra.mrb[20].mxu0 %v14210_v26  ;;  %v14263_v26 = vld [vmem:[%s16241_s1 + $0x178] sm:$0xff]   ;;  %s15714_s10 = scalar_lea.vmem %s14505_s21, %s10851_s30  ;;  %s10884_s30 = sshll.u32 %s15727_s6, 2 }
 0x1b3   : > { %13077 = vmatmul.mubr.bf16.gmra.mrb[20].mxu1 %v14212_v29  ;;  %12805 = vmatpush3.bf16.msra.mxu0 %v14211_v27  ;;  %v247_v27 = vand.u32 15, %v15577_v19  ;;  %v282_v29 = vand.u32 15, %v15583_v21  ;;  %s15745_s9 = sshra.s32 %s9223_s25, 3  ;;  %v14293_v19 = vld [vmem:[%s16241_s1 + $0x1b0] sm:$0xff]   ;;  %s16016_s27 = scalar_lea.vmem %s14505_s21, %s10884_s30 }
 0x1b4   : > { %13093 = vmatpush3.bf16.msra.mxu1 %v14213_v28  ;;  %12806 = vmatprep.subr.bf16.mxu0 %v14214_v30  ;;  %v14264_v28 = vld [vmem:[%s15548_s26] sm:$0xff]   ;;  %s11181_s8 = sshll.u32 %s15745_s9, 2  ;;  %s9470_s6 = sshra.s32 %s9469_s12, 3 }
 0x1b5   : > { %13094 = vmatprep.subr.bf16.mxu1 %v14215_v31  ;;  %12792 = vmatprep.mubr.bf16.mxu0 %v14216_v32  ;;  %v289_v32 = vand.u32 15, %v15593_v25  ;;  %vm15707_vm3 = vcmp.le.s32.totalorder %v247_v27, 8  ;;  %vm15767_vm5 = vcmp.ge.s32.totalorder %v282_v29, 1  ;;  %s10917_s24 = sshll.u32 %s7131_s29, 2  ;;  %s11214_s30 = sshll.u32 %s9470_s6, 2 }
 0x1b6   : > { %13080 = vmatprep.mubr.bf16.mxu1 %v14217_v33  ;;  %v14266_v33 = vld [vmem:[%s15548_s26 + $0x8] sm:$0xff]   ;;  %s16114_s20 = scalar_lea.vmem %s14505_s21, %s11214_s30 }
 0x1b7   : > { %12807 = vmatpush3.bf16.msra.mxu0 %v14214_v30  ;;  %v14265_v30 = vld [vmem:[%s15564_s22] sm:$0xff]   ;;  %vm15786_vm6 = vcmp.le.s32.totalorder %v289_v32, 8 }
 0x1b8   : > { %13095 = vmatpush3.bf16.msra.mxu1 %v14215_v31  ;;  %12808 = vmatprep.subr.bf16.mxu0 %v14219_v35  ;;  %v268_v31 = vand.u32 15, %v15587_v23  ;;  %v15754_v23 = vld [vmem:[%s16241_s1 + $0x1b8] sm:$0xff]  }
 0x1b9   : > { %13096 = vmatprep.subr.bf16.mxu1 %v14221_v36 }
 0x1ba   : > { %12793 = vmatmul.mubr.bf16.gmra.mrb[24].mxu0 %v14218_v34  ;;  %v14267_v34 = vld [vmem:[%s16241_s1 + $0x180] sm:$0xff]   ;;  %vm15741_vm4 = vcmp.ge.s32.totalorder %v268_v31, 1  ;;  %v15774_v31 = vld [vmem:[%s16241_s1 + $0x1b8] sm:$0xff]  }
 0x1bb   : > { %13081 = vmatmul.mubr.bf16.gmra.mrb[24].mxu1 %v14220_v37  ;;  %12809 = vmatpush3.bf16.msra.mxu0 %v14219_v35  ;;  %v14269_v35 = vld [vmem:[%s16241_s1 + $0x180] sm:$0xff]   ;;  %v14268_v37 = vld [vmem:[%s15564_s22 + $0x8] sm:$0xff]  }
 0x1bc   : > { %13097 = vmatpush3.bf16.msra.mxu1 %v14221_v36  ;;  %12810 = vmatprep.subr.bf16.mxu0 %v14222_v38  ;;  %v15614_v36 = vadd.s32 40, %v15527_v2 }
 0x1bd   : > { %13098 = vmatprep.subr.bf16.mxu1 %v14223_v39  ;;  %12796 = vmatprep.mubr.bf16.mxu0 %v14224_v40  ;;  %v15628_v40 = vadd.s32 80, %v15527_v2 }
 0x1be   : > { %13084 = vmatprep.mubr.bf16.mxu1 %v14225_v41  ;;  %v14272_v41 = vld [vmem:[%s15548_s26 + $0x10] sm:$0xff]  }
 0x1bf   : > { %12811 = vmatpush3.bf16.msra.mxu0 %v14222_v38  ;;  %v14270_v38 = vld [vmem:[%s16241_s1 + $0x188] sm:$0xff]  }
 0x1c0   : > { %13099 = vmatpush3.bf16.msra.mxu1 %v14223_v39  ;;  %12812 = vmatprep.subr.bf16.mxu0 %v14227_v43  ;;  %v14271_v39 = vld [vmem:[%s16241_s1 + $0x188] sm:$0xff]  }
 0x1c1   : > { %13100 = vmatprep.subr.bf16.mxu1 %v14229_v44 }
 0x1c2   : > { %12797 = vmatmul.mubr.bf16.gmra.mrb[28].mxu0 %v14226_v42  ;;  %v275_v42 = vand.u32 15, %v15614_v36 }
 0x1c3   : > { %13085 = vmatmul.mubr.bf16.gmra.mrb[28].mxu1 %v14228_v45  ;;  %12813 = vmatpush3.bf16.msra.mxu0 %v14227_v43  ;;  %v14273_v43 = vld [vmem:[%s15564_s22 + $0x10] sm:$0xff]   ;;  %v14274_v45 = vld [vmem:[%s15548_s26 + $0x18] sm:$0xff]  }
 0x1c4   : > { %13101 = vmatpush3.bf16.msra.mxu1 %v14229_v44  ;;  %12814 = vmatprep.subr.bf16.mxu0 %v14230_v46  ;;  %v15636_v44 = vadd.s32 64, %v15527_v2  ;;  %vm15792_vm7 = vcmp.le.s32.totalorder %v275_v42, 8  ;;  %v15807_v42 = vld [vmem:[%s16241_s1 + $0x1c0] sm:$0xff]  }
 0x1c5   : > { %13102 = vmatprep.subr.bf16.mxu1 %v14231_v47  ;;  %12816 = vmatprep.mubr.bf16.mxu0 %v14232_v48  ;;  %v14277_v48 = vld [vmem:[%s16241_s1 + $0x190] sm:$0xff]  }
 0x1c6   : > { %13104 = vmatprep.mubr.bf16.mxu1 %v14233_v49  ;;  %v15647_v49 = vadd.s32 88, %v15527_v2 }
 0x1c7   : > { %12815 = vmatpush3.bf16.msra.mxu0 %v14230_v46  ;;  %v14275_v46 = vld [vmem:[%s16241_s1 + $0x190] sm:$0xff]  }
 0x1c8   : > { %13103 = vmatpush3.bf16.msra.mxu1 %v14231_v47  ;;  %12832 = vmatprep.subr.bf16.mxu0 %v14235_v51  ;;  %v310_v47 = vand.u32 15, %v15628_v40 }
 0x1c9   : > { %13120 = vmatprep.subr.bf16.mxu1 %v14237_v52 }
 0x1ca   : > { %12817 = vmatmul.mubr.bf16.vlgmr.msra.gmra.mrb[16].mxu0 %v14234_v50  ;;  %v14276_v50 = vld [vmem:[%s15564_s22 + $0x18] sm:$0xff]   ;;  %vm15830_vm9 = vcmp.ge.s32.totalorder %v310_v47, 1 }
 0x1cb   : > { %13105 = vmatmul.mubr.bf16.vlgmr.msra.gmra.mrb[16].mxu1 %v14236_v53  ;;  %12833 = vmatpush3.bf16.msra.mxu0 %v14235_v51  ;;  %v15651_v51 = vadd.s32 72, %v15527_v2  ;;  %v15657_v53 = vadd.s32 112, %v15527_v2 }
 0x1cc   : > { %13121 = vmatpush3.bf16.msra.mxu1 %v14237_v52  ;;  %12834 = vmatprep.subr.bf16.mxu0 %v14238_v54  ;;  %v14278_v52 = vld [vmem:[%s16241_s1 + $0x198] sm:$0xff]  }
 0x1cd   : > { %13122 = vmatprep.subr.bf16.mxu1 %v14239_v55  ;;  %12820 = vmatprep.mubr.bf16.mxu0 %v14240_v56  ;;  %v14280_v56 = vld [vmem:[%s15548_s26 + $0x20] sm:$0xff]   ;;  %v338_v61 = vand.u32 15, %v15657_v53 }
 0x1ce   : > { %13108 = vmatprep.mubr.bf16.mxu1 %v14241_v57  ;;  %v296_v57 = vand.u32 15, %v15636_v44 }
 0x1cf   : > { %12835 = vmatpush3.bf16.msra.mxu0 %v14238_v54  ;;  %v14279_v54 = vld [vmem:[%s16241_s1 + $0x198] sm:$0xff]   ;;  %vm15908_vm13 = vcmp.ge.s32.totalorder %v338_v61, 1 }
 0x1d0   : > { %13123 = vmatpush3.bf16.msra.mxu1 %v14239_v55  ;;  %12836 = vmatprep.subr.bf16.mxu0 %v14243_v59  ;;  %v15663_v55 = vadd.s32 96, %v15527_v2  ;;  %vm15822_vm8 = vcmp.ge.s32.totalorder %v296_v57, 1 }
 0x1d1   : > { %13124 = vmatprep.subr.bf16.mxu1 %v14245_v60 }
 0x1d2   : > { %12821 = vmatmul.mubr.bf16.gmra.mrb[20].mxu0 %v14242_v58  ;;  %v14281_v58 = vld [vmem:[%s15564_s22 + $0x20] sm:$0xff]  }
 0x1d3   : > { %13109 = vmatmul.mubr.bf16.gmra.mrb[20].mxu1 %v14244_v62  ;;  %12837 = vmatpush3.bf16.msra.mxu0 %v14243_v59  ;;  %v317_v59 = vand.u32 15, %v15647_v49  ;;  %v14282_v62 = vld [vmem:[%s15548_s26 + $0x28] sm:$0xff]  }
 0x1d4   : > { %13125 = vmatpush3.bf16.msra.mxu1 %v14245_v60  ;;  %12838 = vmatprep.subr.bf16.mxu0 %v14246_v63  ;;  %v303_v60 = vand.u32 15, %v15651_v51 }
 0x1d5   : > { %13126 = vmatprep.subr.bf16.mxu1 %v14247_v0  ;;  %12824 = vmatprep.mubr.bf16.mxu0 %v14248_v1  ;;  %v324_v1 = vand.u32 15, %v15663_v55  ;;  %vm15855_vm10 = vcmp.le.s32.totalorder %v317_v59, 8  ;;  %v14309_v55 = vld [vmem:[%s16241_s1 + $0x1d0] sm:$0xff]  }
 0x1d6   : > { %13112 = vmatprep.mubr.bf16.mxu1 %v14249_v3  ;;  %v14285_v3 = vld [vmem:[%s16241_s1 + $0x1a0] sm:$0xff]   ;;  %vm15867_vm11 = vcmp.le.s32.totalorder %v303_v60, 8 }
 0x1d7   : > { %12839 = vmatpush3.bf16.msra.mxu0 %v14246_v63  ;;  %v14283_v63 = vld [vmem:[%s16241_s1 + $0x1a0] sm:$0xff]   ;;  %vm15888_vm12 = vcmp.ge.s32.totalorder %v324_v1, 1 }
 0x1d8   : > { %13127 = vmatpush3.bf16.msra.mxu1 %v14247_v0  ;;  %12840 = vmatprep.subr.bf16.mxu0 %v14251_v5 }
 0x1d9   : > { %13128 = vmatprep.subr.bf16.mxu1 %v14253_v6 }
 0x1da   : > { %12825 = vmatmul.mubr.bf16.gmra.mrb[24].mxu0 %v14250_v4  ;;  %v14284_v4 = vld [vmem:[%s15564_s22 + $0x28] sm:$0xff]  }
 0x1db   : > { %13113 = vmatmul.mubr.bf16.gmra.mrb[24].mxu1 %v14252_v8  ;;  %12841 = vmatpush3.bf16.msra.mxu0 %v14251_v5  ;;  %v14286_v8 = vld [vmem:[%s16241_s1 + $0x1a8] sm:$0xff]  }
 0x1dc   : > { %13129 = vmatpush3.bf16.msra.mxu1 %v14253_v6  ;;  %12842 = vmatprep.subr.bf16.mxu0 %v14254_v10  ;;  %v15694_v6 = vadd.s32 120, %v15527_v2 }
 0x1dd   : > { %13130 = vmatprep.subr.bf16.mxu1 %v14255_v11  ;;  %12828 = vmatprep.mubr.bf16.mxu0 %v14256_v12  ;;  %v14288_v12 = vld [vmem:[%s15548_s26 + $0x30] sm:$0xff]  }
 0x1de   : > { %13116 = vmatprep.mubr.bf16.mxu1 %v14257_v14 }
 0x1df   : > { %12843 = vmatpush3.bf16.msra.mxu0 %v14254_v10 }
 0x1e0   : > { %13131 = vmatpush3.bf16.msra.mxu1 %v14255_v11  ;;  %12844 = vmatprep.subr.bf16.mxu0 %v14259_v18  ;;  %v15717_v11 = vadd.s32 104, %v15527_v2  ;;  %v345_v2 = vand.u32 15, %v15694_v6 }
 0x1e1   : > { %13132 = vmatprep.subr.bf16.mxu1 %v14261_v20 }
 0x1e2   : > { %12829 = vmatmul.mubr.bf16.gmra.mrb[28].mxu0 %v14258_v17  ;;  %v331_v14 = vand.u32 15, %v15717_v11  ;;  %v14314_v11 = vld [vmem:[%s15714_s10 + $0x28] sm:$0xff]   ;;  %vm16000_vm15 = vcmp.le.s32.totalorder %v345_v2, 8 }
 0x1e3   : > { %13117 = vmatmul.mubr.bf16.gmra.mrb[28].mxu1 %v14260_v22  ;;  %12845 = vmatpush3.bf16.msra.mxu0 %v14259_v18 }
 0x1e4   : > { %13133 = vmatpush3.bf16.msra.mxu1 %v14261_v20  ;;  %12846 = vmatprep.subr.bf16.mxu0 %v14262_v24  ;;  %vm15939_vm14 = vcmp.le.s32.totalorder %v331_v14, 8  ;;  %v14317_v14 = vld [vmem:[%s16241_s1 + $0x1e0] sm:$0xff]  }
 0x1e5   : > { %13134 = vmatprep.subr.bf16.mxu1 %v14263_v26  ;;  %12848 = vmatprep.mubr.bf16.mxu0 %v14264_v28 }
 0x1e6   : > { %13136 = vmatprep.mubr.bf16.mxu1 %v14265_v30 }
 0x1e7   : > { %12847 = vmatpush3.bf16.msra.mxu0 %v14262_v24  ;;  %v14292_v24 = vld [vmem:[%s15564_s22 + $0x38] sm:$0xff]  }
 0x1e8   : > { %13135 = vmatpush3.bf16.msra.mxu1 %v14263_v26  ;;  %12864 = vmatprep.subr.bf16.mxu0 %v14267_v34 }
 0x1e9   : > { %13152 = vmatprep.subr.bf16.mxu1 %v14269_v35 }
 0x1ea   : > { %12849 = vmatmul.mubr.bf16.vlgmr.msra.gmra.mrb[16].mxu0 %v14266_v33 }
 0x1eb   : > { %13137 = vmatmul.mubr.bf16.vlgmr.msra.gmra.mrb[16].mxu1 %v14268_v37  ;;  %12865 = vmatpush3.bf16.msra.mxu0 %v14267_v34  ;;  %v14296_v37 = vld [vmem:[%s15714_s10] sm:$0xff]  }
 0x1ec   : > { %13153 = vmatpush3.bf16.msra.mxu1 %v14269_v35  ;;  %12866 = vmatprep.subr.bf16.mxu0 %v14270_v38 }
 0x1ed   : > { %13154 = vmatprep.subr.bf16.mxu1 %v14271_v39  ;;  %12852 = vmatprep.mubr.bf16.mxu0 %v14272_v41 }
 0x1ee   : > { %13140 = vmatprep.mubr.bf16.mxu1 %v14273_v43 }
 0x1ef   : > { %12867 = vmatpush3.bf16.msra.mxu0 %v14270_v38  ;;  %v14297_v38 = vld [vmem:[%s15725_s5] sm:$0xff]  }
 0x1f0   : > { %13155 = vmatpush3.bf16.msra.mxu1 %v14271_v39  ;;  %12868 = vmatprep.subr.bf16.mxu0 %v14275_v46 }
 0x1f1   : > { %13156 = vmatprep.subr.bf16.mxu1 %v14277_v48 }
 0x1f2   : > { %12853 = vmatmul.mubr.bf16.gmra.mrb[20].mxu0 %v14274_v45 }
 0x1f3   : > { %13141 = vmatmul.mubr.bf16.gmra.mrb[20].mxu1 %v14276_v50  ;;  %12869 = vmatpush3.bf16.msra.mxu0 %v14275_v46 }
 0x1f4   : > { %13157 = vmatpush3.bf16.msra.mxu1 %v14277_v48  ;;  %12870 = vmatprep.subr.bf16.mxu0 %v14278_v52 }
 0x1f5   : > { %13158 = vmatprep.subr.bf16.mxu1 %v14279_v54  ;;  %12856 = vmatprep.mubr.bf16.mxu0 %v14280_v56 }
 0x1f6   : > { %13144 = vmatprep.mubr.bf16.mxu1 %v14281_v58  ;;  %v15812_v58 = vld [vmem:[%s16241_s1 + $0x1c0] sm:$0xff]  }
 0x1f7   : > { %12871 = vmatpush3.bf16.msra.mxu0 %v14278_v52 }
 0x1f8   : > { %13159 = vmatpush3.bf16.msra.mxu1 %v14279_v54  ;;  %12872 = vmatprep.subr.bf16.mxu0 %v14283_v63 }
 0x1f9   : > { %13160 = vmatprep.subr.bf16.mxu1 %v14285_v3 }
 0x1fa   : > { %12857 = vmatmul.mubr.bf16.gmra.mrb[24].mxu0 %v14282_v62 }
 0x1fb   : > { %13145 = vmatmul.mubr.bf16.gmra.mrb[24].mxu1 %v14284_v4  ;;  %12873 = vmatpush3.bf16.msra.mxu0 %v14283_v63 }
 0x1fc   : > { %13161 = vmatpush3.bf16.msra.mxu1 %v14285_v3  ;;  %12874 = vmatprep.subr.bf16.mxu0 %v14286_v8 }
 0x1fd   : > { %v12370_v18 = vpop.f32.mrb[0].mxu0  ;;  %13162 = vmatprep.subr.bf16.mxu1 %v14287_v9  ;;  %12860 = vmatprep.mubr.bf16.mxu0 %v14288_v12 }
 0x1fe   : > { %v12658_v20 = vpop.f32.mrb[0].mxu1  ;;  %v2587_v22 = vpop.f32.mrb[1].mxu0  ;;  %13148 = vmatprep.mubr.bf16.mxu1 %v14289_v13  ;;  %v2780_v21 = vsel %vm15689_vm1, %v12370_v18, 0.0 }
 0x1ff   : > { %v2778_v26 = vsel %vm15677_vm0, %v2587_v22, 0.0  ;;  %v4958_v27 = vpop.f32.mrb[1].mxu1  ;;  %v12371_v28 = vpop.f32.mrb[2].mxu0  ;;  %12875 = vmatpush3.bf16.msra.mxu0 %v14286_v8  ;;  %v5119_v29 = vsel %vm15689_vm1, %v12658_v20, 0.0  ;;  %v2818_v4 = vmul.f32 %v2780_v21, %v2780_v21 }
 0x200   : > { %v11337_v33 = vpack.c.bf16 %v12371_v28, %v12370_v18  ;;  %v12659_v34 = vpop.f32.mrb[2].mxu1  ;;  %13163 = vmatpush3.bf16.msra.mxu1 %v14287_v9  ;;  %v2590_v35 = vpop.f32.mrb[3].mxu0  ;;  %12876 = vmatprep.subr.bf16.mxu0 %v14291_v16  ;;  %v5117_v39 = vsel %vm15677_vm0, %v4958_v27, 0.0  ;;  %v2816_v48 = vmul.f32 %v2778_v26, %v2778_v26  ;;  %v2781_v50 = vsel %vm15701_vm2, %v12371_v28, 0.0 }
 0x201   : > { %v11377_v41 = vpack.c.bf16 %v12659_v34, %v12658_v20  ;;  %v4961_v43 = vpop.f32.mrb[3].mxu1  ;;  %13164 = vmatprep.subr.bf16.mxu1 %v14293_v19  ;;  %v11332_v52 = vpack.c.bf16 %v2590_v35, %v2587_v22  ;;  %v2779_v25 = vsel %vm15707_vm3, %v2590_v35, 0.0  ;;  %v5155_v62 = vmul.f32 %v5117_v39, %v5117_v39  ;;  %v15840_v35 = vld [vmem:[%s16241_s1 + $0x1c8] sm:$0xff]  }
 0x202   : > { %11489 = vst [vmem:[%s15763_s28 + $0x8] sm:$0xff] %v11337_v33   ;;  %12861 = vmatmul.mubr.bf16.gmra.mrb[28].mxu0 %v14290_v15  ;;  %v2794_v32 = vadd.f32 %v2779_v25, %v2778_v26  ;;  %v2817_v54 = vmul.f32 %v2779_v25, %v2779_v25  ;;  %v11372_v56 = vpack.c.bf16 %v4961_v43, %v4958_v27  ;;  %v5118_v36 = vsel %vm15707_vm3, %v4961_v43, 0.0  ;;  %v14300_v26 = vld [vmem:[%s15725_s5 + $0x8] sm:$0xff]  }
 0x203   : > { %11497 = vst [vmem:[%s15763_s28 + $0x48] sm:$0xff] %v11377_v41   ;;  %13149 = vmatmul.mubr.bf16.gmra.mrb[28].mxu1 %v14292_v24  ;;  %12877 = vmatpush3.bf16.msra.mxu0 %v14291_v16  ;;  %11333 = vst [vmem:[%s15763_s28] sm:$0xff] %v11332_v52   ;;  %v5133_v63 = vadd.f32 %v5118_v36, %v5117_v39  ;;  %v5156_v3 = vmul.f32 %v5118_v36, %v5118_v36  ;;  %v5120_v8 = vsel %vm15701_vm2, %v12659_v34, 0.0  ;;  %v14298_v24 = vld [vmem:[%s15714_s10 + $0x8] sm:$0xff]   ;;  %v14305_v36 = vld [vmem:[%s15725_s5 + $0x10] sm:$0xff]  }
 0x204   : > { %13165 = vmatpush3.bf16.msra.mxu1 %v14293_v19  ;;  %12878 = vmatprep.subr.bf16.mxu0 %v15754_v23  ;;  %v2795_v9 = vadd.f32 %v2794_v32, %v2780_v21  ;;  %v2832_v12 = vadd.f32 %v2817_v54, %v2816_v48  ;;  %11496 = vst [vmem:[%s15763_s28 + $0x40] sm:$0xff] %v11372_v56   ;;  %v15846_v39 = vld [vmem:[%s16241_s1 + $0x1c8] sm:$0xff]  }
 0x205   : > { %v12374_v13 = vpop.f32.mrb[4].mxu0  ;;  %13166 = vmatprep.subr.bf16.mxu1 %v15774_v31  ;;  %12880 = vmatprep.mubr.bf16.mxu0 %v14296_v37  ;;  %v5157_v16 = vmul.f32 %v5119_v29, %v5119_v29  ;;  %v5134_v18 = vadd.f32 %v5133_v63, %v5119_v29  ;;  %v5171_v19 = vadd.f32 %v5156_v3, %v5155_v62 }
 0x206   : > { %v12662_v20 = vpop.f32.mrb[4].mxu1  ;;  %v2603_v22 = vpop.f32.mrb[5].mxu0  ;;  %13168 = vmatprep.mubr.bf16.mxu1 %v14297_v38  ;;  %v2819_v44 = vmul.f32 %v2781_v50, %v2781_v50  ;;  %v2833_v57 = vadd.f32 %v2832_v12, %v2818_v4  ;;  %v5158_v40 = vmul.f32 %v5120_v8, %v5120_v8  ;;  %v2796_v37 = vadd.f32 %v2795_v9, %v2781_v50  ;;  %v15874_v4 = vld [vmem:[%s16241_s1 + $0x1d0] sm:$0xff]  }
 0x207   : > { %v2782_v28 = vsel %vm15741_vm4, %v2603_v22, 0.0  ;;  %v4974_v33 = vpop.f32.mrb[5].mxu1  ;;  %v12375_v34 = vpop.f32.mrb[6].mxu0  ;;  %12879 = vmatpush3.bf16.msra.mxu0 %v15754_v23  ;;  %v5172_v47 = vadd.f32 %v5171_v19, %v5157_v16  ;;  %v14304_v23 = vld [vmem:[%s15714_s10 + $0x10] sm:$0xff]   ;;  %v5135_v48 = vadd.f32 %v5134_v18, %v5120_v8  ;;  %v2784_v25 = vsel %vm15767_vm5, %v12374_v13, 0.0 }
 0x208   : > { %v2820_v38 = vmul.f32 %v2782_v28, %v2782_v28  ;;  %v12663_v21 = vpop.f32.mrb[6].mxu1  ;;  %13167 = vmatpush3.bf16.msra.mxu1 %v15774_v31  ;;  %v2606_v29 = vpop.f32.mrb[7].mxu0  ;;  %v2834_v41 = vadd.f32 %v2833_v57, %v2819_v44  ;;  %v5121_v43 = vsel %vm15741_vm4, %v4974_v33, 0.0  ;;  %v11347_v52 = vpack.c.bf16 %v12375_v34, %v12374_v13  ;;  %12896 = vmatprep.subr.bf16.mxu0 %v15807_v42  ;;  %v14306_v44 = vld [vmem:[%s15714_s10 + $0x18] sm:$0xff]  }
 0x209   : > { %v4977_v50 = vpop.f32.mrb[7].mxu1  ;;  %13184 = vmatprep.subr.bf16.mxu1 %v15812_v58  ;;  %v2797_v32 = vadd.f32 %v2796_v37, %v2782_v28  ;;  %v5159_v54 = vmul.f32 %v5121_v43, %v5121_v43  ;;  %v5173_v56 = vadd.f32 %v5172_v47, %v5158_v40  ;;  %v5123_v62 = vsel %vm15767_vm5, %v12662_v20, 0.0  ;;  %v14308_v57 = vld [vmem:[%s15725_s5 + $0x18] sm:$0xff]  }
 0x20a   : > { %12881 = vmatmul.mubr.bf16.vlgmr.msra.gmra.mrb[16].mxu0 %v14298_v24  ;;  %v2835_v63 = vadd.f32 %v2834_v41, %v2820_v38  ;;  %v5136_v3 = vadd.f32 %v5135_v48, %v5121_v43  ;;  %11491 = vst [vmem:[%s15763_s28 + $0x18] sm:$0xff] %v11347_v52   ;;  %v11387_v49 = vpack.c.bf16 %v12663_v21, %v12662_v20  ;;  %v2785_v9 = vsel %vm15786_vm6, %v12375_v34, 0.0  ;;  %v15915_v38 = vld [vmem:[%s16241_s1 + $0x1d8] sm:$0xff]   ;;  %v14312_v48 = vld [vmem:[%s15714_s10 + $0x20] sm:$0xff]  }
 0x20b   : > { %13169 = vmatmul.mubr.bf16.vlgmr.msra.gmra.mrb[16].mxu1 %v14300_v26  ;;  %v5174_v8 = vadd.f32 %v5173_v56, %v5159_v54  ;;  %v11342_v12 = vpack.c.bf16 %v2606_v29, %v2603_v22  ;;  %v2783_v13 = vsel %vm15792_vm7, %v2606_v29, 0.0  ;;  %12897 = vmatpush3.bf16.msra.mxu0 %v15807_v42  ;;  %v5124_v51 = vsel %vm15786_vm6, %v12663_v21, 0.0  ;;  %v14311_v43 = vld [vmem:[%s16241_s1 + $0x1d8] sm:$0xff]   ;;  %v14313_v56 = vld [vmem:[%s15725_s5 + $0x20] sm:$0xff]  }
 0x20c   : > { %13185 = vmatpush3.bf16.msra.mxu1 %v15812_v58  ;;  %11499 = vst [vmem:[%s15763_s28 + $0x58] sm:$0xff] %v11387_v49   ;;  %v2798_v60 = vadd.f32 %v2797_v32, %v2783_v13  ;;  %v2821_v16 = vmul.f32 %v2783_v13, %v2783_v13  ;;  %v11382_v18 = vpack.c.bf16 %v4977_v50, %v4974_v33  ;;  %v5122_v22 = vsel %vm15792_vm7, %v4977_v50, 0.0 }
 0x20d   : > { %v12378_v19 = vpop.f32.mrb[8].mxu0  ;;  %12898 = vmatprep.subr.bf16.mxu0 %v15840_v35  ;;  %v2822_v42 = vmul.f32 %v2784_v25, %v2784_v25  ;;  %v5161_v58 = vmul.f32 %v5123_v62, %v5123_v62  ;;  %11490 = vst [vmem:[%s15763_s28 + $0x10] sm:$0xff] %v11342_v12   ;;  %13186 = vmatprep.subr.bf16.mxu1 %v15846_v39 }
 0x20e   : > { %v12666_v24 = vpop.f32.mrb[8].mxu1  ;;  %v15895_v26 = vpop.f32.mrb[9].mxu0  ;;  %12884 = vmatprep.mubr.bf16.mxu0 %v14304_v23  ;;  %v2799_v1 = vadd.f32 %v2798_v60, %v2784_v25  ;;  %v2836_v28 = vadd.f32 %v2835_v63, %v2821_v16  ;;  %11498 = vst [vmem:[%s15763_s28 + $0x50] sm:$0xff] %v11382_v18   ;;  %v5137_v33 = vadd.f32 %v5136_v3, %v5122_v22  ;;  %v15931_v32 = vsel %vm15830_vm9, %v12378_v19, 0.0 }
 0x20f   : > { %v5160_v34 = vmul.f32 %v5122_v22, %v5122_v22  ;;  %v15904_v40 = vpop.f32.mrb[9].mxu1  ;;  %v12379_v47 = vpop.f32.mrb[10].mxu0  ;;  %13172 = vmatprep.mubr.bf16.mxu1 %v14305_v36  ;;  %v2823_v21 = vmul.f32 %v2785_v9, %v2785_v9  ;;  %v5162_v29 = vmul.f32 %v5124_v51, %v5124_v51  ;;  %v2786_v23 = vsel %vm15822_vm8, %v15895_v26, 0.0  ;;  %12899 = vmatpush3.bf16.msra.mxu0 %v15840_v35 }
 0x210   : > { %v5125_v53 = vsel %vm15822_vm8, %v15904_v40, 0.0  ;;  %v12667_v61 = vpop.f32.mrb[10].mxu1  ;;  %13187 = vmatpush3.bf16.msra.mxu1 %v15846_v39  ;;  %v2622_v41 = vpop.f32.mrb[11].mxu0  ;;  %v2837_v52 = vadd.f32 %v2836_v28, %v2822_v42  ;;  %v5138_v50 = vadd.f32 %v5137_v33, %v5123_v62  ;;  %12900 = vmatprep.subr.bf16.mxu0 %v15874_v4  ;;  %v2800_v35 = vadd.f32 %v2799_v1, %v2785_v9  ;;  %v15946_v9 = vld [vmem:[%s16241_s1 + $0x1e0] sm:$0xff]  }
 0x211   : > { %v5175_v25 = vadd.f32 %v5174_v8, %v5160_v34  ;;  %v4993_v54 = vpop.f32.mrb[11].mxu1  ;;  %v2824_v39 = vmul.f32 %v2786_v23, %v2786_v23  ;;  %v5163_v36 = vmul.f32 %v5125_v53, %v5125_v53  ;;  %v11357_v63 = vpack.c.bf16 %v12379_v47, %v12378_v19  ;;  %13188 = vmatprep.subr.bf16.mxu1 %v14309_v55 }
 0x212   : > { %12885 = vmatmul.mubr.bf16.gmra.mrb[20].mxu0 %v14306_v44  ;;  %v5127_v62 = vsel %vm15830_vm9, %v12666_v24, 0.0  ;;  %v2838_v49 = vadd.f32 %v2837_v52, %v2823_v21  ;;  %v5139_v8 = vadd.f32 %v5138_v50, %v5124_v51  ;;  %v2826_v13 = vmul.f32 %v15931_v32, %v15931_v32  ;;  %v14318_v52 = vld [vmem:[%s16241_s1 + $0x1e8] sm:$0xff]  }
 0x213   : > { %v5176_v3 = vadd.f32 %v5175_v25, %v5161_v58  ;;  %13173 = vmatmul.mubr.bf16.gmra.mrb[20].mxu1 %v14308_v57  ;;  %v2801_v60 = vadd.f32 %v2800_v35, %v2786_v23  ;;  %11493 = vst [vmem:[%s15763_s28 + $0x28] sm:$0xff] %v11357_v63   ;;  %v2789_v51 = vsel %vm15855_vm10, %v12379_v47, 0.0  ;;  %v11397_v16 = vpack.c.bf16 %v12667_v61, %v12666_v24  ;;  %v14319_v50 = vld [vmem:[%s16241_s1 + $0x1e8] sm:$0xff]   ;;  %v14320_v25 = vld [vmem:[%s15714_s10 + $0x30] sm:$0xff]  }
 0x214   : > { %12901 = vmatpush3.bf16.msra.mxu0 %v15874_v4  ;;  %13189 = vmatpush3.bf16.msra.mxu1 %v14309_v55  ;;  %v2839_v18 = vadd.f32 %v2838_v49, %v2824_v39  ;;  %v5140_v19 = vadd.f32 %v5139_v8, %v5125_v53  ;;  %v5128_v58 = vsel %vm15855_vm10, %v12667_v61, 0.0  ;;  %v11352_v4 = vpack.c.bf16 %v2622_v41, %v15895_v26 }
 0x215   : > { %v5177_v42 = vadd.f32 %v5176_v3, %v5162_v29  ;;  %v15960_v22 = vpop.f32.mrb[12].mxu0  ;;  %12902 = vmatprep.subr.bf16.mxu0 %v15915_v38  ;;  %11501 = vst [vmem:[%s15763_s28 + $0x68] sm:$0xff] %v11397_v16   ;;  %v2787_v24 = vsel %vm15867_vm11, %v2622_v41, 0.0  ;;  %v11392_v44 = vpack.c.bf16 %v4993_v54, %v15904_v40  ;;  %v5126_v57 = vsel %vm15867_vm11, %v4993_v54, 0.0  ;;  %13190 = vmatprep.subr.bf16.mxu1 %v14311_v43  ;;  %v14316_v40 = vld [vmem:[%s15725_s5 + $0x28] sm:$0xff]  }
 0x216   : > { %v12670_v55 = vpop.f32.mrb[12].mxu1  ;;  %v15970_v1 = vpop.f32.mrb[13].mxu0  ;;  %12888 = vmatprep.mubr.bf16.mxu0 %v14312_v48  ;;  %v2802_v33 = vadd.f32 %v2801_v60, %v2787_v24  ;;  %v2825_v34 = vmul.f32 %v2787_v24, %v2787_v24  ;;  %v5141_v26 = vadd.f32 %v5140_v19, %v5126_v57  ;;  %13176 = vmatprep.mubr.bf16.mxu1 %v14313_v56  ;;  %v2792_v63 = vsel %vm15908_vm13, %v15960_v22, 0.0 }
 0x217   : > { %v5178_v28 = vadd.f32 %v5177_v42, %v5163_v36  ;;  %v15972_v47 = vpop.f32.mrb[13].mxu1  ;;  %v12383_v21 = vpop.f32.mrb[14].mxu0  ;;  %v5165_v29 = vmul.f32 %v5127_v62, %v5127_v62  ;;  %v2827_v23 = vmul.f32 %v2789_v51, %v2789_v51  ;;  %11492 = vst [vmem:[%s15763_s28 + $0x20] sm:$0xff] %v11352_v4   ;;  %11500 = vst [vmem:[%s15763_s28 + $0x60] sm:$0xff] %v11392_v44   ;;  %v2790_v61 = vsel %vm15888_vm12, %v15970_v1, 0.0  ;;  %v14325_v44 = vld [vmem:[%s16241_s1 + $0x1f0] sm:$0xff]  }
 0x218   : > { %v5164_v53 = vmul.f32 %v5126_v57, %v5126_v57  ;;  %v12671_v41 = vpop.f32.mrb[14].mxu1  ;;  %12903 = vmatpush3.bf16.msra.mxu0 %v15915_v38  ;;  %13191 = vmatpush3.bf16.msra.mxu1 %v14311_v43  ;;  %v2638_v48 = vpop.f32.mrb[15].mxu0  ;;  %v5166_v54 = vmul.f32 %v5128_v58, %v5128_v58  ;;  %v2803_v56 = vadd.f32 %v2802_v33, %v15931_v32  ;;  %v14321_v38 = vld [vmem:[%s15725_s5 + $0x30] sm:$0xff]   ;;  %v5129_v49 = vsel %vm15888_vm12, %v15972_v47, 0.0 }
 0x219   : > { %v2840_v35 = vadd.f32 %v2839_v18, %v2825_v34  ;;  %v5142_v39 = vadd.f32 %v5141_v26, %v5127_v62  ;;  %v5009_v36 = vpop.f32.mrb[15].mxu1  ;;  %12904 = vmatprep.subr.bf16.mxu0 %v15946_v9  ;;  %v2828_v3 = vmul.f32 %v2790_v61, %v2790_v61  ;;  %13192 = vmatprep.subr.bf16.mxu1 %v14317_v14  ;;  %v5131_v6 = vsel %vm15908_vm13, %v12670_v55, 0.0  ;;  %v14327_v34 = vld [vmem:[%s16241_s1 + $0x1f8] sm:$0xff]  }
 0x21a   : > { %v5179_v43 = vadd.f32 %v5178_v28, %v5164_v53  ;;  %12889 = vmatmul.mubr.bf16.gmra.mrb[24].mxu0 %v14314_v11  ;;  %v2804_v8 = vadd.f32 %v2803_v56, %v2789_v51  ;;  %v5167_v60 = vmul.f32 %v5129_v49, %v5129_v49  ;;  %v11367_v19 = vpack.c.bf16 %v12383_v21, %v15960_v22  ;;  %v14323_v51 = vld [vmem:[%s16241_s1 + $0x1f0] sm:$0xff]   ;;  %v14324_v22 = vld [vmem:[%s15725_s5 + $0x38] sm:$0xff]   ;;  %s16029_s5 = scalar_lea.vmem %s14505_s21, %s11181_s8  ;;  %s16110_s8 = scalar_lea.vmem %s14505_s21, %s10917_s24 }
 0x21b   : > { %v2841_v32 = vadd.f32 %v2840_v35, %v2826_v13  ;;  %v5143_v62 = vadd.f32 %v5142_v39, %v5128_v58  ;;  %13177 = vmatmul.mubr.bf16.gmra.mrb[24].mxu1 %v14316_v40  ;;  %v11407_v11 = vpack.c.bf16 %v12671_v41, %v12670_v55  ;;  %v14322_v13 = vld [vmem:[%s15714_s10 + $0x38] sm:$0xff]   ;;  %v11362_v4 = vpack.c.bf16 %v2638_v48, %v15970_v1  ;;  %s10073_s21 = sshll.u32 %s16292_s13, 3 }
 0x21c   : > { %v5180_v16 = vadd.f32 %v5179_v43, %v5165_v29  ;;  %12905 = vmatpush3.bf16.msra.mxu0 %v15946_v9  ;;  %13193 = vmatpush3.bf16.msra.mxu1 %v14317_v14  ;;  %v2805_v2 = vadd.f32 %v2804_v8, %v2790_v61  ;;  %v2830_v9 = vmul.f32 %v2792_v63, %v2792_v63  ;;  %v2791_v24 = vsel %vm15939_vm14, %v2638_v48, 0.0  ;;  %v14326_v1 = vld [vmem:[%s16241_s1 + $0x1f8] sm:$0xff]   ;;  %v14332_v8 = vld [vmem:[%s16029_s5 + $0x8] sm:$0xff]   ;;  %s214_s4 = scalar_lea.vmem %s16243_s3, %s10073_s21 }
 0x21d   : > { %v2842_v42 = vadd.f32 %v2841_v32, %v2827_v23  ;;  %v5144_v58 = vadd.f32 %v5143_v62, %v5129_v49  ;;  %12906 = vmatprep.subr.bf16.mxu0 %v14318_v52  ;;  %11495 = vst [vmem:[%s15763_s28 + $0x38] sm:$0xff] %v11367_v19   ;;  %11503 = vst [vmem:[%s15763_s28 + $0x78] sm:$0xff] %v11407_v11   ;;  %13194 = vmatprep.subr.bf16.mxu1 %v14319_v50  ;;  %v2793_v55 = vsel %vm16000_vm15, %v12383_v21, 0.0  ;;  %v14330_v49 = vld [vmem:[%s16016_s27 + $0x8] sm:$0xff]   ;;  %v14333_v32 = vld [vmem:[%s16241_s1 + $0x200] sm:$0xff]  }
 0x21e   : > { %v5181_v14 = vadd.f32 %v5180_v16, %v5166_v54  ;;  %12892 = vmatprep.mubr.bf16.mxu0 %v14320_v25  ;;  %v2806_v28 = vadd.f32 %v2805_v2, %v2791_v24  ;;  %v2829_v33 = vmul.f32 %v2791_v24, %v2791_v24  ;;  %13180 = vmatprep.mubr.bf16.mxu1 %v14321_v38  ;;  %v5132_v40 = vsel %vm16000_vm15, %v12671_v41, 0.0  ;;  %v14328_v25 = vld [vmem:[%s16016_s27] sm:$0xff]   ;;  %v14334_v11 = vld [vmem:[%s16241_s1 + $0x208] sm:$0xff]  }
 0x21f   : > { %v2843_v57 = vadd.f32 %v2842_v42, %v2828_v3  ;;  %11494 = vst [vmem:[%s15763_s28 + $0x30] sm:$0xff] %v11362_v4   ;;  %v11402_v21 = vpack.c.bf16 %v5009_v36, %v15972_v47  ;;  %v5130_v29 = vsel %vm15939_vm14, %v5009_v36, 0.0  ;;  %v5169_v54 = vmul.f32 %v5131_v6, %v5131_v6  ;;  %v14329_v41 = vld [vmem:[%s16029_s5] sm:$0xff]  }
 0x220   : > { %v5182_v26 = vadd.f32 %v5181_v14, %v5167_v60  ;;  %12907 = vmatpush3.bf16.msra.mxu0 %v14318_v52  ;;  %13195 = vmatpush3.bf16.msra.mxu1 %v14319_v50  ;;  %v2807_v23 = vadd.f32 %v2806_v28, %v2792_v63  ;;  %v5145_v61 = vadd.f32 %v5144_v58, %v5130_v29  ;;  %v14331_v50 = vld [vmem:[%s16241_s1 + $0x200] sm:$0xff]   ;;  %v14336_v58 = vld [vmem:[%s16016_s27 + $0x10] sm:$0xff]  }
 0x221   : > { %v2844_v53 = vadd.f32 %v2843_v57, %v2829_v33  ;;  %v5168_v48 = vmul.f32 %v5130_v29, %v5130_v29  ;;  %12908 = vmatprep.subr.bf16.mxu0 %v14323_v51  ;;  %v2831_v56 = vmul.f32 %v2793_v55, %v2793_v55  ;;  %11502 = vst [vmem:[%s15763_s28 + $0x70] sm:$0xff] %v11402_v21  }
 0x222   : > { %12893 = vmatmul.mubr.bf16.gmra.mrb[28].mxu0 %v14322_v13  ;;  %13196 = vmatprep.subr.bf16.mxu1 %v14325_v44  ;;  %v2808_v35 = vadd.f32 %v2807_v23, %v2793_v55  ;;  %v5146_v39 = vadd.f32 %v5145_v61, %v5131_v6  ;;  %v5170_v52 = vmul.f32 %v5132_v40, %v5132_v40  ;;  %v14335_v13 = vld [vmem:[%s16241_s1 + $0x208] sm:$0xff]   ;;  %v14343_v61 = vld [vmem:[%s16241_s1 + $0x218] sm:$0xff]  }
 0x223   : > { %v2845_v47 = vadd.f32 %v2844_v53, %v2830_v9  ;;  %v5183_v38 = vadd.f32 %v5182_v26, %v5168_v48  ;;  %13181 = vmatmul.mubr.bf16.gmra.mrb[28].mxu1 %v14324_v22  ;;  %12912 = vmatprep.mubr.bf16.mxu0 %v14328_v25  ;;  %v14337_v22 = vld [vmem:[%s16029_s5 + $0x10] sm:$0xff]   ;;  %v14342_v53 = vld [vmem:[%s16241_s1 + $0x218] sm:$0xff]  }
 0x224   : > { %12909 = vmatpush3.bf16.msra.mxu0 %v14323_v51  ;;  %13197 = vmatpush3.bf16.msra.mxu1 %v14325_v44  ;;  %v2809_v36 = vrot.slane %v2808_v35, 4  ;;  %v5147_v63 = vadd.f32 %v5146_v39, %v5132_v40  ;;  %v14339_v44 = vld [vmem:[%s16241_s1 + $0x210] sm:$0xff]   ;;  %v14347_v39 = vld [vmem:[%s16241_s1 + $0x220] sm:$0xff]  }
 0x225   : > { %v2846_v43 = vadd.f32 %v2845_v47, %v2831_v56  ;;  %v5184_v3 = vadd.f32 %v5183_v38, %v5169_v54  ;;  %12910 = vmatprep.subr.bf16.mxu0 %v14326_v1  ;;  %13198 = vmatprep.subr.bf16.mxu1 %v14327_v34  ;;  %v14341_v26 = vld [vmem:[%s16241_s1 + $0x210] sm:$0xff]   ;;  %v14344_v56 = vld [vmem:[%s16016_s27 + $0x20] sm:$0xff]  }
 0x226   : > { %13200 = vmatprep.mubr.bf16.mxu1 %v14329_v41  ;;  %v2810_v62 = vadd.f32 %v2809_v36, %v2808_v35  ;;  %v5148_v16 = vrot.slane %v5147_v63, 4  ;;  %v14345_v41 = vld [vmem:[%s16029_s5 + $0x20] sm:$0xff]   ;;  %v14348_v36 = vld [vmem:[%s16029_s5 + $0x28] sm:$0xff]  }
 0x227   : > { %v2847_v60 = vrot.slane %v2846_v43, 4  ;;  %v5185_v19 = vadd.f32 %v5184_v3, %v5170_v52  ;;  %v14346_v52 = vld [vmem:[%s16016_s27 + $0x28] sm:$0xff]   ;;  %v14352_v3 = vld [vmem:[%s16016_s27 + $0x30] sm:$0xff]  }
 0x228   : > { %12911 = vmatpush3.bf16.msra.mxu0 %v14326_v1  ;;  %13199 = vmatpush3.bf16.msra.mxu1 %v14327_v34  ;;  %v2811_v51 = vrot.slane %v2810_v62, 2  ;;  %v5149_v2 = vadd.f32 %v5148_v16, %v5147_v63  ;;  %v14338_v1 = vld [vmem:[%s16016_s27 + $0x18] sm:$0xff]   ;;  %v14351_v63 = vld [vmem:[%s16241_s1 + $0x228] sm:$0xff]  }
 0x229   : > { %v2848_v6 = vadd.f32 %v2847_v60, %v2846_v43  ;;  %v5186_v42 = vrot.slane %v5185_v19, 4  ;;  %12928 = vmatprep.subr.bf16.mxu0 %v14331_v50  ;;  %13216 = vmatprep.subr.bf16.mxu1 %v14333_v32  ;;  %v14340_v34 = vld [vmem:[%s16029_s5 + $0x18] sm:$0xff]   ;;  %v14350_v43 = vld [vmem:[%s16241_s1 + $0x228] sm:$0xff]  }
 0x22a   : > { %v2812_v9 = vadd.f32 %v2811_v51, %v2810_v62  ;;  %v5150_v4 = vrot.slane %v5149_v2, 2  ;;  %v14357_v62 = vld [vmem:[%s16241_s1 + $0x230] sm:$0xff]   ;;  %v14356_v60 = vld [vmem:[%s16029_s5 + $0x38] sm:$0xff]   ;;  %v14362_v51 = vld [vmem:[%s16110_s8 + $0x8] sm:$0xff]  }
 0x22b   : > { %v2849_v14 = vrot.slane %v2848_v6, 2  ;;  %v5187_v24 = vadd.f32 %v5186_v42, %v5185_v19  ;;  %12913 = vmatmul.mubr.bf16.vlgmr.msra.gmra.mrb[16].mxu0 %v14330_v49  ;;  %13201 = vmatmul.mubr.bf16.vlgmr.msra.gmra.mrb[16].mxu1 %v14332_v8  ;;  %v14353_v49 = vld [vmem:[%s16029_s5 + $0x30] sm:$0xff]   ;;  %v14354_v8 = vld [vmem:[%s16016_s27 + $0x38] sm:$0xff]  }
 0x22c   : > { %12929 = vmatpush3.bf16.msra.mxu0 %v14331_v50  ;;  %13217 = vmatpush3.bf16.msra.mxu1 %v14333_v32  ;;  %v2813_v57 = vrot.slane %v2812_v9, 1  ;;  %v5151_v28 = vadd.f32 %v5150_v4, %v5149_v2  ;;  %v14349_v50 = vld [vmem:[%s16241_s1 + $0x220] sm:$0xff]   ;;  %v14355_v32 = vld [vmem:[%s16241_s1 + $0x230] sm:$0xff]   ;;  %v14358_v16 = vld [vmem:[%s16241_s1 + $0x238] sm:$0xff]  }
 0x22d   : > { %v2850_v55 = vadd.f32 %v2849_v14, %v2848_v6  ;;  %v5188_v33 = vrot.slane %v5187_v24, 2  ;;  %12930 = vmatprep.subr.bf16.mxu0 %v14334_v11  ;;  %13218 = vmatprep.subr.bf16.mxu1 %v14335_v13  ;;  %v14359_v19 = vld [vmem:[%s16241_s1 + $0x238] sm:$0xff]   ;;  %v14363_v6 = vld [vmem:[%s16114_s20 + $0x8] sm:$0xff]   ;;  %v14364_v2 = vld [vmem:[%s16110_s8 + $0x10] sm:$0xff]  }
 0x22e   : > { %12916 = vmatprep.mubr.bf16.mxu0 %v14336_v58  ;;  %13204 = vmatprep.mubr.bf16.mxu1 %v14337_v22  ;;  %v2814_v40 = vadd.f32 %v2813_v57, %v2812_v9  ;;  %v5152_v29 = vrot.slane %v5151_v28, 1  ;;  %v14365_v42 = vld [vmem:[%s16114_s20 + $0x10] sm:$0xff]   ;;  %v14366_v58 = vld [vmem:[%s16110_s8 + $0x18] sm:$0xff]   ;;  %v14368_v9 = vld [vmem:[%s16110_s8 + $0x20] sm:$0xff]  }
 0x22f   : > { %v2851_v21 = vrot.slane %v2850_v55, 1  ;;  %v5189_v23 = vadd.f32 %v5188_v33, %v5187_v24  ;;  %v14367_v22 = vld [vmem:[%s16114_s20 + $0x18] sm:$0xff]   ;;  %v14369_v14 = vld [vmem:[%s16114_s20 + $0x20] sm:$0xff]   ;;  %v14370_v4 = vld [vmem:[%s16110_s8 + $0x28] sm:$0xff]  }
 0x230   : > { %12931 = vmatpush3.bf16.msra.mxu0 %v14334_v11  ;;  %13219 = vmatpush3.bf16.msra.mxu1 %v14335_v13  ;;  %v5153_v25 = vadd.f32 %v5152_v29, %v5151_v28  ;;  %v14360_v11 = vld [vmem:[%s16110_s8] sm:$0xff]   ;;  %v14371_v24 = vld [vmem:[%s16114_s20 + $0x28] sm:$0xff]   ;;  %v14373_v57 = vld [vmem:[%s16114_s20 + $0x30] sm:$0xff]  }
 0x231   : > { %v2852_v48 = vadd.f32 %v2851_v21, %v2850_v55  ;;  %v5190_v54 = vrot.slane %v5189_v23, 1  ;;  %12932 = vmatprep.subr.bf16.mxu0 %v14339_v44  ;;  %13220 = vmatprep.subr.bf16.mxu1 %v14341_v26  ;;  %v14361_v13 = vld [vmem:[%s16114_s20] sm:$0xff]   ;;  %v14374_v55 = vld [vmem:[%s16110_s8 + $0x38] sm:$0xff]  }
 0x232   : > { %v16080_v35 = vadd.f32 %v5153_v25, %v2814_v40  ;;  %v14375_v28 = vld [vmem:[%s16114_s20 + $0x38] sm:$0xff]  }
 0x233   : > { %v5191_v47 = vadd.f32 %v5190_v54, %v5189_v23  ;;  %12917 = vmatmul.mubr.bf16.gmra.mrb[20].mxu0 %v14338_v1  ;;  %13205 = vmatmul.mubr.bf16.gmra.mrb[20].mxu1 %v14340_v34 }
 0x234   : > { %12933 = vmatpush3.bf16.msra.mxu0 %v14339_v44  ;;  %13221 = vmatpush3.bf16.msra.mxu1 %v14341_v26  ;;  %v14372_v44 = vld [vmem:[%s16110_s8 + $0x30] sm:$0xff]  }
 0x235   : > { %v16086_v38 = vadd.f32 %v5191_v47, %v2852_v48  ;;  %12934 = vmatprep.subr.bf16.mxu0 %v14342_v53  ;;  %13222 = vmatprep.subr.bf16.mxu1 %v14343_v61 }
 0x236   : > { %12920 = vmatprep.mubr.bf16.mxu0 %v14344_v56  ;;  %13208 = vmatprep.mubr.bf16.mxu1 %v14345_v41 }
 0x238   : > { %12935 = vmatpush3.bf16.msra.mxu0 %v14342_v53  ;;  %13223 = vmatpush3.bf16.msra.mxu1 %v14343_v61 }
 0x239   : > { %12936 = vmatprep.subr.bf16.mxu0 %v14347_v39  ;;  %13224 = vmatprep.subr.bf16.mxu1 %v14349_v50 }
 0x23b   : > { %12921 = vmatmul.mubr.bf16.gmra.mrb[24].mxu0 %v14346_v52  ;;  %13209 = vmatmul.mubr.bf16.gmra.mrb[24].mxu1 %v14348_v36 }
 0x23c   : > { %12937 = vmatpush3.bf16.msra.mxu0 %v14347_v39  ;;  %13225 = vmatpush3.bf16.msra.mxu1 %v14349_v50 }
 0x23d   : > { %12938 = vmatprep.subr.bf16.mxu0 %v14350_v43  ;;  %13226 = vmatprep.subr.bf16.mxu1 %v14351_v63 }
 0x23e   : > { %12924 = vmatprep.mubr.bf16.mxu0 %v14352_v3  ;;  %13212 = vmatprep.mubr.bf16.mxu1 %v14353_v49 }
 0x240   : > { %12939 = vmatpush3.bf16.msra.mxu0 %v14350_v43  ;;  %13227 = vmatpush3.bf16.msra.mxu1 %v14351_v63 }
 0x241   : > { %12940 = vmatprep.subr.bf16.mxu0 %v14355_v32  ;;  %13228 = vmatprep.subr.bf16.mxu1 %v14357_v62 }
 0x243   : > { %12925 = vmatmul.mubr.bf16.gmra.mrb[28].mxu0 %v14354_v8  ;;  %13213 = vmatmul.mubr.bf16.gmra.mrb[28].mxu1 %v14356_v60 }
 0x244   : > { %12941 = vmatpush3.bf16.msra.mxu0 %v14355_v32  ;;  %13229 = vmatpush3.bf16.msra.mxu1 %v14357_v62 }
 0x245   : > { %12942 = vmatprep.subr.bf16.mxu0 %v14358_v16  ;;  %13230 = vmatprep.subr.bf16.mxu1 %v14359_v19 }
 0x246   : > { %12944 = vmatprep.mubr.bf16.mxu0 %v14360_v11  ;;  %13232 = vmatprep.mubr.bf16.mxu1 %v14361_v13 }
 0x248   : > { %12943 = vmatpush3.bf16.msra.mxu0 %v14358_v16  ;;  %13231 = vmatpush3.bf16.msra.mxu1 %v14359_v19 }
 0x24b   : > { %12945 = vmatmul.mubr.bf16.vlgmr.msra.gmra.mrb[16].mxu0 %v14362_v51  ;;  %13233 = vmatmul.mubr.bf16.vlgmr.msra.gmra.mrb[16].mxu1 %v14363_v6 }
 0x24c   : > { %12948 = vmatprep.mubr.bf16.mxu0 %v14364_v2  ;;  %13236 = vmatprep.mubr.bf16.mxu1 %v14365_v42 }
 0x253   : > { %12949 = vmatmul.mubr.bf16.gmra.mrb[20].mxu0 %v14366_v58  ;;  %13237 = vmatmul.mubr.bf16.gmra.mrb[20].mxu1 %v14367_v22 }
 0x254   : > { %12952 = vmatprep.mubr.bf16.mxu0 %v14368_v9  ;;  %13240 = vmatprep.mubr.bf16.mxu1 %v14369_v14 }
 0x25b   : > { %12953 = vmatmul.mubr.bf16.gmra.mrb[24].mxu0 %v14370_v4  ;;  %13241 = vmatmul.mubr.bf16.gmra.mrb[24].mxu1 %v14371_v24 }
 0x25c   : > { %12956 = vmatprep.mubr.bf16.mxu0 %v14372_v44  ;;  %13244 = vmatprep.mubr.bf16.mxu1 %v14373_v57 }
 0x263   : > { %12957 = vmatmul.mubr.bf16.gmra.mrb[28].mxu0 %v14374_v55  ;;  %13245 = vmatmul.mubr.bf16.gmra.mrb[28].mxu1 %v14375_v28 }
 0x31e   : > { %v12946_v33 = vpop.f32.mrb[16].mxu0  ;;  %v13234_v1 = vpop.f32.mrb[16].mxu1 }
 0x31f   : > { %v7297_v34 = vpop.f32.mrb[17].mxu0  ;;  %v9636_v26 = vpop.f32.mrb[17].mxu1  ;;  %v7458_v53 = vsel %vm15689_vm1, %v12946_v33, 0.0  ;;  %v9797_v54 = vsel %vm15689_vm1, %v13234_v1, 0.0  ;;  %vm9873_vm1 = vcmask 1041408  }
 0x320   : > { %v7456_v40 = vsel %vm15677_vm0, %v7297_v34, 0.0  ;;  %v9795_v21 = vsel %vm15677_vm0, %v9636_v26, 0.0  ;;  %v12947_v29 = vpop.f32.mrb[18].mxu0  ;;  %v13235_v23 = vpop.f32.mrb[18].mxu1  ;;  %v7496_v3 = vmul.f32 %v7458_v53, %v7458_v53  ;;  %v9835_v49 = vmul.f32 %v9797_v54, %v9797_v54 }
 0x321   : > { %v11417_v61 = vpack.c.bf16 %v12947_v29, %v12946_v33  ;;  %v7300_v48 = vpop.f32.mrb[19].mxu0  ;;  %v9639_v25 = vpop.f32.mrb[19].mxu1  ;;  %v7494_v56 = vmul.f32 %v7456_v40, %v7456_v40  ;;  %v11457_v41 = vpack.c.bf16 %v13235_v23, %v13234_v1  ;;  %v9833_v39 = vmul.f32 %v9795_v21, %v9795_v21 }
 0x322   : > { %v11412_v47 = vpack.c.bf16 %v7300_v48, %v7297_v34  ;;  %v7457_v0 = vsel %vm15707_vm3, %v7300_v48, 0.0  ;;  %v11452_v52 = vpack.c.bf16 %v9639_v25, %v9636_v26  ;;  %v9796_v50 = vsel %vm15707_vm3, %v9639_v25, 0.0 }
 0x323   : > { %11505 = vst [vmem:[%s15763_s28 + $0x88] sm:$0xff] %v11417_v61   ;;  %11513 = vst [vmem:[%s15763_s28 + $0xc8] sm:$0xff] %v11457_v41   ;;  %v7472_v36 = vadd.f32 %v7457_v0, %v7456_v40  ;;  %v7495_v43 = vmul.f32 %v7457_v0, %v7457_v0  ;;  %v9811_v63 = vadd.f32 %v9796_v50, %v9795_v21  ;;  %v7459_v32 = vsel %vm15701_vm2, %v12947_v29, 0.0 }
 0x324   : > { %11504 = vst [vmem:[%s15763_s28 + $0x80] sm:$0xff] %v11412_v47   ;;  %v9834_v5 = vmul.f32 %v9796_v50, %v9796_v50  ;;  %v9798_v8 = vsel %vm15701_vm2, %v13235_v23, 0.0  ;;  %11512 = vst [vmem:[%s15763_s28 + $0xc0] sm:$0xff] %v11452_v52   ;;  %v7497_v6 = vmul.f32 %v7459_v32, %v7459_v32  ;;  %vm9871_vm0 = vcmask 1040384  }
 0x325   : > { %v7473_v62 = vadd.f32 %v7472_v36, %v7458_v53  ;;  %v7510_v60 = vadd.f32 %v7495_v43, %v7494_v56  ;;  %v9812_v16 = vadd.f32 %v9811_v63, %v9797_v54  ;;  %v9836_v2 = vmul.f32 %v9798_v8, %v9798_v8 }
 0x326   : > { %v9849_v7 = vadd.f32 %v9834_v5, %v9833_v39  ;;  %v12950_v19 = vpop.f32.mrb[20].mxu0  ;;  %v13238_v11 = vpop.f32.mrb[20].mxu1 }
 0x327   : > { %v7313_v13 = vpop.f32.mrb[21].mxu0  ;;  %v9652_v51 = vpop.f32.mrb[21].mxu1  ;;  %v7511_v42 = vadd.f32 %v7510_v60, %v7496_v3  ;;  %v7474_v10 = vadd.f32 %v7473_v62, %v7459_v32  ;;  %v9813_v24 = vadd.f32 %v9812_v16, %v9798_v8  ;;  %v7462_v34 = vsel %vm15767_vm5, %v12950_v19, 0.0 }
 0x328   : > { %v9850_v58 = vadd.f32 %v9849_v7, %v9835_v49  ;;  %v12951_v22 = vpop.f32.mrb[22].mxu0  ;;  %v13239_v9 = vpop.f32.mrb[22].mxu1  ;;  %v7460_v14 = vsel %vm15741_vm4, %v7313_v13, 0.0  ;;  %v9799_v4 = vsel %vm15741_vm4, %v9652_v51, 0.0  ;;  %v9801_v29 = vsel %vm15767_vm5, %v13238_v11, 0.0 }
 0x329   : > { %v7316_v44 = vpop.f32.mrb[23].mxu0  ;;  %v9655_v57 = vpop.f32.mrb[23].mxu1  ;;  %v7498_v55 = vmul.f32 %v7460_v14, %v7460_v14  ;;  %v7512_v28 = vadd.f32 %v7511_v42, %v7497_v6  ;;  %v9837_v33 = vmul.f32 %v9799_v4, %v9799_v4  ;;  %v7475_v26 = vadd.f32 %v7474_v10, %v7460_v14 }
 0x32a   : > { %v9851_v1 = vadd.f32 %v9850_v58, %v9836_v2  ;;  %v9814_v40 = vadd.f32 %v9813_v24, %v9799_v4  ;;  %v11427_v21 = vpack.c.bf16 %v12951_v22, %v12950_v19  ;;  %v11467_v53 = vpack.c.bf16 %v13239_v9, %v13238_v11 }
 0x32b   : > { %v7513_v17 = vadd.f32 %v7512_v28, %v7498_v55  ;;  %v7463_v61 = vsel %vm15786_vm6, %v12951_v22, 0.0  ;;  %v11422_v48 = vpack.c.bf16 %v7316_v44, %v7313_v13  ;;  %v7461_v25 = vsel %vm15792_vm7, %v7316_v44, 0.0 }
 0x32c   : > { %v9852_v23 = vadd.f32 %v9851_v1, %v9837_v33  ;;  %11507 = vst [vmem:[%s15763_s28 + $0x98] sm:$0xff] %v11427_v21   ;;  %v11462_v54 = vpack.c.bf16 %v9655_v57, %v9652_v51  ;;  %11515 = vst [vmem:[%s15763_s28 + $0xd8] sm:$0xff] %v11467_v53   ;;  %v7476_v56 = vadd.f32 %v7475_v26, %v7461_v25  ;;  %v9800_v30 = vsel %vm15792_vm7, %v9655_v57, 0.0 }
 0x32d   : > { %v7499_v41 = vmul.f32 %v7461_v25, %v7461_v25  ;;  %v7500_v0 = vmul.f32 %v7462_v34, %v7462_v34  ;;  %v9802_v52 = vsel %vm15786_vm6, %v13239_v9, 0.0  ;;  %11506 = vst [vmem:[%s15763_s28 + $0x90] sm:$0xff] %v11422_v48   ;;  %v9815_v50 = vadd.f32 %v9814_v40, %v9800_v30 }
 0x32e   : > { %v12954_v47 = vpop.f32.mrb[24].mxu0  ;;  %v13242_v39 = vpop.f32.mrb[24].mxu1  ;;  %11514 = vst [vmem:[%s15763_s28 + $0xd0] sm:$0xff] %v11462_v54   ;;  %v9838_v36 = vmul.f32 %v9800_v30, %v9800_v30  ;;  %v9839_v5 = vmul.f32 %v9801_v29, %v9801_v29  ;;  %v7501_v3 = vmul.f32 %v7463_v61, %v7463_v61  ;;  %v7477_v49 = vadd.f32 %v7476_v56, %v7462_v34 }
 0x32f   : > { %v7329_v43 = vpop.f32.mrb[25].mxu0  ;;  %v9668_v63 = vpop.f32.mrb[25].mxu1  ;;  %v7514_v32 = vadd.f32 %v7513_v17, %v7499_v41  ;;  %v9816_v46 = vadd.f32 %v9815_v50, %v9801_v29  ;;  %v9840_v11 = vmul.f32 %v9802_v52, %v9802_v52  ;;  %v7466_v9 = vsel %vm15830_vm9, %v12954_v47, 0.0 }
 0x330   : > { %v12955_v8 = vpop.f32.mrb[26].mxu0  ;;  %v13243_v62 = vpop.f32.mrb[26].mxu1  ;;  %v9853_v60 = vadd.f32 %v9852_v23, %v9838_v36  ;;  %v7464_v16 = vsel %vm15822_vm8, %v7329_v43, 0.0  ;;  %v9803_v45 = vsel %vm15822_vm8, %v9668_v63, 0.0  ;;  %v7478_v51 = vadd.f32 %v7477_v49, %v7463_v61 }
 0x331   : > { %v7332_v7 = vpop.f32.mrb[27].mxu0  ;;  %v9671_v19 = vpop.f32.mrb[27].mxu1  ;;  %v7515_v13 = vadd.f32 %v7514_v32, %v7500_v0  ;;  %v7502_v6 = vmul.f32 %v7464_v16, %v7464_v16  ;;  %v9817_v42 = vadd.f32 %v9816_v46, %v9802_v52  ;;  %v9841_v58 = vmul.f32 %v9803_v45, %v9803_v45 }
 0x332   : > { %v9854_v2 = vadd.f32 %v9853_v60, %v9839_v5  ;;  %v11437_v22 = vpack.c.bf16 %v12955_v8, %v12954_v47  ;;  %v7479_v14 = vadd.f32 %v7478_v51, %v7464_v16  ;;  %v11477_v15 = vpack.c.bf16 %v13243_v62, %v13242_v39 }
 0x333   : > { %v7516_v10 = vadd.f32 %v7515_v13, %v7501_v3  ;;  %v9805_v4 = vsel %vm15830_vm9, %v13242_v39, 0.0  ;;  %v9818_v24 = vadd.f32 %v9817_v42, %v9803_v45  ;;  %v11432_v57 = vpack.c.bf16 %v7332_v7, %v7329_v43 }
 0x334   : > { %v9855_v44 = vadd.f32 %v9854_v2, %v9840_v11  ;;  %11509 = vst [vmem:[%s15763_s28 + $0xa8] sm:$0xff] %v11437_v22   ;;  %v7467_v28 = vsel %vm15855_vm10, %v12955_v8, 0.0  ;;  %11517 = vst [vmem:[%s15763_s28 + $0xe8] sm:$0xff] %v11477_v15   ;;  %v7465_v33 = vsel %vm15867_vm11, %v7332_v7, 0.0  ;;  %v11472_v1 = vpack.c.bf16 %v9671_v19, %v9668_v63 }
 0x335   : > { %v7517_v55 = vadd.f32 %v7516_v10, %v7502_v6  ;;  %11508 = vst [vmem:[%s15763_s28 + $0xa0] sm:$0xff] %v11432_v57   ;;  %v7480_v27 = vadd.f32 %v7479_v14, %v7465_v33  ;;  %v7503_v21 = vmul.f32 %v7465_v33, %v7465_v33  ;;  %v9804_v29 = vsel %vm15867_vm11, %v9671_v19, 0.0 }
 0x336   : > { %v12958_v34 = vpop.f32.mrb[28].mxu0  ;;  %v13246_v26 = vpop.f32.mrb[28].mxu1  ;;  %v9856_v40 = vadd.f32 %v9855_v44, %v9841_v58  ;;  %v7504_v53 = vmul.f32 %v7466_v9, %v7466_v9  ;;  %v9806_v61 = vsel %vm15855_vm10, %v13243_v62, 0.0  ;;  %11516 = vst [vmem:[%s15763_s28 + $0xe0] sm:$0xff] %v11472_v1   ;;  %v9819_v48 = vadd.f32 %v9818_v24, %v9804_v29 }
 0x337   : > { %v7345_v17 = vpop.f32.mrb[29].mxu0  ;;  %v9684_v23 = vpop.f32.mrb[29].mxu1  ;;  %v9842_v25 = vmul.f32 %v9804_v29, %v9804_v29  ;;  %v9843_v41 = vmul.f32 %v9805_v4, %v9805_v4  ;;  %v7505_v30 = vmul.f32 %v7467_v28, %v7467_v28  ;;  %v7481_v47 = vadd.f32 %v7480_v27, %v7466_v9 }
 0x338   : > { %v12959_v54 = vpop.f32.mrb[30].mxu0  ;;  %v13247_v56 = vpop.f32.mrb[30].mxu1  ;;  %v7518_v39 = vadd.f32 %v7517_v55, %v7503_v21  ;;  %v9820_v50 = vadd.f32 %v9819_v48, %v9805_v4  ;;  %v7468_v36 = vsel %vm15888_vm12, %v7345_v17, 0.0  ;;  %v9807_v31 = vsel %vm15888_vm12, %v9684_v23, 0.0 }
 0x339   : > { %v7348_v0 = vpop.f32.mrb[31].mxu0  ;;  %v9687_v52 = vpop.f32.mrb[31].mxu1  ;;  %v9857_v59 = vadd.f32 %v9856_v40, %v9842_v25  ;;  %v9844_v43 = vmul.f32 %v9806_v61, %v9806_v61  ;;  %v7482_v5 = vadd.f32 %v7481_v47, %v7467_v28  ;;  %v7506_v3 = vmul.f32 %v7468_v36, %v7468_v36 }
 0x33a   : > { %v7519_v63 = vadd.f32 %v7518_v39, %v7504_v53  ;;  %v9821_v32 = vadd.f32 %v9820_v50, %v9806_v61  ;;  %v9845_v8 = vmul.f32 %v9807_v31, %v9807_v31  ;;  %v11447_v62 = vpack.c.bf16 %v12959_v54, %v12958_v34 }
 0x33b   : > { %v9858_v49 = vadd.f32 %v9857_v59, %v9843_v41  ;;  %v7483_v46 = vadd.f32 %v7482_v5, %v7468_v36  ;;  %v11487_v16 = vpack.c.bf16 %v13247_v56, %v13246_v26  ;;  %v7470_v45 = vsel %vm15908_vm13, %v12958_v34, 0.0 }
 0x33c   : > { %v7520_v60 = vadd.f32 %v7519_v63, %v7505_v30  ;;  %v9822_v20 = vadd.f32 %v9821_v32, %v9807_v31  ;;  %11511 = vst [vmem:[%s15763_s28 + $0xb8] sm:$0xff] %v11447_v62   ;;  %v11442_v19 = vpack.c.bf16 %v7348_v0, %v7345_v17  ;;  %v9809_v11 = vsel %vm15908_vm13, %v13246_v26, 0.0 }
 0x33d   : > { %v9859_v7 = vadd.f32 %v9858_v49, %v9844_v43  ;;  %11519 = vst [vmem:[%s15763_s28 + $0xf8] sm:$0xff] %v11487_v16   ;;  %v7469_v51 = vsel %vm15939_vm14, %v7348_v0, 0.0  ;;  %v11482_v6 = vpack.c.bf16 %v9687_v52, %v9684_v23  ;;  %v9808_v22 = vsel %vm15939_vm14, %v9687_v52, 0.0 }
 0x33e   : > { %v7521_v13 = vadd.f32 %v7520_v60, %v7506_v3  ;;  %11510 = vst [vmem:[%s15763_s28 + $0xb0] sm:$0xff] %v11442_v19   ;;  %v7484_v42 = vadd.f32 %v7483_v46, %v7469_v51  ;;  %v7507_v58 = vmul.f32 %v7469_v51, %v7469_v51  ;;  %v7471_v9 = vsel %vm16000_vm15, %v12959_v54, 0.0 }
 0x33f   : > { %v9860_v2 = vadd.f32 %v9859_v7, %v9845_v8  ;;  %11518 = vst [vmem:[%s15763_s28 + $0xf0] sm:$0xff] %v11482_v6   ;;  %v9823_v14 = vadd.f32 %v9822_v20, %v9808_v22  ;;  %v9846_v37 = vmul.f32 %v9808_v22, %v9808_v22  ;;  %v7508_v10 = vmul.f32 %v7470_v45, %v7470_v45 }
 0x340   : > { %v9810_v15 = vsel %vm16000_vm15, %v13247_v56, 0.0  ;;  %v7485_v4 = vadd.f32 %v7484_v42, %v7470_v45  ;;  %v7522_v24 = vadd.f32 %v7521_v13, %v7507_v58  ;;  %v9847_v44 = vmul.f32 %v9809_v11, %v9809_v11 }
 0x341   : > { %v9824_v57 = vadd.f32 %v9823_v14, %v9809_v11  ;;  %v9861_v55 = vadd.f32 %v9860_v2, %v9846_v37  ;;  %v7509_v28 = vmul.f32 %v7471_v9, %v7471_v9  ;;  %v9848_v12 = vmul.f32 %v9810_v15, %v9810_v15 }
 0x342   : > { %v7486_v33 = vadd.f32 %v7485_v4, %v7471_v9  ;;  %v7523_v1 = vadd.f32 %v7522_v24, %v7508_v10 }
 0x343   : > { %v9825_v34 = vadd.f32 %v9824_v57, %v9810_v15  ;;  %v9862_v26 = vadd.f32 %v9861_v55, %v9847_v44 }
 0x344   : > { %v7487_v40 = vrot.slane %v7486_v33, 4  ;;  %v7524_v27 = vadd.f32 %v7523_v1, %v7509_v28 }
 0x345   : > { %v9826_v21 = vrot.slane %v9825_v34, 4  ;;  %v9863_v29 = vadd.f32 %v9862_v26, %v9848_v12 }
 0x346   : > { %v7488_v17 = vadd.f32 %v7487_v40, %v7486_v33  ;;  %v7525_v23 = vrot.slane %v7524_v27, 4 }
 0x347   : > { %v9827_v18 = vadd.f32 %v9826_v21, %v9825_v34  ;;  %v9864_v53 = vrot.slane %v9863_v29, 4 }
 0x348   : > { %v7489_v61 = vrot.slane %v7488_v17, 2  ;;  %v7526_v48 = vadd.f32 %v7525_v23, %v7524_v27 }
 0x349   : > { %v9828_v25 = vrot.slane %v9827_v18, 2  ;;  %v9865_v54 = vadd.f32 %v9864_v53, %v9863_v29 }
 0x34a   : > { %v7490_v56 = vadd.f32 %v7489_v61, %v7488_v17  ;;  %v7527_v41 = vrot.slane %v7526_v48, 2 }
 0x34b   : > { %v9829_v30 = vadd.f32 %v9828_v25, %v9827_v18  ;;  %v9866_v47 = vrot.slane %v9865_v54, 2 }
 0x34c   : > { %v7491_v39 = vrot.slane %v7490_v56, 1  ;;  %v7528_v0 = vadd.f32 %v7527_v41, %v7526_v48 }
 0x34d   : > { %v9830_v52 = vrot.slane %v9829_v30, 1  ;;  %v9867_v50 = vadd.f32 %v9866_v47, %v9865_v54 }
 0x34e   : > { %v7492_v59 = vadd.f32 %v7491_v39, %v7490_v56  ;;  %v7529_v36 = vrot.slane %v7528_v0, 1 }
 0x34f   : > { %v9868_v31 = vrot.slane %v9867_v50, 1  ;;  %v9831_v5 = vadd.f32 %v9830_v52, %v9829_v30 }
 0x350   : > { %v7493_v43 = vadd.f32 %v7492_v59, %v16080_v35  ;;  %v7530_v63 = vadd.f32 %v7529_v36, %v7528_v0 }
 0x351   : > { %v9869_v32 = vadd.f32 %v9868_v31, %v9867_v50 }
 0x352   : > { %v7531_v3 = vadd.f32 %v7530_v63, %v16086_v38  ;;  %v9832_v49 = vadd.f32 %v9831_v5, %v7493_v43 }
 0x354   : > { %v9870_v8 = vadd.f32 %v9869_v32, %v7531_v3 }
 0x356   : > { %v9872_v62 = vsel %vm9871_vm0, %v9832_v49, %v9870_v8 }
 0x357   : > { %v9874_v46 = vsel %vm9873_vm1, %v9872_v62, 0.0 }
 0x358   : > { %9875 = vst [vmem:[%s214_s4] sm:$0xff] %v9874_v46 }
 0x359 PF: > { %s14_s16 = sadd.s32 1, %s14414_s16   ;;  %s16277_s12 = smov %s14406_s14 }
 0x35a   : > { %p11_p8 = scmp.ge.s32.totalorder %s14_s16, 6   ;;  %s16278_s13 = smov %s14410_s15 }
 0x35b   : > { %s16279_s14 = smov %s16282_s17  ;;  %s16280_s15 = smov %s16286_s18 }
 0x35c   :  { %13 = sbr.rel (!%p11_p8) target bundleno = 3 (0x3), region = 114 }

// kernel: basic_block_forward.7
= control target key start
LH: loop header
LB: loop body
LE: loop exit
PB: predicated region body
PF: predicated region fallthrough
CT: control target
= control target key end

     0   :  { %s1830_s15 = smov 0   ;;  %s2095_s0 = inlined_call_operand.vmem [shape: bf16[1024,128], index: 0, kind: input, shape index: {}]   ;;  %s2096_s1 = inlined_call_operand.vmem [shape: f32[1,128], index: 1, kind: input, shape index: {}]   ;;  %s2097_s2 = inlined_call_operand.vmem [shape: f32[1,128], index: 2, kind: input, shape index: {}]   ;;  %s2098_s3 = inlined_call_operand.vmem [shape: bf16[1024,128], index: 3, kind: input, shape index: {}]   ;;  %s2099_s4 = inlined_call_operand.vmem [shape: bf16[1024,128], index: 4, kind: output, shape index: {}]  }
   0x1 LB: > { %s1137_s16 = sadd.s32 4294967295, %s1803_s15   ;;  %p1141_p0 = scmp.ge.s32.totalorder %s1803_s15, 1  ;;  %s1803_s15 = sphi %s1830_s15, %s14_s15  }
   0x2   : > { %p174_p1 = scmp.lt.s32.totalorder %s1803_s15, 3 }
   0x4   : > { %p175_p2 = pnand %p1141_p0, %p174_p1 }
   0x5   : > { %s1142_s17 = sshll.u32 (!%p175_p2), %s1137_s16, 6  ;;  %v1855_v0 = vld [vmem:[%s2096_s1] ss:$0 sm:$0xff] (!%p175_p2) }
   0x6   : > { %178 = sbr.rel (%p175_p2) target bundleno = 128 (0x80), region = 36  ;;  %p206_p3 = scmp.lt.s32.totalorder (!%p175_p2), %s1142_s17, 127  ;;  %v1866_v11 = vld [vmem:[%s2097_s2] ss:$0 sm:$0xff] (!%p175_p2) }
   0xd   : > { %s2101_s17 = smov (!%p206_p3, %s1142_s17), 127 }
   0xe   : > { %s1838_s18 = sshll.u32 %s2101_s17, 2 }
   0xf   : > { %s1844_s21 = scalar_lea.vmem %s2095_s0, %s1838_s18  ;;  %s1850_s24 = scalar_lea.vmem %s2098_s3, %s1838_s18 }
  0x10   : > { %v1281_v1 = vld [vmem:[%s1844_s21] sm:$0xff]   ;;  %v1696_v3 = vld [vmem:[%s1844_s21 + $0x8] sm:$0xff]   ;;  %v1697_v9 = vld [vmem:[%s1844_s21 + $0x10] sm:$0xff]   ;;  %s1889_s5 = scalar_lea.vmem %s2099_s4, %s1838_s18 }
  0x11   : > { %v1409_v2 = vld [vmem:[%s1850_s24] sm:$0xff]   ;;  %v1282_v4 = vunpack.c.l.bf16 %v1281_v1  ;;  %v1283_v5 = vunpack.c.h.bf16 %v1281_v1  ;;  %v1727_v8 = vld [vmem:[%s1850_s24 + $0x8] sm:$0xff]   ;;  %v1728_v10 = vld [vmem:[%s1850_s24 + $0x10] sm:$0xff]   ;;  %v1286_v12 = vunpack.c.l.bf16 %v1696_v3  ;;  %v1287_v13 = vunpack.c.h.bf16 %v1696_v3 }
  0x12   : > { %v1410_v6 = vunpack.c.l.bf16 %v1409_v2  ;;  %v1411_v7 = vunpack.c.h.bf16 %v1409_v2  ;;  %v1414_v14 = vunpack.c.l.bf16 %v1727_v8  ;;  %v1415_v15 = vunpack.c.h.bf16 %v1727_v8  ;;  %v1698_v20 = vld [vmem:[%s1844_s21 + $0x18] sm:$0xff]   ;;  %v1699_v46 = vld [vmem:[%s1844_s21 + $0x20] sm:$0xff]   ;;  %v1700_v56 = vld [vmem:[%s1844_s21 + $0x28] sm:$0xff]  }
  0x13   : > { %v358_v16 = vmul.f32 %v1282_v4, %v1855_v0  ;;  %v359_v17 = vmul.f32 %v1283_v5, %v1855_v0  ;;  %v1290_v18 = vunpack.c.l.bf16 %v1697_v9  ;;  %v1291_v19 = vunpack.c.h.bf16 %v1697_v9  ;;  %v1729_v41 = vld [vmem:[%s1850_s24 + $0x18] sm:$0xff]   ;;  %v1730_v51 = vld [vmem:[%s1850_s24 + $0x20] sm:$0xff]   ;;  %v1731_v61 = vld [vmem:[%s1850_s24 + $0x28] sm:$0xff]  }
  0x14   : > { %v360_v21 = vmul.f32 %v1286_v12, %v1855_v0  ;;  %v361_v22 = vmul.f32 %v1287_v13, %v1855_v0  ;;  %v1418_v23 = vunpack.c.l.bf16 %v1728_v10  ;;  %v1419_v24 = vunpack.c.h.bf16 %v1728_v10  ;;  %v1732_v8 = vld [vmem:[%s1850_s24 + $0x30] sm:$0xff]  }
  0x15   : > { %v429_v25 = vadd.f32 %v1866_v11, %v358_v16  ;;  %v430_v26 = vadd.f32 %v1866_v11, %v359_v17  ;;  %v362_v27 = vmul.f32 %v1290_v18, %v1855_v0  ;;  %v363_v28 = vmul.f32 %v1291_v19, %v1855_v0 }
  0x16   : > { %v431_v29 = vadd.f32 %v1866_v11, %v360_v21  ;;  %v432_v30 = vadd.f32 %v1866_v11, %v361_v22  ;;  %v1294_v31 = vunpack.c.l.bf16 %v1698_v20  ;;  %v1295_v32 = vunpack.c.h.bf16 %v1698_v20  ;;  %v1702_v22 = vld [vmem:[%s1844_s21 + $0x38] sm:$0xff]  }
  0x17   : > { %v621_v33 = vadd.f32 %v1410_v6, %v429_v25  ;;  %v622_v34 = vadd.f32 %v1411_v7, %v430_v26  ;;  %v433_v35 = vadd.f32 %v1866_v11, %v362_v27  ;;  %v434_v36 = vadd.f32 %v1866_v11, %v363_v28  ;;  %v1701_v7 = vld [vmem:[%s1844_s21 + $0x30] sm:$0xff]  }
  0x18   : > { %v623_v37 = vadd.f32 %v1414_v14, %v431_v29  ;;  %v624_v38 = vadd.f32 %v1415_v15, %v432_v30  ;;  %v364_v39 = vmul.f32 %v1294_v31, %v1855_v0  ;;  %v365_v40 = vmul.f32 %v1295_v32, %v1855_v0  ;;  %v1733_v31 = vld [vmem:[%s1850_s24 + $0x38] sm:$0xff]  }
  0x19   : > { %v685_v42 = vmax.f32 %v621_v33, 0.0  ;;  %v686_v43 = vmax.f32 %v622_v34, 0.0  ;;  %v625_v44 = vadd.f32 %v1418_v23, %v433_v35  ;;  %v626_v45 = vadd.f32 %v1419_v24, %v434_v36 }
  0x1a   : > { %v687_v47 = vmax.f32 %v623_v37, 0.0  ;;  %v688_v48 = vmax.f32 %v624_v38, 0.0  ;;  %v435_v49 = vadd.f32 %v1866_v11, %v364_v39  ;;  %v436_v50 = vadd.f32 %v1866_v11, %v365_v40  ;;  %v1703_v40 = vld [vmem:[%s1844_s21 + $0x40] sm:$0xff]  }
  0x1b   : > { %v1539_v52 = vpack.c.bf16 %v686_v43, %v685_v42  ;;  %v689_v53 = vmax.f32 %v625_v44, 0.0  ;;  %v690_v54 = vmax.f32 %v626_v45, 0.0  ;;  %v1422_v55 = vunpack.c.l.bf16 %v1729_v41 }
  0x1c   : > { %v1544_v57 = vpack.c.bf16 %v688_v48, %v687_v47  ;;  %v1423_v58 = vunpack.c.h.bf16 %v1729_v41  ;;  %v1298_v59 = vunpack.c.l.bf16 %v1699_v46  ;;  %v1299_v60 = vunpack.c.h.bf16 %v1699_v46 }
  0x1d   : > { %1540 = vst [vmem:[%s1889_s5] sm:$0xff] %v1539_v52   ;;  %v1549_v62 = vpack.c.bf16 %v690_v54, %v689_v53  ;;  %v627_v63 = vadd.f32 %v1422_v55, %v435_v49  ;;  %v1426_v1 = vunpack.c.l.bf16 %v1730_v51  ;;  %v1427_v2 = vunpack.c.h.bf16 %v1730_v51  ;;  %v1734_v49 = vld [vmem:[%s1850_s24 + $0x40] sm:$0xff]   ;;  %v1704_v54 = vld [vmem:[%s1844_s21 + $0x48] sm:$0xff]  }
  0x1e   : > { %1758 = vst [vmem:[%s1889_s5 + $0x8] sm:$0xff] %v1544_v57   ;;  %v628_v3 = vadd.f32 %v1423_v58, %v436_v50  ;;  %v366_v4 = vmul.f32 %v1298_v59, %v1855_v0  ;;  %v367_v5 = vmul.f32 %v1299_v60, %v1855_v0  ;;  %v1302_v6 = vunpack.c.l.bf16 %v1700_v56 }
  0x1f   : > { %1759 = vst [vmem:[%s1889_s5 + $0x10] sm:$0xff] %v1549_v62   ;;  %v691_v9 = vmax.f32 %v627_v63, 0.0  ;;  %v1303_v10 = vunpack.c.h.bf16 %v1700_v56  ;;  %v1430_v12 = vunpack.c.l.bf16 %v1731_v61  ;;  %v1431_v13 = vunpack.c.h.bf16 %v1731_v61  ;;  %v1735_v63 = vld [vmem:[%s1850_s24 + $0x48] sm:$0xff]  }
  0x20   : > { %v692_v14 = vmax.f32 %v628_v3, 0.0  ;;  %v437_v15 = vadd.f32 %v1866_v11, %v366_v4  ;;  %v438_v16 = vadd.f32 %v1866_v11, %v367_v5  ;;  %v368_v17 = vmul.f32 %v1302_v6, %v1855_v0  ;;  %v1705_v5 = vld [vmem:[%s1844_s21 + $0x50] sm:$0xff]  }
  0x21   : > { %v369_v18 = vmul.f32 %v1303_v10, %v1855_v0  ;;  %v1306_v19 = vunpack.c.l.bf16 %v1701_v7  ;;  %v1307_v20 = vunpack.c.h.bf16 %v1701_v7  ;;  %v1434_v21 = vunpack.c.l.bf16 %v1732_v8  ;;  %v1736_v10 = vld [vmem:[%s1850_s24 + $0x50] sm:$0xff]  }
  0x22   : > { %v1554_v23 = vpack.c.bf16 %v692_v14, %v691_v9  ;;  %v629_v24 = vadd.f32 %v1426_v1, %v437_v15  ;;  %v630_v25 = vadd.f32 %v1427_v2, %v438_v16  ;;  %v439_v26 = vadd.f32 %v1866_v11, %v368_v17 }
  0x23   : > { %v440_v27 = vadd.f32 %v1866_v11, %v369_v18  ;;  %v370_v28 = vmul.f32 %v1306_v19, %v1855_v0  ;;  %v371_v29 = vmul.f32 %v1307_v20, %v1855_v0  ;;  %v1435_v30 = vunpack.c.h.bf16 %v1732_v8  ;;  %v1706_v20 = vld [vmem:[%s1844_s21 + $0x58] sm:$0xff]  }
  0x24   : > { %1760 = vst [vmem:[%s1889_s5 + $0x18] sm:$0xff] %v1554_v23   ;;  %v693_v32 = vmax.f32 %v629_v24, 0.0  ;;  %v694_v33 = vmax.f32 %v630_v25, 0.0  ;;  %v631_v34 = vadd.f32 %v1430_v12, %v439_v26  ;;  %v1310_v35 = vunpack.c.l.bf16 %v1702_v22 }
  0x25   : > { %v632_v36 = vadd.f32 %v1431_v13, %v440_v27  ;;  %v441_v37 = vadd.f32 %v1866_v11, %v370_v28  ;;  %v442_v38 = vadd.f32 %v1866_v11, %v371_v29  ;;  %v1311_v39 = vunpack.c.h.bf16 %v1702_v22  ;;  %v1737_v29 = vld [vmem:[%s1850_s24 + $0x58] sm:$0xff]  }
  0x26   : > { %v1559_v41 = vpack.c.bf16 %v694_v33, %v693_v32  ;;  %v695_v42 = vmax.f32 %v631_v34, 0.0  ;;  %v372_v43 = vmul.f32 %v1310_v35, %v1855_v0  ;;  %v1438_v44 = vunpack.c.l.bf16 %v1733_v31 }
  0x27   : > { %v696_v45 = vmax.f32 %v632_v36, 0.0  ;;  %v633_v46 = vadd.f32 %v1434_v21, %v441_v37  ;;  %v634_v47 = vadd.f32 %v1435_v30, %v442_v38  ;;  %v373_v48 = vmul.f32 %v1311_v39, %v1855_v0  ;;  %v1707_v38 = vld [vmem:[%s1844_s21 + $0x60] sm:$0xff]  }
  0x28   : > { %1761 = vst [vmem:[%s1889_s5 + $0x20] sm:$0xff] %v1559_v41   ;;  %v443_v50 = vadd.f32 %v1866_v11, %v372_v43  ;;  %v1439_v51 = vunpack.c.h.bf16 %v1733_v31  ;;  %v1314_v52 = vunpack.c.l.bf16 %v1703_v40  ;;  %v1315_v53 = vunpack.c.h.bf16 %v1703_v40  ;;  %v1738_v43 = vld [vmem:[%s1850_s24 + $0x60] sm:$0xff]  }
  0x29   : > { %v1564_v55 = vpack.c.bf16 %v696_v45, %v695_v42  ;;  %v697_v56 = vmax.f32 %v633_v46, 0.0  ;;  %v698_v57 = vmax.f32 %v634_v47, 0.0  ;;  %v444_v58 = vadd.f32 %v1866_v11, %v373_v48 }
  0x2a   : > { %v635_v59 = vadd.f32 %v1438_v44, %v443_v50  ;;  %v374_v60 = vmul.f32 %v1314_v52, %v1855_v0  ;;  %v375_v61 = vmul.f32 %v1315_v53, %v1855_v0  ;;  %v1442_v62 = vunpack.c.l.bf16 %v1734_v49  ;;  %v1708_v52 = vld [vmem:[%s1844_s21 + $0x68] sm:$0xff]  }
  0x2b   : > { %1762 = vst [vmem:[%s1889_s5 + $0x28] sm:$0xff] %v1564_v55   ;;  %v1569_v1 = vpack.c.bf16 %v698_v57, %v697_v56  ;;  %v636_v2 = vadd.f32 %v1439_v51, %v444_v58  ;;  %v1443_v3 = vunpack.c.h.bf16 %v1734_v49  ;;  %v1318_v4 = vunpack.c.l.bf16 %v1704_v54 }
  0x2c   : > { %v699_v6 = vmax.f32 %v635_v59, 0.0  ;;  %v445_v7 = vadd.f32 %v1866_v11, %v374_v60  ;;  %v446_v8 = vadd.f32 %v1866_v11, %v375_v61  ;;  %v1319_v9 = vunpack.c.h.bf16 %v1704_v54  ;;  %v1739_v61 = vld [vmem:[%s1850_s24 + $0x68] sm:$0xff]  }
  0x2d   : > { %1763 = vst [vmem:[%s1889_s5 + $0x30] sm:$0xff] %v1569_v1   ;;  %v700_v12 = vmax.f32 %v636_v2, 0.0  ;;  %v376_v13 = vmul.f32 %v1318_v4, %v1855_v0  ;;  %v1446_v14 = vunpack.c.l.bf16 %v1735_v63  ;;  %v1447_v15 = vunpack.c.h.bf16 %v1735_v63 }
  0x2e   : > { %v637_v16 = vadd.f32 %v1442_v62, %v445_v7  ;;  %v638_v17 = vadd.f32 %v1443_v3, %v446_v8  ;;  %v377_v18 = vmul.f32 %v1319_v9, %v1855_v0  ;;  %v1322_v19 = vunpack.c.l.bf16 %v1705_v5  ;;  %v1709_v3 = vld [vmem:[%s1844_s21 + $0x70] sm:$0xff]  }
  0x2f   : > { %v1574_v21 = vpack.c.bf16 %v700_v12, %v699_v6  ;;  %v447_v22 = vadd.f32 %v1866_v11, %v376_v13  ;;  %v1323_v23 = vunpack.c.h.bf16 %v1705_v5  ;;  %v1450_v24 = vunpack.c.l.bf16 %v1736_v10  ;;  %v1740_v13 = vld [vmem:[%s1850_s24 + $0x70] sm:$0xff]  }
  0x30   : > { %v701_v25 = vmax.f32 %v637_v16, 0.0  ;;  %v702_v26 = vmax.f32 %v638_v17, 0.0  ;;  %v448_v27 = vadd.f32 %v1866_v11, %v377_v18  ;;  %v378_v28 = vmul.f32 %v1322_v19, %v1855_v0 }
  0x31   : > { %1764 = vst [vmem:[%s1889_s5 + $0x38] sm:$0xff] %v1574_v21   ;;  %v639_v30 = vadd.f32 %v1446_v14, %v447_v22  ;;  %v379_v31 = vmul.f32 %v1323_v23, %v1855_v0  ;;  %v1451_v32 = vunpack.c.h.bf16 %v1736_v10  ;;  %v1326_v33 = vunpack.c.l.bf16 %v1706_v20  ;;  %v1710_v22 = vld [vmem:[%s1844_s21 + $0x78] sm:$0xff]  }
  0x32   : > { %v1579_v34 = vpack.c.bf16 %v702_v26, %v701_v25  ;;  %v640_v35 = vadd.f32 %v1447_v15, %v448_v27  ;;  %v449_v36 = vadd.f32 %v1866_v11, %v378_v28  ;;  %v1327_v37 = vunpack.c.h.bf16 %v1706_v20  ;;  %v1741_v27 = vld [vmem:[%s1850_s24 + $0x78] sm:$0xff]  }
  0x33   : > { %v703_v39 = vmax.f32 %v639_v30, 0.0  ;;  %v450_v40 = vadd.f32 %v1866_v11, %v379_v31  ;;  %v380_v41 = vmul.f32 %v1326_v33, %v1855_v0  ;;  %v1454_v42 = vunpack.c.l.bf16 %v1737_v29 }
  0x34   : > { %1765 = vst [vmem:[%s1889_s5 + $0x40] sm:$0xff] %v1579_v34   ;;  %v704_v44 = vmax.f32 %v640_v35, 0.0  ;;  %v641_v45 = vadd.f32 %v1450_v24, %v449_v36  ;;  %v381_v46 = vmul.f32 %v1327_v37, %v1855_v0  ;;  %v1455_v47 = vunpack.c.h.bf16 %v1737_v29  ;;  %v1711_v36 = vld [vmem:[%s1844_s21 + $0x80] sm:$0xff]  }
  0x35   : > { %v642_v48 = vadd.f32 %v1451_v32, %v450_v40  ;;  %v451_v49 = vadd.f32 %v1866_v11, %v380_v41  ;;  %v1330_v50 = vunpack.c.l.bf16 %v1707_v38  ;;  %v1331_v51 = vunpack.c.h.bf16 %v1707_v38  ;;  %v1742_v41 = vld [vmem:[%s1850_s24 + $0x80] sm:$0xff]  }
  0x36   : > { %v1584_v53 = vpack.c.bf16 %v704_v44, %v703_v39  ;;  %v705_v54 = vmax.f32 %v641_v45, 0.0  ;;  %v452_v55 = vadd.f32 %v1866_v11, %v381_v46  ;;  %v1458_v56 = vunpack.c.l.bf16 %v1738_v43 }
  0x37   : > { %v706_v57 = vmax.f32 %v642_v48, 0.0  ;;  %v643_v58 = vadd.f32 %v1454_v42, %v451_v49  ;;  %v382_v59 = vmul.f32 %v1330_v50, %v1855_v0  ;;  %v383_v60 = vmul.f32 %v1331_v51, %v1855_v0  ;;  %v1712_v50 = vld [vmem:[%s1844_s21 + $0x88] sm:$0xff]  }
  0x38   : > { %1766 = vst [vmem:[%s1889_s5 + $0x48] sm:$0xff] %v1584_v53   ;;  %v644_v62 = vadd.f32 %v1455_v47, %v452_v55  ;;  %v1459_v63 = vunpack.c.h.bf16 %v1738_v43  ;;  %v1334_v1 = vunpack.c.l.bf16 %v1708_v52  ;;  %v1335_v2 = vunpack.c.h.bf16 %v1708_v52  ;;  %v1743_v55 = vld [vmem:[%s1850_s24 + $0x88] sm:$0xff]  }
  0x39   : > { %v1589_v4 = vpack.c.bf16 %v706_v57, %v705_v54  ;;  %v707_v5 = vmax.f32 %v643_v58, 0.0  ;;  %v453_v6 = vadd.f32 %v1866_v11, %v382_v59  ;;  %v454_v7 = vadd.f32 %v1866_v11, %v383_v60 }
  0x3a   : > { %v708_v8 = vmax.f32 %v644_v62, 0.0  ;;  %v384_v9 = vmul.f32 %v1334_v1, %v1855_v0  ;;  %v385_v10 = vmul.f32 %v1335_v2, %v1855_v0  ;;  %v1462_v12 = vunpack.c.l.bf16 %v1739_v61  ;;  %v1713_v1 = vld [vmem:[%s1844_s21 + $0x90] sm:$0xff]  }
  0x3b   : > { %1767 = vst [vmem:[%s1889_s5 + $0x50] sm:$0xff] %v1589_v4   ;;  %v645_v14 = vadd.f32 %v1458_v56, %v453_v6  ;;  %v646_v15 = vadd.f32 %v1459_v63, %v454_v7  ;;  %v1463_v16 = vunpack.c.h.bf16 %v1739_v61  ;;  %v1338_v17 = vunpack.c.l.bf16 %v1709_v3 }
  0x3c   : > { %v1594_v18 = vpack.c.bf16 %v708_v8, %v707_v5  ;;  %v455_v19 = vadd.f32 %v1866_v11, %v384_v9  ;;  %v456_v20 = vadd.f32 %v1866_v11, %v385_v10  ;;  %v1339_v21 = vunpack.c.h.bf16 %v1709_v3  ;;  %v1744_v10 = vld [vmem:[%s1850_s24 + $0x90] sm:$0xff]  }
  0x3d   : > { %v709_v23 = vmax.f32 %v645_v14, 0.0  ;;  %v710_v24 = vmax.f32 %v646_v15, 0.0  ;;  %v386_v25 = vmul.f32 %v1338_v17, %v1855_v0  ;;  %v1466_v26 = vunpack.c.l.bf16 %v1740_v13 }
  0x3e   : > { %1768 = vst [vmem:[%s1889_s5 + $0x58] sm:$0xff] %v1594_v18   ;;  %v647_v28 = vadd.f32 %v1462_v12, %v455_v19  ;;  %v648_v29 = vadd.f32 %v1463_v16, %v456_v20  ;;  %v387_v30 = vmul.f32 %v1339_v21, %v1855_v0  ;;  %v1467_v31 = vunpack.c.h.bf16 %v1740_v13  ;;  %v1714_v20 = vld [vmem:[%s1844_s21 + $0x98] sm:$0xff]  }
  0x3f   : > { %v1599_v32 = vpack.c.bf16 %v710_v24, %v709_v23  ;;  %v457_v33 = vadd.f32 %v1866_v11, %v386_v25  ;;  %v1342_v34 = vunpack.c.l.bf16 %v1710_v22  ;;  %v1343_v35 = vunpack.c.h.bf16 %v1710_v22  ;;  %v1745_v25 = vld [vmem:[%s1850_s24 + $0x98] sm:$0xff]  }
  0x40   : > { %v711_v37 = vmax.f32 %v647_v28, 0.0  ;;  %v712_v38 = vmax.f32 %v648_v29, 0.0  ;;  %v458_v39 = vadd.f32 %v1866_v11, %v387_v30  ;;  %v1470_v40 = vunpack.c.l.bf16 %v1741_v27 }
  0x41   : > { %1769 = vst [vmem:[%s1889_s5 + $0x60] sm:$0xff] %v1599_v32   ;;  %v649_v42 = vadd.f32 %v1466_v26, %v457_v33  ;;  %v388_v43 = vmul.f32 %v1342_v34, %v1855_v0  ;;  %v389_v44 = vmul.f32 %v1343_v35, %v1855_v0  ;;  %v1471_v45 = vunpack.c.h.bf16 %v1741_v27  ;;  %v1715_v34 = vld [vmem:[%s1844_s21 + $0xa0] sm:$0xff]  }
  0x42   : > { %v1604_v46 = vpack.c.bf16 %v712_v38, %v711_v37  ;;  %v650_v47 = vadd.f32 %v1467_v31, %v458_v39  ;;  %v1346_v48 = vunpack.c.l.bf16 %v1711_v36  ;;  %v1347_v49 = vunpack.c.h.bf16 %v1711_v36  ;;  %v1746_v39 = vld [vmem:[%s1850_s24 + $0xa0] sm:$0xff]  }
  0x43   : > { %v713_v51 = vmax.f32 %v649_v42, 0.0  ;;  %v459_v52 = vadd.f32 %v1866_v11, %v388_v43  ;;  %v460_v53 = vadd.f32 %v1866_v11, %v389_v44  ;;  %v1474_v54 = vunpack.c.l.bf16 %v1742_v41 }
  0x44   : > { %1770 = vst [vmem:[%s1889_s5 + $0x68] sm:$0xff] %v1604_v46   ;;  %v714_v56 = vmax.f32 %v650_v47, 0.0  ;;  %v390_v57 = vmul.f32 %v1346_v48, %v1855_v0  ;;  %v391_v58 = vmul.f32 %v1347_v49, %v1855_v0  ;;  %v1475_v59 = vunpack.c.h.bf16 %v1742_v41  ;;  %v1716_v48 = vld [vmem:[%s1844_s21 + $0xa8] sm:$0xff]  }
  0x45   : > { %v651_v60 = vadd.f32 %v1470_v40, %v459_v52  ;;  %v652_v61 = vadd.f32 %v1471_v45, %v460_v53  ;;  %v1350_v62 = vunpack.c.l.bf16 %v1712_v50  ;;  %v1351_v63 = vunpack.c.h.bf16 %v1712_v50  ;;  %v1747_v53 = vld [vmem:[%s1850_s24 + $0xa8] sm:$0xff]  }
  0x46   : > { %v1609_v2 = vpack.c.bf16 %v714_v56, %v713_v51  ;;  %v461_v3 = vadd.f32 %v1866_v11, %v390_v57  ;;  %v462_v4 = vadd.f32 %v1866_v11, %v391_v58  ;;  %v1478_v5 = vunpack.c.l.bf16 %v1743_v55 }
  0x47   : > { %v715_v6 = vmax.f32 %v651_v60, 0.0  ;;  %v716_v7 = vmax.f32 %v652_v61, 0.0  ;;  %v392_v8 = vmul.f32 %v1350_v62, %v1855_v0  ;;  %v393_v9 = vmul.f32 %v1351_v63, %v1855_v0  ;;  %v1717_v62 = vld [vmem:[%s1844_s21 + $0xb0] sm:$0xff]  }
  0x48   : > { %1771 = vst [vmem:[%s1889_s5 + $0x70] sm:$0xff] %v1609_v2   ;;  %v653_v12 = vadd.f32 %v1474_v54, %v461_v3  ;;  %v654_v13 = vadd.f32 %v1475_v59, %v462_v4  ;;  %v1479_v14 = vunpack.c.h.bf16 %v1743_v55  ;;  %v1354_v15 = vunpack.c.l.bf16 %v1713_v1 }
  0x49   : > { %v1614_v16 = vpack.c.bf16 %v716_v7, %v715_v6  ;;  %v463_v17 = vadd.f32 %v1866_v11, %v392_v8  ;;  %v464_v18 = vadd.f32 %v1866_v11, %v393_v9  ;;  %v1355_v19 = vunpack.c.h.bf16 %v1713_v1  ;;  %v1748_v8 = vld [vmem:[%s1850_s24 + $0xb0] sm:$0xff]  }
  0x4a   : > { %v717_v21 = vmax.f32 %v653_v12, 0.0  ;;  %v718_v22 = vmax.f32 %v654_v13, 0.0  ;;  %v394_v23 = vmul.f32 %v1354_v15, %v1855_v0  ;;  %v1482_v24 = vunpack.c.l.bf16 %v1744_v10 }
  0x4b   : > { %1772 = vst [vmem:[%s1889_s5 + $0x78] sm:$0xff] %v1614_v16   ;;  %v655_v26 = vadd.f32 %v1478_v5, %v463_v17  ;;  %v656_v27 = vadd.f32 %v1479_v14, %v464_v18  ;;  %v395_v28 = vmul.f32 %v1355_v19, %v1855_v0  ;;  %v1483_v29 = vunpack.c.h.bf16 %v1744_v10  ;;  %v1718_v18 = vld [vmem:[%s1844_s21 + $0xb8] sm:$0xff]  }
  0x4c   : > { %v1619_v30 = vpack.c.bf16 %v718_v22, %v717_v21  ;;  %v465_v31 = vadd.f32 %v1866_v11, %v394_v23  ;;  %v1358_v32 = vunpack.c.l.bf16 %v1714_v20  ;;  %v1359_v33 = vunpack.c.h.bf16 %v1714_v20  ;;  %v1749_v23 = vld [vmem:[%s1850_s24 + $0xb8] sm:$0xff]  }
  0x4d   : > { %v719_v35 = vmax.f32 %v655_v26, 0.0  ;;  %v720_v36 = vmax.f32 %v656_v27, 0.0  ;;  %v466_v37 = vadd.f32 %v1866_v11, %v395_v28  ;;  %v1486_v38 = vunpack.c.l.bf16 %v1745_v25 }
  0x4e   : > { %1773 = vst [vmem:[%s1889_s5 + $0x80] sm:$0xff] %v1619_v30   ;;  %v657_v40 = vadd.f32 %v1482_v24, %v465_v31  ;;  %v396_v41 = vmul.f32 %v1358_v32, %v1855_v0  ;;  %v397_v42 = vmul.f32 %v1359_v33, %v1855_v0  ;;  %v1487_v43 = vunpack.c.h.bf16 %v1745_v25  ;;  %v1719_v32 = vld [vmem:[%s1844_s21 + $0xc0] sm:$0xff]  }
  0x4f   : > { %v1624_v44 = vpack.c.bf16 %v720_v36, %v719_v35  ;;  %v658_v45 = vadd.f32 %v1483_v29, %v466_v37  ;;  %v1362_v46 = vunpack.c.l.bf16 %v1715_v34  ;;  %v1363_v47 = vunpack.c.h.bf16 %v1715_v34  ;;  %v1750_v37 = vld [vmem:[%s1850_s24 + $0xc0] sm:$0xff]  }
  0x50   : > { %v721_v49 = vmax.f32 %v657_v40, 0.0  ;;  %v467_v50 = vadd.f32 %v1866_v11, %v396_v41  ;;  %v468_v51 = vadd.f32 %v1866_v11, %v397_v42  ;;  %v1490_v52 = vunpack.c.l.bf16 %v1746_v39 }
  0x51   : > { %1774 = vst [vmem:[%s1889_s5 + $0x88] sm:$0xff] %v1624_v44   ;;  %v722_v54 = vmax.f32 %v658_v45, 0.0  ;;  %v398_v55 = vmul.f32 %v1362_v46, %v1855_v0  ;;  %v399_v56 = vmul.f32 %v1363_v47, %v1855_v0  ;;  %v1491_v57 = vunpack.c.h.bf16 %v1746_v39  ;;  %v1720_v46 = vld [vmem:[%s1844_s21 + $0xc8] sm:$0xff]  }
  0x52   : > { %v659_v58 = vadd.f32 %v1486_v38, %v467_v50  ;;  %v660_v59 = vadd.f32 %v1487_v43, %v468_v51  ;;  %v1366_v60 = vunpack.c.l.bf16 %v1716_v48  ;;  %v1367_v61 = vunpack.c.h.bf16 %v1716_v48  ;;  %v1751_v51 = vld [vmem:[%s1850_s24 + $0xc8] sm:$0xff]  }
  0x53   : > { %v1629_v63 = vpack.c.bf16 %v722_v54, %v721_v49  ;;  %v469_v1 = vadd.f32 %v1866_v11, %v398_v55  ;;  %v470_v2 = vadd.f32 %v1866_v11, %v399_v56  ;;  %v1494_v3 = vunpack.c.l.bf16 %v1747_v53 }
  0x54   : > { %v723_v4 = vmax.f32 %v659_v58, 0.0  ;;  %v724_v5 = vmax.f32 %v660_v59, 0.0  ;;  %v400_v6 = vmul.f32 %v1366_v60, %v1855_v0  ;;  %v401_v7 = vmul.f32 %v1367_v61, %v1855_v0  ;;  %v1721_v60 = vld [vmem:[%s1844_s21 + $0xd0] sm:$0xff]  }
  0x55   : > { %1775 = vst [vmem:[%s1889_s5 + $0x90] sm:$0xff] %v1629_v63   ;;  %v661_v9 = vadd.f32 %v1490_v52, %v469_v1  ;;  %v662_v10 = vadd.f32 %v1491_v57, %v470_v2  ;;  %v1495_v12 = vunpack.c.h.bf16 %v1747_v53  ;;  %v1370_v13 = vunpack.c.l.bf16 %v1717_v62 }
  0x56   : > { %v1634_v14 = vpack.c.bf16 %v724_v5, %v723_v4  ;;  %v471_v15 = vadd.f32 %v1866_v11, %v400_v6  ;;  %v472_v16 = vadd.f32 %v1866_v11, %v401_v7  ;;  %v1371_v17 = vunpack.c.h.bf16 %v1717_v62  ;;  %v1752_v6 = vld [vmem:[%s1850_s24 + $0xd0] sm:$0xff]  }
  0x57   : > { %v725_v19 = vmax.f32 %v661_v9, 0.0  ;;  %v726_v20 = vmax.f32 %v662_v10, 0.0  ;;  %v402_v21 = vmul.f32 %v1370_v13, %v1855_v0  ;;  %v1498_v22 = vunpack.c.l.bf16 %v1748_v8 }
  0x58   : > { %1776 = vst [vmem:[%s1889_s5 + $0x98] sm:$0xff] %v1634_v14   ;;  %v663_v24 = vadd.f32 %v1494_v3, %v471_v15  ;;  %v664_v25 = vadd.f32 %v1495_v12, %v472_v16  ;;  %v403_v26 = vmul.f32 %v1371_v17, %v1855_v0  ;;  %v1499_v27 = vunpack.c.h.bf16 %v1748_v8  ;;  %v1722_v16 = vld [vmem:[%s1844_s21 + $0xd8] sm:$0xff]  }
  0x59   : > { %v1639_v28 = vpack.c.bf16 %v726_v20, %v725_v19  ;;  %v473_v29 = vadd.f32 %v1866_v11, %v402_v21  ;;  %v1374_v30 = vunpack.c.l.bf16 %v1718_v18  ;;  %v1375_v31 = vunpack.c.h.bf16 %v1718_v18  ;;  %v1753_v21 = vld [vmem:[%s1850_s24 + $0xd8] sm:$0xff]  }
  0x5a   : > { %v727_v33 = vmax.f32 %v663_v24, 0.0  ;;  %v728_v34 = vmax.f32 %v664_v25, 0.0  ;;  %v474_v35 = vadd.f32 %v1866_v11, %v403_v26  ;;  %v1502_v36 = vunpack.c.l.bf16 %v1749_v23 }
  0x5b   : > { %1777 = vst [vmem:[%s1889_s5 + $0xa0] sm:$0xff] %v1639_v28   ;;  %v665_v38 = vadd.f32 %v1498_v22, %v473_v29  ;;  %v404_v39 = vmul.f32 %v1374_v30, %v1855_v0  ;;  %v405_v40 = vmul.f32 %v1375_v31, %v1855_v0  ;;  %v1503_v41 = vunpack.c.h.bf16 %v1749_v23  ;;  %v1723_v30 = vld [vmem:[%s1844_s21 + $0xe0] sm:$0xff]  }
  0x5c   : > { %v1644_v42 = vpack.c.bf16 %v728_v34, %v727_v33  ;;  %v666_v43 = vadd.f32 %v1499_v27, %v474_v35  ;;  %v1378_v44 = vunpack.c.l.bf16 %v1719_v32  ;;  %v1379_v45 = vunpack.c.h.bf16 %v1719_v32  ;;  %v1754_v35 = vld [vmem:[%s1850_s24 + $0xe0] sm:$0xff]  }
  0x5d   : > { %v729_v47 = vmax.f32 %v665_v38, 0.0  ;;  %v475_v48 = vadd.f32 %v1866_v11, %v404_v39  ;;  %v476_v49 = vadd.f32 %v1866_v11, %v405_v40  ;;  %v1506_v50 = vunpack.c.l.bf16 %v1750_v37 }
  0x5e   : > { %1778 = vst [vmem:[%s1889_s5 + $0xa8] sm:$0xff] %v1644_v42   ;;  %v730_v52 = vmax.f32 %v666_v43, 0.0  ;;  %v406_v53 = vmul.f32 %v1378_v44, %v1855_v0  ;;  %v407_v54 = vmul.f32 %v1379_v45, %v1855_v0  ;;  %v1507_v55 = vunpack.c.h.bf16 %v1750_v37  ;;  %v1724_v44 = vld [vmem:[%s1844_s21 + $0xe8] sm:$0xff]  }
  0x5f   : > { %v667_v56 = vadd.f32 %v1502_v36, %v475_v48  ;;  %v668_v57 = vadd.f32 %v1503_v41, %v476_v49  ;;  %v1382_v58 = vunpack.c.l.bf16 %v1720_v46  ;;  %v1383_v59 = vunpack.c.h.bf16 %v1720_v46  ;;  %v1755_v49 = vld [vmem:[%s1850_s24 + $0xe8] sm:$0xff]  }
  0x60   : > { %v1649_v61 = vpack.c.bf16 %v730_v52, %v729_v47  ;;  %v477_v62 = vadd.f32 %v1866_v11, %v406_v53  ;;  %v478_v63 = vadd.f32 %v1866_v11, %v407_v54  ;;  %v1510_v1 = vunpack.c.l.bf16 %v1751_v51 }
  0x61   : > { %v731_v2 = vmax.f32 %v667_v56, 0.0  ;;  %v732_v3 = vmax.f32 %v668_v57, 0.0  ;;  %v408_v4 = vmul.f32 %v1382_v58, %v1855_v0  ;;  %v409_v5 = vmul.f32 %v1383_v59, %v1855_v0  ;;  %v1725_v58 = vld [vmem:[%s1844_s21 + $0xf0] sm:$0xff]  }
  0x62   : > { %1779 = vst [vmem:[%s1889_s5 + $0xb0] sm:$0xff] %v1649_v61   ;;  %v669_v7 = vadd.f32 %v1506_v50, %v477_v62  ;;  %v670_v8 = vadd.f32 %v1507_v55, %v478_v63  ;;  %v1511_v9 = vunpack.c.h.bf16 %v1751_v51  ;;  %v1386_v10 = vunpack.c.l.bf16 %v1721_v60 }
  0x63   : > { %v1654_v12 = vpack.c.bf16 %v732_v3, %v731_v2  ;;  %v479_v13 = vadd.f32 %v1866_v11, %v408_v4  ;;  %v480_v14 = vadd.f32 %v1866_v11, %v409_v5  ;;  %v1387_v15 = vunpack.c.h.bf16 %v1721_v60  ;;  %v1756_v4 = vld [vmem:[%s1850_s24 + $0xf0] sm:$0xff]  }
  0x64   : > { %v733_v17 = vmax.f32 %v669_v7, 0.0  ;;  %v734_v18 = vmax.f32 %v670_v8, 0.0  ;;  %v410_v19 = vmul.f32 %v1386_v10, %v1855_v0  ;;  %v1514_v20 = vunpack.c.l.bf16 %v1752_v6 }
  0x65   : > { %1780 = vst [vmem:[%s1889_s5 + $0xb8] sm:$0xff] %v1654_v12   ;;  %v671_v22 = vadd.f32 %v1510_v1, %v479_v13  ;;  %v672_v23 = vadd.f32 %v1511_v9, %v480_v14  ;;  %v411_v24 = vmul.f32 %v1387_v15, %v1855_v0  ;;  %v1515_v25 = vunpack.c.h.bf16 %v1752_v6  ;;  %v1726_v14 = vld [vmem:[%s1844_s21 + $0xf8] sm:$0xff]  }
  0x66   : > { %v1659_v26 = vpack.c.bf16 %v734_v18, %v733_v17  ;;  %v481_v27 = vadd.f32 %v1866_v11, %v410_v19  ;;  %v1390_v28 = vunpack.c.l.bf16 %v1722_v16  ;;  %v1391_v29 = vunpack.c.h.bf16 %v1722_v16  ;;  %v1757_v19 = vld [vmem:[%s1850_s24 + $0xf8] sm:$0xff]  }
  0x67   : > { %v735_v31 = vmax.f32 %v671_v22, 0.0  ;;  %v736_v32 = vmax.f32 %v672_v23, 0.0  ;;  %v482_v33 = vadd.f32 %v1866_v11, %v411_v24  ;;  %v1518_v34 = vunpack.c.l.bf16 %v1753_v21 }
  0x68   : > { %1781 = vst [vmem:[%s1889_s5 + $0xc0] sm:$0xff] %v1659_v26   ;;  %v673_v36 = vadd.f32 %v1514_v20, %v481_v27  ;;  %v412_v37 = vmul.f32 %v1390_v28, %v1855_v0  ;;  %v413_v38 = vmul.f32 %v1391_v29, %v1855_v0  ;;  %v1519_v39 = vunpack.c.h.bf16 %v1753_v21 }
  0x69   : > { %v1664_v40 = vpack.c.bf16 %v736_v32, %v735_v31  ;;  %v674_v41 = vadd.f32 %v1515_v25, %v482_v33  ;;  %v1394_v42 = vunpack.c.l.bf16 %v1723_v30  ;;  %v1395_v43 = vunpack.c.h.bf16 %v1723_v30 }
  0x6a   : > { %v737_v45 = vmax.f32 %v673_v36, 0.0  ;;  %v483_v46 = vadd.f32 %v1866_v11, %v412_v37  ;;  %v484_v47 = vadd.f32 %v1866_v11, %v413_v38  ;;  %v1522_v48 = vunpack.c.l.bf16 %v1754_v35 }
  0x6b   : > { %1782 = vst [vmem:[%s1889_s5 + $0xc8] sm:$0xff] %v1664_v40   ;;  %v738_v50 = vmax.f32 %v674_v41, 0.0  ;;  %v414_v51 = vmul.f32 %v1394_v42, %v1855_v0  ;;  %v415_v52 = vmul.f32 %v1395_v43, %v1855_v0  ;;  %v1523_v53 = vunpack.c.h.bf16 %v1754_v35 }
  0x6c   : > { %v675_v54 = vadd.f32 %v1518_v34, %v483_v46  ;;  %v676_v55 = vadd.f32 %v1519_v39, %v484_v47  ;;  %v1398_v56 = vunpack.c.l.bf16 %v1724_v44  ;;  %v1399_v57 = vunpack.c.h.bf16 %v1724_v44 }
  0x6d   : > { %v1669_v59 = vpack.c.bf16 %v738_v50, %v737_v45  ;;  %v485_v60 = vadd.f32 %v1866_v11, %v414_v51  ;;  %v486_v61 = vadd.f32 %v1866_v11, %v415_v52  ;;  %v1526_v62 = vunpack.c.l.bf16 %v1755_v49 }
  0x6e   : > { %v739_v63 = vmax.f32 %v675_v54, 0.0  ;;  %v740_v1 = vmax.f32 %v676_v55, 0.0  ;;  %v416_v2 = vmul.f32 %v1398_v56, %v1855_v0  ;;  %v417_v3 = vmul.f32 %v1399_v57, %v1855_v0 }
  0x6f   : > { %1783 = vst [vmem:[%s1889_s5 + $0xd0] sm:$0xff] %v1669_v59   ;;  %v677_v5 = vadd.f32 %v1522_v48, %v485_v60  ;;  %v678_v6 = vadd.f32 %v1523_v53, %v486_v61  ;;  %v1527_v7 = vunpack.c.h.bf16 %v1755_v49  ;;  %v1402_v8 = vunpack.c.l.bf16 %v1725_v58 }
  0x70   : > { %v1674_v9 = vpack.c.bf16 %v740_v1, %v739_v63  ;;  %v487_v10 = vadd.f32 %v1866_v11, %v416_v2  ;;  %v488_v12 = vadd.f32 %v1866_v11, %v417_v3  ;;  %v1403_v13 = vunpack.c.h.bf16 %v1725_v58 }
  0x71   : > { %v741_v15 = vmax.f32 %v677_v5, 0.0  ;;  %v742_v16 = vmax.f32 %v678_v6, 0.0  ;;  %v418_v17 = vmul.f32 %v1402_v8, %v1855_v0  ;;  %v1530_v18 = vunpack.c.l.bf16 %v1756_v4 }
  0x72   : > { %1784 = vst [vmem:[%s1889_s5 + $0xd8] sm:$0xff] %v1674_v9   ;;  %v679_v20 = vadd.f32 %v1526_v62, %v487_v10  ;;  %v680_v21 = vadd.f32 %v1527_v7, %v488_v12  ;;  %v419_v22 = vmul.f32 %v1403_v13, %v1855_v0  ;;  %v1531_v23 = vunpack.c.h.bf16 %v1756_v4 }
  0x73   : > { %v1679_v24 = vpack.c.bf16 %v742_v16, %v741_v15  ;;  %v489_v25 = vadd.f32 %v1866_v11, %v418_v17  ;;  %v1406_v26 = vunpack.c.l.bf16 %v1726_v14  ;;  %v1407_v27 = vunpack.c.h.bf16 %v1726_v14 }
  0x74   : > { %v743_v28 = vmax.f32 %v679_v20, 0.0  ;;  %v744_v29 = vmax.f32 %v680_v21, 0.0  ;;  %v490_v30 = vadd.f32 %v1866_v11, %v419_v22  ;;  %v1534_v31 = vunpack.c.l.bf16 %v1757_v19 }
  0x75   : > { %1785 = vst [vmem:[%s1889_s5 + $0xe0] sm:$0xff] %v1679_v24   ;;  %v681_v32 = vadd.f32 %v1530_v18, %v489_v25  ;;  %v420_v33 = vmul.f32 %v1406_v26, %v1855_v0  ;;  %v421_v34 = vmul.f32 %v1407_v27, %v1855_v0  ;;  %v1535_v35 = vunpack.c.h.bf16 %v1757_v19 }
  0x76   : > { %v1684_v36 = vpack.c.bf16 %v744_v29, %v743_v28  ;;  %v682_v37 = vadd.f32 %v1531_v23, %v490_v30 }
  0x77   : > { %v745_v38 = vmax.f32 %v681_v32, 0.0  ;;  %v491_v39 = vadd.f32 %v1866_v11, %v420_v33  ;;  %v492_v40 = vadd.f32 %v1866_v11, %v421_v34 }
  0x78   : > { %1786 = vst [vmem:[%s1889_s5 + $0xe8] sm:$0xff] %v1684_v36   ;;  %v746_v41 = vmax.f32 %v682_v37, 0.0 }
  0x79   : > { %v683_v42 = vadd.f32 %v1534_v31, %v491_v39  ;;  %v684_v43 = vadd.f32 %v1535_v35, %v492_v40 }
  0x7a   : > { %v1689_v44 = vpack.c.bf16 %v746_v41, %v745_v38 }
  0x7b   : > { %v747_v45 = vmax.f32 %v683_v42, 0.0  ;;  %v748_v46 = vmax.f32 %v684_v43, 0.0 }
  0x7c   : > { %1787 = vst [vmem:[%s1889_s5 + $0xf0] sm:$0xff] %v1689_v44  }
  0x7d   : > { %v1694_v47 = vpack.c.bf16 %v748_v46, %v747_v45 }
  0x7f   : > { %1788 = vst [vmem:[%s1889_s5 + $0xf8] sm:$0xff] %v1694_v47  }
  0x80 PF: > { %s14_s15 = sadd.s32 1, %s1803_s15  }
  0x81   : > { %p11_p4 = scmp.ge.s32.totalorder %s14_s15, 4  }
  0x83   :  { %13 = sbr.rel (!%p11_p4) target bundleno = 1 (0x1), region = 69 }

</bundles_post_ra>
